<compile_context>
chip_gen: v6e
topology: v6e:2x2x1
jax: 0.10.0
libtpu: 0.0.40
codegen_flags: <defaults>
</compile_context>

<pallas_src>
import math
import functools

import jax
import jax.numpy as jnp
from jax import lax
from jax.experimental import pallas as pl
from jax.experimental.pallas import tpu as pltpu


def _mha_kernel(q_ref, k_ref,
                wq_ref, bq_ref, wk_ref, bk_ref, wv_ref, bv_ref,
                wo_ref, bo_ref, bias_ref, out_ref,
                *, num_heads, head_dims, compute_dtype, approx_recip):
    scale = jnp.float32(1.0 / math.sqrt(head_dims))

    # (rows, E) activation slabs, already in compute_dtype (cast in wrapper).
    xq = q_ref[...]
    xk = k_ref[...]

    # Linear projections: compute_dtype into the MXU, f32 accumulation + bias.
    Q = jnp.dot(xq, wq_ref[...], preferred_element_type=jnp.float32) + bq_ref[...]
    K = jnp.dot(xk, wk_ref[...], preferred_element_type=jnp.float32) + bk_ref[...]
    Kc = K.astype(compute_dtype)
    # Reproduced module quirk: W_values is applied to the projected keys.
    V = jnp.dot(Kc, wv_ref[...], preferred_element_type=jnp.float32) + bv_ref[...]

    Qc = Q.astype(compute_dtype)
    Vc = V.astype(compute_dtype)
    bias = bias_ref[...]                    # (rows, rows) block-diag additive bias

    # Per-head attention over the whole row slab (all Bt batch elements at
    # once).  Cross-batch score entries are killed exactly by the -1e9 bias
    # (exp underflows to 0), so results match per-batch attention bit-for-bit
    # at f32.  Heads use static lane slices; H is small so a static unroll is
    # cheap.  TODO(synk): for large H use lax.fori_loop over heads instead.
    o_heads = []
    for h in range(num_heads):
        c0 = h * head_dims
        qh = Qc[:, c0:c0 + head_dims]       # (rows, Hd)
        kh = Kc[:, c0:c0 + head_dims]       # (rows, Hd)
        vh = Vc[:, c0:c0 + head_dims]       # (rows, Hd)

        # q @ k^T with no materialized transpose (contract dim 1 of both).
        s = lax.dot_general(qh, kh, (((1,), (1,)), ((), ())),
                            preferred_element_type=jnp.float32)
        s = s * scale + bias                # (rows, rows): lane-dense softmax
        s = s - jnp.max(s, axis=-1, keepdims=True)
        p = jnp.exp(s)
        p = p * pl.reciprocal(jnp.sum(p, axis=-1, keepdims=True),
                              approx=approx_recip)

        o_heads.append(jnp.dot(p.astype(compute_dtype), vh,
                               preferred_element_type=jnp.float32))

    # Head-merge fused into ONE K=E output projection (not H thin K=Hd matmuls).
    attn = jnp.concatenate(o_heads, axis=-1).astype(compute_dtype)   # (rows, E)
    out = jnp.dot(attn, wo_ref[...], preferred_element_type=jnp.float32) + bo_ref[...]

    # Single full-tile, lane-dense store.
    out_ref[...] = out.astype(out_ref.dtype)


def _pick_batch_tile(B, S, *, target_rows=256, min_grid_steps=2):
    """Largest divisor of B whose row slab fits `target_rows`, while keeping
    >= min_grid_steps grid steps (feeds both v7x TensorCores) when possible."""
    divisors = [d for d in range(1, B + 1) if B % d == 0]
    fitting = [d for d in divisors if d * S <= target_rows] or [1]
    bt = max(fitting)
    if B // bt < min_grid_steps:
        smaller = [d for d in divisors if B // d >= min_grid_steps]
        if smaller:
            bt = max(smaller)
    return bt


def _default_vmem_limit_bytes():
    """Per-generation scoped-VMEM budget (review item)."""
    try:
        kind = jax.devices()[0].device_kind.lower()
    except Exception:  # pragma: no cover
        return None
    if "v7" in kind:
        return 48 * 1024 * 1024       # 64 MiB physical per TC; leave headroom
    if "v5 lite" in kind or "v5e" in kind or "v6" in kind:
        return 96 * 1024 * 1024       # 128 MiB physical VMEM
    return None                        # other generations: compiler default


def multi_head_attention(queries, keys, values, params, mask, num_heads, *,
                         batch_tile=None, compute_dtype=jnp.bfloat16,
                         approx_recip=True, target_rows=256):
    """Pallas MHA. `values` is accepted but unused (matches the PyTorch module's
    forward, where values = W_values(W_keys(keys)))."""
    del values  # unused by design, see quirk note above
    B, S, E = queries.shape
    H = num_heads
    Hd = E // H
    assert H * Hd == E, "num_heads must be a divisor of embedding_dims"

    if batch_tile is None:
        batch_tile = _pick_batch_tile(B, S, target_rows=target_rows)
    assert B % batch_tile == 0
    Bt = batch_tile
    if (Bt * S) % 8 != 0:
        Bt = B  # full-array block sidesteps the (8,128) sublane constraint
    rows = Bt * S

    wq, bq, wk, bk, wv, bv, wo, bo = params

    # Fold batch into the sublane axis and cast activations ONCE here:
    # halves HBM->VMEM DMA bytes on the bf16 path.
    q2 = queries.reshape(B * S, E).astype(compute_dtype)
    k2 = keys.reshape(B * S, E).astype(compute_dtype)

    # Block-diagonal additive mask bias, built ONCE: diagonal (same-batch)
    # blocks carry the module's mask (0 keep / -1e9 mask), off-diagonal
    # (cross-batch) entries are -1e9 so they contribute exactly 0 after exp.
    neg = jnp.float32(-1e9)
    mask_bias = jnp.where(mask == 0, neg, jnp.float32(0.0))            # (S, S)
    same_batch = jnp.kron(jnp.eye(Bt, dtype=jnp.float32),
                          jnp.ones((S, S), jnp.float32))               # (rows, rows)
    bias_big = jnp.where(same_batch > 0, jnp.tile(mask_bias, (Bt, Bt)), neg)

    # Matmul weights cast once in the wrapper; biases stay f32 (post-accum add).
    wq_c, wk_c, wv_c, wo_c = (w.astype(compute_dtype) for w in (wq, wk, wv, wo))

    kernel = functools.partial(
        _mha_kernel, num_heads=H, head_dims=Hd,
        compute_dtype=compute_dtype, approx_recip=approx_recip)

    act_spec = pl.BlockSpec((rows, E), lambda i: (i, 0))
    out_spec = pl.BlockSpec((rows, E), lambda i: (i, 0))

    def build(single_buffer_invariants):
        def inv(shape):
            # Grid-invariant operands: drop the redundant second pipeline
            # buffer (matters for big E under v7x's 64 MiB VMEM).
            if single_buffer_invariants:
                return pl.BlockSpec(shape, lambda i: (0, 0),
                                    pipeline_mode=pl.Buffered(1))
            return pl.BlockSpec(shape, lambda i: (0, 0))

        return pl.pallas_call(
            kernel,
            out_shape=jax.ShapeDtypeStruct((B * S, E), queries.dtype),
            grid_spec=pltpu.PrefetchScalarGridSpec(
                num_scalar_prefetch=0,
                grid=(B // Bt,),
                in_specs=[
                    act_spec,             # queries  (B*S, E)
                    act_spec,             # keys     (B*S, E)
                    inv((E, E)),          # Wq  (in, out)
                    inv((1, E)),          # bq
                    inv((E, E)),          # Wk
                    inv((1, E)),          # bk
                    inv((E, E)),          # Wv
                    inv((1, E)),          # bv
                    inv((E, E)),          # Wo
                    inv((1, E)),          # bo
                    inv((rows, rows)),    # block-diagonal additive mask bias
                ],
                out_specs=out_spec,
            ),
            compiler_params=pltpu.CompilerParams(
                dimension_semantics=("parallel",),
                vmem_limit_bytes=_default_vmem_limit_bytes()),
        )

    args = (q2, k2, wq_c, bq, wk_c, bk, wv_c, bv, wo_c, bo, bias_big)
    try:
        out2 = build(True)(*args)
    except Exception:
        # TODO(synk): this jax build rejected pl.Buffered(1) single-buffering;
        # fall back to default double-buffered grid-invariant operands.
        out2 = build(False)(*args)

    return out2.reshape(B, S, E)


def _reference(queries, keys, params, mask, num_heads):
    """Pure-JAX reference mirroring the (intended) PyTorch forward."""
    wq, bq, wk, bk, wv, bv, wo, bo = params
    B, S, E = queries.shape
    H = num_heads
    Hd = E // H
    Q = queries @ wq + bq
    K = keys @ wk + bk
    V = K @ wv + bv                      # same quirk: W_values applied to keys
    split = lambda x: x.reshape(B, S, H, Hd).transpose(0, 2, 1, 3)
    Qh, Kh, Vh = split(Q), split(K), split(V)
    scores = (Qh @ jnp.swapaxes(Kh, -2, -1)) / math.sqrt(Hd)
    scores = jnp.where(mask[None, None, :, :] == 0, -1e9, scores)
    p = jax.nn.softmax(scores, axis=-1)
    attn = (p @ Vh).transpose(0, 2, 1, 3).reshape(B, S, E)
    return attn @ wo + bo


if __name__ == "__main__":
    # Small demo shapes, chosen so one grid step is a 128-row, lane-dense slab
    # (Bt=16 -> rows=128) and the parallel grid still has 2 steps (v7x 2x TC).
    B, S, E, H = 32, 8, 128, 4

    key = jax.random.PRNGKey(0)
    ks = jax.random.split(key, 12)
    bound = 1.0 / math.sqrt(E)

    # PyTorch nn.Linear weights are (out, in); stored pre-transposed as (in, out).
    wq = jax.random.uniform(ks[0], (E, E), jnp.float32, -bound, bound)
    bq = jax.random.uniform(ks[1], (1, E), jnp.float32, -bound, bound)
    wk = jax.random.uniform(ks[2], (E, E), jnp.float32, -bound, bound)
    bk = jax.random.uniform(ks[3], (1, E), jnp.float32, -bound, bound)
    wv = jax.random.uniform(ks[4], (E, E), jnp.float32, -bound, bound)
    bv = jax.random.uniform(ks[5], (1, E), jnp.float32, -bound, bound)
    wo = jax.random.uniform(ks[6], (E, E), jnp.float32, -bound, bound)
    bo = jax.random.uniform(ks[7], (1, E), jnp.float32, -bound, bound)
    params = (wq, bq, wk, bk, wv, bv, wo, bo)

    # Causal (decoder-style) mask: 1 = attend, 0 = masked.
    mask = jnp.tril(jnp.ones((S, S), jnp.float32))

    queries = jax.random.normal(ks[8], (B, S, E), jnp.float32)
    keys_in = jax.random.normal(ks[9], (B, S, E), jnp.float32)
    values_in = jax.random.normal(ks[10], (B, S, E), jnp.float32)  # unused by design

    with jax.default_matmul_precision("float32"):
        ref = _reference(queries, keys_in, params, mask, H)
    ref = jax.block_until_ready(ref)

    # Optimized path (default): bf16 MXU inputs + approx reciprocal.
    out = multi_head_attention(queries, keys_in, values_in, params, mask, H)
    out = jax.block_until_ready(out)
    assert out.shape == (B, S, E)
    err_bf16 = float(jnp.max(jnp.abs(out - ref)))
    assert jnp.allclose(out, ref, atol=5e-2, rtol=5e-2), \
        f"bf16 path: max abs err = {err_bf16}"

    # Exact-math path (f32 MXU inputs, exact reciprocal): tighter logic check.
    out_f32 = multi_head_attention(queries, keys_in, values_in, params, mask, H,
                                   compute_dtype=jnp.float32, approx_recip=False)
    out_f32 = jax.block_until_ready(out_f32)
    err_f32 = float(jnp.max(jnp.abs(out_f32 - ref)))
    assert jnp.allclose(out_f32, ref, atol=1e-2, rtol=1e-2), \
        f"f32 path: max abs err = {err_f32}"

    print("KERNEL_OK")
</pallas_src>

<mosaic_0001>
module attributes {stable_mosaic.version = 11 : i64} {
  func.func @_mha_kernel(%arg0: i32, %arg1: memref<128x128xbf16, #tpu.memory_space<vmem>>, %arg2: memref<128x128xbf16, #tpu.memory_space<vmem>>, %arg3: memref<128x128xbf16, #tpu.memory_space<vmem>>, %arg4: memref<1x128xf32, #tpu.memory_space<vmem>>, %arg5: memref<128x128xbf16, #tpu.memory_space<vmem>>, %arg6: memref<1x128xf32, #tpu.memory_space<vmem>>, %arg7: memref<128x128xbf16, #tpu.memory_space<vmem>>, %arg8: memref<1x128xf32, #tpu.memory_space<vmem>>, %arg9: memref<128x128xbf16, #tpu.memory_space<vmem>>, %arg10: memref<1x128xf32, #tpu.memory_space<vmem>>, %arg11: memref<128x128xf32, #tpu.memory_space<vmem>>, %arg12: memref<128x128xf32, #tpu.memory_space<vmem>>) attributes {dimension_semantics = [#tpu.dimension_semantics<parallel>], iteration_bounds = array<i64: 2>, scalar_prefetch = 0 : i64, scratch_operands = 0 : i64, tpu.core_type = #tpu.core_type<tc>, window_params = [{transform_indices = @transform_0, window_bounds = array<i64: 128, 128>}, {transform_indices = @transform_1, window_bounds = array<i64: 128, 128>}, {pipeline_mode = #tpu.pipeline_mode<synchronous>, transform_indices = @transform_2, window_bounds = array<i64: 128, 128>}, {pipeline_mode = #tpu.pipeline_mode<synchronous>, transform_indices = @transform_3, window_bounds = array<i64: 1, 128>}, {pipeline_mode = #tpu.pipeline_mode<synchronous>, transform_indices = @transform_4, window_bounds = array<i64: 128, 128>}, {pipeline_mode = #tpu.pipeline_mode<synchronous>, transform_indices = @transform_5, window_bounds = array<i64: 1, 128>}, {pipeline_mode = #tpu.pipeline_mode<synchronous>, transform_indices = @transform_6, window_bounds = array<i64: 128, 128>}, {pipeline_mode = #tpu.pipeline_mode<synchronous>, transform_indices = @transform_7, window_bounds = array<i64: 1, 128>}, {pipeline_mode = #tpu.pipeline_mode<synchronous>, transform_indices = @transform_8, window_bounds = array<i64: 128, 128>}, {pipeline_mode = #tpu.pipeline_mode<synchronous>, transform_indices = @transform_9, window_bounds = array<i64: 1, 128>}, {pipeline_mode = #tpu.pipeline_mode<synchronous>, transform_indices = @transform_10, window_bounds = array<i64: 128, 128>}, {transform_indices = @transform_11, window_bounds = array<i64: 128, 128>}]} {
    %c0 = arith.constant 0 : index
    %c0_0 = arith.constant 0 : index
    %0 = vector.load %arg1[%c0, %c0_0] : memref<128x128xbf16, #tpu.memory_space<vmem>>, vector<128x128xbf16>
    %c0_1 = arith.constant 0 : index
    %c0_2 = arith.constant 0 : index
    %1 = vector.load %arg2[%c0_1, %c0_2] : memref<128x128xbf16, #tpu.memory_space<vmem>>, vector<128x128xbf16>
    %c0_3 = arith.constant 0 : index
    %c0_4 = arith.constant 0 : index
    %2 = vector.load %arg3[%c0_3, %c0_4] : memref<128x128xbf16, #tpu.memory_space<vmem>>, vector<128x128xbf16>
    %cst = arith.constant dense<0.000000e+00> : vector<128x128xf32>
    %3 = tpu.matmul %0, %2, %cst {dimension_numbers = #tpu.dot_dimension_numbers<[1], [0], [0], [1], [0, 0, 1, 1], [], []>} : vector<128x128xbf16>, vector<128x128xbf16>, vector<128x128xf32> -> vector<128x128xf32>
    %c0_5 = arith.constant 0 : index
    %c0_6 = arith.constant 0 : index
    %4 = vector.load %arg4[%c0_5, %c0_6] : memref<1x128xf32, #tpu.memory_space<vmem>>, vector<1x128xf32>
    %5 = vector.broadcast %4 : vector<1x128xf32> to vector<128x128xf32>
    %6 = arith.addf %3, %5 : vector<128x128xf32>
    %c0_7 = arith.constant 0 : index
    %c0_8 = arith.constant 0 : index
    %7 = vector.load %arg5[%c0_7, %c0_8] : memref<128x128xbf16, #tpu.memory_space<vmem>>, vector<128x128xbf16>
    %cst_9 = arith.constant dense<0.000000e+00> : vector<128x128xf32>
    %8 = tpu.matmul %1, %7, %cst_9 {dimension_numbers = #tpu.dot_dimension_numbers<[1], [0], [0], [1], [0, 0, 1, 1], [], []>} : vector<128x128xbf16>, vector<128x128xbf16>, vector<128x128xf32> -> vector<128x128xf32>
    %c0_10 = arith.constant 0 : index
    %c0_11 = arith.constant 0 : index
    %9 = vector.load %arg6[%c0_10, %c0_11] : memref<1x128xf32, #tpu.memory_space<vmem>>, vector<1x128xf32>
    %10 = vector.broadcast %9 : vector<1x128xf32> to vector<128x128xf32>
    %11 = arith.addf %8, %10 : vector<128x128xf32>
    %12 = arith.truncf %11 : vector<128x128xf32> to vector<128x128xbf16>
    %c0_12 = arith.constant 0 : index
    %c0_13 = arith.constant 0 : index
    %13 = vector.load %arg7[%c0_12, %c0_13] : memref<128x128xbf16, #tpu.memory_space<vmem>>, vector<128x128xbf16>
    %cst_14 = arith.constant dense<0.000000e+00> : vector<128x128xf32>
    %14 = tpu.matmul %12, %13, %cst_14 {dimension_numbers = #tpu.dot_dimension_numbers<[1], [0], [0], [1], [0, 0, 1, 1], [], []>} : vector<128x128xbf16>, vector<128x128xbf16>, vector<128x128xf32> -> vector<128x128xf32>
    %c0_15 = arith.constant 0 : index
    %c0_16 = arith.constant 0 : index
    %15 = vector.load %arg8[%c0_15, %c0_16] : memref<1x128xf32, #tpu.memory_space<vmem>>, vector<1x128xf32>
    %16 = vector.broadcast %15 : vector<1x128xf32> to vector<128x128xf32>
    %17 = arith.addf %14, %16 : vector<128x128xf32>
    %18 = arith.truncf %6 : vector<128x128xf32> to vector<128x128xbf16>
    %19 = arith.truncf %17 : vector<128x128xf32> to vector<128x128xbf16>
    %c0_17 = arith.constant 0 : index
    %c0_18 = arith.constant 0 : index
    %20 = vector.load %arg11[%c0_17, %c0_18] : memref<128x128xf32, #tpu.memory_space<vmem>>, vector<128x128xf32>
    %21 = vector.extract_strided_slice %18 {offsets = [0, 0], sizes = [128, 32], strides = [1, 1]} : vector<128x128xbf16> to vector<128x32xbf16>
    %22 = vector.extract_strided_slice %12 {offsets = [0, 0], sizes = [128, 32], strides = [1, 1]} : vector<128x128xbf16> to vector<128x32xbf16>
    %23 = vector.extract_strided_slice %19 {offsets = [0, 0], sizes = [128, 32], strides = [1, 1]} : vector<128x128xbf16> to vector<128x32xbf16>
    %cst_19 = arith.constant dense<0.000000e+00> : vector<128x128xf32>
    %24 = tpu.matmul %21, %22, %cst_19 {dimension_numbers = #tpu.dot_dimension_numbers<[1], [1], [0], [0], [0, 0, 1, 0], [], []>} : vector<128x32xbf16>, vector<128x32xbf16>, vector<128x128xf32> -> vector<128x128xf32>
    %cst_20 = arith.constant 0.176776692 : f32
    %25 = vector.broadcast %cst_20 : f32 to vector<128x128xf32>
    %26 = arith.mulf %24, %25 : vector<128x128xf32>
    %27 = arith.addf %26, %20 : vector<128x128xf32>
    %cst_21 = arith.constant dense<0xFF800000> : vector<128xf32>
    %28 = vector.multi_reduction <maximumf>, %27, %cst_21 [1] : vector<128x128xf32> to vector<128xf32>
    %29 = vector.shape_cast %28 : vector<128xf32> to vector<128x1xf32>
    %30 = vector.broadcast %29 : vector<128x1xf32> to vector<128x128xf32>
    %31 = arith.subf %27, %30 : vector<128x128xf32>
    %32 = math.exp %31 : vector<128x128xf32>
    %cst_22 = arith.constant dense<0.000000e+00> : vector<128xf32>
    %33 = vector.multi_reduction <add>, %32, %cst_22 [1] : vector<128x128xf32> to vector<128xf32>
    %34 = vector.shape_cast %33 : vector<128xf32> to vector<128x1xf32>
    %35 = tpu.reciprocal %34 {approx = true} : vector<128x1xf32> -> vector<128x1xf32>
    %36 = vector.broadcast %35 : vector<128x1xf32> to vector<128x128xf32>
    %37 = arith.mulf %32, %36 : vector<128x128xf32>
    %38 = arith.truncf %37 : vector<128x128xf32> to vector<128x128xbf16>
    %cst_23 = arith.constant dense<0.000000e+00> : vector<128x32xf32>
    %39 = tpu.matmul %38, %23, %cst_23 {dimension_numbers = #tpu.dot_dimension_numbers<[1], [0], [0], [1], [0, 0, 1, 1], [], []>} : vector<128x128xbf16>, vector<128x32xbf16>, vector<128x32xf32> -> vector<128x32xf32>
    %40 = vector.extract_strided_slice %18 {offsets = [0, 32], sizes = [128, 32], strides = [1, 1]} : vector<128x128xbf16> to vector<128x32xbf16>
    %41 = vector.extract_strided_slice %12 {offsets = [0, 32], sizes = [128, 32], strides = [1, 1]} : vector<128x128xbf16> to vector<128x32xbf16>
    %42 = vector.extract_strided_slice %19 {offsets = [0, 32], sizes = [128, 32], strides = [1, 1]} : vector<128x128xbf16> to vector<128x32xbf16>
    %cst_24 = arith.constant dense<0.000000e+00> : vector<128x128xf32>
    %43 = tpu.matmul %40, %41, %cst_24 {dimension_numbers = #tpu.dot_dimension_numbers<[1], [1], [0], [0], [0, 0, 1, 0], [], []>} : vector<128x32xbf16>, vector<128x32xbf16>, vector<128x128xf32> -> vector<128x128xf32>
    %cst_25 = arith.constant 0.176776692 : f32
    %44 = vector.broadcast %cst_25 : f32 to vector<128x128xf32>
    %45 = arith.mulf %43, %44 : vector<128x128xf32>
    %46 = arith.addf %45, %20 : vector<128x128xf32>
    %cst_26 = arith.constant dense<0xFF800000> : vector<128xf32>
    %47 = vector.multi_reduction <maximumf>, %46, %cst_26 [1] : vector<128x128xf32> to vector<128xf32>
    %48 = vector.shape_cast %47 : vector<128xf32> to vector<128x1xf32>
    %49 = vector.broadcast %48 : vector<128x1xf32> to vector<128x128xf32>
    %50 = arith.subf %46, %49 : vector<128x128xf32>
    %51 = math.exp %50 : vector<128x128xf32>
    %cst_27 = arith.constant dense<0.000000e+00> : vector<128xf32>
    %52 = vector.multi_reduction <add>, %51, %cst_27 [1] : vector<128x128xf32> to vector<128xf32>
    %53 = vector.shape_cast %52 : vector<128xf32> to vector<128x1xf32>
    %54 = tpu.reciprocal %53 {approx = true} : vector<128x1xf32> -> vector<128x1xf32>
    %55 = vector.broadcast %54 : vector<128x1xf32> to vector<128x128xf32>
    %56 = arith.mulf %51, %55 : vector<128x128xf32>
    %57 = arith.truncf %56 : vector<128x128xf32> to vector<128x128xbf16>
    %cst_28 = arith.constant dense<0.000000e+00> : vector<128x32xf32>
    %58 = tpu.matmul %57, %42, %cst_28 {dimension_numbers = #tpu.dot_dimension_numbers<[1], [0], [0], [1], [0, 0, 1, 1], [], []>} : vector<128x128xbf16>, vector<128x32xbf16>, vector<128x32xf32> -> vector<128x32xf32>
    %59 = vector.extract_strided_slice %18 {offsets = [0, 64], sizes = [128, 32], strides = [1, 1]} : vector<128x128xbf16> to vector<128x32xbf16>
    %60 = vector.extract_strided_slice %12 {offsets = [0, 64], sizes = [128, 32], strides = [1, 1]} : vector<128x128xbf16> to vector<128x32xbf16>
    %61 = vector.extract_strided_slice %19 {offsets = [0, 64], sizes = [128, 32], strides = [1, 1]} : vector<128x128xbf16> to vector<128x32xbf16>
    %cst_29 = arith.constant dense<0.000000e+00> : vector<128x128xf32>
    %62 = tpu.matmul %59, %60, %cst_29 {dimension_numbers = #tpu.dot_dimension_numbers<[1], [1], [0], [0], [0, 0, 1, 0], [], []>} : vector<128x32xbf16>, vector<128x32xbf16>, vector<128x128xf32> -> vector<128x128xf32>
    %cst_30 = arith.constant 0.176776692 : f32
    %63 = vector.broadcast %cst_30 : f32 to vector<128x128xf32>
    %64 = arith.mulf %62, %63 : vector<128x128xf32>
    %65 = arith.addf %64, %20 : vector<128x128xf32>
    %cst_31 = arith.constant dense<0xFF800000> : vector<128xf32>
    %66 = vector.multi_reduction <maximumf>, %65, %cst_31 [1] : vector<128x128xf32> to vector<128xf32>
    %67 = vector.shape_cast %66 : vector<128xf32> to vector<128x1xf32>
    %68 = vector.broadcast %67 : vector<128x1xf32> to vector<128x128xf32>
    %69 = arith.subf %65, %68 : vector<128x128xf32>
    %70 = math.exp %69 : vector<128x128xf32>
    %cst_32 = arith.constant dense<0.000000e+00> : vector<128xf32>
    %71 = vector.multi_reduction <add>, %70, %cst_32 [1] : vector<128x128xf32> to vector<128xf32>
    %72 = vector.shape_cast %71 : vector<128xf32> to vector<128x1xf32>
    %73 = tpu.reciprocal %72 {approx = true} : vector<128x1xf32> -> vector<128x1xf32>
    %74 = vector.broadcast %73 : vector<128x1xf32> to vector<128x128xf32>
    %75 = arith.mulf %70, %74 : vector<128x128xf32>
    %76 = arith.truncf %75 : vector<128x128xf32> to vector<128x128xbf16>
    %cst_33 = arith.constant dense<0.000000e+00> : vector<128x32xf32>
    %77 = tpu.matmul %76, %61, %cst_33 {dimension_numbers = #tpu.dot_dimension_numbers<[1], [0], [0], [1], [0, 0, 1, 1], [], []>} : vector<128x128xbf16>, vector<128x32xbf16>, vector<128x32xf32> -> vector<128x32xf32>
    %78 = vector.extract_strided_slice %18 {offsets = [0, 96], sizes = [128, 32], strides = [1, 1]} : vector<128x128xbf16> to vector<128x32xbf16>
    %79 = vector.extract_strided_slice %12 {offsets = [0, 96], sizes = [128, 32], strides = [1, 1]} : vector<128x128xbf16> to vector<128x32xbf16>
    %80 = vector.extract_strided_slice %19 {offsets = [0, 96], sizes = [128, 32], strides = [1, 1]} : vector<128x128xbf16> to vector<128x32xbf16>
    %cst_34 = arith.constant dense<0.000000e+00> : vector<128x128xf32>
    %81 = tpu.matmul %78, %79, %cst_34 {dimension_numbers = #tpu.dot_dimension_numbers<[1], [1], [0], [0], [0, 0, 1, 0], [], []>} : vector<128x32xbf16>, vector<128x32xbf16>, vector<128x128xf32> -> vector<128x128xf32>
    %cst_35 = arith.constant 0.176776692 : f32
    %82 = vector.broadcast %cst_35 : f32 to vector<128x128xf32>
    %83 = arith.mulf %81, %82 : vector<128x128xf32>
    %84 = arith.addf %83, %20 : vector<128x128xf32>
    %cst_36 = arith.constant dense<0xFF800000> : vector<128xf32>
    %85 = vector.multi_reduction <maximumf>, %84, %cst_36 [1] : vector<128x128xf32> to vector<128xf32>
    %86 = vector.shape_cast %85 : vector<128xf32> to vector<128x1xf32>
    %87 = vector.broadcast %86 : vector<128x1xf32> to vector<128x128xf32>
    %88 = arith.subf %84, %87 : vector<128x128xf32>
    %89 = math.exp %88 : vector<128x128xf32>
    %cst_37 = arith.constant dense<0.000000e+00> : vector<128xf32>
    %90 = vector.multi_reduction <add>, %89, %cst_37 [1] : vector<128x128xf32> to vector<128xf32>
    %91 = vector.shape_cast %90 : vector<128xf32> to vector<128x1xf32>
    %92 = tpu.reciprocal %91 {approx = true} : vector<128x1xf32> -> vector<128x1xf32>
    %93 = vector.broadcast %92 : vector<128x1xf32> to vector<128x128xf32>
    %94 = arith.mulf %89, %93 : vector<128x128xf32>
    %95 = arith.truncf %94 : vector<128x128xf32> to vector<128x128xbf16>
    %cst_38 = arith.constant dense<0.000000e+00> : vector<128x32xf32>
    %96 = tpu.matmul %95, %80, %cst_38 {dimension_numbers = #tpu.dot_dimension_numbers<[1], [0], [0], [1], [0, 0, 1, 1], [], []>} : vector<128x128xbf16>, vector<128x32xbf16>, vector<128x32xf32> -> vector<128x32xf32>
    %97 = tpu.concatenate %39, %58, %77, %96 in 1 : vector<128x32xf32>, vector<128x32xf32>, vector<128x32xf32>, vector<128x32xf32> -> vector<128x128xf32>
    %98 = arith.truncf %97 : vector<128x128xf32> to vector<128x128xbf16>
    %c0_39 = arith.constant 0 : index
    %c0_40 = arith.constant 0 : index
    %99 = vector.load %arg9[%c0_39, %c0_40] : memref<128x128xbf16, #tpu.memory_space<vmem>>, vector<128x128xbf16>
    %cst_41 = arith.constant dense<0.000000e+00> : vector<128x128xf32>
    %100 = tpu.matmul %98, %99, %cst_41 {dimension_numbers = #tpu.dot_dimension_numbers<[1], [0], [0], [1], [0, 0, 1, 1], [], []>} : vector<128x128xbf16>, vector<128x128xbf16>, vector<128x128xf32> -> vector<128x128xf32>
    %c0_42 = arith.constant 0 : index
    %c0_43 = arith.constant 0 : index
    %101 = vector.load %arg10[%c0_42, %c0_43] : memref<1x128xf32, #tpu.memory_space<vmem>>, vector<1x128xf32>
    %102 = vector.broadcast %101 : vector<1x128xf32> to vector<128x128xf32>
    %103 = arith.addf %100, %102 : vector<128x128xf32>
    %c0_44 = arith.constant 0 : index
    %c0_45 = arith.constant 0 : index
    %104 = vector.load %arg12[%c0_44, %c0_45] : memref<128x128xf32, #tpu.memory_space<vmem>>, vector<128x128xf32>
    tpu.vector_store %arg12[%c0_44, %c0_45], %103 {strides = array<i32>} : memref<128x128xf32, #tpu.memory_space<vmem>>, vector<128x128xf32>,
    return
  }
  func.func @transform_0(%arg0: i32) -> (i32, i32) {
    %c0_i32 = arith.constant 0 : i32
    %c0_i32_0 = arith.constant 0 : i32
    return %arg0, %c0_i32 : i32, i32
  }
  func.func @transform_1(%arg0: i32) -> (i32, i32) {
    %c0_i32 = arith.constant 0 : i32
    %c0_i32_0 = arith.constant 0 : i32
    return %arg0, %c0_i32 : i32, i32
  }
  func.func @transform_2(%arg0: i32) -> (i32, i32) {
    %c0_i32 = arith.constant 0 : i32
    %c0_i32_0 = arith.constant 0 : i32
    %c0_i32_1 = arith.constant 0 : i32
    return %c0_i32, %c0_i32_0 : i32, i32
  }
  func.func @transform_3(%arg0: i32) -> (i32, i32) {
    %c0_i32 = arith.constant 0 : i32
    %c0_i32_0 = arith.constant 0 : i32
    %c0_i32_1 = arith.constant 0 : i32
    return %c0_i32, %c0_i32_0 : i32, i32
  }
  func.func @transform_4(%arg0: i32) -> (i32, i32) {
    %c0_i32 = arith.constant 0 : i32
    %c0_i32_0 = arith.constant 0 : i32
    %c0_i32_1 = arith.constant 0 : i32
    return %c0_i32, %c0_i32_0 : i32, i32
  }
  func.func @transform_5(%arg0: i32) -> (i32, i32) {
    %c0_i32 = arith.constant 0 : i32
    %c0_i32_0 = arith.constant 0 : i32
    %c0_i32_1 = arith.constant 0 : i32
    return %c0_i32, %c0_i32_0 : i32, i32
  }
  func.func @transform_6(%arg0: i32) -> (i32, i32) {
    %c0_i32 = arith.constant 0 : i32
    %c0_i32_0 = arith.constant 0 : i32
    %c0_i32_1 = arith.constant 0 : i32
    return %c0_i32, %c0_i32_0 : i32, i32
  }
  func.func @transform_7(%arg0: i32) -> (i32, i32) {
    %c0_i32 = arith.constant 0 : i32
    %c0_i32_0 = arith.constant 0 : i32
    %c0_i32_1 = arith.constant 0 : i32
    return %c0_i32, %c0_i32_0 : i32, i32
  }
  func.func @transform_8(%arg0: i32) -> (i32, i32) {
    %c0_i32 = arith.constant 0 : i32
    %c0_i32_0 = arith.constant 0 : i32
    %c0_i32_1 = arith.constant 0 : i32
    return %c0_i32, %c0_i32_0 : i32, i32
  }
  func.func @transform_9(%arg0: i32) -> (i32, i32) {
    %c0_i32 = arith.constant 0 : i32
    %c0_i32_0 = arith.constant 0 : i32
    %c0_i32_1 = arith.constant 0 : i32
    return %c0_i32, %c0_i32_0 : i32, i32
  }
  func.func @transform_10(%arg0: i32) -> (i32, i32) {
    %c0_i32 = arith.constant 0 : i32
    %c0_i32_0 = arith.constant 0 : i32
    %c0_i32_1 = arith.constant 0 : i32
    return %c0_i32, %c0_i32_0 : i32, i32
  }
  func.func @transform_11(%arg0: i32) -> (i32, i32) {
    %c0_i32 = arith.constant 0 : i32
    %c0_i32_0 = arith.constant 0 : i32
    return %arg0, %c0_i32 : i32, i32
  }
}

module attributes {stable_mosaic.version = 11 : i64} {
  func.func @_mha_kernel(%arg0: i32, %arg1: memref<128x128xbf16, #tpu.memory_space<vmem>>, %arg2: memref<128x128xbf16, #tpu.memory_space<vmem>>, %arg3: memref<128x128xbf16, #tpu.memory_space<vmem>>, %arg4: memref<1x128xf32, #tpu.memory_space<vmem>>, %arg5: memref<128x128xbf16, #tpu.memory_space<vmem>>, %arg6: memref<1x128xf32, #tpu.memory_space<vmem>>, %arg7: memref<128x128xbf16, #tpu.memory_space<vmem>>, %arg8: memref<1x128xf32, #tpu.memory_space<vmem>>, %arg9: memref<128x128xbf16, #tpu.memory_space<vmem>>, %arg10: memref<1x128xf32, #tpu.memory_space<vmem>>, %arg11: memref<128x128xf32, #tpu.memory_space<vmem>>, %arg12: memref<128x128xf32, #tpu.memory_space<vmem>>) attributes {dimension_semantics = [#tpu.dimension_semantics<parallel>], iteration_bounds = array<i64: 2>, scalar_prefetch = 0 : i64, scratch_operands = 0 : i64, tpu.core_type = #tpu.core_type<tc>, window_params = [{transform_indices = @transform_0, window_bounds = array<i64: 128, 128>}, {transform_indices = @transform_1, window_bounds = array<i64: 128, 128>}, {pipeline_mode = #tpu.pipeline_mode<synchronous>, transform_indices = @transform_2, window_bounds = array<i64: 128, 128>}, {pipeline_mode = #tpu.pipeline_mode<synchronous>, transform_indices = @transform_3, window_bounds = array<i64: 1, 128>}, {pipeline_mode = #tpu.pipeline_mode<synchronous>, transform_indices = @transform_4, window_bounds = array<i64: 128, 128>}, {pipeline_mode = #tpu.pipeline_mode<synchronous>, transform_indices = @transform_5, window_bounds = array<i64: 1, 128>}, {pipeline_mode = #tpu.pipeline_mode<synchronous>, transform_indices = @transform_6, window_bounds = array<i64: 128, 128>}, {pipeline_mode = #tpu.pipeline_mode<synchronous>, transform_indices = @transform_7, window_bounds = array<i64: 1, 128>}, {pipeline_mode = #tpu.pipeline_mode<synchronous>, transform_indices = @transform_8, window_bounds = array<i64: 128, 128>}, {pipeline_mode = #tpu.pipeline_mode<synchronous>, transform_indices = @transform_9, window_bounds = array<i64: 1, 128>}, {pipeline_mode = #tpu.pipeline_mode<synchronous>, transform_indices = @transform_10, window_bounds = array<i64: 128, 128>}, {transform_indices = @transform_11, window_bounds = array<i64: 128, 128>}]} {
    %c0 = arith.constant 0 : index
    %c0_0 = arith.constant 0 : index
    %0 = vector.load %arg1[%c0, %c0_0] : memref<128x128xbf16, #tpu.memory_space<vmem>>, vector<128x128xbf16>
    %c0_1 = arith.constant 0 : index
    %c0_2 = arith.constant 0 : index
    %1 = vector.load %arg2[%c0_1, %c0_2] : memref<128x128xbf16, #tpu.memory_space<vmem>>, vector<128x128xbf16>
    %c0_3 = arith.constant 0 : index
    %c0_4 = arith.constant 0 : index
    %2 = vector.load %arg3[%c0_3, %c0_4] : memref<128x128xbf16, #tpu.memory_space<vmem>>, vector<128x128xbf16>
    %cst = arith.constant dense<0.000000e+00> : vector<128x128xf32>
    %3 = tpu.matmul %0, %2, %cst {dimension_numbers = #tpu.dot_dimension_numbers<[1], [0], [0], [1], [0, 0, 1, 1], [], []>} : vector<128x128xbf16>, vector<128x128xbf16>, vector<128x128xf32> -> vector<128x128xf32>
    %c0_5 = arith.constant 0 : index
    %c0_6 = arith.constant 0 : index
    %4 = vector.load %arg4[%c0_5, %c0_6] : memref<1x128xf32, #tpu.memory_space<vmem>>, vector<1x128xf32>
    %5 = vector.broadcast %4 : vector<1x128xf32> to vector<128x128xf32>
    %6 = arith.addf %3, %5 : vector<128x128xf32>
    %c0_7 = arith.constant 0 : index
    %c0_8 = arith.constant 0 : index
    %7 = vector.load %arg5[%c0_7, %c0_8] : memref<128x128xbf16, #tpu.memory_space<vmem>>, vector<128x128xbf16>
    %cst_9 = arith.constant dense<0.000000e+00> : vector<128x128xf32>
    %8 = tpu.matmul %1, %7, %cst_9 {dimension_numbers = #tpu.dot_dimension_numbers<[1], [0], [0], [1], [0, 0, 1, 1], [], []>} : vector<128x128xbf16>, vector<128x128xbf16>, vector<128x128xf32> -> vector<128x128xf32>
    %c0_10 = arith.constant 0 : index
    %c0_11 = arith.constant 0 : index
    %9 = vector.load %arg6[%c0_10, %c0_11] : memref<1x128xf32, #tpu.memory_space<vmem>>, vector<1x128xf32>
    %10 = vector.broadcast %9 : vector<1x128xf32> to vector<128x128xf32>
    %11 = arith.addf %8, %10 : vector<128x128xf32>
    %12 = arith.truncf %11 : vector<128x128xf32> to vector<128x128xbf16>
    %c0_12 = arith.constant 0 : index
    %c0_13 = arith.constant 0 : index
    %13 = vector.load %arg7[%c0_12, %c0_13] : memref<128x128xbf16, #tpu.memory_space<vmem>>, vector<128x128xbf16>
    %cst_14 = arith.constant dense<0.000000e+00> : vector<128x128xf32>
    %14 = tpu.matmul %12, %13, %cst_14 {dimension_numbers = #tpu.dot_dimension_numbers<[1], [0], [0], [1], [0, 0, 1, 1], [], []>} : vector<128x128xbf16>, vector<128x128xbf16>, vector<128x128xf32> -> vector<128x128xf32>
    %c0_15 = arith.constant 0 : index
    %c0_16 = arith.constant 0 : index
    %15 = vector.load %arg8[%c0_15, %c0_16] : memref<1x128xf32, #tpu.memory_space<vmem>>, vector<1x128xf32>
    %16 = vector.broadcast %15 : vector<1x128xf32> to vector<128x128xf32>
    %17 = arith.addf %14, %16 : vector<128x128xf32>
    %18 = arith.truncf %6 : vector<128x128xf32> to vector<128x128xbf16>
    %19 = arith.truncf %17 : vector<128x128xf32> to vector<128x128xbf16>
    %c0_17 = arith.constant 0 : index
    %c0_18 = arith.constant 0 : index
    %20 = vector.load %arg11[%c0_17, %c0_18] : memref<128x128xf32, #tpu.memory_space<vmem>>, vector<128x128xf32>
    %21 = vector.extract_strided_slice %18 {offsets = [0, 0], sizes = [128, 32], strides = [1, 1]} : vector<128x128xbf16> to vector<128x32xbf16>
    %22 = vector.extract_strided_slice %12 {offsets = [0, 0], sizes = [128, 32], strides = [1, 1]} : vector<128x128xbf16> to vector<128x32xbf16>
    %23 = vector.extract_strided_slice %19 {offsets = [0, 0], sizes = [128, 32], strides = [1, 1]} : vector<128x128xbf16> to vector<128x32xbf16>
    %cst_19 = arith.constant dense<0.000000e+00> : vector<128x128xf32>
    %24 = tpu.matmul %21, %22, %cst_19 {dimension_numbers = #tpu.dot_dimension_numbers<[1], [1], [0], [0], [0, 0, 1, 0], [], []>} : vector<128x32xbf16>, vector<128x32xbf16>, vector<128x128xf32> -> vector<128x128xf32>
    %cst_20 = arith.constant 0.176776692 : f32
    %25 = vector.broadcast %cst_20 : f32 to vector<128x128xf32>
    %26 = arith.mulf %24, %25 : vector<128x128xf32>
    %27 = arith.addf %26, %20 : vector<128x128xf32>
    %cst_21 = arith.constant dense<0xFF800000> : vector<128xf32>
    %28 = vector.multi_reduction <maximumf>, %27, %cst_21 [1] : vector<128x128xf32> to vector<128xf32>
    %29 = vector.shape_cast %28 : vector<128xf32> to vector<128x1xf32>
    %30 = vector.broadcast %29 : vector<128x1xf32> to vector<128x128xf32>
    %31 = arith.subf %27, %30 : vector<128x128xf32>
    %32 = math.exp %31 : vector<128x128xf32>
    %cst_22 = arith.constant dense<0.000000e+00> : vector<128xf32>
    %33 = vector.multi_reduction <add>, %32, %cst_22 [1] : vector<128x128xf32> to vector<128xf32>
    %34 = vector.shape_cast %33 : vector<128xf32> to vector<128x1xf32>
    %35 = tpu.reciprocal %34 {approx = true} : vector<128x1xf32> -> vector<128x1xf32>
    %36 = vector.broadcast %35 : vector<128x1xf32> to vector<128x128xf32>
    %37 = arith.mulf %32, %36 : vector<128x128xf32>
    %38 = arith.truncf %37 : vector<128x128xf32> to vector<128x128xbf16>
    %cst_23 = arith.constant dense<0.000000e+00> : vector<128x32xf32>
    %39 = tpu.matmul %38, %23, %cst_23 {dimension_numbers = #tpu.dot_dimension_numbers<[1], [0], [0], [1], [0, 0, 1, 1], [], []>} : vector<128x128xbf16>, vector<128x32xbf16>, vector<128x32xf32> -> vector<128x32xf32>
    %40 = vector.extract_strided_slice %18 {offsets = [0, 32], sizes = [128, 32], strides = [1, 1]} : vector<128x128xbf16> to vector<128x32xbf16>
    %41 = vector.extract_strided_slice %12 {offsets = [0, 32], sizes = [128, 32], strides = [1, 1]} : vector<128x128xbf16> to vector<128x32xbf16>
    %42 = vector.extract_strided_slice %19 {offsets = [0, 32], sizes = [128, 32], strides = [1, 1]} : vector<128x128xbf16> to vector<128x32xbf16>
    %cst_24 = arith.constant dense<0.000000e+00> : vector<128x128xf32>
    %43 = tpu.matmul %40, %41, %cst_24 {dimension_numbers = #tpu.dot_dimension_numbers<[1], [1], [0], [0], [0, 0, 1, 0], [], []>} : vector<128x32xbf16>, vector<128x32xbf16>, vector<128x128xf32> -> vector<128x128xf32>
    %cst_25 = arith.constant 0.176776692 : f32
    %44 = vector.broadcast %cst_25 : f32 to vector<128x128xf32>
    %45 = arith.mulf %43, %44 : vector<128x128xf32>
    %46 = arith.addf %45, %20 : vector<128x128xf32>
    %cst_26 = arith.constant dense<0xFF800000> : vector<128xf32>
    %47 = vector.multi_reduction <maximumf>, %46, %cst_26 [1] : vector<128x128xf32> to vector<128xf32>
    %48 = vector.shape_cast %47 : vector<128xf32> to vector<128x1xf32>
    %49 = vector.broadcast %48 : vector<128x1xf32> to vector<128x128xf32>
    %50 = arith.subf %46, %49 : vector<128x128xf32>
    %51 = math.exp %50 : vector<128x128xf32>
    %cst_27 = arith.constant dense<0.000000e+00> : vector<128xf32>
    %52 = vector.multi_reduction <add>, %51, %cst_27 [1] : vector<128x128xf32> to vector<128xf32>
    %53 = vector.shape_cast %52 : vector<128xf32> to vector<128x1xf32>
    %54 = tpu.reciprocal %53 {approx = true} : vector<128x1xf32> -> vector<128x1xf32>
    %55 = vector.broadcast %54 : vector<128x1xf32> to vector<128x128xf32>
    %56 = arith.mulf %51, %55 : vector<128x128xf32>
    %57 = arith.truncf %56 : vector<128x128xf32> to vector<128x128xbf16>
    %cst_28 = arith.constant dense<0.000000e+00> : vector<128x32xf32>
    %58 = tpu.matmul %57, %42, %cst_28 {dimension_numbers = #tpu.dot_dimension_numbers<[1], [0], [0], [1], [0, 0, 1, 1], [], []>} : vector<128x128xbf16>, vector<128x32xbf16>, vector<128x32xf32> -> vector<128x32xf32>
    %59 = vector.extract_strided_slice %18 {offsets = [0, 64], sizes = [128, 32], strides = [1, 1]} : vector<128x128xbf16> to vector<128x32xbf16>
    %60 = vector.extract_strided_slice %12 {offsets = [0, 64], sizes = [128, 32], strides = [1, 1]} : vector<128x128xbf16> to vector<128x32xbf16>
    %61 = vector.extract_strided_slice %19 {offsets = [0, 64], sizes = [128, 32], strides = [1, 1]} : vector<128x128xbf16> to vector<128x32xbf16>
    %cst_29 = arith.constant dense<0.000000e+00> : vector<128x128xf32>
    %62 = tpu.matmul %59, %60, %cst_29 {dimension_numbers = #tpu.dot_dimension_numbers<[1], [1], [0], [0], [0, 0, 1, 0], [], []>} : vector<128x32xbf16>, vector<128x32xbf16>, vector<128x128xf32> -> vector<128x128xf32>
    %cst_30 = arith.constant 0.176776692 : f32
    %63 = vector.broadcast %cst_30 : f32 to vector<128x128xf32>
    %64 = arith.mulf %62, %63 : vector<128x128xf32>
    %65 = arith.addf %64, %20 : vector<128x128xf32>
    %cst_31 = arith.constant dense<0xFF800000> : vector<128xf32>
    %66 = vector.multi_reduction <maximumf>, %65, %cst_31 [1] : vector<128x128xf32> to vector<128xf32>
    %67 = vector.shape_cast %66 : vector<128xf32> to vector<128x1xf32>
    %68 = vector.broadcast %67 : vector<128x1xf32> to vector<128x128xf32>
    %69 = arith.subf %65, %68 : vector<128x128xf32>
    %70 = math.exp %69 : vector<128x128xf32>
    %cst_32 = arith.constant dense<0.000000e+00> : vector<128xf32>
    %71 = vector.multi_reduction <add>, %70, %cst_32 [1] : vector<128x128xf32> to vector<128xf32>
    %72 = vector.shape_cast %71 : vector<128xf32> to vector<128x1xf32>
    %73 = tpu.reciprocal %72 {approx = true} : vector<128x1xf32> -> vector<128x1xf32>
    %74 = vector.broadcast %73 : vector<128x1xf32> to vector<128x128xf32>
    %75 = arith.mulf %70, %74 : vector<128x128xf32>
    %76 = arith.truncf %75 : vector<128x128xf32> to vector<128x128xbf16>
    %cst_33 = arith.constant dense<0.000000e+00> : vector<128x32xf32>
    %77 = tpu.matmul %76, %61, %cst_33 {dimension_numbers = #tpu.dot_dimension_numbers<[1], [0], [0], [1], [0, 0, 1, 1], [], []>} : vector<128x128xbf16>, vector<128x32xbf16>, vector<128x32xf32> -> vector<128x32xf32>
    %78 = vector.extract_strided_slice %18 {offsets = [0, 96], sizes = [128, 32], strides = [1, 1]} : vector<128x128xbf16> to vector<128x32xbf16>
    %79 = vector.extract_strided_slice %12 {offsets = [0, 96], sizes = [128, 32], strides = [1, 1]} : vector<128x128xbf16> to vector<128x32xbf16>
    %80 = vector.extract_strided_slice %19 {offsets = [0, 96], sizes = [128, 32], strides = [1, 1]} : vector<128x128xbf16> to vector<128x32xbf16>
    %cst_34 = arith.constant dense<0.000000e+00> : vector<128x128xf32>
    %81 = tpu.matmul %78, %79, %cst_34 {dimension_numbers = #tpu.dot_dimension_numbers<[1], [1], [0], [0], [0, 0, 1, 0], [], []>} : vector<128x32xbf16>, vector<128x32xbf16>, vector<128x128xf32> -> vector<128x128xf32>
    %cst_35 = arith.constant 0.176776692 : f32
    %82 = vector.broadcast %cst_35 : f32 to vector<128x128xf32>
    %83 = arith.mulf %81, %82 : vector<128x128xf32>
    %84 = arith.addf %83, %20 : vector<128x128xf32>
    %cst_36 = arith.constant dense<0xFF800000> : vector<128xf32>
    %85 = vector.multi_reduction <maximumf>, %84, %cst_36 [1] : vector<128x128xf32> to vector<128xf32>
    %86 = vector.shape_cast %85 : vector<128xf32> to vector<128x1xf32>
    %87 = vector.broadcast %86 : vector<128x1xf32> to vector<128x128xf32>
    %88 = arith.subf %84, %87 : vector<128x128xf32>
    %89 = math.exp %88 : vector<128x128xf32>
    %cst_37 = arith.constant dense<0.000000e+00> : vector<128xf32>
    %90 = vector.multi_reduction <add>, %89, %cst_37 [1] : vector<128x128xf32> to vector<128xf32>
    %91 = vector.shape_cast %90 : vector<128xf32> to vector<128x1xf32>
    %92 = tpu.reciprocal %91 {approx = true} : vector<128x1xf32> -> vector<128x1xf32>
    %93 = vector.broadcast %92 : vector<128x1xf32> to vector<128x128xf32>
    %94 = arith.mulf %89, %93 : vector<128x128xf32>
    %95 = arith.truncf %94 : vector<128x128xf32> to vector<128x128xbf16>
    %cst_38 = arith.constant dense<0.000000e+00> : vector<128x32xf32>
    %96 = tpu.matmul %95, %80, %cst_38 {dimension_numbers = #tpu.dot_dimension_numbers<[1], [0], [0], [1], [0, 0, 1, 1], [], []>} : vector<128x128xbf16>, vector<128x32xbf16>, vector<128x32xf32> -> vector<128x32xf32>
    %97 = tpu.concatenate %39, %58, %77, %96 in 1 : vector<128x32xf32>, vector<128x32xf32>, vector<128x32xf32>, vector<128x32xf32> -> vector<128x128xf32>
    %98 = arith.truncf %97 : vector<128x128xf32> to vector<128x128xbf16>
    %c0_39 = arith.constant 0 : index
    %c0_40 = arith.constant 0 : index
    %99 = vector.load %arg9[%c0_39, %c0_40] : memref<128x128xbf16, #tpu.memory_space<vmem>>, vector<128x128xbf16>
    %cst_41 = arith.constant dense<0.000000e+00> : vector<128x128xf32>
    %100 = tpu.matmul %98, %99, %cst_41 {dimension_numbers = #tpu.dot_dimension_numbers<[1], [0], [0], [1], [0, 0, 1, 1], [], []>} : vector<128x128xbf16>, vector<128x128xbf16>, vector<128x128xf32> -> vector<128x128xf32>
    %c0_42 = arith.constant 0 : index
    %c0_43 = arith.constant 0 : index
    %101 = vector.load %arg10[%c0_42, %c0_43] : memref<1x128xf32, #tpu.memory_space<vmem>>, vector<1x128xf32>
    %102 = vector.broadcast %101 : vector<1x128xf32> to vector<128x128xf32>
    %103 = arith.addf %100, %102 : vector<128x128xf32>
    %c0_44 = arith.constant 0 : index
    %c0_45 = arith.constant 0 : index
    %104 = vector.load %arg12[%c0_44, %c0_45] : memref<128x128xf32, #tpu.memory_space<vmem>>, vector<128x128xf32>
    tpu.vector_store %arg12[%c0_44, %c0_45], %103 {strides = array<i32>} : memref<128x128xf32, #tpu.memory_space<vmem>>, vector<128x128xf32>,
    return
  }
  func.func @transform_0(%arg0: i32) -> (i32, i32) {
    %c0_i32 = arith.constant 0 : i32
    %c0_i32_0 = arith.constant 0 : i32
    return %arg0, %c0_i32 : i32, i32
  }
  func.func @transform_1(%arg0: i32) -> (i32, i32) {
    %c0_i32 = arith.constant 0 : i32
    %c0_i32_0 = arith.constant 0 : i32
    return %arg0, %c0_i32 : i32, i32
  }
  func.func @transform_2(%arg0: i32) -> (i32, i32) {
    %c0_i32 = arith.constant 0 : i32
    %c0_i32_0 = arith.constant 0 : i32
    %c0_i32_1 = arith.constant 0 : i32
    return %c0_i32, %c0_i32_0 : i32, i32
  }
  func.func @transform_3(%arg0: i32) -> (i32, i32) {
    %c0_i32 = arith.constant 0 : i32
    %c0_i32_0 = arith.constant 0 : i32
    %c0_i32_1 = arith.constant 0 : i32
    return %c0_i32, %c0_i32_0 : i32, i32
  }
  func.func @transform_4(%arg0: i32) -> (i32, i32) {
    %c0_i32 = arith.constant 0 : i32
    %c0_i32_0 = arith.constant 0 : i32
    %c0_i32_1 = arith.constant 0 : i32
    return %c0_i32, %c0_i32_0 : i32, i32
  }
  func.func @transform_5(%arg0: i32) -> (i32, i32) {
    %c0_i32 = arith.constant 0 : i32
    %c0_i32_0 = arith.constant 0 : i32
    %c0_i32_1 = arith.constant 0 : i32
    return %c0_i32, %c0_i32_0 : i32, i32
  }
  func.func @transform_6(%arg0: i32) -> (i32, i32) {
    %c0_i32 = arith.constant 0 : i32
    %c0_i32_0 = arith.constant 0 : i32
    %c0_i32_1 = arith.constant 0 : i32
    return %c0_i32, %c0_i32_0 : i32, i32
  }
  func.func @transform_7(%arg0: i32) -> (i32, i32) {
    %c0_i32 = arith.constant 0 : i32
    %c0_i32_0 = arith.constant 0 : i32
    %c0_i32_1 = arith.constant 0 : i32
    return %c0_i32, %c0_i32_0 : i32, i32
  }
  func.func @transform_8(%arg0: i32) -> (i32, i32) {
    %c0_i32 = arith.constant 0 : i32
    %c0_i32_0 = arith.constant 0 : i32
    %c0_i32_1 = arith.constant 0 : i32
    return %c0_i32, %c0_i32_0 : i32, i32
  }
  func.func @transform_9(%arg0: i32) -> (i32, i32) {
    %c0_i32 = arith.constant 0 : i32
    %c0_i32_0 = arith.constant 0 : i32
    %c0_i32_1 = arith.constant 0 : i32
    return %c0_i32, %c0_i32_0 : i32, i32
  }
  func.func @transform_10(%arg0: i32) -> (i32, i32) {
    %c0_i32 = arith.constant 0 : i32
    %c0_i32_0 = arith.constant 0 : i32
    %c0_i32_1 = arith.constant 0 : i32
    return %c0_i32, %c0_i32_0 : i32, i32
  }
  func.func @transform_11(%arg0: i32) -> (i32, i32) {
    %c0_i32 = arith.constant 0 : i32
    %c0_i32_0 = arith.constant 0 : i32
    return %arg0, %c0_i32 : i32, i32
  }
}

</mosaic_0001>

<bundles_post_ra>
// kernel: tpu_custom_call.1
= control target key start
LH: loop header
LB: loop body
LE: loop exit
PB: predicated region body
PF: predicated region fallthrough
CT: control target
= control target key end

     0   :  { %s6944_s0 = inlined_call_operand.hbm [shape: bf16[256,128], index: 0, kind: input, shape index: {}]   ;;  %s6945_s1 = inlined_call_operand.hbm [shape: bf16[256,128], index: 1, kind: input, shape index: {}]   ;;  %s6946_s2 = inlined_call_operand.hbm [shape: bf16[128,128], index: 2, kind: input, shape index: {}]   ;;  %s6947_s3 = inlined_call_operand.vmem [shape: f32[1,128], index: 3, kind: input, shape index: {}]   ;;  %s6948_s4 = inlined_call_operand.hbm [shape: bf16[128,128], index: 4, kind: input, shape index: {}]   ;;  %s6949_s5 = inlined_call_operand.vmem [shape: f32[1,128], index: 5, kind: input, shape index: {}]   ;;  %s6950_s6 = inlined_call_operand.hbm [shape: bf16[128,128], index: 6, kind: input, shape index: {}]   ;;  %s6951_s7 = inlined_call_operand.vmem [shape: f32[1,128], index: 7, kind: input, shape index: {}]   ;;  %s6952_s8 = inlined_call_operand.hbm [shape: bf16[128,128], index: 8, kind: input, shape index: {}]   ;;  %s6953_s9 = inlined_call_operand.vmem [shape: f32[1,128], index: 9, kind: input, shape index: {}]   ;;  %s6954_s10 = inlined_call_operand.hbm [shape: f32[128,128], index: 10, kind: input, shape index: {}]   ;;  %s6955_s11 = inlined_call_operand.hbm [shape: f32[256,128], index: 11, kind: output, shape index: {}]  }
   0x1   :  { %7001 = sst [smem:[#allocation59_spill]] %s6944_s0 }
   0x2   :  { %7002 = sst [smem:[#allocation60_spill]] %s6946_s2 }
   0x3   :  { %7003 = sst [smem:[#allocation61_spill]] %s6948_s4 }
   0x4   :  { %7004 = sst [smem:[#allocation62_spill]] %s6950_s6 }
   0x5   :  { %7005 = sst [smem:[#allocation63_spill]] %s6952_s8 }
   0x6   :  { %7006 = sst [smem:[#allocation64_spill]] %s6954_s10 }
   0x7   :  { %16 = vsyncpa [#allocation3], 0 }
   0x8   :  { %18 = vsyncpa [#allocation3 + $0x1], 0 }
   0x9   :  { %19 = vsyncpa [#allocation6], 0 }
   0xa   :  { %21 = vsyncpa [#allocation6 + $0x1], 0 }
   0xb   :  { %22 = vsyncpa [#allocation9], 0 }
   0xc   :  { %23 = vsyncpa [#allocation12], 0 }
   0xd   :  { %24 = vsyncpa [#allocation4], 0 }
   0xe   :  { %26 = vsyncpa [#allocation4 + $0x1], 0  ;;  %s5300_s17 = smov 0   ;;  %s5302_s18 = smov 0  }
   0xf   :  { %s5304_s19 = smov 0   ;;  %s5306_s20 = smov 0  }
  0x10 LB: > { %7007 = sst [smem:[#allocation21_spill]] %s5217_s19  ;;  %s5223_s21 = smov [#allocation7]   ;;  %s5221_s20 = sphi %s5306_s20, %s7137_s20   ;;  %s5217_s19 = sphi %s5304_s19, %s7139_s19   ;;  %s5213_s18 = sphi %s5302_s18, %s7141_s18   ;;  %s5209_s17 = sphi %s5300_s17, %s7140_s17  }
  0x11   : > { %s316_s22 = sshll.u32 %s5223_s21, 4  ;;  %s5321_s23 = sadd.s32 4294967295, %s5221_s20   ;;  %s317_s22 = int_to_ptr.vmem [resolvable:$true] %s316_s22 }
  0x12   : > { %p3682_p0 = scmp.ge.s32.totalorder %s5221_s20, 1  ;;  %p6963_p1 = scmp.eq.s32.totalorder %s5321_s23, 0 }
  0x13   : > { %p304_p2 = scmp.lt.s32.totalorder %s5221_s20, 3  ;;  %s5224_s25 = smov [#allocation8]  }
  0x14   : > { %s332_s26 = sshll.u32 %s5224_s25, 4  ;;  %s5225_s28 = smov [#allocation11]   ;;  %s5339_s26 = int_to_ptr.vmem [resolvable:$true] %s332_s26 }
  0x15   : > { %p5326_p3 = pnand %p3682_p0, %p304_p2  ;;  %s364_s29 = sshll.u32 %s5225_s28, 4  ;;  %s5341_s29 = int_to_ptr.vmem [resolvable:$true] %s364_s29 }
  0x16   : > { %s4966_s12 = scalar_lea.vmem %s317_s22, 1024  ;;  %p4974_p11 = scmp.lt.s32.totalorder %s317_s22, %s317_s22 }
  0x17   : > { %p4430_p5 = pneg %p5326_p3  ;;  %p4967_p8 = scmp.ne.s32.totalorder %s317_s22, %s4966_s12 }
  0x18   : > { %p4975_p12 = scmp.lt.s32.totalorder %s4966_s12, %s4966_s12 }
  0x19   : > { %p5335_p6 = pnand %p4430_p5, %p6963_p1 }
  0x1a   : > { %p4976_p13 = por %p4975_p12, %p4974_p11 }
  0x1b   : > { %p5345_p7 = pneg %p5335_p6 }
  0x1d   : > { %p4969_p9 = pnand %p4967_p8, %p5345_p7 }
  0x1f   : > { %p4970_p10 = pneg %p4969_p9 }
  0x21   : > { %p4977_p0 = pnand %p4976_p13, %p4970_p10 }
  0x23   : > { %4980 = shalt.err (!%p4977_p0)
}
  0x24   : > { %s6956_s13 = smov 64   ;;  %s6958_s14 = smov 4  }
  0x25   : > { %s7011_s2 = sld [smem:[#allocation60_spill]]  ;;  %s4992_s21 = scalar_lea.vmem %s5339_s26, 1024 }
  0x26   : > { %p4993_p2 = scmp.ne.s32.totalorder %s5339_s26, %s4992_s21  ;;  %p5000_p9 = scmp.lt.s32.totalorder %s5339_s26, %s5339_s26 }
  0x27   : > { %p5001_p10 = scmp.lt.s32.totalorder %s4992_s21, %s4992_s21 }
  0x28   : > { %p4995_p5 = pnand %p4993_p2, %p5345_p7 }
  0x29   : > { %p5002_p11 = por %p5001_p10, %p5000_p9 }
  0x2a   : > { %p4996_p8 = pneg %p4995_p5 }
  0x2b   : > { %4433 = dma.hbm_to_vmem [thread:$0]  (!%p5335_p6), %s7011_s2, 1024, %s317_s22, [#allocation6], %s6956_s13, %s6956_s13, %s6958_s14  }
  0x2c   : > { %p5003_p12 = pnand %p5002_p11, %p4996_p8 }
  0x2e   : > { %5006 = shalt.err (!%p5003_p12)
}
  0x2f   : > { %s7012_s4 = sld [smem:[#allocation61_spill]]  ;;  %s5018_s22 = scalar_lea.vmem %s5341_s29, 1024 }
  0x30   : > { %p5019_p13 = scmp.ne.s32.totalorder %s5341_s29, %s5018_s22  ;;  %p5026_p5 = scmp.lt.s32.totalorder %s5341_s29, %s5341_s29 }
  0x31   : > { %p5027_p8 = scmp.lt.s32.totalorder %s5018_s22, %s5018_s22 }
  0x32   : > { %p5021_p0 = pnand %p5019_p13, %p5345_p7 }
  0x33   : > { %p5028_p9 = por %p5027_p8, %p5026_p5 }
  0x34   : > { %p5022_p2 = pneg %p5021_p0 }
  0x35   : > { %4436 = dma.hbm_to_vmem [thread:$0]  (!%p5335_p6), %s7012_s4, 1024, %s5339_s26, [#allocation9], %s6956_s13, %s6956_s13, %s6958_s14  }
  0x36   : > { %p5029_p10 = pnand %p5028_p9, %p5022_p2 }
  0x38   : > { %5032 = shalt.err (!%p5029_p10)
}
  0x39   : > { %s7013_s8 = sld [smem:[#allocation63_spill]]  ;;  %s5228_s26 = smov [#allocation10]  }
  0x3a   : > { %s348_s16 = sshll.u32 %s5228_s26, 4  ;;  %s5229_s21 = smov [#allocation13]   ;;  %s349_s16 = int_to_ptr.vmem [resolvable:$true] %s348_s16 }
  0x3b   : > { %s380_s25 = sshll.u32 %s5229_s21, 4  ;;  %s5044_s28 = scalar_lea.vmem %s349_s16, 1024  ;;  %s381_s25 = int_to_ptr.vmem [resolvable:$true] %s380_s25 }
  0x3c   : > { %p5045_p11 = scmp.ne.s32.totalorder %s349_s16, %s5044_s28  ;;  %p5052_p0 = scmp.lt.s32.totalorder %s349_s16, %s349_s16 }
  0x3d   : > { %p5053_p2 = scmp.lt.s32.totalorder %s5044_s28, %s5044_s28 }
  0x3e   : > { %p5047_p12 = pnand %p5045_p11, %p5345_p7 }
  0x3f   : > { %4442 = dma.hbm_to_vmem [thread:$0]  (!%p5335_p6), %s7013_s8, 1024, %s5341_s29, [#allocation12], %s6956_s13, %s6956_s13, %s6958_s14  }
  0x40   : > { %p5048_p13 = pneg %p5047_p12  ;;  %p5054_p5 = por %p5053_p2, %p5052_p0 }
  0x42   : > { %p5055_p8 = pnand %p5054_p5, %p5048_p13 }
  0x44   : > { %5058 = shalt.err (!%p5055_p8)
}
  0x45   : > { %s7014_s6 = sld [smem:[#allocation62_spill]]  ;;  %s5070_s12 = scalar_lea.vmem %s381_s25, 2048 }
  0x46   : > { %p5071_p9 = scmp.ne.s32.totalorder %s381_s25, %s5070_s12  ;;  %p5078_p12 = scmp.lt.s32.totalorder %s381_s25, %s381_s25 }
  0x47   : > { %p5079_p0 = scmp.lt.s32.totalorder %s5070_s12, %s5070_s12 }
  0x48   : > { %p5073_p10 = pnand %p5071_p9, %p5345_p7 }
  0x49   : > { %p5080_p13 = por %p5079_p0, %p5078_p12 }
  0x4a   : > { %p5074_p11 = pneg %p5073_p10 }
  0x4b   : > { %4439 = dma.hbm_to_vmem [thread:$0]  (!%p5335_p6), %s7014_s6, 1024, %s349_s16, [#allocation9], %s6956_s13, %s6956_s13, %s6958_s14  }
  0x4c   : > { %p5081_p2 = pnand %p5080_p13, %p5074_p11 }
  0x4e   : > { %5084 = shalt.err (!%p5081_p2)
}
  0x4f   : > { %s5230_s15 = smov 128   ;;  %s5231_s30 = smov 8  }
  0x50   : > { %s7015_s10 = sld [smem:[#allocation64_spill]]  ;;  %s3681_s21 = sadd.s32 4294967294, %s5221_s20  }
  0x51   : > { %s5408_s28 = sadd.s32 1, %s5221_s20   ;;  %s39_s29 = sadd.s32 1, %s5217_s19 }
  0x52   : > { %7016 = sst [smem:[#allocation22_spill]] %s5408_s28  ;;  %s36_s22 = ssub.s32 %s5221_s20, %s5408_s28 }
  0x53   : > { %p46_p7 = scmp.ne.s32.totalorder %s5217_s19, %s5213_s18  ;;  %p37_p5 = scmp.eq.s32.totalorder %s36_s22, 0 }
  0x54   : > { %p47_p8 = scmp.eq.s32.totalorder %s5221_s20, 0  ;;  %p52_p9 = scmp.ne.s32.totalorder %s5213_s18, %s5209_s17 }
  0x55   : > { %p291_p10 = scmp.eq.s32.totalorder %s5321_s23, 1  ;;  %p297_p0 = scmp.eq.s32.totalorder %s3681_s21, 1 }
  0x56   : > { %4445 = dma.hbm_to_vmem [thread:$0]  (!%p5335_p6), %s7015_s10, 2048, %s381_s25, [#allocation12], %s5230_s15, %s5230_s15, %s5231_s30  }
  0x57   : > { %s5420_s12 = scalar_select %p37_p5, %s5217_s19, %s39_s29  }
  0x58   : > { %p48_p11 = por %p47_p8, %p46_p7  ;;  %p5424_p12 = por %p6963_p1, %p52_p9 }
  0x59   : > { %7017 = sst [smem:[#allocation23_spill]] %s5420_s12  ;;  %p5428_p6 = por %p291_p10, %p46_p7 }
  0x5a   : > { %s7018_s27 = scalar_select %p5424_p12, 1, 0 }
  0x5b   : > { %s7019_s25 = scalar_select %p5428_p6, 1, 0 }
  0x5c   : > { %p4462_p13 = scmp.lt.s32.totalorder %s5221_s20, 2  ;;  %s394_s15 = sand.u32 1, %s5217_s19  }
  0x5d   : > { %p5434_p2 = por %p297_p0, %p52_p9  ;;  %s5438_s26 = sshll.u32 %s394_s15, 6 }
  0x5e   : > { %s3793_s16 = sshll.u32 %s5221_s20, 10  ;;  %s7022_s0 = sld [smem:[#allocation59_spill]] }
  0x5f   : > { %s7020_s30 = scalar_select %p5434_p2, 1, 0 }
  0x60   : > { %s398_s14 = scalar_lea.vmem [#allocation2], %s5438_s26  ;;  %p5447_p7 = pnand %p4462_p13, %p48_p11 }
  0x61   : > { %7021 = sst [smem:[#allocation24_spill]] %s7020_s30  ;;  %s405_s21 = sshll.u32 %s398_s14, 4  ;;  %s5451_s21 = int_to_ptr.vmem [resolvable:$true] %s405_s21 }
  0x62   : > { %s5456_s8 = scalar_lea.hbm %s6945_s1, %s3793_s16  ;;  %s5458_s29 = scalar_lea.sflag [#allocation3], %s394_s15 }
  0x63   : > { %p5087_p8 = pneg %p5447_p7 }
  0x64   : > { %s5444_s13 = scalar_lea.hbm %s7022_s0, %s3793_s16  ;;  %s5090_s12 = scalar_lea.hbm %s7022_s0, 2048 }
  0x65   : > { %s5085_s22 = scalar_lea.hbm %s5444_s13, 1024  ;;  %p5091_p11 = scmp.lt.s32.totalorder %s5444_s13, %s7022_s0 }
  0x66   : > { %p5086_p5 = scmp.ne.s32.totalorder %s5444_s13, %s5085_s22  ;;  %p5092_p0 = scmp.lt.s32.totalorder %s5090_s12, %s5085_s22 }
  0x68   : > { %p5088_p9 = pnand %p5087_p8, %p5086_p5  ;;  %p5093_p13 = por %p5092_p0, %p5091_p11 }
  0x6a   : > { %p5089_p10 = pneg %p5088_p9 }
  0x6c   : > { %p5094_p4 = pnand %p5093_p13, %p5089_p10 }
  0x6e   : > { %5097 = shalt.err (!%p5094_p4)
}
  0x6f   : > { %s5098_s4 = scalar_lea.vmem %s5451_s21, 1024  ;;  %s5232_s6 = smov [#allocation2]  }
  0x70   : > { %p5099_p1 = scmp.ne.s32.totalorder %s5451_s21, %s5098_s4  ;;  %s5103_s10 = sshll.u32 %s5232_s6, 4  ;;  %s5104_s10 = int_to_ptr.vmem [resolvable:$false] %s5103_s10 }
  0x71   : > { %s5105_s15 = scalar_lea.vmem %s5104_s10, 2048  ;;  %p5106_p2 = scmp.lt.s32.totalorder %s5451_s21, %s5104_s10 }
  0x72   : > { %p5101_p5 = pnand %p5099_p1, %p5087_p8  ;;  %p5107_p6 = scmp.lt.s32.totalorder %s5105_s15, %s5098_s4 }
  0x74   : > { %p5102_p9 = pneg %p5101_p5  ;;  %p5108_p12 = por %p5107_p6, %p5106_p2 }
  0x76   : > { %p5109_p11 = pnand %p5108_p12, %p5102_p9 }
  0x78   : > { %5112 = shalt.err (!%p5109_p11)
}
  0x79   : > { %s7024_s19 = smov 4   ;;  %s7025_s28 = smov 64  }
  0x7a   : > { %4449 = dma.hbm_to_vmem [thread:$0]  (!%p5447_p7), %s5444_s13, 1024, %s5451_s21, %s5458_s29, %s7025_s28, %s7025_s28, %s7024_s19  }
  0x7b   : > { %s419_s12 = scalar_lea.vmem [#allocation5], %s5438_s26  ;;  %s415_s22 = sand.u32 1, %s5221_s20  }
  0x7c   : > { %s426_s16 = sshll.u32 %s419_s12, 4  ;;  %s416_s14 = scalar_lea.sflag [#allocation6], %s415_s22  ;;  %s5490_s16 = int_to_ptr.vmem [resolvable:$true] %s426_s16 }
  0x7d   : > { %s5113_s4 = scalar_lea.hbm %s5456_s8, 1024  ;;  %s5118_s15 = scalar_lea.hbm %s6945_s1, 2048 }
  0x7e   : > { %p5114_p1 = scmp.ne.s32.totalorder %s5456_s8, %s5113_s4  ;;  %p5119_p6 = scmp.lt.s32.totalorder %s5456_s8, %s6945_s1 }
  0x7f   : > { %p5120_p2 = scmp.lt.s32.totalorder %s5118_s15, %s5113_s4 }
  0x80   : > { %p5116_p4 = pnand %p5114_p1, %p5087_p8 }
  0x81   : > { %p5121_p10 = por %p5120_p2, %p5119_p6 }
  0x82   : > { %p5117_p12 = pneg %p5116_p4 }
  0x84   : > { %p5122_p0 = pnand %p5121_p10, %p5117_p12 }
  0x86   : > { %5125 = shalt.err (!%p5122_p0)
}
  0x87   : > { %s5126_s13 = scalar_lea.vmem %s5490_s16, 1024  ;;  %s5233_s26 = smov [#allocation5]  }
  0x88   : > { %p5127_p13 = scmp.ne.s32.totalorder %s5490_s16, %s5126_s13  ;;  %s5131_s21 = sshll.u32 %s5233_s26, 4  ;;  %s5132_s21 = int_to_ptr.vmem [resolvable:$false] %s5131_s21 }
  0x89   : > { %s5133_s29 = scalar_lea.vmem %s5132_s21, 2048  ;;  %p5134_p11 = scmp.lt.s32.totalorder %s5490_s16, %s5132_s21 }
  0x8a   : > { %p5129_p5 = pnand %p5127_p13, %p5087_p8  ;;  %p5135_p1 = scmp.lt.s32.totalorder %s5133_s29, %s5126_s13 }
  0x8c   : > { %p5130_p9 = pneg %p5129_p5  ;;  %p5136_p4 = por %p5135_p1, %p5134_p11 }
  0x8e   : > { %p5137_p6 = pnand %p5136_p4, %p5130_p9 }
  0x90   : > { %5140 = shalt.err (!%p5137_p6)
}
  0x91   : > { %4452 = dma.hbm_to_vmem [thread:$0]  (!%p5447_p7), %s5456_s8, 1024, %s5490_s16, %s416_s14, %s7025_s28, %s7025_s28, %s7024_s19  }
  0x92   : > { %438 = sbr.rel (%p5326_p3) target bundleno = 3448 (0xd78), region = 64 }
  0x97   : > { %s5520_s0 = sand.u32 1, %s5213_s18   ;;  %p7026_p8 = scmp.ne.s32.totalorder %s7018_s27, 0 }
  0x98   : > { %s3696_s30 = sshll.u32 %s5520_s0, 6  ;;  %s441_s12 = scalar_lea.sflag [#allocation3], %s5520_s0 }
  0x99   : > { %s5524_s22 = scalar_lea.vmem [#allocation2], %s3696_s30 }
  0x9a   : > { %5184 = dma.done.wait (%p7026_p8), %s441_s12, 1024  }
  0x9b   : > { %5186 = vsyncadd (%p7026_p8), %s441_s12, 4294966272  ;;  %s449_s2 = sand.u32 1, %s5321_s23   ;;  %s5531_s24 = scalar_lea.vmem [#allocation5], %s3696_s30 }
  0x9c   : > { %s450_s8 = scalar_lea.sflag [#allocation6], %s449_s2 }
  0x9d   : > { %5188 = dma.done.wait (%p7026_p8), %s450_s8, 1024  }
  0x9e   : > { %5190 = vsyncadd (%p7026_p8), %s450_s8, 4294966272  ;;  %p7027_p3 = scmp.eq.s32.totalorder %s5321_s23, 0 }
  0xa0   : > { %5192 = dma.done.wait (%p7027_p3), [#allocation6], 1024   ;;  %p7028_p7 = pmov %p7027_p3 }
  0xa1   : > { %p7029_p12 = pmov %p7027_p3 }
  0xa2   : > { %5194 = vsyncadd (%p7028_p7), [#allocation6], 4294966272 }
  0xa3   : > { %5196 = dma.done.wait (%p7029_p12), [#allocation9], 2048   ;;  %p7030_p2 = pmov %p7027_p3 }
  0xa5   : > { %5198 = vsyncadd (%p7030_p2), [#allocation9], 4294965248  ;;  %p7031_p10 = pmov %p7030_p2 }
  0xa6   : > { %p7032_p0 = pmov %p7030_p2 }
  0xa7   : > { %5200 = dma.done.wait (%p7031_p10), [#allocation12], 3072  }
  0xa8   : > { %5202 = vsyncadd (%p7032_p0), [#allocation12], 4294964224  ;;  %v4635_v0 = vld [vmem:[#allocation8 + $0x38] sm:$0xff]   ;;  %v4636_v1 = vld [vmem:[#allocation8 + $0x30] sm:$0xff]   ;;  %vm1193_vm0 = vcmask 261120   ;;  %s5234_s14 = smov 96  }
  0xa9   : > { %4020 = vmatprep.subr.bf16.mxu1 %v4635_v0  ;;  %v4637_v2 = vld [vmem:[#allocation8 + $0x28] sm:$0xff]   ;;  %v4638_v3 = vld [vmem:[#allocation8 + $0x20] sm:$0xff]   ;;  %v4639_v5 = vld [vmem:[#allocation8 + $0x18] sm:$0xff]   ;;  %s5235_s10 = smov 64   ;;  %s5236_s15 = smov 32   ;;  %vm3298_vm1 = vcmask 523264  }
  0xaa   : > { %4021 = vmatpush3.bf16.msra.mxu1 %v4635_v0  ;;  %v4643_v4 = vld [vmem:[%s5531_s24] sm:$0xff]   ;;  %v4640_v6 = vld [vmem:[#allocation8 + $0x10] sm:$0xff]   ;;  %v4651_v7 = vld [vmem:[#allocation7 + $0x38] sm:$0xff]   ;;  %vm3315_vm2 = vcmask 785408   ;;  %s3703_s13 = sshll.u32 %s5520_s0, 7  ;;  %s3795_s30 = sshll.u32 %s5321_s23, 11 }
  0xab   : > { %4022 = vmatprep.subr.bf16.mxu1 %v4636_v1  ;;  %4036 = vmatprep.mubr.bf16.mxu1 %v4643_v4  ;;  %v4652_v8 = vld [vmem:[#allocation7 + $0x30] sm:$0xff]   ;;  %v4641_v9 = vld [vmem:[#allocation8 + $0x8] sm:$0xff]   ;;  %v4642_v11 = vld [vmem:[#allocation8] sm:$0xff]   ;;  %s6876_s29 = scalar_lea.vmem [#allocation14], %s3703_s13  ;;  %s6897_s8 = scalar_lea.hbm %s6955_s11, %s3795_s30 }
  0xac   : > { %3988 = vmatprep.subr.bf16.mxu0 %v4651_v7  ;;  %v4653_v10 = vld [vmem:[#allocation7 + $0x28] sm:$0xff]   ;;  %v4654_v12 = vld [vmem:[#allocation7 + $0x20] sm:$0xff]   ;;  %v4655_v14 = vld [vmem:[#allocation7 + $0x18] sm:$0xff]   ;;  %s3538_s12 = sshll.u32 %s6876_s29, 4  ;;  %p7133_p5 = scmp.ne.s32.totalorder %s7019_s25, 0  ;;  %s6899_s12 = int_to_ptr.vmem [resolvable:$true] %s3538_s12 }
  0xad   : > { %3989 = vmatpush3.bf16.msra.mxu0 %v4651_v7  ;;  %v4659_v13 = vld [vmem:[%s5524_s22] sm:$0xff]   ;;  %v4644_v15 = vld [vmem:[%s5531_s24 + $0x8] sm:$0xff]   ;;  %v4645_v16 = vld [vmem:[%s5531_s24 + $0x10] sm:$0xff]   ;;  %s5141_s23 = scalar_lea.vmem %s6899_s12, 2048  ;;  %s5237_s27 = smov [#allocation14]  }
  0xae   : > { %4023 = vmatpush3.bf16.msra.mxu1 %v4636_v1  ;;  %3990 = vmatprep.subr.bf16.mxu0 %v4652_v8  ;;  %v4656_v17 = vld [vmem:[#allocation7 + $0x10] sm:$0xff]   ;;  %v4646_v18 = vld [vmem:[%s5531_s24 + $0x18] sm:$0xff]   ;;  %v4657_v19 = vld [vmem:[#allocation7 + $0x8] sm:$0xff]   ;;  %p5142_p13 = scmp.ne.s32.totalorder %s6899_s12, %s5141_s23  ;;  %s5145_s19 = sshll.u32 %s5237_s27, 4  ;;  %s5146_s19 = int_to_ptr.vmem [resolvable:$false] %s5145_s19 }
  0xaf   : > { %4024 = vmatprep.subr.bf16.mxu1 %v4637_v2  ;;  %4004 = vmatprep.mubr.bf16.mxu0 %v4659_v13  ;;  %v4647_v20 = vld [vmem:[%s5531_s24 + $0x20] sm:$0xff]   ;;  %v4667_v22 = vld [vmem:[#allocation10 + $0x38] sm:$0xff]   ;;  %v4648_v23 = vld [vmem:[%s5531_s24 + $0x28] sm:$0xff]   ;;  %s5147_s28 = scalar_lea.vmem %s5146_s19, 4096  ;;  %p5148_p1 = scmp.lt.s32.totalorder %s6899_s12, %s5146_s19 }
  0xb0   : > { %v4658_v21 = vld [vmem:[#allocation7] sm:$0xff]   ;;  %v4660_v24 = vld [vmem:[%s5524_s22 + $0x8] sm:$0xff]   ;;  %v4649_v25 = vld [vmem:[%s5531_s24 + $0x30] sm:$0xff]   ;;  %p5143_p9 = pnand %p5142_p13, %p7133_p5  ;;  %p5149_p4 = scmp.lt.s32.totalorder %s5147_s28, %s5141_s23 }
  0xb1   : > { %3991 = vmatpush3.bf16.msra.mxu0 %v4652_v8  ;;  %v4661_v26 = vld [vmem:[%s5524_s22 + $0x10] sm:$0xff]   ;;  %v4669_v28 = vld [vmem:[#allocation10 + $0x28] sm:$0xff]   ;;  %v4650_v29 = vld [vmem:[%s5531_s24 + $0x38] sm:$0xff]   ;;  %s3525_s24 = scalar_lea.sflag [#allocation4], %s5520_s0 }
  0xb2   : > { %4025 = vmatpush3.bf16.msra.mxu1 %v4637_v2  ;;  %3992 = vmatprep.subr.bf16.mxu0 %v4653_v10  ;;  %v4668_v27 = vld [vmem:[#allocation10 + $0x30] sm:$0xff]   ;;  %v4662_v30 = vld [vmem:[%s5524_s22 + $0x18] sm:$0xff]   ;;  %v4663_v31 = vld [vmem:[%s5524_s22 + $0x20] sm:$0xff]   ;;  %p5144_p11 = pneg %p5143_p9  ;;  %p5150_p6 = por %p5149_p4, %p5148_p1 }
  0xb3   : > { %4026 = vmatprep.subr.bf16.mxu1 %v4638_v3  ;;  %v4670_v32 = vld [vmem:[#allocation10 + $0x20] sm:$0xff]   ;;  %v4671_v33 = vld [vmem:[#allocation10 + $0x18] sm:$0xff]   ;;  %v4664_v34 = vld [vmem:[%s5524_s22 + $0x28] sm:$0xff]  }
  0xb4   : > { %v4665_v35 = vld [vmem:[%s5524_s22 + $0x30] sm:$0xff]   ;;  %v4666_v36 = vld [vmem:[%s5524_s22 + $0x38] sm:$0xff]   ;;  %v4673_v38 = vld [vmem:[#allocation10 + $0x8] sm:$0xff]   ;;  %p5151_p8 = pnand %p5150_p6, %p5144_p11 }
  0xb5   : > { %3993 = vmatpush3.bf16.msra.mxu0 %v4653_v10  ;;  %v4672_v37 = vld [vmem:[#allocation10 + $0x10] sm:$0xff]   ;;  %v4674_v39 = vld [vmem:[#allocation10] sm:$0xff]  }
  0xb6   : > { %4027 = vmatpush3.bf16.msra.mxu1 %v4638_v3  ;;  %3994 = vmatprep.subr.bf16.mxu0 %v4654_v12  ;;  %v3721_v43 = vld [vmem:[%s6949_s5] ss:$0 sm:$0xff] }
  0xb7   : > { %4028 = vmatprep.subr.bf16.mxu1 %v4639_v5  ;;  %v5577_v56 = vld [vmem:[%s6947_s3] ss:$0 sm:$0xff] }
  0xb9   : > { %3995 = vmatpush3.bf16.msra.mxu0 %v4654_v12 }
  0xba   : > { %4029 = vmatpush3.bf16.msra.mxu1 %v4639_v5  ;;  %3996 = vmatprep.subr.bf16.mxu0 %v4655_v14 }
  0xbb   : > { %4030 = vmatprep.subr.bf16.mxu1 %v4640_v6 }
  0xbd   : > { %3997 = vmatpush3.bf16.msra.mxu0 %v4655_v14 }
  0xbe   : > { %4031 = vmatpush3.bf16.msra.mxu1 %v4640_v6  ;;  %3998 = vmatprep.subr.bf16.mxu0 %v4656_v17 }
  0xbf   : > { %4032 = vmatprep.subr.bf16.mxu1 %v4641_v9 }
  0xc1   : > { %3999 = vmatpush3.bf16.msra.mxu0 %v4656_v17 }
  0xc2   : > { %4033 = vmatpush3.bf16.msra.mxu1 %v4641_v9  ;;  %4000 = vmatprep.subr.bf16.mxu0 %v4657_v19 }
  0xc3   : > { %4034 = vmatprep.subr.bf16.mxu1 %v4642_v11 }
  0xc5   : > { %4001 = vmatpush3.bf16.msra.mxu0 %v4657_v19 }
  0xc6   : > { %4035 = vmatpush3.bf16.msra.mxu1 %v4642_v11  ;;  %4002 = vmatprep.subr.bf16.mxu0 %v4658_v21 }
  0xc9   : > { %4037 = vmatmul.mubr.bf16.vlgmr.msra.gmra.mxu1 %v4644_v15  ;;  %4003 = vmatpush3.bf16.msra.mxu0 %v4658_v21 }
  0xca   : > { %4040 = vmatprep.mubr.bf16.mxu1 %v4645_v16  ;;  %4052 = vmatprep.subr.bf16.mxu0 %v4667_v22 }
  0xcc   : > { %4005 = vmatmul.mubr.bf16.vlgmr.msra.gmra.mxu0 %v4660_v24 }
  0xcd   : > { %4008 = vmatprep.mubr.bf16.mxu0 %v4661_v26  ;;  %4053 = vmatpush3.bf16.msra.mxu0 %v4667_v22 }
  0xce   : > { %4054 = vmatprep.subr.bf16.mxu0 %v4668_v27 }
  0xd1   : > { %4041 = vmatmul.mubr.bf16.gmra.mxu1 %v4646_v18  ;;  %4055 = vmatpush3.bf16.msra.mxu0 %v4668_v27 }
  0xd2   : > { %4044 = vmatprep.mubr.bf16.mxu1 %v4647_v20  ;;  %4056 = vmatprep.subr.bf16.mxu0 %v4669_v28 }
  0xd4   : > { %4009 = vmatmul.mubr.bf16.gmra.mxu0 %v4662_v30 }
  0xd5   : > { %4012 = vmatprep.mubr.bf16.mxu0 %v4663_v31  ;;  %4057 = vmatpush3.bf16.msra.mxu0 %v4669_v28 }
  0xd6   : > { %4058 = vmatprep.subr.bf16.mxu0 %v4670_v32 }
  0xd9   : > { %4045 = vmatmul.mubr.bf16.gmra.mxu1 %v4648_v23  ;;  %4059 = vmatpush3.bf16.msra.mxu0 %v4670_v32 }
  0xda   : > { %4048 = vmatprep.mubr.bf16.mxu1 %v4649_v25  ;;  %4060 = vmatprep.subr.bf16.mxu0 %v4671_v33 }
  0xdc   : > { %4013 = vmatmul.mubr.bf16.gmra.mxu0 %v4664_v34 }
  0xdd   : > { %4016 = vmatprep.mubr.bf16.mxu0 %v4665_v35  ;;  %4061 = vmatpush3.bf16.msra.mxu0 %v4671_v33 }
  0xde   : > { %4062 = vmatprep.subr.bf16.mxu0 %v4672_v37 }
  0xe1   : > { %4049 = vmatmul.mubr.bf16.gmra.mxu1 %v4650_v29  ;;  %4063 = vmatpush3.bf16.msra.mxu0 %v4672_v37 }
  0xe2   : > { %4064 = vmatprep.subr.bf16.mxu0 %v4673_v38 }
  0xe4   : > { %4017 = vmatmul.mubr.bf16.gmra.mxu0 %v4666_v36 }
  0xe5   : > { %4065 = vmatpush3.bf16.msra.mxu0 %v4673_v38 }
  0xe6   : > { %4066 = vmatprep.subr.bf16.mxu0 %v4674_v39 }
  0xe9   : > { %4067 = vmatpush3.bf16.msra.mxu0 %v4674_v39 }
 0x189   : > { %v4038_v40 = vpop.f32.mrf.mxu1 }
 0x18a   : > { %v931_v48 = vadd.f32 %v4038_v40, %v3721_v43 }
 0x18b   : > { %v922_v41 = vpop.f32.mrf.mxu1 }
 0x18c   : > { %v923_v46 = vadd.f32 %v3721_v43, %v922_v41  ;;  %v4006_v61 = vpop.f32.mrf.mxu0 }
 0x18d   : > { %v4039_v42 = vpop.f32.mrf.mxu1  ;;  %v715_v63 = vadd.f32 %v4006_v61, %v5577_v56 }
 0x18e   : > { %v934_v44 = vadd.f32 %v4039_v42, %v3721_v43  ;;  %v706_v2 = vpop.f32.mrf.mxu0 }
 0x18f   : > { %v925_v45 = vpop.f32.mrf.mxu1  ;;  %v707_v5 = vadd.f32 %v5577_v56, %v706_v2 }
 0x190   : > { %v926_v47 = vadd.f32 %v3721_v43, %v925_v45  ;;  %v5570_v51 = vpack.c.bf16 %v934_v44, %v931_v48  ;;  %v4007_v4 = vpop.f32.mrf.mxu0 }
 0x191   : > { %v4042_v49 = vpop.f32.mrf.mxu1  ;;  %v718_v6 = vadd.f32 %v4007_v4, %v5577_v56 }
 0x192   : > { %v5568_v50 = vpack.c.bf16 %v926_v47, %v923_v46  ;;  %v947_v59 = vadd.f32 %v4042_v49, %v3721_v43  ;;  %v709_v9 = vpop.f32.mrf.mxu0  ;;  %v1222_v39 = vsel %vm1193_vm0, %v5570_v51, 0 }
 0x193   : > { %v938_v52 = vpop.f32.mrf.mxu1  ;;  %v5588_v12 = vpack.c.bf16 %v718_v6, %v715_v63  ;;  %v710_v13 = vadd.f32 %v5577_v56, %v709_v9 }
 0x194   : > { %4068 = vmatprep.mubr.bf16.mxu0 %v5568_v50  ;;  %v939_v57 = vadd.f32 %v3721_v43, %v938_v52  ;;  %v4010_v32 = vpop.f32.mrf.mxu0  ;;  %v1219_v42 = vsel %vm1193_vm0, %v5568_v50, 0 }
 0x195   : > { %v4043_v53 = vpop.f32.mrf.mxu1  ;;  %4069 = vmatmul.mubr.bf16.vlgmr.msra.gmra.mxu0 %v5570_v51  ;;  %v5593_v17 = vpack.c.bf16 %v710_v13, %v707_v5  ;;  %v731_v49 = vadd.f32 %v4010_v32, %v5577_v56 }
 0x196   : > { %v950_v54 = vadd.f32 %v4043_v53, %v3721_v43  ;;  %v722_v34 = vpop.f32.mrf.mxu0 }
 0x197   : > { %v941_v55 = vpop.f32.mrf.mxu1  ;;  %4100 = vmatprep.mubr.msk.bf16.mxu1 %vm1193_vm0, %v5593_v17  ;;  %v723_v44 = vadd.f32 %v5577_v56, %v722_v34 }
 0x198   : > { %v942_v58 = vadd.f32 %v3721_v43, %v941_v55  ;;  %v5582_v0 = vpack.c.bf16 %v950_v54, %v947_v59  ;;  %v4011_v35 = vpop.f32.mrf.mxu0 }
 0x199   : > { %v4046_v60 = vpop.f32.mrf.mxu1  ;;  %v734_v52 = vadd.f32 %v4011_v35, %v5577_v56 }
 0x19a   : > { %v5579_v62 = vpack.c.bf16 %v942_v58, %v939_v57  ;;  %7034 = vst [vmem:[#allocation26_spill] sm:$0xff] %v5582_v0  ;;  %v963_v14 = vadd.f32 %v4046_v60, %v3721_v43  ;;  %v1228_v33 = vsel %vm1193_vm0, %v5582_v0, 0  ;;  %v725_v37 = vpop.f32.mrf.mxu0 }
 0x19b   : > { %v954_v1 = vpop.f32.mrf.mxu1  ;;  %v726_v45 = vadd.f32 %v5577_v56, %v725_v37  ;;  %v5655_v57 = vpack.c.bf16 %v734_v52, %v731_v49 }
 0x19c   : > { %7033 = vst [vmem:[#allocation25_spill] sm:$0xff] %v5579_v62  ;;  %4072 = vmatprep.mubr.bf16.mxu0 %v5579_v62  ;;  %v955_v10 = vadd.f32 %v3721_v43, %v954_v1  ;;  %v1225_v36 = vsel %vm1193_vm0, %v5579_v62, 0  ;;  %v4014_v38 = vpop.f32.mrf.mxu0 }
 0x19d   : > { %v4047_v3 = vpop.f32.mrf.mxu1  ;;  %4073 = vmatmul.mubr.bf16.gmra.mxu0 %v5582_v0  ;;  %v5645_v47 = vpack.c.bf16 %v726_v45, %v723_v44  ;;  %v747_v60 = vadd.f32 %v4014_v38, %v5577_v56 }
 0x19e   : > { %v966_v7 = vadd.f32 %v4047_v3, %v3721_v43  ;;  %v738_v40 = vpop.f32.mrf.mxu0 }
 0x19f   : > { %v957_v8 = vpop.f32.mrf.mxu1  ;;  %v739_v53 = vadd.f32 %v5577_v56, %v738_v40 }
 0x1a0   : > { %v958_v11 = vadd.f32 %v3721_v43, %v957_v8  ;;  %v5595_v18 = vpack.c.bf16 %v966_v7, %v963_v14  ;;  %v4015_v41 = vpop.f32.mrf.mxu0 }
 0x1a1   : > { %v4050_v15 = vpop.f32.mrf.mxu1  ;;  %v750_v61 = vadd.f32 %v4015_v41, %v5577_v56 }
 0x1a2   : > { %v5591_v16 = vpack.c.bf16 %v958_v11, %v955_v10  ;;  %7035 = vst [vmem:[#allocation27_spill] sm:$0xff] %v5595_v18  ;;  %v979_v21 = vadd.f32 %v4050_v15, %v3721_v43  ;;  %v1234_v30 = vsel %vm1193_vm0, %v5595_v18, 0 }
 0x1a3   : > { %v970_v19 = vpop.f32.mrf.mxu1  ;;  %v5667_v2 = vpack.c.bf16 %v750_v61, %v747_v60  ;;  %v5720_v61 = vld [vmem:[#allocation13 + $0x10] sm:$0xff] }
 0x1a4   : > { %4076 = vmatprep.mubr.bf16.mxu0 %v5591_v16  ;;  %v971_v24 = vadd.f32 %v3721_v43, %v970_v19  ;;  %v1231_v31 = vsel %vm1193_vm0, %v5591_v16, 0 }
 0x1a5   : > { %v4051_v20 = vpop.f32.mrf.mxu1  ;;  %4077 = vmatmul.mubr.bf16.gmra.mxu0 %v5595_v18 }
 0x1a6   : > { %v982_v22 = vadd.f32 %v4051_v20, %v3721_v43 }
 0x1a7   : > { %v973_v23 = vpop.f32.mrf.mxu1 }
 0x1a8   : > { %v5601_v25 = vpack.c.bf16 %v982_v22, %v979_v21  ;;  %v974_v26 = vadd.f32 %v3721_v43, %v973_v23  ;;  %v741_v43 = vpop.f32.mrf.mxu0 }
 0x1a9   : > { %v742_v54 = vadd.f32 %v5577_v56, %v741_v43 }
 0x1aa   : > { %7036 = vst [vmem:[#allocation28_spill] sm:$0xff] %v5601_v25  ;;  %v5603_v27 = vpack.c.bf16 %v974_v26, %v971_v24  ;;  %1666 = vrot.lane.b32.xlu0 %v5601_v25, %s5234_s14  ;;  %4372 = vmatprep.subr.msk.bf16.mxu1 %vm1193_vm0, %v5601_v25  ;;  %v1240_v28 = vsel %vm1193_vm0, %v5601_v25, 0  ;;  %v4018_v46 = vpop.f32.mrf.mxu0  ;;  %v3738_v24 = vld [vmem:[%s6951_s7] ss:$0 sm:$0xff] }
 0x1ab   : > { %4085 = vmatpush3.bf16.xpose.msra.mxu1 %v1240_v28  ;;  %v5657_v58 = vpack.c.bf16 %v742_v54, %v739_v53  ;;  %v763_v4 = vadd.f32 %v4018_v46, %v5577_v56 }
 0x1ac   : > { %1664 = vrot.lane.b32.xlu1 %v5603_v27, %s5234_s14  ;;  %4080 = vmatprep.mubr.bf16.mxu0 %v5603_v27  ;;  %v1237_v29 = vsel %vm1193_vm0, %v5603_v27, 0  ;;  %v754_v48 = vpop.f32.mrf.mxu0 }
 0x1ad   : > { %4373 = vmatprep.subr.msk.bf16.mxu1 %vm1193_vm0, %v5603_v27  ;;  %4081 = vmatmul.mubr.bf16.gmra.mxu0 %v5601_v25  ;;  %v755_v63 = vadd.f32 %v5577_v56, %v754_v48 }
 0x1ae   : > { %v4019_v55 = vpop.f32.mrf.mxu0 }
 0x1af   : > { %v766_v5 = vadd.f32 %v4019_v55, %v5577_v56 }
 0x1b0   : > { %v757_v59 = vpop.f32.mrf.mxu0 }
 0x1b1   : > { %v758_v1 = vadd.f32 %v5577_v56, %v757_v59  ;;  %v5677_v6 = vpack.c.bf16 %v766_v5, %v763_v4  ;;  %v5722_v4 = vld [vmem:[#allocation13] sm:$0xff] }
 0x1b3   : > { %4087 = vmatpush3.bf16.xpose.msra.mxu1 %v1237_v29  ;;  %v5669_v3 = vpack.c.bf16 %v758_v1, %v755_v63 }
 0x1b4   : > { %4374 = vmatprep.subr.msk.bf16.mxu1 %vm1193_vm0, %v5595_v18 }
 0x1bb   : > { %4089 = vmatpush3.bf16.xpose.msra.mxu1 %v1234_v30 }
 0x1bc   : > { %4375 = vmatprep.subr.msk.bf16.mxu1 %vm1193_vm0, %v5591_v16 }
 0x1c3   : > { %4091 = vmatpush3.bf16.xpose.msra.mxu1 %v1231_v31 }
 0x1c4   : > { %4376 = vmatprep.subr.msk.bf16.mxu1 %vm1193_vm0, %v5582_v0 }
 0x1cb   : > { %4093 = vmatpush3.bf16.xpose.msra.mxu1 %v1228_v33 }
 0x1cc   : > { %4377 = vmatprep.subr.msk.bf16.mxu1 %vm1193_vm0, %v5579_v62 }
 0x1d3   : > { %4095 = vmatpush3.bf16.xpose.msra.mxu1 %v1225_v36 }
 0x1d4   : > { %4378 = vmatprep.subr.msk.bf16.mxu1 %vm1193_vm0, %v5570_v51 }
 0x1db   : > { %4097 = vmatpush3.bf16.xpose.msra.mxu1 %v1222_v39 }
 0x1dc   : > { %4379 = vmatprep.subr.msk.bf16.mxu1 %vm1193_vm0, %v5568_v50 }
 0x1e3   : > { %4099 = vmatpush3.bf16.xpose.msra.mxu1 %v1219_v42 }
 0x1ea   : > { %4101 = vmatmul.mubr.msk.bf16.vlgmr.msra.gmra.mxu1 %vm1193_vm0, %v5588_v12 }
 0x1eb   : > { %4104 = vmatprep.mubr.msk.bf16.mxu1 %vm1193_vm0, %v5645_v47 }
 0x1f2   : > { %4105 = vmatmul.mubr.msk.bf16.gmra.mxu1 %vm1193_vm0, %v5655_v57 }
 0x1f3   : > { %4108 = vmatprep.mubr.msk.bf16.mxu1 %vm1193_vm0, %v5657_v58 }
 0x1fa   : > { %4109 = vmatmul.mubr.msk.bf16.gmra.mxu1 %vm1193_vm0, %v5667_v2 }
 0x1fb   : > { %4112 = vmatprep.mubr.msk.bf16.mxu1 %vm1193_vm0, %v5669_v3 }
 0x202   : > { %4113 = vmatmul.mubr.msk.bf16.gmra.mxu1 %vm1193_vm0, %v5677_v6 }
 0x21c   : > { %v5715_v59 = vpop.permute.xlu0 %1666 }
 0x255   : > { %v4070_v7 = vpop.f32.mrf.mxu0 }
 0x256   : > { %v1107_v49 = vadd.f32 %v4070_v7, %v3738_v24 }
 0x257   : > { %v1098_v8 = vpop.f32.mrf.mxu0 }
 0x258   : > { %v1099_v54 = vadd.f32 %v3738_v24, %v1098_v8 }
 0x259   : > { %v4071_v9 = vpop.f32.mrf.mxu0 }
 0x25a   : > { %v1110_v46 = vadd.f32 %v4071_v9, %v3738_v24  ;;  %v5727_v9 = vld [vmem:[#allocation13 + $0x18] sm:$0xff] }
 0x25b   : > { %v1101_v10 = vpop.f32.mrf.mxu0 }
 0x25c   : > { %v5707_v52 = vpack.c.bf16 %v1110_v46, %v1107_v49  ;;  %v1102_v53 = vadd.f32 %v3738_v24, %v1101_v10 }
 0x25d   : > { %v4074_v11 = vpop.f32.mrf.mxu0 }
 0x25e   : > { %v1123_v42 = vadd.f32 %v4074_v11, %v3738_v24  ;;  %7037 = vst [vmem:[#allocation29_spill] sm:$0xff] %v5707_v52  ;;  %v5711_v55 = vpack.c.bf16 %v1102_v53, %v1099_v54  ;;  %v5772_v54 = vld [vmem:[#allocation13 + $0x58] sm:$0xff] }
 0x25f   : > { %v1114_v13 = vpop.f32.mrf.mxu0 }
 0x260   : > { %v1115_v45 = vadd.f32 %v3738_v24, %v1114_v13  ;;  %7038 = vst [vmem:[#allocation30_spill] sm:$0xff] %v5711_v55 }
 0x261   : > { %v4075_v14 = vpop.f32.mrf.mxu0 }
 0x262   : > { %v1126_v40 = vadd.f32 %v4075_v14, %v3738_v24  ;;  %v5733_v14 = vld [vmem:[#allocation13 + $0x8] sm:$0xff] }
 0x263   : > { %v1117_v15 = vpop.f32.mrf.mxu0 }
 0x264   : > { %v5699_v43 = vpack.c.bf16 %v1126_v40, %v1123_v42  ;;  %v1118_v44 = vadd.f32 %v3738_v24, %v1117_v15  ;;  %v5759_v40 = vld [vmem:[#allocation13 + $0x50] sm:$0xff] }
 0x265   : > { %v4078_v19 = vpop.f32.mrf.mxu0  ;;  %7041 = vst [vmem:[#allocation33_spill] sm:$0xff] %v5759_v40 }
 0x266   : > { %v1139_v36 = vadd.f32 %v4078_v19, %v3738_v24  ;;  %v5703_v48 = vpack.c.bf16 %v1118_v44, %v1115_v45 }
 0x267   : > { %v1130_v20 = vpop.f32.mrf.mxu0 }
 0x268   : > { %v1131_v39 = vadd.f32 %v3738_v24, %v1130_v20 }
 0x269   : > { %v4079_v21 = vpop.f32.mrf.mxu0 }
 0x26a   : > { %v1142_v34 = vadd.f32 %v4079_v21, %v3738_v24  ;;  %v5739_v21 = vld [vmem:[#allocation13 + $0x30] sm:$0xff] }
 0x26b   : > { %v1133_v56 = vpop.f32.mrf.mxu0  ;;  %7039 = vst [vmem:[#allocation31_spill] sm:$0xff] %v5739_v21 }
 0x26c   : > { %v5691_v37 = vpack.c.bf16 %v1142_v34, %v1139_v36  ;;  %v1134_v38 = vadd.f32 %v3738_v24, %v1133_v56 }
 0x26d   : > { %v4082_v22 = vpop.f32.mrf.mxu0 }
 0x26e   : > { %v1155_v28 = vadd.f32 %v4082_v22, %v3738_v24  ;;  %v5695_v41 = vpack.c.bf16 %v1134_v38, %v1131_v39  ;;  %v5757_v39 = vld [vmem:[#allocation13 + $0x28] sm:$0xff] }
 0x26f   : > { %v1146_v23 = vpop.f32.mrf.mxu0 }
 0x270   : > { %v1147_v31 = vadd.f32 %v3738_v24, %v1146_v23 }
 0x271   : > { %v4083_v26 = vpop.f32.mrf.mxu0 }
 0x272   : > { %v1158_v29 = vadd.f32 %v4083_v26, %v3738_v24 }
 0x273   : > { %v1149_v30 = vpop.f32.mrf.mxu0 }
 0x274   : > { %v5684_v32 = vpack.c.bf16 %v1158_v29, %v1155_v28  ;;  %v1150_v33 = vadd.f32 %v3738_v24, %v1149_v30  ;;  %v5749_v28 = vld [vmem:[#allocation13 + $0x38] sm:$0xff] }
 0x276   : > { %v5686_v35 = vpack.c.bf16 %v1150_v33, %v1147_v31  ;;  %4116 = vmatprep.subr.bf16.mxu0 %v5684_v32  ;;  %v5751_v33 = vld [vmem:[#allocation13 + $0x20] sm:$0xff] }
 0x277   : > { %4117 = vmatpush3.bf16.msra.mxu0 %v5684_v32  ;;  %7040 = vst [vmem:[#allocation32_spill] sm:$0xff] %v5751_v33 }
 0x278   : > { %4118 = vmatprep.subr.bf16.mxu0 %v5686_v35 }
 0x27b   : > { %4119 = vmatpush3.bf16.msra.mxu0 %v5686_v35 }
 0x27c   : > { %4120 = vmatprep.subr.bf16.mxu0 %v5691_v37 }
 0x27f   : > { %4121 = vmatpush3.bf16.msra.mxu0 %v5691_v37 }
 0x280   : > { %4122 = vmatprep.subr.bf16.mxu0 %v5695_v41 }
 0x283   : > { %4123 = vmatpush3.bf16.msra.mxu0 %v5695_v41 }
 0x284   : > { %4124 = vmatprep.subr.bf16.mxu0 %v5699_v43 }
 0x287   : > { %4125 = vmatpush3.bf16.msra.mxu0 %v5699_v43 }
 0x288   : > { %4126 = vmatprep.subr.bf16.mxu0 %v5703_v48 }
 0x28b   : > { %4127 = vmatpush3.bf16.msra.mxu0 %v5703_v48 }
 0x28c   : > { %4128 = vmatprep.subr.bf16.mxu0 %v5707_v52 }
 0x28f   : > { %4129 = vmatpush3.bf16.msra.mxu0 %v5707_v52 }
 0x290   : > { %4130 = vmatprep.subr.bf16.mxu0 %v5711_v55 }
 0x293   : > { %4131 = vmatpush3.bf16.msra.mxu0 %v5711_v55 }
 0x294   : > { %4380 = vmatprep.subr.msk.bf16.mxu0 %vm1193_vm0, %v5715_v59 }
 0x2aa   : > { %v4102_v60 = vpop.f32.mrf.mxu1 }
 0x2ab   : > { %v1341_v63 = vmul.f32 0.17677669, %v4102_v60 }
 0x2ac   : > { %v1276_v1 = vpop.f32.mrf.mxu1 }
 0x2ad   : > { %v1339_v5 = vmul.f32 0.17677669, %v1276_v1  ;;  %v5725_v7 = vadd.f32 %v1341_v63, %v5720_v61 }
 0x2ae   : > { %v4103_v8 = vpop.f32.mrf.mxu1 }
 0x2af   : > { %v1342_v10 = vmul.f32 0.17677669, %v4103_v8  ;;  %1375 = vmax.xlane.f32.xlu1 %v5725_v7  ;;  %v5731_v11 = vadd.f32 %v1339_v5, %v5722_v4  ;;  %v5775_v5 = vld [vmem:[#allocation13 + $0x40] sm:$0xff] }
 0x2b0   : > { %v1279_v13 = vpop.f32.mrf.mxu1  ;;  %7042 = vst [vmem:[#allocation34_spill] sm:$0xff] %v5775_v5 }
 0x2b1   : > { %v1340_v15 = vmul.f32 0.17677669, %v1279_v13  ;;  %1371 = vmax.xlane.f32.xlu0 %v5731_v11  ;;  %v5737_v19 = vadd.f32 %v1342_v10, %v5727_v9 }
 0x2b2   : > { %v4106_v20 = vpop.f32.mrf.mxu1 }
 0x2b3   : > { %v1345_v56 = vmul.f32 0.17677669, %v4106_v20  ;;  %1377 = vmax.xlane.f32.xlu1 %v5737_v19  ;;  %v5743_v22 = vadd.f32 %v1340_v15, %v5733_v14  ;;  %v5781_v15 = vld [vmem:[#allocation13 + $0x48] sm:$0xff]  ;;  %v5783_v20 = vld [vmem:[#allocation13 + $0x70] sm:$0xff] }
 0x2b4   : > { %v1292_v23 = vpop.f32.mrf.mxu1  ;;  %7043 = vst [vmem:[#allocation35_spill] sm:$0xff] %v5783_v20 }
 0x2b5   : > { %1373 = vmax.xlane.f32.xlu0 %v5743_v22  ;;  %v5747_v24 = vadd.f32 %v1345_v56, %v5739_v21  ;;  %v1343_v29 = vmul.f32 0.17677669, %v1292_v23 }
 0x2b6   : > { %v4107_v26 = vpop.f32.mrf.mxu1 }
 0x2b7   : > { %v1346_v30 = vmul.f32 0.17677669, %v4107_v26  ;;  %v5763_v44 = vadd.f32 %v1343_v29, %v5751_v33 }
 0x2b8   : > { %v1295_v31 = vpop.f32.mrf.mxu1 }
 0x2b9   : > { %v1344_v34 = vmul.f32 0.17677669, %v1295_v31  ;;  %1383 = vmax.xlane.f32.xlu0 %v5747_v24  ;;  %v5755_v36 = vadd.f32 %v1346_v30, %v5749_v28 }
 0x2ba   : > { %v4110_v38 = vpop.f32.mrf.mxu1 }
 0x2bb   : > { %v1349_v42 = vmul.f32 0.17677669, %v4110_v38  ;;  %1385 = vmax.xlane.f32.xlu1 %v5755_v36  ;;  %v5767_v46 = vadd.f32 %v1344_v34, %v5757_v39  ;;  %v5796_v34 = vld [vmem:[#allocation13 + $0x60] sm:$0xff] }
 0x2bc   : > { %v1308_v45 = vpop.f32.mrf.mxu1  ;;  %7044 = vst [vmem:[#allocation36_spill] sm:$0xff] %v5796_v34 }
 0x2bd   : > { %1379 = vmax.xlane.f32.xlu0 %v5763_v44  ;;  %v5770_v49 = vadd.f32 %v1349_v42, %v5759_v40  ;;  %v1347_v60 = vmul.f32 0.17677669, %v1308_v45 }
 0x2be   : > { %v4111_v53 = vpop.f32.mrf.mxu1 }
 0x2bf   : > { %v1350_v63 = vmul.f32 0.17677669, %v4111_v53  ;;  %1381 = vmax.xlane.f32.xlu1 %v5767_v46  ;;  %v5787_v23 = vadd.f32 %v1347_v60, %v5775_v5  ;;  %v5808_v60 = vld [vmem:[#allocation13 + $0x78] sm:$0xff] }
 0x2c0   : > { %v1311_v1 = vpop.f32.mrf.mxu1  ;;  %7045 = vst [vmem:[#allocation37_spill] sm:$0xff] %v5808_v60 }
 0x2c1   : > { %v1348_v8 = vmul.f32 0.17677669, %v1311_v1  ;;  %1391 = vmax.xlane.f32.xlu0 %v5770_v49  ;;  %v5779_v10 = vadd.f32 %v1350_v63, %v5772_v54 }
 0x2c2   : > { %v4114_v13 = vpop.f32.mrf.mxu1 }
 0x2c3   : > { %1393 = vmax.xlane.f32.xlu1 %v5779_v10  ;;  %v1353_v56 = vmul.f32 0.17677669, %v4114_v13  ;;  %v5791_v29 = vadd.f32 %v1348_v8, %v5781_v15  ;;  %v5813_v8 = vld [vmem:[#allocation13 + $0x68] sm:$0xff] }
 0x2c4   : > { %v1324_v26 = vpop.f32.mrf.mxu1  ;;  %7046 = vst [vmem:[#allocation38_spill] sm:$0xff] %v5813_v8 }
 0x2c5   : > { %1387 = vmax.xlane.f32.xlu0 %v5787_v23  ;;  %v1351_v30 = vmul.f32 0.17677669, %v1324_v26  ;;  %v5794_v31 = vadd.f32 %v1353_v56, %v5783_v20  ;;  %v5820_v56 = vpop.permute.xlu1 %1664 }
 0x2c6   : > { %v4115_v42 = vpop.f32.mrf.mxu1 }
 0x2c7   : > { %1389 = vmax.xlane.f32.xlu1 %v5791_v29  ;;  %v5801_v38 = vadd.f32 %v1351_v30, %v5796_v34  ;;  %v1354_v45 = vmul.f32 0.17677669, %v4115_v42 }
 0x2c8   : > { %v1327_v53 = vpop.f32.mrf.mxu1 }
 0x2c9   : > { %1399 = vmax.xlane.f32.xlu0 %v5794_v31  ;;  %v1352_v63 = vmul.f32 0.17677669, %v1327_v53  ;;  %v5811_v1 = vadd.f32 %v1354_v45, %v5808_v60 }
 0x2cb   : > { %v5817_v13 = vadd.f32 %v1352_v63, %v5813_v8 }
 0x2cd   : > { %1395 = vmax.xlane.f32.xlu0 %v5801_v38 }
 0x2d8   : > { %1660 = vrot.lane.b32.xlu1 %v5591_v16, %s5234_s14 }
 0x2e3   : > { %1662 = vrot.lane.b32.xlu0 %v5595_v18, %s5234_s14 }
 0x2fc   : > { %1401 = vmax.xlane.f32.xlu1 %v5811_v1 }
 0x300   : > { %1397 = vmax.xlane.f32.xlu1 %v5817_v13 }
 0x338   : > { %v1376_v26 = vpop.xlane.xlu1 %1375 }
 0x339   : > { %v1405_v30 = vsub.f32 %v5725_v7, %v1376_v26 }
 0x33a   : > { %v1372_v42 = vpop.xlane.xlu0 %1371 }
 0x33b   : > { %v1423_v18 = vmul.f32 1.442695, %v1405_v30  ;;  %v1403_v53 = vsub.f32 %v5731_v11, %v1372_v42 }
 0x33c   : > { %v1378_v45 = vpop.xlane.xlu1 %1377 }
 0x33d   : > { %4683 = vpow2.f32 %v1423_v18  ;;  %v1419_v25 = vmul.f32 1.442695, %v1403_v53  ;;  %v1406_v60 = vsub.f32 %v5737_v19, %v1378_v45 }
 0x33e   : > { %v1374_v34 = vpop.xlane.xlu0 %1373 }
 0x33f   : > { %v1425_v20 = vmul.f32 1.442695, %v1406_v60  ;;  %v1404_v63 = vsub.f32 %v5743_v22, %v1374_v34  ;;  %4685 = vpow2.f32 %v1419_v25 }
 0x341   : > { %4687 = vpow2.f32 %v1425_v20  ;;  %v1421_v8 = vmul.f32 1.442695, %v1404_v63 }
 0x342   : > { %v1384_v25 = vpop.xlane.xlu0 %1383 }
 0x343   : > { %4689 = vpow2.f32 %v1421_v8  ;;  %v1409_v60 = vsub.f32 %v5747_v24, %v1384_v25 }
 0x344   : > { %v1386_v20 = vpop.xlane.xlu1 %1385 }
 0x345   : > { %v1431_v42 = vmul.f32 1.442695, %v1409_v60  ;;  %v1410_v45 = vsub.f32 %v5755_v36, %v1386_v20 }
 0x346   : > { %v1380_v19 = vpop.xlane.xlu0 %1379 }
 0x347   : > { %v1407_v26 = vsub.f32 %v5763_v44, %v1380_v19  ;;  %4691 = vpow2.f32 %v1431_v42  ;;  %v1433_v21 = vmul.f32 1.442695, %v1410_v45 }
 0x348   : > { %v1382_v8 = vpop.xlane.xlu1 %1381 }
 0x349   : > { %v1408_v53 = vsub.f32 %v5767_v46, %v1382_v8  ;;  %v1427_v63 = vmul.f32 1.442695, %v1407_v26 }
 0x34a   : > { %v5826_v5 = vpop.eup %4683  ;;  %v1392_v22 = vpop.xlane.xlu0 %1391 }
 0x34b   : > { %1455 = vadd.xlane.f32.xlu0 %v5826_v5  ;;  %4693 = vpow2.f32 %v1427_v63  ;;  %v1413_v24 = vsub.f32 %v5770_v49, %v1392_v22 }
 0x34c   : > { %v5829_v7 = vpop.eup %4685  ;;  %v1394_v40 = vpop.xlane.xlu1 %1393 }
 0x34d   : > { %v1439_v46 = vmul.f32 1.442695, %v1413_v24  ;;  %v1414_v60 = vsub.f32 %v5779_v10, %v1394_v40 }
 0x34e   : > { %v5831_v11 = vpop.eup %4687  ;;  %v1388_v34 = vpop.xlane.xlu0 %1387 }
 0x34f   : > { %1451 = vadd.xlane.f32.xlu0 %v5829_v7  ;;  %1457 = vadd.xlane.f32.xlu1 %v5831_v11  ;;  %v1411_v36 = vsub.f32 %v5787_v23, %v1388_v34 }
 0x350   : > { %v5835_v18 = vpop.eup %4689  ;;  %v1390_v19 = vpop.xlane.xlu1 %1389 }
 0x351   : > { %v1435_v8 = vmul.f32 1.442695, %v1411_v36 }
 0x352   : > { %v1400_v30 = vpop.xlane.xlu0 %1399 }
 0x353   : > { %1453 = vadd.xlane.f32.xlu1 %v5835_v18  ;;  %v1417_v33 = vsub.f32 %v5794_v31, %v1400_v30 }
 0x354   : > { %v5851_v31 = vpop.permute.xlu1 %1660  ;;  %v5853_v26 = vpop.eup %4691 }
 0x355   : > { %v1447_v25 = vmul.f32 1.442695, %v1417_v33 }
 0x358   : > { %v5856_v33 = vpop.eup %4693 }
 0x364   : > { %1656 = vrot.lane.b32.xlu1 %v5579_v62, %s5234_s14  ;;  %v1429_v62 = vmul.f32 1.442695, %v1408_v53 }
 0x365   : > { %1658 = vrot.lane.b32.xlu0 %v5582_v0, %s5234_s14  ;;  %v1396_v0 = vpop.xlane.xlu0 %1395 }
 0x366   : > { %4695 = vpow2.f32 %v1429_v62  ;;  %v1415_v44 = vsub.f32 %v5801_v38, %v1396_v0  ;;  %v1441_v62 = vmul.f32 1.442695, %v1414_v60 }
 0x367   : > { %4697 = vpow2.f32 %v1433_v21  ;;  %v1412_v21 = vsub.f32 %v5791_v29, %v1390_v19 }
 0x368   : > { %4699 = vpow2.f32 %v1447_v25  ;;  %v1443_v20 = vmul.f32 1.442695, %v1415_v44 }
 0x369   : > { %4701 = vpow2.f32 %v1439_v46  ;;  %v1437_v22 = vmul.f32 1.442695, %v1412_v21  ;;  %v1663_v25 = vpop.permute.xlu0 %1662 }
 0x36a   : > { %4703 = vpow2.f32 %v1443_v20 }
 0x36b   : > { %4705 = vpow2.f32 %v1435_v8 }
 0x36c   : > { %4707 = vpow2.f32 %v1441_v62 }
 0x373   : > { %v5860_v23 = vpop.eup %4695 }
 0x374   : > { %v5864_v38 = vpop.eup %4697 }
 0x375   : > { %v5867_v30 = vpop.eup %4699 }
 0x376   : > { %v5871_v29 = vpop.eup %4701 }
 0x377   : > { %v5873_v42 = vpop.eup %4703 }
 0x378   : > { %v5877_v53 = vpop.eup %4705 }
 0x384   : > { %1463 = vadd.xlane.f32.xlu0 %v5853_v26 }
 0x385   : > { %v1402_v0 = vpop.xlane.xlu1 %1401 }
 0x386   : > { %v1418_v49 = vsub.f32 %v5811_v1, %v1402_v0 }
 0x388   : > { %v1449_v40 = vmul.f32 1.442695, %v1418_v49  ;;  %1461 = vadd.xlane.f32.xlu0 %v5860_v23  ;;  %1459 = vadd.xlane.f32.xlu1 %v5856_v33 }
 0x389   : > { %v1398_v10 = vpop.xlane.xlu1 %1397 }
 0x38a   : > { %4709 = vpow2.f32 %v1449_v40  ;;  %v1416_v34 = vsub.f32 %v5817_v13, %v1398_v10  ;;  %v5880_v13 = vpop.eup %4707 }
 0x38b   : > { %4711 = vpow2.f32 %v1437_v22 }
 0x38c   : > { %1479 = vadd.xlane.f32.xlu0 %v5867_v30  ;;  %1465 = vadd.xlane.f32.xlu1 %v5864_v38  ;;  %v1445_v1 = vmul.f32 1.442695, %v1416_v34  ;;  %v1714_v34 = vsel %vm1193_vm0, %v5715_v59, 0 }
 0x38e   : > { %4713 = vpow2.f32 %v1445_v1 }
 0x390   : > { %1475 = vadd.xlane.f32.xlu0 %v5873_v42  ;;  %1471 = vadd.xlane.f32.xlu1 %v5871_v29 }
 0x394   : > { %1467 = vadd.xlane.f32.xlu1 %v5877_v53 }
 0x397   : > { %v5882_v45 = vpop.eup %4709 }
 0x398   : > { %1481 = vadd.xlane.f32.xlu0 %v5882_v45  ;;  %1473 = vadd.xlane.f32.xlu1 %v5880_v13  ;;  %v5886_v63 = vpop.eup %4711 }
 0x39b   : > { %v5889_v24 = vpop.eup %4713 }
 0x39c   : > { %1469 = vadd.xlane.f32.xlu1 %v5886_v63 }
 0x3a0   : > { %1477 = vadd.xlane.f32.xlu1 %v5889_v24 }
 0x3ae   : > { %1654 = vrot.lane.b32.xlu0 %v5570_v51, %s5234_s14 }
 0x3b1   : > { %1652 = vrot.lane.b32.xlu1 %v5568_v50, %s5234_s14 }
 0x3b2   : > { %1628 = vrot.lane.b32.xlu0 %v5593_v17, %s5234_s14 }
 0x3b5   : > { %1630 = vrot.lane.b32.xlu1 %v5588_v12, %s5234_s14 }
 0x3b6   : > { %1632 = vrot.lane.b32.xlu0 %v5645_v47, %s5234_s14 }
 0x3b9   : > { %1634 = vrot.lane.b32.xlu1 %v5655_v57, %s5234_s14 }
 0x3ba   : > { %1636 = vrot.lane.b32.xlu0 %v5657_v58, %s5234_s14 }
 0x3bd   : > { %1638 = vrot.lane.b32.xlu1 %v5667_v2, %s5234_s14 }
 0x3be   : > { %1640 = vrot.lane.b32.xlu0 %v5669_v3, %s5234_s14 }
 0x3c1   : > { %1642 = vrot.lane.b32.xlu1 %v5677_v6, %s5234_s14 }
 0x3c2   : > { %2019 = vrot.lane.b32.xlu0 %v5684_v32, %s5234_s14 }
 0x3c5   : > { %2017 = vrot.lane.b32.xlu1 %v5686_v35, %s5234_s14 }
 0x3c6   : > { %2015 = vrot.lane.b32.xlu0 %v5691_v37, %s5234_s14 }
 0x3c9   : > { %2009 = vrot.lane.b32.xlu1 %v5703_v48, %s5234_s14 }
 0x3ca   : > { %2013 = vrot.lane.b32.xlu0 %v5695_v41, %s5234_s14 }
 0x3cd   : > { %2005 = vrot.lane.b32.xlu1 %v5711_v55, %s5234_s14 }
 0x3ce   : > { %2011 = vrot.lane.b32.xlu0 %v5699_v43, %s5234_s14 }
 0x3d4   : > { %v1456_v44 = vpop.xlane.xlu0 %1455 }
 0x3d8   : > { %v1452_v19 = vpop.xlane.xlu0 %1451  ;;  %v1458_v46 = vpop.xlane.xlu1 %1457 }
 0x3d9   : > { %4715 = vrcp.f32 %v1458_v46 }
 0x3da   : > { %4717 = vrcp.f32 %v1452_v19 }
 0x3db   : > { %4719 = vrcp.f32 %v1456_v44 }
 0x3dc   : > { %v1454_v36 = vpop.xlane.xlu1 %1453  ;;  %v1659_v59 = vpop.permute.xlu0 %1658 }
 0x3dd   : > { %4721 = vrcp.f32 %v1454_v36 }
 0x3e6   : > { %v4716_v20 = vpop.eup %4715 }
 0x3e7   : > { %v4718_v60 = vpop.eup %4717  ;;  %v1502_v0 = vmul.f32 %v4716_v20, %v5831_v11  ;;  %v1711_v11 = vsel %vm1193_vm0, %v5820_v56, 0 }
 0x3e8   : > { %v4720_v8 = vpop.eup %4719  ;;  %v1499_v21 = vmul.f32 %v4718_v60, %v5829_v7  ;;  %v1708_v7 = vsel %vm1193_vm0, %v1663_v25, 0 }
 0x3e9   : > { %v1501_v40 = vmul.f32 %v4720_v8, %v5826_v5  ;;  %v1705_v5 = vsel %vm1193_vm0, %v5851_v31, 0 }
 0x3ea   : > { %v4722_v62 = vpop.eup %4721 }
 0x3eb   : > { %v1500_v49 = vmul.f32 %v4722_v62, %v5835_v18  ;;  %v1516_v22 = vpack.c.bf16 %v1502_v0, %v1501_v40  ;;  %v1657_v18 = vpop.permute.xlu1 %1656 }
 0x3ed   : > { %v1515_v10 = vpack.c.bf16 %v1500_v49, %v1499_v21 }
 0x3ef   : > { %4132 = vmatprep.mubr.bf16.mxu0 %v1515_v10 }
 0x3f0   : > { %4133 = vmatmul.mubr.bf16.vlgmr.msra.gmra.mxu0 %v1516_v22 }
 0x3f1   : > { %4149 = vmatpush3.bf16.xpose.msra.mxu0 %v1714_v34 }
 0x3f2   : > { %4381 = vmatprep.subr.msk.bf16.mxu0 %vm1193_vm0, %v5820_v56  ;;  %v1702_v56 = vsel %vm1193_vm0, %v1659_v59, 0 }
 0x3f9   : > { %4151 = vmatpush3.bf16.xpose.msra.mxu0 %v1711_v11 }
 0x3fa   : > { %4382 = vmatprep.subr.msk.bf16.mxu0 %vm1193_vm0, %v1663_v25 }
 0x401   : > { %4153 = vmatpush3.bf16.xpose.msra.mxu0 %v1708_v7 }
 0x402   : > { %4383 = vmatprep.subr.msk.bf16.mxu0 %vm1193_vm0, %v5851_v31  ;;  %v1699_v31 = vsel %vm1193_vm0, %v1657_v18, 0 }
 0x409   : > { %4155 = vmatpush3.bf16.xpose.msra.mxu0 %v1705_v5 }
 0x40a   : > { %4384 = vmatprep.subr.msk.bf16.mxu0 %vm1193_vm0, %v1659_v59 }
 0x40d   : > { %v1464_v1 = vpop.xlane.xlu0 %1463 }
 0x411   : > { %4157 = vmatpush3.bf16.xpose.msra.mxu0 %v1702_v56  ;;  %v1462_v44 = vpop.xlane.xlu0 %1461  ;;  %v1460_v19 = vpop.xlane.xlu1 %1459 }
 0x412   : > { %4723 = vrcp.f32 %v1462_v44  ;;  %4385 = vmatprep.subr.msk.bf16.mxu0 %vm1193_vm0, %v1657_v18 }
 0x413   : > { %4725 = vrcp.f32 %v1460_v19 }
 0x414   : > { %4727 = vrcp.f32 %v1464_v1 }
 0x415   : > { %v1466_v25 = vpop.xlane.xlu1 %1465  ;;  %v1480_v46 = vpop.xlane.xlu0 %1479 }
 0x416   : > { %4729 = vrcp.f32 %v1466_v25 }
 0x419   : > { %4159 = vmatpush3.bf16.xpose.msra.mxu0 %v1699_v31  ;;  %v1472_v36 = vpop.xlane.xlu1 %1471  ;;  %v1476_v20 = vpop.xlane.xlu0 %1475 }
 0x41d   : > { %v1468_v60 = vpop.xlane.xlu1 %1467 }
 0x41f   : > { %v4724_v8 = vpop.eup %4723 }
 0x420   : > { %v4726_v62 = vpop.eup %4725  ;;  %v1504_v0 = vmul.f32 %v4724_v8, %v5860_v23 }
 0x421   : > { %v1482_v21 = vpop.xlane.xlu0 %1481  ;;  %v1474_v49 = vpop.xlane.xlu1 %1473  ;;  %v1503_v40 = vmul.f32 %v4726_v62, %v5856_v33 }
 0x422   : > { %v4728_v10 = vpop.eup %4727  ;;  %4731 = vrcp.f32 %v1474_v49 }
 0x423   : > { %v1517_v22 = vpack.c.bf16 %v1504_v0, %v1503_v40  ;;  %v4730_v34 = vpop.eup %4729  ;;  %4733 = vrcp.f32 %v1468_v60  ;;  %v1505_v5 = vmul.f32 %v4728_v10, %v5853_v26 }
 0x424   : > { %4735 = vrcp.f32 %v1472_v36  ;;  %v1506_v59 = vmul.f32 %v4730_v34, %v5864_v38 }
 0x425   : > { %4136 = vmatprep.mubr.bf16.mxu0 %v1517_v22  ;;  %v1655_v11 = vpop.permute.xlu0 %1654  ;;  %v1470_v7 = vpop.xlane.xlu1 %1469 }
 0x426   : > { %4737 = vrcp.f32 %v1470_v7  ;;  %4386 = vmatprep.subr.msk.bf16.mxu0 %vm1193_vm0, %v1655_v11  ;;  %v1696_v23 = vsel %vm1193_vm0, %v1655_v11, 0  ;;  %v1518_v33 = vpack.c.bf16 %v1506_v59, %v1505_v5 }
 0x427   : > { %4161 = vmatpush3.bf16.xpose.msra.mxu0 %v1696_v23  ;;  %4739 = vrcp.f32 %v1476_v20 }
 0x428   : > { %4137 = vmatmul.mubr.bf16.gmra.mxu0 %v1518_v33 }
 0x429   : > { %v1629_v18 = vpop.permute.xlu0 %1628  ;;  %v1478_v1 = vpop.xlane.xlu1 %1477 }
 0x42a   : > { %4741 = vrcp.f32 %v1478_v1 }
 0x42b   : > { %4743 = vrcp.f32 %v1482_v21 }
 0x42c   : > { %4745 = vrcp.f32 %v1480_v46 }
 0x42d   : > { %v1633_v56 = vpop.permute.xlu0 %1632  ;;  %v1653_v44 = vpop.permute.xlu1 %1652 }
 0x42e   : > { %4387 = vmatprep.subr.msk.bf16.mxu0 %vm1193_vm0, %v1653_v44  ;;  %v1693_v26 = vsel %vm1193_vm0, %v1653_v44, 0 }
 0x42f   : > { %4163 = vmatpush3.bf16.xpose.msra.mxu0 %v1693_v26  ;;  %v4732_v38 = vpop.eup %4731 }
 0x430   : > { %v4734_v19 = vpop.eup %4733  ;;  %v1510_v20 = vmul.f32 %v4732_v38, %v5880_v13 }
 0x431   : > { %v1637_v25 = vpop.permute.xlu0 %1636  ;;  %v1631_v31 = vpop.permute.xlu1 %1630  ;;  %v1507_v8 = vmul.f32 %v4734_v19, %v5877_v53 }
 0x432   : > { %v4736_v36 = vpop.eup %4735 }
 0x433   : > { %v4738_v60 = vpop.eup %4737  ;;  %v1509_v49 = vmul.f32 %v4736_v36, %v5871_v29 }
 0x434   : > { %v1508_v62 = vmul.f32 %v4738_v60, %v5886_v63  ;;  %v4740_v46 = vpop.eup %4739 }
 0x435   : > { %v1641_v0 = vpop.permute.xlu0 %1640  ;;  %v1635_v21 = vpop.permute.xlu1 %1634  ;;  %v1520_v22 = vpack.c.bf16 %v1510_v20, %v1509_v49  ;;  %v1511_v11 = vmul.f32 %v4740_v46, %v5873_v42 }
 0x436   : > { %v1519_v40 = vpack.c.bf16 %v1508_v62, %v1507_v8 }
 0x437   : > { %v4742_v10 = vpop.eup %4741 }
 0x438   : > { %v4744_v34 = vpop.eup %4743  ;;  %4140 = vmatprep.mubr.bf16.mxu0 %v1519_v40  ;;  %v1512_v7 = vmul.f32 %v4742_v10, %v5889_v24 }
 0x439   : > { %v2020_v5 = vpop.permute.xlu0 %2019  ;;  %4141 = vmatmul.mubr.bf16.gmra.mxu0 %v1520_v22  ;;  %v1639_v13 = vpop.permute.xlu1 %1638  ;;  %v1514_v59 = vmul.f32 %v4744_v34, %v5882_v45 }
 0x43a   : > { %v4746_v53 = vpop.eup %4745  ;;  %4180 = vmatprep.subr.bf16.mxu1 %v2020_v5  ;;  %v1521_v63 = vpack.c.bf16 %v1512_v7, %v1511_v11 }
 0x43b   : > { %4181 = vmatpush3.bf16.msra.mxu1 %v2020_v5  ;;  %v1513_v23 = vmul.f32 %v4746_v53, %v5867_v30 }
 0x43c   : > { %4144 = vmatprep.mubr.bf16.mxu0 %v1521_v63 }
 0x43d   : > { %v1643_v29 = vpop.permute.xlu1 %1642  ;;  %v2016_v33 = vpop.permute.xlu0 %2015  ;;  %v1522_v1 = vpack.c.bf16 %v1514_v59, %v1513_v23 }
 0x441   : > { %4145 = vmatmul.mubr.bf16.gmra.mxu0 %v1522_v1  ;;  %v2018_v44 = vpop.permute.xlu1 %2017  ;;  %v2014_v42 = vpop.permute.xlu0 %2013 }
 0x442   : > { %4164 = vmatprep.mubr.msk.bf16.mxu0 %vm1193_vm0, %v1629_v18  ;;  %4182 = vmatprep.subr.bf16.mxu1 %v2018_v44 }
 0x443   : > { %4183 = vmatpush3.bf16.msra.mxu1 %v2018_v44 }
 0x444   : > { %4184 = vmatprep.subr.bf16.mxu1 %v2016_v33 }
 0x445   : > { %v2012_v45 = vpop.permute.xlu0 %2011  ;;  %v2010_v30 = vpop.permute.xlu1 %2009 }
 0x447   : > { %4185 = vmatpush3.bf16.msra.mxu1 %v2016_v33 }
 0x448   : > { %4186 = vmatprep.subr.bf16.mxu1 %v2014_v42 }
 0x449   : > { %4165 = vmatmul.mubr.msk.bf16.vlgmr.msra.gmra.mxu0 %vm1193_vm0, %v1631_v31 }
 0x44a   : > { %4168 = vmatprep.mubr.msk.bf16.mxu0 %vm1193_vm0, %v1633_v56 }
 0x44b   : > { %4187 = vmatpush3.bf16.msra.mxu1 %v2014_v42 }
 0x44c   : > { %4188 = vmatprep.subr.bf16.mxu1 %v2012_v45 }
 0x44f   : > { %4189 = vmatpush3.bf16.msra.mxu1 %v2012_v45 }
 0x450   : > { %4190 = vmatprep.subr.bf16.mxu1 %v2010_v30 }
 0x451   : > { %4169 = vmatmul.mubr.msk.bf16.gmra.mxu0 %vm1193_vm0, %v1635_v21 }
 0x452   : > { %4172 = vmatprep.mubr.msk.bf16.mxu0 %vm1193_vm0, %v1637_v25 }
 0x453   : > { %4191 = vmatpush3.bf16.msra.mxu1 %v2010_v30 }
 0x459   : > { %4173 = vmatmul.mubr.msk.bf16.gmra.mxu0 %vm1193_vm0, %v1639_v13 }
 0x45a   : > { %4176 = vmatprep.mubr.msk.bf16.mxu0 %vm1193_vm0, %v1641_v0 }
 0x461   : > { %4177 = vmatmul.mubr.msk.bf16.gmra.mxu0 %vm1193_vm0, %v1643_v29 }
 0x4b0   : > { %v5970_v24 = vpop.f32.mrf.mxu0 }
 0x4b1   : > { %7047 = vst [vmem:[#allocation39_spill] sm:$0xff] %v5970_v24 }
 0x4b2   : > { %v5972_v18 = vpop.f32.mrf.mxu0 }
 0x4b3   : > { %7048 = vst [vmem:[#allocation40_spill] sm:$0xff] %v5972_v18  ;;  %v6314_v18 = vld [vmem:[#allocation13 + $0x58] sm:$0xff] }
 0x4b4   : > { %v5974_v56 = vpop.f32.mrf.mxu0 }
 0x4b5   : > { %7049 = vst [vmem:[#allocation41_spill] sm:$0xff] %v5974_v56 }
 0x4b6   : > { %v5976_v26 = vpop.f32.mrf.mxu0 }
 0x4b7   : > { %7050 = vst [vmem:[#allocation42_spill] sm:$0xff] %v5976_v26  ;;  %v6320_v26 = vld [vmem:[#allocation13 + $0x48] sm:$0xff] }
 0x4e8   : > { %v5978_v38 = vpop.f32.mrf.mxu0 }
 0x4e9   : > { %7051 = vst [vmem:[#allocation43_spill] sm:$0xff] %v5978_v38 }
 0x4ea   : > { %v5980_v19 = vpop.f32.mrf.mxu0 }
 0x4eb   : > { %7052 = vst [vmem:[#allocation44_spill] sm:$0xff] %v5980_v19 }
 0x4ec   : > { %v5982_v25 = vpop.f32.mrf.mxu0 }
 0x4ed   : > { %7053 = vst [vmem:[#allocation45_spill] sm:$0xff] %v5982_v25  ;;  %v6308_v25 = vld [vmem:[#allocation13 + $0x28] sm:$0xff] }
 0x4ee   : > { %v5984_v31 = vpop.f32.mrf.mxu0 }
 0x4ef   : > { %7054 = vst [vmem:[#allocation46_spill] sm:$0xff] %v5984_v31 }
 0x4f9   : > { %v5986_v36 = vpop.f32.mrf.mxu0 }
 0x4fa   : > { %7055 = vst [vmem:[#allocation47_spill] sm:$0xff] %v5986_v36 }
 0x4fb   : > { %v5988_v60 = vpop.f32.mrf.mxu0 }
 0x4fc   : > { %7056 = vst [vmem:[#allocation48_spill] sm:$0xff] %v5988_v60 }
 0x4fd   : > { %v5990_v20 = vpop.f32.mrf.mxu0 }
 0x4fe   : > { %7057 = vst [vmem:[#allocation49_spill] sm:$0xff] %v5990_v20 }
 0x4ff   : > { %v5992_v8 = vpop.f32.mrf.mxu0 }
 0x500   : > { %7058 = vst [vmem:[#allocation50_spill] sm:$0xff] %v5992_v8 }
 0x501   : > { %v5994_v62 = vpop.f32.mrf.mxu0 }
 0x502   : > { %7059 = vst [vmem:[#allocation51_spill] sm:$0xff] %v5994_v62 }
 0x503   : > { %v5996_v46 = vpop.f32.mrf.mxu0 }
 0x504   : > { %7060 = vst [vmem:[#allocation52_spill] sm:$0xff] %v5996_v46 }
 0x505   : > { %v5998_v0 = vpop.f32.mrf.mxu0 }
 0x506   : > { %7061 = vst [vmem:[#allocation53_spill] sm:$0xff] %v5998_v0 }
 0x507   : > { %v6000_v21 = vpop.f32.mrf.mxu0 }
 0x508   : > { %7062 = vst [vmem:[#allocation54_spill] sm:$0xff] %v6000_v21 }
 0x509   : > { %v4166_v49 = vpop.f32.mrf.mxu0 }
 0x50a   : > { %v1815_v40 = vmul.f32 0.17677669, %v4166_v49 }
 0x50b   : > { %v1750_v10 = vpop.f32.mrf.mxu0 }
 0x50c   : > { %v1813_v22 = vmul.f32 0.17677669, %v1750_v10  ;;  %v6003_v34 = vadd.f32 %v1815_v40, %v5720_v61 }
 0x50d   : > { %v4167_v11 = vpop.f32.mrf.mxu0 }
 0x50e   : > { %1849 = vmax.xlane.f32.xlu0 %v6003_v34  ;;  %v1816_v5 = vmul.f32 0.17677669, %v4167_v11  ;;  %v6007_v53 = vadd.f32 %v1813_v22, %v5722_v4  ;;  %v7063_v22 = vld [vmem:[#allocation31_spill] sm:$0xff] }
 0x50f   : > { %v1753_v7 = vpop.f32.mrf.mxu0 }
 0x510   : > { %v1814_v13 = vmul.f32 0.17677669, %v1753_v7  ;;  %v6015_v61 = vadd.f32 %v1816_v5, %v5727_v9  ;;  %v7064_v7 = vld [vmem:[#allocation32_spill] sm:$0xff] }
 0x511   : > { %v4170_v63 = vpop.f32.mrf.mxu0 }
 0x512   : > { %1845 = vmax.xlane.f32.xlu0 %v6007_v53  ;;  %v6011_v59 = vadd.f32 %v1814_v13, %v5733_v14 }
 0x513   : > { %v1766_v29 = vpop.f32.mrf.mxu0 }
 0x514   : > { %1847 = vmax.xlane.f32.xlu1 %v6011_v59 }
 0x515   : > { %v4171_v23 = vpop.f32.mrf.mxu0 }
 0x516   : > { %v1820_v33 = vmul.f32 0.17677669, %v4171_v23  ;;  %1851 = vmax.xlane.f32.xlu0 %v6015_v61 }
 0x517   : > { %v1769_v1 = vpop.f32.mrf.mxu0 }
 0x518   : > { %v1818_v44 = vmul.f32 0.17677669, %v1769_v1  ;;  %v6019_v4 = vadd.f32 %v1820_v33, %v5749_v28  ;;  %v7065_v33 = vld [vmem:[#allocation33_spill] sm:$0xff] }
 0x519   : > { %v4174_v42 = vpop.f32.mrf.mxu0 }
 0x51a   : > { %1859 = vmax.xlane.f32.xlu1 %v6019_v4  ;;  %v6023_v45 = vadd.f32 %v1818_v44, %v5757_v39  ;;  %v1819_v39 = vmul.f32 0.17677669, %v4170_v63 }
 0x51b   : > { %v1782_v14 = vpop.f32.mrf.mxu0 }
 0x51c   : > { %v6041_v11 = vadd.f32 %v1819_v39, %v7063_v22  ;;  %v1821_v23 = vmul.f32 0.17677669, %v1782_v14  ;;  %v7068_v22 = vld [vmem:[#allocation36_spill] sm:$0xff] }
 0x51d   : > { %v4175_v30 = vpop.f32.mrf.mxu0 }
 0x51e   : > { %v1824_v49 = vmul.f32 0.17677669, %v4175_v30  ;;  %1855 = vmax.xlane.f32.xlu1 %v6023_v45 }
 0x51f   : > { %v1785_v9 = vpop.f32.mrf.mxu0 }
 0x520   : > { %v1822_v40 = vmul.f32 0.17677669, %v1785_v9  ;;  %v6027_v10 = vadd.f32 %v1824_v49, %v5772_v54  ;;  %v1817_v54 = vmul.f32 0.17677669, %v1766_v29  ;;  %v7066_v29 = vld [vmem:[#allocation34_spill] sm:$0xff] }
 0x521   : > { %v4178_v13 = vpop.f32.mrf.mxu0  ;;  %v6053_v30 = vadd.f32 %v1821_v23, %v7066_v29  ;;  %v7070_v23 = vld [vmem:[#allocation38_spill] sm:$0xff] }
 0x522   : > { %1867 = vmax.xlane.f32.xlu1 %v6027_v10  ;;  %v6031_v28 = vadd.f32 %v1822_v40, %v5781_v15  ;;  %v1823_v15 = vmul.f32 0.17677669, %v4174_v42  ;;  %v6045_v5 = vadd.f32 %v1817_v54, %v7064_v7  ;;  %v1827_v63 = vmul.f32 0.17677669, %v4178_v13  ;;  %v7067_v40 = vld [vmem:[#allocation35_spill] sm:$0xff]  ;;  %v7069_v7 = vld [vmem:[#allocation37_spill] sm:$0xff] }
 0x523   : > { %v1798_v44 = vpop.f32.mrf.mxu0  ;;  %v7073_v29 = vld [vmem:[#allocation26_spill] sm:$0xff] }
 0x524   : > { %v6049_v1 = vadd.f32 %v1823_v15, %v7065_v33  ;;  %v1825_v42 = vmul.f32 0.17677669, %v1798_v44  ;;  %v6057_v39 = vadd.f32 %v1827_v63, %v7067_v40  ;;  %v7071_v44 = vld [vmem:[#allocation28_spill] sm:$0xff]  ;;  %v7072_v63 = vld [vmem:[#allocation27_spill] sm:$0xff] }
 0x525   : > { %v4179_v49 = vpop.f32.mrf.mxu0 }
 0x526   : > { %1863 = vmax.xlane.f32.xlu1 %v6031_v28  ;;  %v1828_v9 = vmul.f32 0.17677669, %v4179_v49  ;;  %v6061_v15 = vadd.f32 %v1825_v42, %v7068_v22 }
 0x527   : > { %v1801_v54 = vpop.f32.mrf.mxu0 }
 0x528   : > { %v1826_v14 = vmul.f32 0.17677669, %v1801_v54  ;;  %v6064_v13 = vadd.f32 %v1828_v9, %v7069_v7  ;;  %v2006_v9 = vpop.permute.xlu1 %2005 }
 0x52a   : > { %v6069_v33 = vadd.f32 %v1826_v14, %v7070_v23 }
 0x52c   : > { %2007 = vrot.lane.b32.xlu0 %v5707_v52, %s5234_s14 }
 0x537   : > { %2154 = vrot.lane.b32.xlu1 %v5603_v27, %s5235_s10 }
 0x53b   : > { %2150 = vrot.lane.b32.xlu1 %v5591_v16, %s5235_s10 }
 0x54b   : > { %1857 = vmax.xlane.f32.xlu0 %v6041_v11 }
 0x54f   : > { %1853 = vmax.xlane.f32.xlu0 %v6045_v5 }
 0x553   : > { %1865 = vmax.xlane.f32.xlu0 %v6049_v1 }
 0x557   : > { %1861 = vmax.xlane.f32.xlu0 %v6053_v30 }
 0x55b   : > { %1873 = vmax.xlane.f32.xlu0 %v6057_v39 }
 0x55f   : > { %1869 = vmax.xlane.f32.xlu0 %v6061_v15  ;;  %1875 = vmax.xlane.f32.xlu1 %v6064_v13 }
 0x563   : > { %1871 = vmax.xlane.f32.xlu1 %v6069_v33 }
 0x575   : > { %2156 = vrot.lane.b32.xlu0 %v7071_v44, %s5235_s10 }
 0x579   : > { %2152 = vrot.lane.b32.xlu0 %v7072_v63, %s5235_s10 }
 0x57d   : > { %2148 = vrot.lane.b32.xlu0 %v7073_v29, %s5235_s10 }
 0x597   : > { %v1850_v49 = vpop.xlane.xlu0 %1849 }
 0x598   : > { %v1879_v42 = vsub.f32 %v6003_v34, %v1850_v49 }
 0x59a   : > { %v1897_v40 = vmul.f32 1.442695, %v1879_v42 }
 0x59b   : > { %v1846_v54 = vpop.xlane.xlu0 %1845 }
 0x59c   : > { %4747 = vpow2.f32 %v1897_v40  ;;  %v1877_v14 = vsub.f32 %v6007_v53, %v1846_v54 }
 0x59d   : > { %v1848_v22 = vpop.xlane.xlu1 %1847 }
 0x59e   : > { %v1893_v7 = vmul.f32 1.442695, %v1877_v14  ;;  %v1878_v46 = vsub.f32 %v6011_v59, %v1848_v22 }
 0x59f   : > { %v1852_v23 = vpop.xlane.xlu0 %1851 }
 0x5a0   : > { %4749 = vpow2.f32 %v1893_v7  ;;  %v1880_v21 = vsub.f32 %v6015_v61, %v1852_v23  ;;  %v1895_v60 = vmul.f32 1.442695, %v1878_v46 }
 0x5a2   : > { %v1899_v62 = vmul.f32 1.442695, %v1880_v21 }
 0x5a3   : > { %v2008_v0 = vpop.permute.xlu0 %2007 }
 0x5a4   : > { %4751 = vpow2.f32 %v1899_v62  ;;  %4192 = vmatprep.subr.bf16.mxu1 %v2008_v0  ;;  %v1860_v62 = vpop.xlane.xlu1 %1859 }
 0x5a5   : > { %4193 = vmatpush3.bf16.msra.mxu1 %v2008_v0  ;;  %4753 = vpow2.f32 %v1895_v60  ;;  %v7074_v60 = vld [vmem:[#allocation25_spill] sm:$0xff]  ;;  %v1884_v40 = vsub.f32 %v6019_v4, %v1860_v62 }
 0x5a6   : > { %4194 = vmatprep.subr.bf16.mxu1 %v2006_v9 }
 0x5a7   : > { %v1907_v8 = vmul.f32 1.442695, %v1884_v40 }
 0x5a8   : > { %v1856_v46 = vpop.xlane.xlu1 %1855 }
 0x5a9   : > { %v6082_v34 = vpop.eup %4747  ;;  %4195 = vmatpush3.bf16.msra.mxu1 %v2006_v9  ;;  %v1882_v61 = vsub.f32 %v6023_v45, %v1856_v46 }
 0x5aa   : > { %1929 = vadd.xlane.f32.xlu1 %v6082_v34 }
 0x5ab   : > { %v1903_v54 = vmul.f32 1.442695, %v1882_v61 }
 0x5ac   : > { %v1868_v0 = vpop.xlane.xlu1 %1867 }
 0x5ad   : > { %v6085_v53 = vpop.eup %4749 }
 0x5ae   : > { %1925 = vadd.xlane.f32.xlu1 %v6085_v53 }
 0x5b0   : > { %v1864_v14 = vpop.xlane.xlu1 %1863 }
 0x5b1   : > { %v6088_v59 = vpop.eup %4751 }
 0x5b2   : > { %1931 = vadd.xlane.f32.xlu1 %v6088_v59  ;;  %v6091_v21 = vpop.eup %4753 }
 0x5b4   : > { %v6101_v45 = vpop.permute.xlu1 %2154 }
 0x5b6   : > { %1927 = vadd.xlane.f32.xlu1 %v6091_v21 }
 0x5c7   : > { %2146 = vrot.lane.b32.xlu1 %v7074_v60, %s5235_s10 }
 0x5d4   : > { %v1858_v49 = vpop.xlane.xlu0 %1857 }
 0x5d5   : > { %v1883_v42 = vsub.f32 %v6041_v11, %v1858_v49  ;;  %v1888_v11 = vsub.f32 %v6027_v10, %v1868_v0 }
 0x5d7   : > { %v1905_v9 = vmul.f32 1.442695, %v1883_v42  ;;  %v1915_v49 = vmul.f32 1.442695, %v1888_v11  ;;  %v6106_v42 = vpop.permute.xlu1 %2150 }
 0x5d8   : > { %v1854_v22 = vpop.xlane.xlu0 %1853 }
 0x5d9   : > { %4755 = vpow2.f32 %v1905_v9  ;;  %v1881_v7 = vsub.f32 %v6045_v5, %v1854_v22  ;;  %v1886_v5 = vsub.f32 %v6031_v28, %v1864_v14 }
 0x5da   : > { %4757 = vpow2.f32 %v1903_v54 }
 0x5db   : > { %v1901_v23 = vmul.f32 1.442695, %v1881_v7 }
 0x5dc   : > { %v1866_v36 = vpop.xlane.xlu0 %1865 }
 0x5dd   : > { %4759 = vpow2.f32 %v1901_v23  ;;  %v1887_v20 = vsub.f32 %v6049_v1, %v1866_v36 }
 0x5de   : > { %4761 = vpow2.f32 %v1907_v8  ;;  %v1911_v8 = vmul.f32 1.442695, %v1886_v5 }
 0x5df   : > { %v1913_v46 = vmul.f32 1.442695, %v1887_v20 }
 0x5e0   : > { %v1862_v4 = vpop.xlane.xlu0 %1861 }
 0x5e1   : > { %4763 = vpow2.f32 %v1913_v46  ;;  %v1885_v62 = vsub.f32 %v6053_v30, %v1862_v4 }
 0x5e3   : > { %v1909_v61 = vmul.f32 1.442695, %v1885_v62 }
 0x5e4   : > { %v1874_v9 = vpop.xlane.xlu0 %1873 }
 0x5e5   : > { %4765 = vpow2.f32 %v1909_v61  ;;  %v1891_v36 = vsub.f32 %v6057_v39, %v1874_v9 }
 0x5e6   : > { %v6109_v1 = vpop.eup %4755  ;;  %4767 = vpow2.f32 %v1915_v49 }
 0x5e7   : > { %v1921_v20 = vmul.f32 1.442695, %v1891_v36  ;;  %1937 = vadd.xlane.f32.xlu0 %v6109_v1  ;;  %v6112_v30 = vpop.eup %4757 }
 0x5e8   : > { %v1870_v10 = vpop.xlane.xlu0 %1869  ;;  %v1876_v0 = vpop.xlane.xlu1 %1875 }
 0x5e9   : > { %4769 = vpow2.f32 %v1921_v20  ;;  %v1889_v28 = vsub.f32 %v6061_v15, %v1870_v10  ;;  %v1892_v40 = vsub.f32 %v6064_v13, %v1876_v0 }
 0x5ea   : > { %v6116_v54 = vpop.eup %4759  ;;  %4771 = vpow2.f32 %v1911_v8 }
 0x5eb   : > { %v1917_v14 = vmul.f32 1.442695, %v1889_v28  ;;  %1933 = vadd.xlane.f32.xlu0 %v6116_v54  ;;  %1935 = vadd.xlane.f32.xlu1 %v6112_v30  ;;  %v1923_v39 = vmul.f32 1.442695, %v1892_v40  ;;  %v6122_v23 = vpop.eup %4761 }
 0x5ec   : > { %v6120_v22 = vpop.permute.xlu0 %2156  ;;  %v1872_v7 = vpop.xlane.xlu1 %1871 }
 0x5ed   : > { %4773 = vpow2.f32 %v1917_v14  ;;  %v1890_v46 = vsub.f32 %v6069_v33, %v1872_v7  ;;  %4388 = vmatprep.subr.msk.bf16.mxu1 %vm1193_vm0, %v6120_v22 }
 0x5ee   : > { %v6127_v15 = vpop.eup %4763  ;;  %4775 = vpow2.f32 %v1923_v39 }
 0x5ef   : > { %v1919_v13 = vmul.f32 1.442695, %v1890_v46  ;;  %1939 = vadd.xlane.f32.xlu0 %v6122_v23  ;;  %1945 = vadd.xlane.f32.xlu1 %v6127_v15 }
 0x5f1   : > { %4777 = vpow2.f32 %v1919_v13 }
 0x5f2   : > { %v6131_v11 = vpop.eup %4765 }
 0x5f3   : > { %1941 = vadd.xlane.f32.xlu1 %v6131_v11  ;;  %v6134_v4 = vpop.eup %4767 }
 0x5f6   : > { %v6136_v62 = vpop.eup %4769 }
 0x5f7   : > { %1953 = vadd.xlane.f32.xlu0 %v6136_v62  ;;  %1947 = vadd.xlane.f32.xlu1 %v6134_v4  ;;  %v6140_v33 = vpop.eup %4771 }
 0x5fa   : > { %v6142_v61 = vpop.eup %4773 }
 0x5fb   : > { %1949 = vadd.xlane.f32.xlu0 %v6142_v61  ;;  %1943 = vadd.xlane.f32.xlu1 %v6140_v33  ;;  %v6146_v49 = vpop.eup %4775 }
 0x5fe   : > { %v6148_v5 = vpop.eup %4777 }
 0x5ff   : > { %1955 = vadd.xlane.f32.xlu0 %v6146_v49  ;;  %1951 = vadd.xlane.f32.xlu1 %v6148_v5 }
 0x610   : > { %2142 = vrot.lane.b32.xlu1 %v5568_v50, %s5235_s10 }
 0x614   : > { %2128 = vrot.lane.b32.xlu1 %v5588_v12, %s5235_s10 }
 0x615   : > { %2144 = vrot.lane.b32.xlu0 %v5570_v51, %s5235_s10 }
 0x618   : > { %2132 = vrot.lane.b32.xlu1 %v5655_v57, %s5235_s10 }
 0x619   : > { %2126 = vrot.lane.b32.xlu0 %v5593_v17, %s5235_s10 }
 0x61c   : > { %2136 = vrot.lane.b32.xlu1 %v5667_v2, %s5235_s10 }
 0x61d   : > { %2130 = vrot.lane.b32.xlu0 %v5645_v47, %s5235_s10 }
 0x620   : > { %2140 = vrot.lane.b32.xlu1 %v5677_v6, %s5235_s10 }
 0x621   : > { %2134 = vrot.lane.b32.xlu0 %v5657_v58, %s5235_s10 }
 0x624   : > { %2499 = vrot.lane.b32.xlu1 %v5686_v35, %s5235_s10 }
 0x625   : > { %2138 = vrot.lane.b32.xlu0 %v5669_v3, %s5235_s10 }
 0x628   : > { %2491 = vrot.lane.b32.xlu1 %v5703_v48, %s5235_s10 }
 0x629   : > { %2501 = vrot.lane.b32.xlu0 %v5684_v32, %s5235_s10 }
 0x62c   : > { %2487 = vrot.lane.b32.xlu1 %v5711_v55, %s5235_s10 }
 0x62d   : > { %2497 = vrot.lane.b32.xlu0 %v5691_v37, %s5235_s10 }
 0x631   : > { %2495 = vrot.lane.b32.xlu0 %v5695_v41, %s5235_s10 }
 0x633   : > { %v1930_v9 = vpop.xlane.xlu1 %1929 }
 0x635   : > { %2493 = vrot.lane.b32.xlu0 %v5699_v43, %s5235_s10 }
 0x637   : > { %v1926_v36 = vpop.xlane.xlu1 %1925 }
 0x63b   : > { %v1932_v20 = vpop.xlane.xlu1 %1931 }
 0x63c   : > { %4779 = vrcp.f32 %v1932_v20 }
 0x63d   : > { %4781 = vrcp.f32 %v1926_v36  ;;  %v2153_v36 = vpop.permute.xlu0 %2152 }
 0x63e   : > { %4783 = vrcp.f32 %v1930_v9  ;;  %v2204_v9 = vsel %vm1193_vm0, %v6120_v22, 0 }
 0x63f   : > { %v1928_v8 = vpop.xlane.xlu1 %1927 }
 0x640   : > { %4785 = vrcp.f32 %v1928_v8 }
 0x649   : > { %v4780_v10 = vpop.eup %4779 }
 0x64a   : > { %v4782_v0 = vpop.eup %4781  ;;  %v1976_v14 = vmul.f32 %v4780_v10, %v6088_v59  ;;  %v2201_v59 = vsel %vm1193_vm0, %v6101_v45, 0 }
 0x64b   : > { %v4784_v28 = vpop.eup %4783  ;;  %v1973_v39 = vmul.f32 %v4782_v0, %v6085_v53  ;;  %v2149_v53 = vpop.permute.xlu0 %2148 }
 0x64c   : > { %v1975_v46 = vmul.f32 %v4784_v28, %v6082_v34  ;;  %v2198_v34 = vsel %vm1193_vm0, %v2153_v36, 0 }
 0x64d   : > { %v4786_v40 = vpop.eup %4785 }
 0x64e   : > { %v1974_v7 = vmul.f32 %v4786_v40, %v6091_v21  ;;  %v1990_v19 = vpack.c.bf16 %v1976_v14, %v1975_v46  ;;  %v2147_v21 = vpop.permute.xlu1 %2146 }
 0x650   : > { %v1989_v13 = vpack.c.bf16 %v1974_v7, %v1973_v39 }
 0x652   : > { %4196 = vmatprep.mubr.bf16.mxu1 %v1989_v13 }
 0x653   : > { %4197 = vmatmul.mubr.bf16.vlgmr.msra.gmra.mxu1 %v1990_v19  ;;  %v2195_v19 = vsel %vm1193_vm0, %v6106_v42, 0 }
 0x654   : > { %4213 = vmatpush3.bf16.xpose.msra.mxu1 %v2204_v9 }
 0x655   : > { %4389 = vmatprep.subr.msk.bf16.mxu1 %vm1193_vm0, %v6101_v45  ;;  %v2192_v45 = vsel %vm1193_vm0, %v2149_v53, 0 }
 0x65c   : > { %4215 = vmatpush3.bf16.xpose.msra.mxu1 %v2201_v59 }
 0x65d   : > { %4390 = vmatprep.subr.msk.bf16.mxu1 %vm1193_vm0, %v2153_v36 }
 0x664   : > { %4217 = vmatpush3.bf16.xpose.msra.mxu1 %v2198_v34 }
 0x665   : > { %4391 = vmatprep.subr.msk.bf16.mxu1 %vm1193_vm0, %v6106_v42  ;;  %v2189_v42 = vsel %vm1193_vm0, %v2147_v21, 0 }
 0x66c   : > { %4219 = vmatpush3.bf16.xpose.msra.mxu1 %v2195_v19 }
 0x66d   : > { %4392 = vmatprep.subr.msk.bf16.mxu1 %vm1193_vm0, %v2149_v53 }
 0x670   : > { %v1938_v22 = vpop.xlane.xlu0 %1937 }
 0x674   : > { %4221 = vmatpush3.bf16.xpose.msra.mxu1 %v2192_v45  ;;  %v1934_v20 = vpop.xlane.xlu0 %1933  ;;  %v1936_v8 = vpop.xlane.xlu1 %1935 }
 0x675   : > { %4787 = vrcp.f32 %v1934_v20  ;;  %4393 = vmatprep.subr.msk.bf16.mxu1 %vm1193_vm0, %v2147_v21 }
 0x676   : > { %4789 = vrcp.f32 %v1936_v8 }
 0x677   : > { %4791 = vrcp.f32 %v1938_v22 }
 0x678   : > { %v1940_v10 = vpop.xlane.xlu0 %1939  ;;  %v1946_v0 = vpop.xlane.xlu1 %1945 }
 0x679   : > { %4793 = vrcp.f32 %v1940_v10 }
 0x67c   : > { %4223 = vmatpush3.bf16.xpose.msra.mxu1 %v2189_v42  ;;  %v1942_v28 = vpop.xlane.xlu1 %1941 }
 0x680   : > { %v1954_v40 = vpop.xlane.xlu0 %1953  ;;  %v1948_v14 = vpop.xlane.xlu1 %1947 }
 0x681   : > { %4795 = vrcp.f32 %v1948_v14 }
 0x682   : > { %v4788_v39 = vpop.eup %4787  ;;  %4797 = vrcp.f32 %v1942_v28 }
 0x683   : > { %v4790_v7 = vpop.eup %4789  ;;  %v1977_v46 = vmul.f32 %v4788_v39, %v6116_v54  ;;  %4799 = vrcp.f32 %v1946_v0 }
 0x684   : > { %v4792_v13 = vpop.eup %4791  ;;  %v1950_v9 = vpop.xlane.xlu0 %1949  ;;  %v1978_v36 = vmul.f32 %v4790_v7, %v6112_v30 }
 0x685   : > { %v1944_v59 = vpop.xlane.xlu1 %1943  ;;  %v1979_v53 = vmul.f32 %v4792_v13, %v6109_v1 }
 0x686   : > { %v4794_v34 = vpop.eup %4793  ;;  %4801 = vrcp.f32 %v1944_v59  ;;  %v1991_v19 = vpack.c.bf16 %v1978_v36, %v1977_v46 }
 0x687   : > { %v1980_v21 = vmul.f32 %v4794_v34, %v6122_v23  ;;  %4803 = vrcp.f32 %v1950_v9 }
 0x688   : > { %4200 = vmatprep.mubr.bf16.mxu1 %v1991_v19  ;;  %v1956_v22 = vpop.xlane.xlu0 %1955 }
 0x689   : > { %v1952_v45 = vpop.xlane.xlu1 %1951  ;;  %v1992_v20 = vpack.c.bf16 %v1980_v21, %v1979_v53 }
 0x68a   : > { %4805 = vrcp.f32 %v1952_v45 }
 0x68b   : > { %4807 = vrcp.f32 %v1956_v22  ;;  %4201 = vmatmul.mubr.bf16.gmra.mxu1 %v1992_v20 }
 0x68c   : > { %v2145_v54 = vpop.permute.xlu0 %2144  ;;  %4809 = vrcp.f32 %v1954_v40 }
 0x68d   : > { %v2143_v8 = vpop.permute.xlu1 %2142  ;;  %4394 = vmatprep.subr.msk.bf16.mxu1 %vm1193_vm0, %v2145_v54  ;;  %v2186_v30 = vsel %vm1193_vm0, %v2145_v54, 0 }
 0x68e   : > { %4225 = vmatpush3.bf16.xpose.msra.mxu1 %v2186_v30  ;;  %v4796_v1 = vpop.eup %4795  ;;  %v2183_v9 = vsel %vm1193_vm0, %v2143_v8, 0 }
 0x68f   : > { %4395 = vmatprep.subr.msk.bf16.mxu1 %vm1193_vm0, %v2143_v8  ;;  %v4798_v0 = vpop.eup %4797  ;;  %v1984_v14 = vmul.f32 %v4796_v1, %v6134_v4 }
 0x690   : > { %v2127_v23 = vpop.permute.xlu0 %2126  ;;  %v4800_v42 = vpop.eup %4799  ;;  %v1981_v46 = vmul.f32 %v4798_v0, %v6131_v11 }
 0x691   : > { %v2129_v10 = vpop.permute.xlu1 %2128  ;;  %v1983_v59 = vmul.f32 %v4800_v42, %v6127_v15 }
 0x693   : > { %v4802_v28 = vpop.eup %4801  ;;  %v1994_v19 = vpack.c.bf16 %v1984_v14, %v1983_v59 }
 0x694   : > { %v2131_v39 = vpop.permute.xlu0 %2130  ;;  %v1982_v40 = vmul.f32 %v4802_v28, %v6140_v33  ;;  %v4804_v13 = vpop.eup %4803 }
 0x695   : > { %v2133_v7 = vpop.permute.xlu1 %2132  ;;  %v1985_v4 = vmul.f32 %v4804_v13, %v6142_v61 }
 0x696   : > { %4227 = vmatpush3.bf16.xpose.msra.mxu1 %v2183_v9  ;;  %v1993_v36 = vpack.c.bf16 %v1982_v40, %v1981_v46 }
 0x697   : > { %v4806_v34 = vpop.eup %4805 }
 0x698   : > { %v4808_v53 = vpop.eup %4807  ;;  %4204 = vmatprep.mubr.bf16.mxu1 %v1993_v36  ;;  %v2135_v21 = vpop.permute.xlu0 %2134  ;;  %v1986_v45 = vmul.f32 %v4806_v34, %v6148_v5 }
 0x699   : > { %v2137_v22 = vpop.permute.xlu1 %2136  ;;  %4205 = vmatmul.mubr.bf16.gmra.mxu1 %v1994_v19  ;;  %v4810_v11 = vpop.eup %4809  ;;  %v1988_v20 = vmul.f32 %v4808_v53, %v6146_v49 }
 0x69a   : > { %v1995_v33 = vpack.c.bf16 %v1986_v45, %v1985_v4  ;;  %v1987_v8 = vmul.f32 %v4810_v11, %v6136_v62 }
 0x69c   : > { %4208 = vmatprep.mubr.bf16.mxu1 %v1995_v33  ;;  %v2139_v54 = vpop.permute.xlu0 %2138  ;;  %v1996_v30 = vpack.c.bf16 %v1988_v20, %v1987_v8 }
 0x69d   : > { %v2141_v15 = vpop.permute.xlu1 %2140 }
 0x6a0   : > { %v2502_v1 = vpop.permute.xlu0 %2501 }
 0x6a1   : > { %4209 = vmatmul.mubr.bf16.gmra.mxu1 %v1996_v30  ;;  %4244 = vmatprep.subr.bf16.mxu0 %v2502_v1  ;;  %v2500_v0 = vpop.permute.xlu1 %2499 }
 0x6a2   : > { %4228 = vmatprep.mubr.msk.bf16.mxu1 %vm1193_vm0, %v2127_v23  ;;  %4245 = vmatpush3.bf16.msra.mxu0 %v2502_v1  ;;  %v6278_v1 = vld [vmem:[#allocation13 + $0x10] sm:$0xff] }
 0x6a3   : > { %4246 = vmatprep.subr.bf16.mxu0 %v2500_v0 }
 0x6a4   : > { %v2498_v61 = vpop.permute.xlu0 %2497 }
 0x6a5   : > { %v2492_v49 = vpop.permute.xlu1 %2491 }
 0x6a6   : > { %4247 = vmatpush3.bf16.msra.mxu0 %v2500_v0 }
 0x6a7   : > { %4248 = vmatprep.subr.bf16.mxu0 %v2498_v61 }
 0x6a8   : > { %v2496_v5 = vpop.permute.xlu0 %2495 }
 0x6a9   : > { %4229 = vmatmul.mubr.msk.bf16.vlgmr.msra.gmra.mxu1 %vm1193_vm0, %v2129_v10 }
 0x6aa   : > { %4232 = vmatprep.mubr.msk.bf16.mxu1 %vm1193_vm0, %v2131_v39  ;;  %4249 = vmatpush3.bf16.msra.mxu0 %v2498_v61 }
 0x6ab   : > { %4250 = vmatprep.subr.bf16.mxu0 %v2496_v5 }
 0x6ac   : > { %v2494_v62 = vpop.permute.xlu0 %2493 }
 0x6ae   : > { %4251 = vmatpush3.bf16.msra.mxu0 %v2496_v5 }
 0x6af   : > { %4252 = vmatprep.subr.bf16.mxu0 %v2494_v62 }
 0x6b1   : > { %4233 = vmatmul.mubr.msk.bf16.gmra.mxu1 %vm1193_vm0, %v2133_v7 }
 0x6b2   : > { %4236 = vmatprep.mubr.msk.bf16.mxu1 %vm1193_vm0, %v2135_v21  ;;  %4253 = vmatpush3.bf16.msra.mxu0 %v2494_v62 }
 0x6b3   : > { %4254 = vmatprep.subr.bf16.mxu0 %v2492_v49 }
 0x6b6   : > { %4255 = vmatpush3.bf16.msra.mxu0 %v2492_v49  ;;  %v6284_v49 = vld [vmem:[#allocation13] sm:$0xff] }
 0x6b9   : > { %4237 = vmatmul.mubr.msk.bf16.gmra.mxu1 %vm1193_vm0, %v2137_v22 }
 0x6ba   : > { %4240 = vmatprep.mubr.msk.bf16.mxu1 %vm1193_vm0, %v2139_v54 }
 0x6c1   : > { %4241 = vmatmul.mubr.msk.bf16.gmra.mxu1 %vm1193_vm0, %v2141_v15 }
 0x713   : > { %v6230_v23 = vpop.f32.mrf.mxu1 }
 0x714   : > { %7075 = vst [vmem:[#allocation31_spill] sm:$0xff] %v6230_v23 }
 0x715   : > { %v6232_v10 = vpop.f32.mrf.mxu1 }
 0x716   : > { %7076 = vst [vmem:[#allocation32_spill] sm:$0xff] %v6232_v10  ;;  %v6362_v10 = vld [vmem:[#allocation13 + $0x60] sm:$0xff] }
 0x717   : > { %v6234_v42 = vpop.f32.mrf.mxu1 }
 0x718   : > { %7077 = vst [vmem:[#allocation33_spill] sm:$0xff] %v6234_v42 }
 0x719   : > { %v6238_v14 = vpop.f32.mrf.mxu1 }
 0x71a   : > { %7078 = vst [vmem:[#allocation34_spill] sm:$0xff] %v6238_v14 }
 0x74b   : > { %v6242_v7 = vpop.f32.mrf.mxu1 }
 0x74c   : > { %7079 = vst [vmem:[#allocation35_spill] sm:$0xff] %v6242_v7 }
 0x74d   : > { %v6244_v46 = vpop.f32.mrf.mxu1 }
 0x74e   : > { %7080 = vst [vmem:[#allocation36_spill] sm:$0xff] %v6244_v46 }
 0x74f   : > { %v6246_v40 = vpop.f32.mrf.mxu1 }
 0x750   : > { %7081 = vst [vmem:[#allocation37_spill] sm:$0xff] %v6246_v40 }
 0x751   : > { %v6250_v9 = vpop.f32.mrf.mxu1 }
 0x752   : > { %7082 = vst [vmem:[#allocation38_spill] sm:$0xff] %v6250_v9 }
 0x759   : > { %v6254_v36 = vpop.f32.mrf.mxu1 }
 0x75a   : > { %7083 = vst [vmem:[#allocation28_spill] sm:$0xff] %v6254_v36 }
 0x75b   : > { %v6256_v34 = vpop.f32.mrf.mxu1 }
 0x75c   : > { %7084 = vst [vmem:[#allocation27_spill] sm:$0xff] %v6256_v34 }
 0x75d   : > { %v6258_v19 = vpop.f32.mrf.mxu1 }
 0x75e   : > { %7085 = vst [vmem:[#allocation26_spill] sm:$0xff] %v6258_v19 }
 0x75f   : > { %v6262_v21 = vpop.f32.mrf.mxu1 }
 0x760   : > { %7086 = vst [vmem:[#allocation25_spill] sm:$0xff] %v6262_v21 }
 0x761   : > { %v6266_v4 = vpop.f32.mrf.mxu1 }
 0x762   : > { %7087 = vst [vmem:[#allocation55_spill] sm:$0xff] %v6266_v4 }
 0x763   : > { %v6268_v45 = vpop.f32.mrf.mxu1 }
 0x764   : > { %7088 = vst [vmem:[#allocation56_spill] sm:$0xff] %v6268_v45 }
 0x765   : > { %v6270_v11 = vpop.f32.mrf.mxu1 }
 0x766   : > { %7089 = vst [vmem:[#allocation57_spill] sm:$0xff] %v6270_v11 }
 0x767   : > { %v6274_v20 = vpop.f32.mrf.mxu1 }
 0x768   : > { %7090 = vst [vmem:[#allocation58_spill] sm:$0xff] %v6274_v20 }
 0x769   : > { %v4230_v15 = vpop.f32.mrf.mxu1 }
 0x76a   : > { %v2305_v8 = vmul.f32 0.17677669, %v4230_v15  ;;  %v6289_v15 = vld [vmem:[#allocation13 + $0x8] sm:$0xff] }
 0x76b   : > { %v2240_v30 = vpop.f32.mrf.mxu1 }
 0x76c   : > { %v6281_v0 = vadd.f32 %v6278_v1, %v2305_v8  ;;  %v2303_v61 = vmul.f32 0.17677669, %v2240_v30  ;;  %v6295_v30 = vld [vmem:[#allocation13 + $0x18] sm:$0xff] }
 0x76d   : > { %v4231_v5 = vpop.f32.mrf.mxu1 }
 0x76e   : > { %2339 = vmax.xlane.f32.xlu0 %v6281_v0  ;;  %v6287_v33 = vadd.f32 %v6284_v49, %v2303_v61  ;;  %v2306_v22 = vmul.f32 0.17677669, %v4231_v5 }
 0x76f   : > { %v2243_v62 = vpop.f32.mrf.mxu1 }
 0x770   : > { %v2304_v54 = vmul.f32 0.17677669, %v2243_v62  ;;  %v6298_v53 = vadd.f32 %v6295_v30, %v2306_v22  ;;  %v6302_v62 = vld [vmem:[#allocation13 + $0x38] sm:$0xff] }
 0x771   : > { %v4234_v59 = vpop.f32.mrf.mxu1 }
 0x772   : > { %v6292_v39 = vadd.f32 %v6289_v15, %v2304_v54  ;;  %2335 = vmax.xlane.f32.xlu0 %v6287_v33 }
 0x773   : > { %v2256_v8 = vpop.f32.mrf.mxu1 }
 0x774   : > { %2337 = vmax.xlane.f32.xlu1 %v6292_v39 }
 0x775   : > { %v4235_v61 = vpop.f32.mrf.mxu1 }
 0x776   : > { %v2310_v13 = vmul.f32 0.17677669, %v4235_v61  ;;  %2341 = vmax.xlane.f32.xlu0 %v6298_v53 }
 0x777   : > { %v2259_v5 = vpop.f32.mrf.mxu1 }
 0x778   : > { %v6305_v54 = vadd.f32 %v6302_v62, %v2310_v13  ;;  %v2308_v28 = vmul.f32 0.17677669, %v2259_v5 }
 0x779   : > { %v4238_v31 = vpop.f32.mrf.mxu1 }
 0x77a   : > { %2349 = vmax.xlane.f32.xlu1 %v6305_v54  ;;  %v6311_v22 = vadd.f32 %v6308_v25, %v2308_v28  ;;  %v2313_v4 = vmul.f32 0.17677669, %v4238_v31  ;;  %v6356_v31 = vld [vmem:[#allocation13 + $0x70] sm:$0xff] }
 0x77b   : > { %v2272_v38 = vpop.f32.mrf.mxu1 }
 0x77d   : > { %v4239_v24 = vpop.f32.mrf.mxu1 }
 0x77e   : > { %v2314_v61 = vmul.f32 0.17677669, %v4239_v24  ;;  %2345 = vmax.xlane.f32.xlu1 %v6311_v22  ;;  %v2309_v24 = vmul.f32 0.17677669, %v4234_v59  ;;  %v2311_v59 = vmul.f32 0.17677669, %v2272_v38 }
 0x77f   : > { %v2275_v56 = vpop.f32.mrf.mxu1 }
 0x780   : > { %v6317_v13 = vadd.f32 %v6314_v18, %v2314_v61  ;;  %v2312_v5 = vmul.f32 0.17677669, %v2275_v56  ;;  %v6332_v56 = vld [vmem:[#allocation13 + $0x30] sm:$0xff]  ;;  %v2307_v61 = vmul.f32 0.17677669, %v2256_v8  ;;  %v6350_v8 = vld [vmem:[#allocation13 + $0x40] sm:$0xff] }
 0x781   : > { %v6335_v28 = vadd.f32 %v6332_v56, %v2309_v24  ;;  %v4242_v11 = vpop.f32.mrf.mxu1  ;;  %v6353_v34 = vadd.f32 %v6350_v8, %v2311_v59  ;;  %v6367_v59 = vld [vmem:[#allocation13 + $0x78] sm:$0xff] }
 0x782   : > { %2357 = vmax.xlane.f32.xlu1 %v6317_v13  ;;  %v6323_v45 = vadd.f32 %v6320_v26, %v2312_v5  ;;  %v6338_v5 = vld [vmem:[#allocation13 + $0x20] sm:$0xff] }
 0x783   : > { %v6341_v20 = vadd.f32 %v6338_v5, %v2307_v61  ;;  %v2288_v24 = vpop.f32.mrf.mxu1  ;;  %v2317_v61 = vmul.f32 0.17677669, %v4242_v11 }
 0x785   : > { %v4243_v21 = vpop.f32.mrf.mxu1  ;;  %v6359_v46 = vadd.f32 %v6356_v31, %v2317_v61 }
 0x786   : > { %2353 = vmax.xlane.f32.xlu1 %v6323_v45  ;;  %v2318_v9 = vmul.f32 0.17677669, %v4243_v21 }
 0x787   : > { %v2291_v38 = vpop.f32.mrf.mxu1 }
 0x788   : > { %v6370_v11 = vadd.f32 %v6367_v59, %v2318_v9  ;;  %v2316_v36 = vmul.f32 0.17677669, %v2291_v38 }
 0x78c   : > { %2489 = vrot.lane.b32.xlu0 %v5707_v52, %s5235_s10 }
 0x797   : > { %2636 = vrot.lane.b32.xlu1 %v5603_v27, %s5236_s15  ;;  %v6344_v27 = vld [vmem:[#allocation13 + $0x50] sm:$0xff] }
 0x79b   : > { %2632 = vrot.lane.b32.xlu1 %v5591_v16, %s5236_s15  ;;  %v6347_v16 = vadd.f32 %v6344_v27, %v2313_v4  ;;  %v2315_v4 = vmul.f32 0.17677669, %v2288_v24  ;;  %v6374_v24 = vld [vmem:[#allocation13 + $0x68] sm:$0xff] }
 0x79c   : > { %v6377_v21 = vadd.f32 %v6374_v24, %v2316_v36 }
 0x79d   : > { %v6365_v14 = vadd.f32 %v6362_v10, %v2315_v4  ;;  %v2488_v4 = vpop.permute.xlu1 %2487 }
 0x7ab   : > { %2347 = vmax.xlane.f32.xlu0 %v6335_v28 }
 0x7af   : > { %2343 = vmax.xlane.f32.xlu0 %v6341_v20 }
 0x7b3   : > { %2355 = vmax.xlane.f32.xlu0 %v6347_v16 }
 0x7b7   : > { %2351 = vmax.xlane.f32.xlu0 %v6353_v34 }
 0x7bb   : > { %2363 = vmax.xlane.f32.xlu0 %v6359_v46 }
 0x7bf   : > { %2359 = vmax.xlane.f32.xlu0 %v6365_v14  ;;  %2365 = vmax.xlane.f32.xlu1 %v6370_v11 }
 0x7c3   : > { %2361 = vmax.xlane.f32.xlu1 %v6377_v21 }
 0x7d5   : > { %2638 = vrot.lane.b32.xlu0 %v7071_v44, %s5236_s15 }
 0x7d9   : > { %2634 = vrot.lane.b32.xlu0 %v7072_v63, %s5236_s15 }
 0x7dd   : > { %2630 = vrot.lane.b32.xlu0 %v7073_v29, %s5236_s15 }
 0x7f7   : > { %v2340_v9 = vpop.xlane.xlu0 %2339 }
 0x7f8   : > { %v2369_v61 = vsub.f32 %v6281_v0, %v2340_v9 }
 0x7fa   : > { %v2387_v38 = vmul.f32 1.442695, %v2369_v61 }
 0x7fb   : > { %v2336_v19 = vpop.xlane.xlu0 %2335 }
 0x7fc   : > { %4811 = vpow2.f32 %v2387_v38  ;;  %v2367_v36 = vsub.f32 %v6287_v33, %v2336_v19 }
 0x7fd   : > { %v2338_v7 = vpop.xlane.xlu1 %2337 }
 0x7fe   : > { %v2383_v40 = vmul.f32 1.442695, %v2367_v36  ;;  %v2368_v44 = vsub.f32 %v6292_v39, %v2338_v7 }
 0x7ff   : > { %v2342_v52 = vpop.xlane.xlu0 %2341 }
 0x800   : > { %4813 = vpow2.f32 %v2383_v40  ;;  %v2370_v63 = vsub.f32 %v6298_v53, %v2342_v52  ;;  %v2385_v29 = vmul.f32 1.442695, %v2368_v44 }
 0x802   : > { %v2389_v23 = vmul.f32 1.442695, %v2370_v63 }
 0x803   : > { %v2490_v42 = vpop.permute.xlu0 %2489 }
 0x804   : > { %4815 = vpow2.f32 %v2389_v23  ;;  %4256 = vmatprep.subr.bf16.mxu0 %v2490_v42  ;;  %v2350_v23 = vpop.xlane.xlu1 %2349 }
 0x805   : > { %4257 = vmatpush3.bf16.msra.mxu0 %v2490_v42  ;;  %4817 = vpow2.f32 %v2385_v29  ;;  %v2374_v61 = vsub.f32 %v6305_v54, %v2350_v23 }
 0x806   : > { %4258 = vmatprep.subr.bf16.mxu0 %v2488_v4 }
 0x807   : > { %v2397_v29 = vmul.f32 1.442695, %v2374_v61 }
 0x808   : > { %v2346_v42 = vpop.xlane.xlu1 %2345 }
 0x809   : > { %v6390_v0 = vpop.eup %4811  ;;  %4259 = vmatpush3.bf16.msra.mxu0 %v2488_v4  ;;  %v2372_v40 = vsub.f32 %v6311_v22, %v2346_v42 }
 0x80a   : > { %2419 = vadd.xlane.f32.xlu1 %v6390_v0 }
 0x80b   : > { %v2393_v4 = vmul.f32 1.442695, %v2372_v40 }
 0x80c   : > { %v2358_v7 = vpop.xlane.xlu1 %2357 }
 0x80d   : > { %v6393_v19 = vpop.eup %4813 }
 0x80e   : > { %2415 = vadd.xlane.f32.xlu1 %v6393_v19 }
 0x810   : > { %v2354_v38 = vpop.xlane.xlu1 %2353 }
 0x811   : > { %v6396_v39 = vpop.eup %4815 }
 0x812   : > { %2421 = vadd.xlane.f32.xlu1 %v6396_v39  ;;  %v6399_v52 = vpop.eup %4817 }
 0x814   : > { %v6409_v22 = vpop.permute.xlu1 %2636 }
 0x816   : > { %2417 = vadd.xlane.f32.xlu1 %v6399_v52 }
 0x827   : > { %2628 = vrot.lane.b32.xlu1 %v7074_v60, %s5236_s15 }
 0x834   : > { %v2348_v53 = vpop.xlane.xlu0 %2347 }
 0x835   : > { %v2373_v33 = vsub.f32 %v6335_v28, %v2348_v53  ;;  %v2378_v28 = vsub.f32 %v6317_v13, %v2358_v7 }
 0x837   : > { %v2395_v9 = vmul.f32 1.442695, %v2373_v33  ;;  %v2405_v53 = vmul.f32 1.442695, %v2378_v28  ;;  %v6414_v33 = vpop.permute.xlu1 %2632 }
 0x838   : > { %v2344_v36 = vpop.xlane.xlu0 %2343 }
 0x839   : > { %4819 = vpow2.f32 %v2395_v9  ;;  %v2371_v44 = vsub.f32 %v6341_v20, %v2344_v36  ;;  %v2376_v20 = vsub.f32 %v6323_v45, %v2354_v38 }
 0x83a   : > { %4821 = vpow2.f32 %v2393_v4 }
 0x83b   : > { %v2391_v63 = vmul.f32 1.442695, %v2371_v44  ;;  %v2401_v13 = vmul.f32 1.442695, %v2376_v20 }
 0x83c   : > { %v2356_v60 = vpop.xlane.xlu0 %2355 }
 0x83d   : > { %4823 = vpow2.f32 %v2391_v63  ;;  %v2377_v55 = vsub.f32 %v6347_v16, %v2356_v60 }
 0x83e   : > { %4825 = vpow2.f32 %v2397_v29 }
 0x83f   : > { %v2403_v42 = vmul.f32 1.442695, %v2377_v55 }
 0x840   : > { %v2352_v54 = vpop.xlane.xlu0 %2351 }
 0x841   : > { %4827 = vpow2.f32 %v2403_v42  ;;  %v2375_v23 = vsub.f32 %v6353_v34, %v2352_v54 }
 0x843   : > { %v2399_v40 = vmul.f32 1.442695, %v2375_v23 }
 0x844   : > { %v2364_v9 = vpop.xlane.xlu0 %2363 }
 0x845   : > { %4829 = vpow2.f32 %v2399_v40  ;;  %v2381_v16 = vsub.f32 %v6359_v46, %v2364_v9 }
 0x846   : > { %v6417_v61 = vpop.eup %4819  ;;  %4831 = vpow2.f32 %v2405_v53 }
 0x847   : > { %v2411_v55 = vmul.f32 1.442695, %v2381_v16  ;;  %2427 = vadd.xlane.f32.xlu0 %v6417_v61  ;;  %v6420_v34 = vpop.eup %4821 }
 0x848   : > { %v2360_v7 = vpop.xlane.xlu0 %2359  ;;  %v2366_v4 = vpop.xlane.xlu1 %2365 }
 0x849   : > { %4833 = vpow2.f32 %v2411_v55  ;;  %v2379_v45 = vsub.f32 %v6365_v14, %v2360_v7  ;;  %v2382_v38 = vsub.f32 %v6370_v11, %v2366_v4  ;;  %v2683_v55 = vsel %vm1193_vm0, %v6409_v22, 0 }
 0x84a   : > { %v6424_v36 = vpop.eup %4823  ;;  %4835 = vpow2.f32 %v2401_v13 }
 0x84b   : > { %v2407_v44 = vmul.f32 1.442695, %v2379_v45  ;;  %2423 = vadd.xlane.f32.xlu0 %v6424_v36  ;;  %2425 = vadd.xlane.f32.xlu1 %v6420_v34  ;;  %v2413_v46 = vmul.f32 1.442695, %v2382_v38  ;;  %v6428_v60 = vpop.eup %4825 }
 0x84c   : > { %v2639_v63 = vpop.permute.xlu0 %2638  ;;  %v2362_v29 = vpop.xlane.xlu1 %2361 }
 0x84d   : > { %4837 = vpow2.f32 %v2407_v44  ;;  %v2380_v42 = vsub.f32 %v6377_v21, %v2362_v29  ;;  %4396 = vmatprep.subr.msk.bf16.mxu0 %vm1193_vm0, %v2639_v63  ;;  %v2686_v16 = vsel %vm1193_vm0, %v2639_v63, 0 }
 0x84e   : > { %v6432_v14 = vpop.eup %4827  ;;  %4839 = vpow2.f32 %v2413_v46 }
 0x84f   : > { %v2409_v11 = vmul.f32 1.442695, %v2380_v42  ;;  %2429 = vadd.xlane.f32.xlu0 %v6428_v60  ;;  %2435 = vadd.xlane.f32.xlu1 %v6432_v14 }
 0x851   : > { %4841 = vpow2.f32 %v2409_v11 }
 0x852   : > { %v6436_v28 = vpop.eup %4829 }
 0x853   : > { %2431 = vadd.xlane.f32.xlu1 %v6436_v28  ;;  %v6439_v54 = vpop.eup %4831 }
 0x856   : > { %v6441_v23 = vpop.eup %4833 }
 0x857   : > { %2443 = vadd.xlane.f32.xlu0 %v6441_v23  ;;  %2437 = vadd.xlane.f32.xlu1 %v6439_v54  ;;  %v6445_v21 = vpop.eup %4835 }
 0x85a   : > { %v6447_v40 = vpop.eup %4837 }
 0x85b   : > { %2439 = vadd.xlane.f32.xlu0 %v6447_v40  ;;  %2433 = vadd.xlane.f32.xlu1 %v6445_v21  ;;  %v6451_v53 = vpop.eup %4839 }
 0x85e   : > { %v6453_v20 = vpop.eup %4841 }
 0x85f   : > { %2445 = vadd.xlane.f32.xlu0 %v6451_v53  ;;  %2441 = vadd.xlane.f32.xlu1 %v6453_v20 }
 0x870   : > { %2624 = vrot.lane.b32.xlu1 %v5568_v50, %s5236_s15 }
 0x874   : > { %2610 = vrot.lane.b32.xlu1 %v5588_v12, %s5236_s15 }
 0x875   : > { %2626 = vrot.lane.b32.xlu0 %v5570_v51, %s5236_s15 }
 0x878   : > { %2614 = vrot.lane.b32.xlu1 %v5655_v57, %s5236_s15 }
 0x879   : > { %2608 = vrot.lane.b32.xlu0 %v5593_v17, %s5236_s15 }
 0x87c   : > { %2618 = vrot.lane.b32.xlu1 %v5667_v2, %s5236_s15 }
 0x87d   : > { %2612 = vrot.lane.b32.xlu0 %v5645_v47, %s5236_s15 }
 0x880   : > { %2622 = vrot.lane.b32.xlu1 %v5677_v6, %s5236_s15 }
 0x881   : > { %2616 = vrot.lane.b32.xlu0 %v5657_v58, %s5236_s15 }
 0x884   : > { %2981 = vrot.lane.b32.xlu1 %v5686_v35, %s5236_s15 }
 0x885   : > { %2620 = vrot.lane.b32.xlu0 %v5669_v3, %s5236_s15 }
 0x889   : > { %2983 = vrot.lane.b32.xlu0 %v5684_v32, %s5236_s15 }
 0x88d   : > { %2979 = vrot.lane.b32.xlu0 %v5691_v37, %s5236_s15 }
 0x893   : > { %v2420_v50 = vpop.xlane.xlu1 %2419 }
 0x897   : > { %v2416_v51 = vpop.xlane.xlu1 %2415 }
 0x89b   : > { %v2422_v12 = vpop.xlane.xlu1 %2421 }
 0x89c   : > { %4843 = vrcp.f32 %v2422_v12 }
 0x89d   : > { %4845 = vrcp.f32 %v2416_v51 }
 0x89e   : > { %4847 = vrcp.f32 %v2420_v50 }
 0x89f   : > { %v2418_v17 = vpop.xlane.xlu1 %2417 }
 0x8a0   : > { %4849 = vrcp.f32 %v2418_v17 }
 0x8a3   : > { %v2629_v13 = vpop.permute.xlu1 %2628 }
 0x8a9   : > { %v4844_v47 = vpop.eup %4843 }
 0x8aa   : > { %v4846_v57 = vpop.eup %4845  ;;  %v2466_v3 = vmul.f32 %v4844_v47, %v6396_v39  ;;  %v2635_v39 = vpop.permute.xlu0 %2634 }
 0x8ab   : > { %v4848_v58 = vpop.eup %4847  ;;  %v2463_v6 = vmul.f32 %v4846_v57, %v6393_v19  ;;  %v2680_v19 = vsel %vm1193_vm0, %v2635_v39, 0 }
 0x8ac   : > { %v2465_v35 = vmul.f32 %v4848_v58, %v6390_v0  ;;  %v2677_v0 = vsel %vm1193_vm0, %v6414_v33, 0 }
 0x8ad   : > { %v4850_v2 = vpop.eup %4849 }
 0x8ae   : > { %v2464_v32 = vmul.f32 %v4850_v2, %v6399_v52  ;;  %v2480_v9 = vpack.c.bf16 %v2466_v3, %v2465_v35  ;;  %v2631_v52 = vpop.permute.xlu0 %2630 }
 0x8b0   : > { %v2479_v37 = vpack.c.bf16 %v2464_v32, %v2463_v6 }
 0x8b2   : > { %4260 = vmatprep.mubr.bf16.mxu0 %v2479_v37 }
 0x8b3   : > { %4261 = vmatmul.mubr.bf16.vlgmr.msra.gmra.mxu0 %v2480_v9 }
 0x8b4   : > { %4277 = vmatpush3.bf16.xpose.msra.mxu0 %v2686_v16 }
 0x8b5   : > { %4397 = vmatprep.subr.msk.bf16.mxu0 %vm1193_vm0, %v6409_v22  ;;  %v2674_v22 = vsel %vm1193_vm0, %v2631_v52, 0 }
 0x8bc   : > { %4279 = vmatpush3.bf16.xpose.msra.mxu0 %v2683_v55 }
 0x8bd   : > { %4398 = vmatprep.subr.msk.bf16.mxu0 %vm1193_vm0, %v2635_v39 }
 0x8c4   : > { %4281 = vmatpush3.bf16.xpose.msra.mxu0 %v2680_v19 }
 0x8c5   : > { %4399 = vmatprep.subr.msk.bf16.mxu0 %vm1193_vm0, %v6414_v33  ;;  %v2671_v33 = vsel %vm1193_vm0, %v2629_v13, 0 }
 0x8cc   : > { %4283 = vmatpush3.bf16.xpose.msra.mxu0 %v2677_v0 }
 0x8cd   : > { %4400 = vmatprep.subr.msk.bf16.mxu0 %vm1193_vm0, %v2631_v52 }
 0x8d0   : > { %v2428_v7 = vpop.xlane.xlu0 %2427 }
 0x8d4   : > { %4285 = vmatpush3.bf16.xpose.msra.mxu0 %v2674_v22  ;;  %v2424_v4 = vpop.xlane.xlu0 %2423  ;;  %v2426_v45 = vpop.xlane.xlu1 %2425 }
 0x8d5   : > { %4851 = vrcp.f32 %v2424_v4  ;;  %4401 = vmatprep.subr.msk.bf16.mxu0 %vm1193_vm0, %v2629_v13 }
 0x8d6   : > { %4853 = vrcp.f32 %v2426_v45 }
 0x8d7   : > { %4855 = vrcp.f32 %v2428_v7 }
 0x8d8   : > { %v2430_v38 = vpop.xlane.xlu0 %2429  ;;  %v2436_v44 = vpop.xlane.xlu1 %2435 }
 0x8d9   : > { %4857 = vrcp.f32 %v2430_v38 }
 0x8dc   : > { %4287 = vmatpush3.bf16.xpose.msra.mxu0 %v2671_v33  ;;  %v2432_v46 = vpop.xlane.xlu1 %2431 }
 0x8e0   : > { %v2444_v63 = vpop.xlane.xlu0 %2443  ;;  %v2438_v29 = vpop.xlane.xlu1 %2437 }
 0x8e1   : > { %4859 = vrcp.f32 %v2438_v29 }
 0x8e2   : > { %v4852_v42 = vpop.eup %4851  ;;  %4861 = vrcp.f32 %v2432_v46 }
 0x8e3   : > { %v4854_v11 = vpop.eup %4853  ;;  %v2467_v50 = vmul.f32 %v4852_v42, %v6424_v36  ;;  %4863 = vrcp.f32 %v2436_v44 }
 0x8e4   : > { %v4856_v51 = vpop.eup %4855  ;;  %v2440_v12 = vpop.xlane.xlu0 %2439  ;;  %v2468_v47 = vmul.f32 %v4854_v11, %v6420_v34 }
 0x8e5   : > { %v2434_v17 = vpop.xlane.xlu1 %2433  ;;  %v2469_v2 = vmul.f32 %v4856_v51, %v6417_v61 }
 0x8e6   : > { %v4858_v57 = vpop.eup %4857  ;;  %4865 = vrcp.f32 %v2434_v17  ;;  %v2481_v58 = vpack.c.bf16 %v2468_v47, %v2467_v50 }
 0x8e7   : > { %v2470_v3 = vmul.f32 %v4858_v57, %v6428_v60  ;;  %4867 = vrcp.f32 %v2440_v12 }
 0x8e8   : > { %4264 = vmatprep.mubr.bf16.mxu0 %v2481_v58  ;;  %v2446_v6 = vpop.xlane.xlu0 %2445 }
 0x8e9   : > { %v2442_v32 = vpop.xlane.xlu1 %2441  ;;  %v2482_v35 = vpack.c.bf16 %v2470_v3, %v2469_v2 }
 0x8ea   : > { %4869 = vrcp.f32 %v2442_v32 }
 0x8eb   : > { %4871 = vrcp.f32 %v2446_v6  ;;  %4265 = vmatmul.mubr.bf16.gmra.mxu0 %v2482_v35 }
 0x8ec   : > { %v2627_v36 = vpop.permute.xlu0 %2626  ;;  %4873 = vrcp.f32 %v2444_v63 }
 0x8ed   : > { %v2625_v37 = vpop.permute.xlu1 %2624  ;;  %v2668_v34 = vsel %vm1193_vm0, %v2627_v36, 0  ;;  %4402 = vmatprep.subr.msk.bf16.mxu0 %vm1193_vm0, %v2627_v36 }
 0x8ee   : > { %4289 = vmatpush3.bf16.xpose.msra.mxu0 %v2668_v34  ;;  %v4860_v61 = vpop.eup %4859  ;;  %v2665_v4 = vsel %vm1193_vm0, %v2625_v37, 0 }
 0x8ef   : > { %4403 = vmatprep.subr.msk.bf16.mxu0 %vm1193_vm0, %v2625_v37  ;;  %v4862_v16 = vpop.eup %4861  ;;  %v2474_v19 = vmul.f32 %v4860_v61, %v6439_v54 }
 0x8f0   : > { %v2609_v60 = vpop.permute.xlu0 %2608  ;;  %v4864_v55 = vpop.eup %4863  ;;  %v2471_v13 = vmul.f32 %v4862_v16, %v6436_v28 }
 0x8f1   : > { %v2611_v9 = vpop.permute.xlu1 %2610  ;;  %v2473_v45 = vmul.f32 %v4864_v55, %v6432_v14 }
 0x8f3   : > { %v4866_v39 = vpop.eup %4865  ;;  %v2484_v33 = vpack.c.bf16 %v2474_v19, %v2473_v45 }
 0x8f4   : > { %v2613_v0 = vpop.permute.xlu0 %2612  ;;  %v2472_v7 = vmul.f32 %v4866_v39, %v6445_v21  ;;  %v4868_v22 = vpop.eup %4867 }
 0x8f5   : > { %v2615_v52 = vpop.permute.xlu1 %2614  ;;  %v2475_v54 = vmul.f32 %v4868_v22, %v6447_v40 }
 0x8f6   : > { %4291 = vmatpush3.bf16.xpose.msra.mxu0 %v2665_v4  ;;  %v2483_v38 = vpack.c.bf16 %v2472_v7, %v2471_v13 }
 0x8f7   : > { %v4870_v44 = vpop.eup %4869 }
 0x8f8   : > { %v4872_v46 = vpop.eup %4871  ;;  %4268 = vmatprep.mubr.bf16.mxu0 %v2483_v38  ;;  %v2617_v63 = vpop.permute.xlu0 %2616  ;;  %v2476_v42 = vmul.f32 %v4870_v44, %v6453_v20 }
 0x8f9   : > { %v2619_v29 = vpop.permute.xlu1 %2618  ;;  %4269 = vmatmul.mubr.bf16.gmra.mxu0 %v2484_v33  ;;  %v4874_v28 = vpop.eup %4873  ;;  %v2478_v11 = vmul.f32 %v4872_v46, %v6451_v53 }
 0x8fa   : > { %v2485_v21 = vpack.c.bf16 %v2476_v42, %v2475_v54  ;;  %v2477_v51 = vmul.f32 %v4874_v28, %v6441_v23 }
 0x8fc   : > { %4272 = vmatprep.mubr.bf16.mxu0 %v2485_v21  ;;  %v2621_v50 = vpop.permute.xlu0 %2620  ;;  %v2486_v12 = vpack.c.bf16 %v2478_v11, %v2477_v51 }
 0x8fd   : > { %v2623_v14 = vpop.permute.xlu1 %2622 }
 0x900   : > { %v2984_v17 = vpop.permute.xlu0 %2983 }
 0x901   : > { %4273 = vmatmul.mubr.bf16.gmra.mxu0 %v2486_v12  ;;  %4308 = vmatprep.subr.bf16.mxu1 %v2984_v17  ;;  %v2982_v47 = vpop.permute.xlu1 %2981 }
 0x902   : > { %4292 = vmatprep.mubr.msk.bf16.mxu0 %vm1193_vm0, %v2609_v60  ;;  %4309 = vmatpush3.bf16.msra.mxu1 %v2984_v17 }
 0x903   : > { %4310 = vmatprep.subr.bf16.mxu1 %v2982_v47 }
 0x904   : > { %v2980_v40 = vpop.permute.xlu0 %2979 }
 0x906   : > { %4311 = vmatpush3.bf16.msra.mxu1 %v2982_v47 }
 0x907   : > { %4312 = vmatprep.subr.bf16.mxu1 %v2980_v40 }
 0x909   : > { %4293 = vmatmul.mubr.msk.bf16.vlgmr.msra.gmra.mxu0 %vm1193_vm0, %v2611_v9 }
 0x90a   : > { %4296 = vmatprep.mubr.msk.bf16.mxu0 %vm1193_vm0, %v2613_v0  ;;  %4313 = vmatpush3.bf16.msra.mxu1 %v2980_v40 }
 0x911   : > { %4297 = vmatmul.mubr.msk.bf16.gmra.mxu0 %vm1193_vm0, %v2615_v52 }
 0x912   : > { %4300 = vmatprep.mubr.msk.bf16.mxu0 %vm1193_vm0, %v2617_v63 }
 0x919   : > { %4301 = vmatmul.mubr.msk.bf16.gmra.mxu0 %vm1193_vm0, %v2619_v29 }
 0x91a   : > { %4304 = vmatprep.mubr.msk.bf16.mxu0 %vm1193_vm0, %v2621_v50 }
 0x921   : > { %4305 = vmatmul.mubr.msk.bf16.gmra.mxu0 %vm1193_vm0, %v2623_v14 }
 0x973   : > { %v6526_v23 = vpop.f32.mrf.mxu0 }
 0x975   : > { %v6528_v53 = vpop.f32.mrf.mxu0 }
 0x977   : > { %v6530_v20 = vpop.f32.mrf.mxu0 }
 0x978   : > { %v4530_v57 = vpack.i.bf16 %v6530_v20, %v6526_v23  ;;  %v7100_v20 = vld [vmem:[#allocation28_spill] sm:$0xff] }
 0x979   : > { %v6534_v58 = vpop.f32.mrf.mxu0 }
 0x97a   : > { %v4525_v2 = vpack.i.bf16 %v6534_v58, %v6528_v53  ;;  %v7099_v53 = vld [vmem:[#allocation26_spill] sm:$0xff] }
 0x9ab   : > { %v6538_v3 = vpop.f32.mrf.mxu0 }
 0x9ad   : > { %v6540_v6 = vpop.f32.mrf.mxu0 }
 0x9af   : > { %v6542_v32 = vpop.f32.mrf.mxu0 }
 0x9b0   : > { %v4550_v35 = vpack.i.bf16 %v6542_v32, %v6538_v3  ;;  %v7103_v3 = vld [vmem:[#allocation32_spill] sm:$0xff] }
 0x9b1   : > { %v6546_v36 = vpop.f32.mrf.mxu0 }
 0x9b2   : > { %v4545_v37 = vpack.i.bf16 %v6546_v36, %v6540_v6 }
 0x9b9   : > { %v6550_v34 = vpop.f32.mrf.mxu0 }
 0x9bb   : > { %v6552_v61 = vpop.f32.mrf.mxu0 }
 0x9bd   : > { %v6554_v60 = vpop.f32.mrf.mxu0 }
 0x9be   : > { %v4580_v9 = vpack.i.bf16 %v6554_v60, %v6550_v34 }
 0x9bf   : > { %v6558_v16 = vpop.f32.mrf.mxu0 }
 0x9c0   : > { %v4575_v55 = vpack.i.bf16 %v6558_v16, %v6552_v61 }
 0x9c1   : > { %v6562_v39 = vpop.f32.mrf.mxu0 }
 0x9c3   : > { %v6564_v19 = vpop.f32.mrf.mxu0 }
 0x9c5   : > { %v6566_v0 = vpop.f32.mrf.mxu0 }
 0x9c6   : > { %v4620_v52 = vpack.i.bf16 %v6566_v0, %v6562_v39 }
 0x9c7   : > { %v6570_v13 = vpop.f32.mrf.mxu0 }
 0x9c8   : > { %v4615_v7 = vpack.i.bf16 %v6570_v13, %v6564_v19 }
 0x9c9   : > { %v4294_v22 = vpop.f32.mrf.mxu0 }
 0x9ca   : > { %v2787_v4 = vmul.f32 0.17677669, %v4294_v22 }
 0x9cb   : > { %v2722_v45 = vpop.f32.mrf.mxu0 }
 0x9cc   : > { %v6575_v38 = vadd.f32 %v6278_v1, %v2787_v4  ;;  %v2785_v44 = vmul.f32 0.17677669, %v2722_v45 }
 0x9cd   : > { %v4295_v33 = vpop.f32.mrf.mxu0 }
 0x9ce   : > { %2821 = vmax.xlane.f32.xlu0 %v6575_v38  ;;  %v6579_v63 = vadd.f32 %v6284_v49, %v2785_v44  ;;  %v2788_v29 = vmul.f32 0.17677669, %v4295_v33 }
 0x9cf   : > { %v2725_v46 = vpop.f32.mrf.mxu0 }
 0x9d0   : > { %v2786_v54 = vmul.f32 0.17677669, %v2725_v46  ;;  %v6586_v1 = vadd.f32 %v6295_v30, %v2788_v29 }
 0x9d1   : > { %v4298_v42 = vpop.f32.mrf.mxu0 }
 0x9d2   : > { %v6582_v28 = vadd.f32 %v6289_v15, %v2786_v54  ;;  %2817 = vmax.xlane.f32.xlu0 %v6579_v63  ;;  %v2791_v11 = vmul.f32 0.17677669, %v4298_v42 }
 0x9d3   : > { %v2738_v21 = vpop.f32.mrf.mxu0 }
 0x9d4   : > { %2819 = vmax.xlane.f32.xlu1 %v6582_v28  ;;  %v6591_v51 = vadd.f32 %v6332_v56, %v2791_v11  ;;  %v2789_v12 = vmul.f32 0.17677669, %v2738_v21 }
 0x9d5   : > { %v4299_v50 = vpop.f32.mrf.mxu0 }
 0x9d6   : > { %v2792_v14 = vmul.f32 0.17677669, %v4299_v50  ;;  %2823 = vmax.xlane.f32.xlu0 %v6586_v1  ;;  %v6599_v40 = vadd.f32 %v6338_v5, %v2789_v12 }
 0x9d7   : > { %v2741_v49 = vpop.f32.mrf.mxu0 }
 0x9d8   : > { %v6594_v15 = vadd.f32 %v6302_v62, %v2792_v14  ;;  %v2790_v17 = vmul.f32 0.17677669, %v2741_v49 }
 0x9d9   : > { %v4302_v47 = vpop.f32.mrf.mxu0 }
 0x9da   : > { %2829 = vmax.xlane.f32.xlu0 %v6591_v51  ;;  %2831 = vmax.xlane.f32.xlu1 %v6594_v15  ;;  %v6602_v22 = vadd.f32 %v6308_v25, %v2790_v17  ;;  %v2795_v4 = vmul.f32 0.17677669, %v4302_v47 }
 0x9db   : > { %v2754_v30 = vpop.f32.mrf.mxu0 }
 0x9dc   : > { %v6607_v44 = vadd.f32 %v6344_v27, %v2795_v4  ;;  %v2793_v33 = vmul.f32 0.17677669, %v2754_v30 }
 0x9dd   : > { %v4303_v56 = vpop.f32.mrf.mxu0 }
 0x9de   : > { %v2796_v45 = vmul.f32 0.17677669, %v4303_v56  ;;  %2825 = vmax.xlane.f32.xlu0 %v6599_v40  ;;  %2827 = vmax.xlane.f32.xlu1 %v6602_v22  ;;  %v6615_v25 = vadd.f32 %v6350_v8, %v2793_v33 }
 0x9df   : > { %v2757_v62 = vpop.f32.mrf.mxu0 }
 0x9e0   : > { %v6610_v46 = vadd.f32 %v6314_v18, %v2796_v45  ;;  %v2794_v5 = vmul.f32 0.17677669, %v2757_v62 }
 0x9e1   : > { %v4306_v29 = vpop.f32.mrf.mxu0 }
 0x9e2   : > { %2837 = vmax.xlane.f32.xlu0 %v6607_v44  ;;  %2839 = vmax.xlane.f32.xlu1 %v6610_v46  ;;  %v6618_v54 = vadd.f32 %v6320_v26, %v2794_v5  ;;  %v2799_v42 = vmul.f32 0.17677669, %v4306_v29 }
 0x9e3   : > { %v2770_v21 = vpop.f32.mrf.mxu0 }
 0x9e4   : > { %v6623_v18 = vadd.f32 %v6356_v31, %v2799_v42  ;;  %v2797_v27 = vmul.f32 0.17677669, %v2770_v21 }
 0x9e5   : > { %v4307_v26 = vpop.f32.mrf.mxu0 }
 0x9e6   : > { %2833 = vmax.xlane.f32.xlu0 %v6615_v25  ;;  %2835 = vmax.xlane.f32.xlu1 %v6618_v54  ;;  %v6627_v11 = vadd.f32 %v6362_v10, %v2797_v27  ;;  %v2800_v8 = vmul.f32 0.17677669, %v4307_v26 }
 0x9e7   : > { %v2773_v50 = vpop.f32.mrf.mxu0 }
 0x9e8   : > { %v6635_v31 = vadd.f32 %v6367_v59, %v2800_v8  ;;  %v2798_v14 = vmul.f32 0.17677669, %v2773_v50 }
 0x9ea   : > { %2845 = vmax.xlane.f32.xlu0 %v6623_v18  ;;  %v6639_v10 = vadd.f32 %v6374_v24, %v2798_v14 }
 0x9ee   : > { %2841 = vmax.xlane.f32.xlu0 %v6627_v11 }
 0x9f7   : > { %2975 = vrot.lane.b32.xlu1 %v5699_v43, %s5236_s15 }
 0xa04   : > { %2977 = vrot.lane.b32.xlu0 %v5695_v41, %s5236_s15 }
 0xa1b   : > { %2847 = vmax.xlane.f32.xlu1 %v6635_v31 }
 0xa1f   : > { %2843 = vmax.xlane.f32.xlu1 %v6639_v10 }
 0xa30   : > { %2973 = vrot.lane.b32.xlu1 %v5703_v48, %s5236_s15 }
 0xa57   : > { %v2822_v43 = vpop.xlane.xlu0 %2821 }
 0xa58   : > { %v2851_v41 = vsub.f32 %v6575_v38, %v2822_v43 }
 0xa5a   : > { %v2869_v49 = vmul.f32 1.442695, %v2851_v41 }
 0xa5b   : > { %v2818_v12 = vpop.xlane.xlu0 %2817 }
 0xa5c   : > { %4875 = vpow2.f32 %v2869_v49  ;;  %v2849_v59 = vsub.f32 %v6579_v63, %v2818_v12 }
 0xa5d   : > { %v2820_v17 = vpop.xlane.xlu1 %2819 }
 0xa5e   : > { %v2865_v47 = vmul.f32 1.442695, %v2849_v59  ;;  %v2850_v30 = vsub.f32 %v6582_v28, %v2820_v17 }
 0xa5f   : > { %v2824_v4 = vpop.xlane.xlu0 %2823 }
 0xa60   : > { %4877 = vpow2.f32 %v2865_v47  ;;  %v2852_v24 = vsub.f32 %v6586_v1, %v2824_v4  ;;  %v2867_v45 = vmul.f32 1.442695, %v2850_v30 }
 0xa62   : > { %v2871_v56 = vmul.f32 1.442695, %v2852_v24 }
 0xa63   : > { %v2830_v62 = vpop.xlane.xlu0 %2829  ;;  %v2832_v48 = vpop.xlane.xlu1 %2831 }
 0xa64   : > { %4879 = vpow2.f32 %v2871_v56  ;;  %v2855_v38 = vsub.f32 %v6591_v51, %v2830_v62  ;;  %v2856_v63 = vsub.f32 %v6594_v15, %v2832_v48 }
 0xa65   : > { %4881 = vpow2.f32 %v2867_v45 }
 0xa66   : > { %v2877_v33 = vmul.f32 1.442695, %v2855_v38  ;;  %v2879_v51 = vmul.f32 1.442695, %v2856_v63 }
 0xa67   : > { %v2826_v5 = vpop.xlane.xlu0 %2825  ;;  %v2828_v29 = vpop.xlane.xlu1 %2827 }
 0xa68   : > { %4883 = vpow2.f32 %v2877_v33  ;;  %v2853_v28 = vsub.f32 %v6599_v40, %v2826_v5  ;;  %v2854_v42 = vsub.f32 %v6602_v22, %v2828_v29 }
 0xa69   : > { %v6652_v21 = vpop.eup %4875 }
 0xa6a   : > { %v2873_v1 = vmul.f32 1.442695, %v2853_v28  ;;  %v2875_v27 = vmul.f32 1.442695, %v2854_v42  ;;  %2901 = vadd.xlane.f32.xlu1 %v6652_v21  ;;  %v7091_v42 = vld [vmem:[#allocation30_spill] sm:$0xff] }
 0xa6b   : > { %v2838_v26 = vpop.xlane.xlu0 %2837  ;;  %v2840_v8 = vpop.xlane.xlu1 %2839 }
 0xa6c   : > { %4885 = vpow2.f32 %v2873_v1  ;;  %v2859_v50 = vsub.f32 %v6607_v44, %v2838_v26  ;;  %v2860_v40 = vsub.f32 %v6610_v46, %v2840_v8  ;;  %v7092_v1 = vld [vmem:[#allocation33_spill] sm:$0xff] }
 0xa6d   : > { %v6656_v14 = vpop.eup %4877  ;;  %4887 = vpow2.f32 %v2875_v27  ;;  %v7093_v27 = vld [vmem:[#allocation31_spill] sm:$0xff]  ;;  %v7095_v8 = vld [vmem:[#allocation29_spill] sm:$0xff] }
 0xa6e   : > { %2897 = vadd.xlane.f32.xlu1 %v6656_v14  ;;  %v2885_v15 = vmul.f32 1.442695, %v2859_v50  ;;  %4889 = vpow2.f32 %v2879_v51  ;;  %v2887_v44 = vmul.f32 1.442695, %v2860_v40  ;;  %v7094_v26 = vpack.i.bf16 %v7092_v1, %v7093_v27  ;;  %v7096_v40 = vld [vmem:[#allocation37_spill] sm:$0xff] }
 0xa6f   : > { %v2834_v22 = vpop.xlane.xlu0 %2833  ;;  %v2836_v41 = vpop.xlane.xlu1 %2835 }
 0xa70   : > { %v2857_v43 = vsub.f32 %v6615_v25, %v2834_v22  ;;  %4891 = vpow2.f32 %v2885_v15  ;;  %v2858_v59 = vsub.f32 %v6618_v54, %v2836_v41  ;;  %v7097_v22 = vld [vmem:[#allocation35_spill] sm:$0xff] }
 0xa71   : > { %v6661_v49 = vpop.eup %4879 }
 0xa72   : > { %v2881_v12 = vmul.f32 1.442695, %v2857_v43  ;;  %2903 = vadd.xlane.f32.xlu1 %v6661_v49  ;;  %v6665_v47 = vpop.eup %4881  ;;  %v2883_v25 = vmul.f32 1.442695, %v2858_v59  ;;  %v7098_v43 = vpack.i.bf16 %v7096_v40, %v7097_v22 }
 0xa73   : > { %v2846_v17 = vpop.xlane.xlu0 %2845  ;;  %v2976_v38 = vpop.permute.xlu1 %2975 }
 0xa74   : > { %4893 = vpow2.f32 %v2881_v12  ;;  %v2863_v46 = vsub.f32 %v6623_v18, %v2846_v17  ;;  %v7108_v17 = vld [vmem:[#allocation25_spill] sm:$0xff] }
 0xa75   : > { %v6668_v30 = vpop.eup %4883  ;;  %4895 = vpow2.f32 %v2887_v44 }
 0xa76   : > { %v2893_v4 = vmul.f32 1.442695, %v2863_v46  ;;  %2909 = vadd.xlane.f32.xlu0 %v6668_v30  ;;  %2899 = vadd.xlane.f32.xlu1 %v6665_v47  ;;  %v7109_v46 = vld [vmem:[#allocation27_spill] sm:$0xff] }
 0xa77   : > { %v2842_v24 = vpop.xlane.xlu0 %2841 }
 0xa78   : > { %4897 = vpow2.f32 %v2893_v4  ;;  %v2861_v56 = vsub.f32 %v6627_v11, %v2842_v24  ;;  %v7110_v4 = vpack.i.bf16 %v7108_v17, %v7109_v46 }
 0xa79   : > { %v6673_v54 = vpop.eup %4885  ;;  %4899 = vpow2.f32 %v2883_v25 }
 0xa7a   : > { %v6675_v45 = vpop.eup %4887  ;;  %v2889_v62 = vmul.f32 1.442695, %v2861_v56  ;;  %2905 = vadd.xlane.f32.xlu0 %v6673_v54 }
 0xa7b   : > { %2907 = vadd.xlane.f32.xlu1 %v6675_v45  ;;  %v2978_v18 = vpop.permute.xlu0 %2977  ;;  %v6679_v48 = vpop.eup %4889 }
 0xa7c   : > { %4901 = vpow2.f32 %v2889_v62  ;;  %4314 = vmatprep.subr.bf16.mxu1 %v2978_v18 }
 0xa7d   : > { %4315 = vmatpush3.bf16.msra.mxu1 %v2978_v18  ;;  %v6682_v11 = vpop.eup %4891 }
 0xa7e   : > { %2911 = vadd.xlane.f32.xlu0 %v6679_v48  ;;  %4316 = vmatprep.subr.bf16.mxu1 %v2976_v38 }
 0xa81   : > { %v6684_v33 = vpop.eup %4893  ;;  %4317 = vmatpush3.bf16.msra.mxu1 %v2976_v38 }
 0xa82   : > { %2917 = vadd.xlane.f32.xlu0 %v6682_v11  ;;  %2913 = vadd.xlane.f32.xlu1 %v6684_v33  ;;  %v6688_v5 = vpop.eup %4895 }
 0xa85   : > { %v6690_v29 = vpop.eup %4897 }
 0xa86   : > { %2925 = vadd.xlane.f32.xlu1 %v6690_v29  ;;  %2919 = vadd.xlane.f32.xlu0 %v6688_v5  ;;  %v6694_v63 = vpop.eup %4899 }
 0xa89   : > { %v6696_v28 = vpop.eup %4901 }
 0xa8a   : > { %2921 = vadd.xlane.f32.xlu1 %v6696_v28  ;;  %2915 = vadd.xlane.f32.xlu0 %v6694_v63 }
 0xa9b   : > { %2969 = vrot.lane.b32.xlu1 %v7091_v42, %s5236_s15 }
 0xa9f   : > { %4521 = vrot.lane.b32.xlu1 %v7094_v26, %s5236_s15 }
 0xaa0   : > { %2971 = vrot.lane.b32.xlu0 %v7095_v8, %s5236_s15 }
 0xaa3   : > { %4526 = vrot.lane.b32.xlu1 %v4525_v2, %s5235_s10 }
 0xaa4   : > { %v2848_v51 = vpop.xlane.xlu1 %2847 }
 0xaa5   : > { %v2864_v12 = vsub.f32 %v6635_v31, %v2848_v51  ;;  %v7102_v31 = vld [vmem:[#allocation34_spill] sm:$0xff] }
 0xaa6   : > { %v7104_v32 = vpack.i.bf16 %v7102_v31, %v7103_v3 }
 0xaa7   : > { %4531 = vrot.lane.b32.xlu1 %v4530_v57, %s5235_s10  ;;  %v2895_v23 = vmul.f32 1.442695, %v2864_v12  ;;  %v7101_v57 = vpack.i.bf16 %v7099_v53, %v7100_v20 }
 0xaa8   : > { %v2844_v50 = vpop.xlane.xlu1 %2843 }
 0xaa9   : > { %v2862_v15 = vsub.f32 %v6639_v10, %v2844_v50  ;;  %v7106_v10 = vld [vmem:[#allocation36_spill] sm:$0xff] }
 0xaab   : > { %4541 = vrot.lane.b32.xlu1 %v7098_v43, %s5236_s15  ;;  %v2891_v44 = vmul.f32 1.442695, %v2862_v15 }
 0xaac   : > { %v2974_v41 = vpop.permute.xlu1 %2973 }
 0xaad   : > { %4318 = vmatprep.subr.bf16.mxu1 %v2974_v41  ;;  %4903 = vpow2.f32 %v2891_v44 }
 0xaae   : > { %4319 = vmatpush3.bf16.msra.mxu1 %v2974_v41  ;;  %4905 = vpow2.f32 %v2895_v23 }
 0xaaf   : > { %4551 = vrot.lane.b32.xlu1 %v4550_v35, %s5235_s10  ;;  %v7105_v35 = vld [vmem:[#allocation38_spill] sm:$0xff] }
 0xab0   : > { %v7107_v59 = vpack.i.bf16 %v7105_v35, %v7106_v10 }
 0xab3   : > { %4561 = vrot.lane.b32.xlu1 %v7101_v57, %s5236_s15 }
 0xaba   : > { %v6730_v58 = vpop.eup %4903 }
 0xabb   : > { %v6733_v2 = vpop.eup %4905 }
 0xabf   : > { %2923 = vadd.xlane.f32.xlu0 %v6730_v58 }
 0xac3   : > { %2927 = vadd.xlane.f32.xlu0 %v6733_v2 }
 0xad9   : > { %4516 = vrot.lane.b32.xlu0 %v7104_v32, %s5236_s15 }
 0xadd   : > { %4536 = vrot.lane.b32.xlu0 %v7107_v59, %s5236_s15 }
 0xae1   : > { %4546 = vrot.lane.b32.xlu0 %v4545_v37, %s5235_s10 }
 0xae5   : > { %4556 = vrot.lane.b32.xlu0 %v7110_v4, %s5236_s15 }
 0xaf3   : > { %v2902_v25 = vpop.xlane.xlu1 %2901 }
 0xaf7   : > { %v2898_v24 = vpop.xlane.xlu1 %2897 }
 0xaf8   : > { %4907 = vrcp.f32 %v2898_v24 }
 0xafb   : > { %v2904_v56 = vpop.xlane.xlu1 %2903 }
 0xaff   : > { %v2910_v62 = vpop.xlane.xlu0 %2909  ;;  %v2900_v18 = vpop.xlane.xlu1 %2899 }
 0xb00   : > { %4909 = vrcp.f32 %v2900_v18 }
 0xb01   : > { %4911 = vrcp.f32 %v2904_v56 }
 0xb03   : > { %v2906_v38 = vpop.xlane.xlu0 %2905 }
 0xb04   : > { %v2908_v42 = vpop.xlane.xlu1 %2907  ;;  %4913 = vrcp.f32 %v2906_v38 }
 0xb05   : > { %4915 = vrcp.f32 %v2908_v42  ;;  %v4908_v37 = vpop.eup %4907 }
 0xb06   : > { %4917 = vrcp.f32 %v2902_v25  ;;  %v2945_v51 = vmul.f32 %v4908_v37, %v6656_v14  ;;  %v4675_v37 = vld [vmem:[#allocation11 + $0x38] sm:$0xff]  }
 0xb07   : > { %v2912_v1 = vpop.xlane.xlu0 %2911 }
 0xb08   : > { %4919 = vrcp.f32 %v2912_v1 }
 0xb09   : > { %4921 = vrcp.f32 %v2910_v62 }
 0xb0b   : > { %v2918_v6 = vpop.xlane.xlu0 %2917  ;;  %v2914_v36 = vpop.xlane.xlu1 %2913 }
 0xb0d   : > { %v4910_v27 = vpop.eup %4909 }
 0xb0e   : > { %v2946_v50 = vmul.f32 %v4910_v27, %v6665_v47  ;;  %v4912_v43 = vpop.eup %4911  ;;  %v4676_v27 = vld [vmem:[#allocation11 + $0x30] sm:$0xff]  }
 0xb0f   : > { %v2920_v26 = vpop.xlane.xlu0 %2919  ;;  %v2926_v8 = vpop.xlane.xlu1 %2925  ;;  %v2948_v14 = vmul.f32 %v4912_v43, %v6661_v49 }
 0xb10   : > { %v2961_v15 = vpack.c.bf16 %v2946_v50, %v2945_v51 }
 0xb11   : > { %v4914_v41 = vpop.eup %4913 }
 0xb12   : > { %4324 = vmatprep.mubr.bf16.mxu1 %v2961_v15  ;;  %v4916_v44 = vpop.eup %4915  ;;  %v2949_v47 = vmul.f32 %v4914_v41, %v6673_v54 }
 0xb13   : > { %v2916_v40 = vpop.xlane.xlu0 %2915  ;;  %v2922_v22 = vpop.xlane.xlu1 %2921  ;;  %v2950_v20 = vmul.f32 %v4916_v44, %v6675_v45 }
 0xb14   : > { %4923 = vrcp.f32 %v2916_v40  ;;  %v4918_v23 = vpop.eup %4917 }
 0xb15   : > { %4925 = vrcp.f32 %v2914_v36  ;;  %v2947_v57 = vmul.f32 %v4918_v23, %v6652_v21  ;;  %v4920_v3 = vpop.eup %4919  ;;  %v2963_v32 = vpack.c.bf16 %v2950_v20, %v2949_v47 }
 0xb16   : > { %4927 = vrcp.f32 %v2920_v26  ;;  %v4922_v35 = vpop.eup %4921  ;;  %v2952_v17 = vmul.f32 %v4920_v3, %v6679_v48  ;;  %v4677_v26 = vld [vmem:[#allocation11 + $0x28] sm:$0xff]  }
 0xb17   : > { %v2972_v12 = vpop.permute.xlu0 %2971  ;;  %v2970_v53 = vpop.permute.xlu1 %2969  ;;  %4929 = vrcp.f32 %v2918_v6  ;;  %v2962_v31 = vpack.c.bf16 %v2948_v14, %v2947_v57  ;;  %v2951_v54 = vmul.f32 %v4922_v35, %v6668_v30  ;;  %v7111_v57 = vld [vmem:[#allocation57_spill] sm:$0xff]  ;;  %v7114_v3 = vld [vmem:[#allocation58_spill] sm:$0xff] }
 0xb18   : > { %4320 = vmatprep.subr.bf16.mxu1 %v2972_v12  ;;  %4931 = vrcp.f32 %v2922_v22 }
 0xb19   : > { %4321 = vmatpush3.bf16.msra.mxu1 %v2972_v12  ;;  %v2964_v46 = vpack.c.bf16 %v2952_v17, %v2951_v54 }
 0xb1a   : > { %4322 = vmatprep.subr.bf16.mxu1 %v2970_v53 }
 0xb1d   : > { %4323 = vmatpush3.bf16.msra.mxu1 %v2970_v53 }
 0xb1e   : > { %4340 = vmatprep.subr.bf16.mxu1 %v4675_v37 }
 0xb20   : > { %4325 = vmatmul.mubr.bf16.vlgmr.msra.gmra.mxu1 %v2962_v31  ;;  %v7112_v31 = vld [vmem:[#allocation55_spill] sm:$0xff] }
 0xb21   : > { %v4924_v10 = vpop.eup %4923  ;;  %4328 = vmatprep.mubr.bf16.mxu1 %v2963_v32  ;;  %4341 = vmatpush3.bf16.msra.mxu1 %v4675_v37  ;;  %v7113_v34 = vpack.i.bf16 %v7111_v57, %v7112_v31  ;;  %v7115_v32 = vld [vmem:[#allocation56_spill] sm:$0xff] }
 0xb22   : > { %v4926_v59 = vpop.eup %4925  ;;  %v2954_v49 = vmul.f32 %v4924_v10, %v6694_v63  ;;  %4342 = vmatprep.subr.bf16.mxu1 %v4676_v27  ;;  %v7116_v61 = vpack.i.bf16 %v7114_v3, %v7115_v32  ;;  %v7121_v3 = vld [vmem:[#allocation45_spill] sm:$0xff] }
 0xb23   : > { %v2953_v45 = vmul.f32 %v4926_v59, %v6684_v33  ;;  %v4928_v4 = vpop.eup %4927 }
 0xb24   : > { %v4930_v25 = vpop.eup %4929  ;;  %v2956_v24 = vmul.f32 %v4928_v4, %v6688_v5 }
 0xb25   : > { %v2965_v21 = vpack.c.bf16 %v2954_v49, %v2953_v45  ;;  %v2955_v56 = vmul.f32 %v4930_v25, %v6682_v11  ;;  %v4932_v30 = vpop.eup %4931  ;;  %4343 = vmatpush3.bf16.msra.mxu1 %v4676_v27  ;;  %v4522_v45 = vpop.permute.xlu1 %4521 }
 0xb26   : > { %v2957_v18 = vmul.f32 %v4932_v30, %v6696_v28  ;;  %4344 = vmatprep.subr.bf16.mxu1 %v4677_v26  ;;  %v4678_v28 = vld [vmem:[#allocation11 + $0x20] sm:$0xff]   ;;  %v7117_v30 = vld [vmem:[#allocation42_spill] sm:$0xff] }
 0xb27   : > { %v2966_v62 = vpack.c.bf16 %v2956_v24, %v2955_v56  ;;  %v4524_v24 = vunpack.i.h.bf16 %v4522_v45  ;;  %v4523_v56 = vunpack.i.l.bf16 %v4522_v45  ;;  %v7124_v45 = vld [vmem:[#allocation44_spill] sm:$0xff] }
 0xb28   : > { %4329 = vmatmul.mubr.bf16.gmra.mxu1 %v2964_v46 }
 0xb29   : > { %4332 = vmatprep.mubr.bf16.mxu1 %v2965_v21  ;;  %4345 = vmatpush3.bf16.msra.mxu1 %v4677_v26  ;;  %v4527_v46 = vpop.permute.xlu1 %4526 }
 0xb2a   : > { %4346 = vmatprep.subr.bf16.mxu1 %v4678_v28  ;;  %v4529_v27 = vunpack.i.h.bf16 %v4527_v46  ;;  %v4528_v26 = vunpack.i.l.bf16 %v4527_v46 }
 0xb2d   : > { %4347 = vmatpush3.bf16.msra.mxu1 %v4678_v28  ;;  %v4532_v4 = vpop.permute.xlu1 %4531 }
 0xb30   : > { %4333 = vmatmul.mubr.bf16.gmra.mxu1 %v2966_v62 }
 0xb31   : > { %v4542_v0 = vpop.permute.xlu1 %4541 }
 0xb35   : > { %v4552_v21 = vpop.permute.xlu1 %4551 }
 0xb39   : > { %v6800_v19 = vpop.permute.xlu1 %4561 }
 0xb48   : > { %v2924_v48 = vpop.xlane.xlu0 %2923 }
 0xb49   : > { %4933 = vrcp.f32 %v2924_v48  ;;  %v4534_v48 = vunpack.i.h.bf16 %v4532_v4 }
 0xb4a   : > { %4935 = vrcp.f32 %v2926_v8  ;;  %v4680_v8 = vld [vmem:[#allocation11 + $0x10] sm:$0xff]  }
 0xb4c   : > { %v2928_v63 = vpop.xlane.xlu0 %2927 }
 0xb4d   : > { %4937 = vrcp.f32 %v2928_v63  ;;  %v4533_v63 = vunpack.i.l.bf16 %v4532_v4 }
 0xb50   : > { %v4517_v39 = vpop.permute.xlu0 %4516 }
 0xb51   : > { %v4519_v13 = vunpack.i.h.bf16 %v4517_v39 }
 0xb56   : > { %v4934_v33 = vpop.eup %4933 }
 0xb57   : > { %v2958_v38 = vmul.f32 %v4934_v33, %v6730_v58  ;;  %v4936_v42 = vpop.eup %4935  ;;  %v4679_v58 = vld [vmem:[#allocation11 + $0x18] sm:$0xff]   ;;  %v3283_v33 = vsel %vm1193_vm0, %v7117_v30, %v4519_v13 }
 0xb58   : > { %v2959_v11 = vmul.f32 %v4936_v42, %v6690_v29  ;;  %4348 = vmatprep.subr.bf16.mxu1 %v4679_v58  ;;  %v4681_v29 = vld [vmem:[#allocation11 + $0x8] sm:$0xff]  }
 0xb59   : > { %v2967_v1 = vpack.c.bf16 %v2958_v38, %v2957_v18  ;;  %4349 = vmatpush3.bf16.msra.mxu1 %v4679_v58  ;;  %v7118_v38 = vld [vmem:[#allocation40_spill] sm:$0xff] }
 0xb5a   : > { %v4938_v6 = vpop.eup %4937  ;;  %4350 = vmatprep.subr.bf16.mxu1 %v4680_v8 }
 0xb5b   : > { %4336 = vmatprep.mubr.bf16.mxu1 %v2967_v1  ;;  %v2960_v5 = vmul.f32 %v4938_v6, %v6733_v2  ;;  %v4682_v2 = vld [vmem:[#allocation11] sm:$0xff]  }
 0xb5d   : > { %v2968_v36 = vpack.c.bf16 %v2960_v5, %v2959_v11  ;;  %4351 = vmatpush3.bf16.msra.mxu1 %v4680_v8  ;;  %v7119_v11 = vld [vmem:[#allocation41_spill] sm:$0xff] }
 0xb5e   : > { %4352 = vmatprep.subr.bf16.mxu1 %v4681_v29  ;;  %v3285_v5 = vsel %vm1193_vm0, %v7119_v11, %v4524_v24 }
 0xb5f   : > { %4337 = vmatmul.mubr.bf16.gmra.mxu1 %v2968_v36  ;;  %v7120_v36 = vld [vmem:[#allocation39_spill] sm:$0xff]  ;;  %v3302_v8 = vsel %vm3298_vm1, %v3285_v5, %v4534_v48  ;;  %v4563_v48 = vunpack.i.l.bf16 %v6800_v19 }
 0xb60   : > { %v3284_v37 = vsel %vm1193_vm0, %v7120_v36, %v4523_v56 }
 0xb61   : > { %4353 = vmatpush3.bf16.msra.mxu1 %v4681_v29  ;;  %v3301_v58 = vsel %vm3298_vm1, %v3284_v37, %v4533_v63 }
 0xb62   : > { %4354 = vmatprep.subr.bf16.mxu1 %v4682_v2 }
 0xb65   : > { %4355 = vmatpush3.bf16.msra.mxu1 %v4682_v2 }
 0xbe0   : > { %v4326_v51 = vpop.f32.mrf.mxu1 }
 0xbe2   : > { %v3027_v50 = vpop.f32.mrf.mxu1 }
 0xbe4   : > { %v4327_v15 = vpop.f32.mrf.mxu1 }
 0xbe5   : > { %v4565_v40 = vpack.i.bf16 %v4327_v15, %v4326_v51 }
 0xbe6   : > { %v3030_v22 = vpop.f32.mrf.mxu1 }
 0xbe7   : > { %v4570_v43 = vpack.i.bf16 %v3030_v22, %v3027_v50  ;;  %4566 = vrot.lane.b32.xlu1 %v4565_v40, %s5234_s14  ;;  %v3300_v22 = vsel %vm3298_vm1, %v3283_v33, %v4529_v27  ;;  %v7125_v27 = vld [vmem:[#allocation49_spill] sm:$0xff] }
 0xbe8   : > { %v4330_v41 = vpop.f32.mrf.mxu1 }
 0xbe9   : > { %4571 = vrot.lane.b32.xlu0 %v4570_v43, %s5234_s14  ;;  %v4544_v43 = vunpack.i.h.bf16 %v4542_v0 }
 0xbea   : > { %v3043_v12 = vpop.f32.mrf.mxu1 }
 0xbeb   : > { %4581 = vrot.lane.b32.xlu1 %v4580_v9, %s5235_s10  ;;  %v3289_v32 = vsel %vm1193_vm0, %v7121_v3, %v4544_v43 }
 0xbec   : > { %v4331_v44 = vpop.f32.mrf.mxu1 }
 0xbed   : > { %v4585_v23 = vpack.i.bf16 %v4331_v44, %v4330_v41  ;;  %4576 = vrot.lane.b32.xlu0 %v4575_v55, %s5235_s10  ;;  %v4543_v41 = vunpack.i.l.bf16 %v4542_v0 }
 0xbee   : > { %v3046_v53 = vpop.f32.mrf.mxu1 }
 0xbef   : > { %v4590_v14 = vpack.i.bf16 %v3046_v53, %v3043_v12  ;;  %4586 = vrot.lane.b32.xlu1 %v4585_v23, %s5234_s14  ;;  %v4554_v23 = vunpack.i.h.bf16 %v4552_v21  ;;  %v4553_v53 = vunpack.i.l.bf16 %v4552_v21 }
 0xbf0   : > { %v4334_v47 = vpop.f32.mrf.mxu1 }
 0xbf1   : > { %4591 = vrot.lane.b32.xlu0 %v4590_v14, %s5234_s14 }
 0xbf2   : > { %v3059_v20 = vpop.f32.mrf.mxu1 }
 0xbf3   : > { %4601 = vrot.lane.b32.xlu1 %v7113_v34, %s5236_s15 }
 0xbf4   : > { %v4335_v60 = vpop.f32.mrf.mxu1 }
 0xbf5   : > { %v4605_v9 = vpack.i.bf16 %v4335_v60, %v4334_v47  ;;  %4596 = vrot.lane.b32.xlu0 %v7116_v61, %s5236_s15  ;;  %v7122_v61 = vld [vmem:[#allocation43_spill] sm:$0xff] }
 0xbf6   : > { %v3062_v16 = vpop.f32.mrf.mxu1 }
 0xbf7   : > { %v4610_v55 = vpack.i.bf16 %v3062_v16, %v3059_v20  ;;  %4606 = vrot.lane.b32.xlu1 %v4605_v9, %s5234_s14  ;;  %v3288_v16 = vsel %vm1193_vm0, %v7122_v61, %v4543_v41 }
 0xbf9   : > { %4611 = vrot.lane.b32.xlu0 %v4610_v55, %s5234_s14 }
 0xbfb   : > { %4621 = vrot.lane.b32.xlu1 %v4620_v52, %s5235_s10  ;;  %v4537_v52 = vpop.permute.xlu0 %4536 }
 0xbfc   : > { %v4539_v20 = vunpack.i.h.bf16 %v4537_v52  ;;  %v4538_v57 = vunpack.i.l.bf16 %v4537_v52 }
 0xbfd   : > { %4616 = vrot.lane.b32.xlu0 %v4615_v7, %s5235_s10  ;;  %v4518_v7 = vunpack.i.l.bf16 %v4517_v39 }
 0xbfe   : > { %v3286_v46 = vsel %vm1193_vm0, %v7124_v45, %v4538_v57 }
 0xbff   : > { %v4547_v25 = vpop.permute.xlu0 %4546  ;;  %v3282_v42 = vsel %vm1193_vm0, %v7118_v38, %v4518_v7  ;;  %v4564_v7 = vunpack.i.h.bf16 %v6800_v19  ;;  %v7126_v19 = vld [vmem:[#allocation47_spill] sm:$0xff] }
 0xc00   : > { %v3299_v40 = vsel %vm3298_vm1, %v3282_v42, %v4528_v26  ;;  %v4549_v34 = vunpack.i.h.bf16 %v4547_v25  ;;  %v4548_v60 = vunpack.i.l.bf16 %v4547_v25 }
 0xc01   : > { %v3293_v26 = vsel %vm1193_vm0, %v7125_v27, %v4564_v7 }
 0xc02   : > { %v3303_v0 = vsel %vm3298_vm1, %v3286_v46, %v4548_v60  ;;  %v7132_v46 = vld [vmem:[#allocation52_spill] sm:$0xff] }
 0xc03   : > { %v6802_v62 = vpop.permute.xlu0 %4556 }
 0xc04   : > { %v4559_v63 = vunpack.i.h.bf16 %v6802_v62  ;;  %v4558_v30 = vunpack.i.l.bf16 %v6802_v62 }
 0xc1f   : > { %v4338_v35 = vpop.f32.mrf.mxu1 }
 0xc21   : > { %v3075_v10 = vpop.f32.mrf.mxu1 }
 0xc23   : > { %v4339_v59 = vpop.f32.mrf.mxu1 }
 0xc24   : > { %v4630_v17 = vpack.i.bf16 %v4339_v59, %v4338_v35  ;;  %v3306_v59 = vsel %vm3298_vm1, %v3289_v32, %v4554_v23 }
 0xc25   : > { %v3078_v49 = vpop.f32.mrf.mxu1 }
 0xc26   : > { %v4625_v54 = vpack.i.bf16 %v3078_v49, %v3075_v10  ;;  %4631 = vrot.lane.b32.xlu1 %v4630_v17, %s5234_s14  ;;  %v3305_v10 = vsel %vm3298_vm1, %v3288_v16, %v4553_v53  ;;  %v7123_v49 = vld [vmem:[#allocation46_spill] sm:$0xff] }
 0xc28   : > { %4626 = vrot.lane.b32.xlu0 %v4625_v54, %s5234_s14  ;;  %v3287_v54 = vsel %vm1193_vm0, %v7123_v49, %v4539_v20 }
 0xc29   : > { %v3304_v52 = vsel %vm3298_vm1, %v3287_v54, %v4549_v34  ;;  %v7131_v54 = vld [vmem:[#allocation54_spill] sm:$0xff] }
 0xc59   : > { %v4567_v18 = vpop.permute.xlu1 %4566 }
 0xc5a   : > { %v4569_v1 = vunpack.i.h.bf16 %v4567_v18  ;;  %v4568_v6 = vunpack.i.l.bf16 %v4567_v18 }
 0xc5b   : > { %v4572_v28 = vpop.permute.xlu0 %4571 }
 0xc5c   : > { %v4574_v29 = vunpack.i.h.bf16 %v4572_v28  ;;  %v4573_v2 = vunpack.i.l.bf16 %v4572_v28  ;;  %v3318_v51 = vsel %vm3315_vm2, %v3301_v58, %v4568_v6  ;;  %v3319_v50 = vsel %vm3315_vm2, %v3302_v8, %v4569_v1  ;;  %v7127_v58 = vld [vmem:[#allocation50_spill] sm:$0xff]  ;;  %v7128_v8 = vld [vmem:[#allocation48_spill] sm:$0xff] }
 0xc5d   : > { %v4582_v15 = vpop.permute.xlu1 %4581  ;;  %v3333_v31 = vpack.c.bf16 %v3319_v50, %v3318_v51  ;;  %v3292_v28 = vsel %vm1193_vm0, %v7126_v19, %v4563_v48  ;;  %v3291_v62 = vsel %vm1193_vm0, %v7127_v58, %v4559_v63 }
 0xc5e   : > { %v3316_v12 = vsel %vm3315_vm2, %v3299_v40, %v4573_v2  ;;  %v3317_v44 = vsel %vm3315_vm2, %v3300_v22, %v4574_v29  ;;  %v4584_v38 = vunpack.i.h.bf16 %v4582_v15  ;;  %v4583_v42 = vunpack.i.l.bf16 %v4582_v15 }
 0xc5f   : > { %v4577_v14 = vpop.permute.xlu0 %4576  ;;  %v3332_v47 = vpack.c.bf16 %v3317_v44, %v3316_v12  ;;  %v3290_v29 = vsel %vm1193_vm0, %v7128_v8, %v4558_v30 }
 0xc60   : > { %v4579_v6 = vunpack.i.h.bf16 %v4577_v14  ;;  %v4578_v11 = vunpack.i.l.bf16 %v4577_v14  ;;  %v3309_v51 = vsel %vm3298_vm1, %v3292_v28, %v4583_v42  ;;  %v3310_v50 = vsel %vm3298_vm1, %v3293_v26, %v4584_v38 }
 0xc61   : > { %v4587_v9 = vpop.permute.xlu1 %4586  ;;  %4356 = vmatprep.mubr.bf16.mxu1 %v3332_v47 }
 0xc62   : > { %v4589_v55 = vunpack.i.h.bf16 %v4587_v9  ;;  %v4588_v35 = vunpack.i.l.bf16 %v4587_v9  ;;  %4357 = vmatmul.mubr.bf16.vlgmr.msra.gmra.mxu1 %v3333_v31  ;;  %v3308_v22 = vsel %vm3298_vm1, %v3291_v62, %v4579_v6  ;;  %v3307_v43 = vsel %vm3298_vm1, %v3290_v29, %v4578_v11 }
 0xc63   : > { %v4592_v17 = vpop.permute.xlu0 %4591 }
 0xc64   : > { %v4594_v4 = vunpack.i.h.bf16 %v4592_v17  ;;  %v4593_v39 = vunpack.i.l.bf16 %v4592_v17  ;;  %v3322_v25 = vsel %vm3315_vm2, %v3305_v10, %v4588_v35  ;;  %v3323_v13 = vsel %vm3315_vm2, %v3306_v59, %v4589_v55  ;;  %v7129_v55 = vld [vmem:[#allocation53_spill] sm:$0xff]  ;;  %v7130_v10 = vld [vmem:[#allocation51_spill] sm:$0xff] }
 0xc65   : > { %v4602_v21 = vpop.permute.xlu1 %4601  ;;  %v3335_v1 = vpack.c.bf16 %v3323_v13, %v3322_v25 }
 0xc66   : > { %v3320_v24 = vsel %vm3315_vm2, %v3303_v0, %v4593_v39  ;;  %v3321_v56 = vsel %vm3315_vm2, %v3304_v52, %v4594_v4  ;;  %v4604_v20 = vunpack.i.h.bf16 %v4602_v21  ;;  %v4603_v57 = vunpack.i.l.bf16 %v4602_v21 }
 0xc67   : > { %v4597_v33 = vpop.permute.xlu0 %4596  ;;  %v3334_v18 = vpack.c.bf16 %v3321_v56, %v3320_v24 }
 0xc68   : > { %v4599_v34 = vunpack.i.h.bf16 %v4597_v33  ;;  %v4598_v60 = vunpack.i.l.bf16 %v4597_v33  ;;  %v3297_v35 = vsel %vm1193_vm0, %v7129_v55, %v4604_v20  ;;  %v3296_v59 = vsel %vm1193_vm0, %v7130_v10, %v4603_v57 }
 0xc69   : > { %v4607_v5 = vpop.permute.xlu1 %4606  ;;  %4360 = vmatprep.mubr.bf16.mxu1 %v3334_v18  ;;  %v3779_v18 = vld [vmem:[%s6953_s9] ss:$0 sm:$0xff] }
 0xc6a   : > { %v4609_v36 = vunpack.i.h.bf16 %v4607_v5  ;;  %v4608_v37 = vunpack.i.l.bf16 %v4607_v5  ;;  %4361 = vmatmul.mubr.bf16.gmra.mxu1 %v3335_v1  ;;  %v3295_v45 = vsel %vm1193_vm0, %v7131_v54, %v4599_v34  ;;  %v3294_v4 = vsel %vm1193_vm0, %v7132_v46, %v4598_v60 }
 0xc6b   : > { %v4612_v2 = vpop.permute.xlu0 %4611 }
 0xc6c   : > { %v4614_v15 = vunpack.i.h.bf16 %v4612_v2  ;;  %v4613_v40 = vunpack.i.l.bf16 %v4612_v2  ;;  %v3326_v41 = vsel %vm3315_vm2, %v3309_v51, %v4608_v37  ;;  %v3327_v12 = vsel %vm3315_vm2, %v3310_v50, %v4609_v36 }
 0xc6d   : > { %v3337_v14 = vpack.c.bf16 %v3327_v12, %v3326_v41  ;;  %v4622_v47 = vpop.permute.xlu1 %4621 }
 0xc6e   : > { %v3324_v44 = vsel %vm3315_vm2, %v3307_v43, %v4613_v40  ;;  %v3325_v23 = vsel %vm3315_vm2, %v3308_v22, %v4614_v15  ;;  %v4624_v9 = vunpack.i.h.bf16 %v4622_v47  ;;  %v4623_v3 = vunpack.i.l.bf16 %v4622_v47 }
 0xc6f   : > { %v3336_v53 = vpack.c.bf16 %v3325_v23, %v3324_v44  ;;  %v4617_v31 = vpop.permute.xlu0 %4616 }
 0xc70   : > { %v4619_v32 = vunpack.i.h.bf16 %v4617_v31  ;;  %v4618_v61 = vunpack.i.l.bf16 %v4617_v31  ;;  %v3313_v39 = vsel %vm3298_vm1, %v3296_v59, %v4623_v3  ;;  %v3314_v0 = vsel %vm3298_vm1, %v3297_v35, %v4624_v9 }
 0xc71   : > { %4364 = vmatprep.mubr.bf16.mxu1 %v3336_v53 }
 0xc72   : > { %4365 = vmatmul.mubr.bf16.gmra.mxu1 %v3337_v14  ;;  %v3312_v24 = vsel %vm3298_vm1, %v3295_v45, %v4619_v32  ;;  %v3311_v56 = vsel %vm3298_vm1, %v3294_v4, %v4618_v61 }
 0xc98   : > { %v4632_v16 = vpop.permute.xlu1 %4631 }
 0xc99   : > { %v4634_v17 = vunpack.i.h.bf16 %v4632_v16  ;;  %v4633_v49 = vunpack.i.l.bf16 %v4632_v16 }
 0xc9a   : > { %v4627_v52 = vpop.permute.xlu0 %4626 }
 0xc9b   : > { %v4629_v21 = vunpack.i.h.bf16 %v4627_v52  ;;  %v4628_v25 = vunpack.i.l.bf16 %v4627_v52  ;;  %v3330_v13 = vsel %vm3315_vm2, %v3313_v39, %v4633_v49  ;;  %v3331_v7 = vsel %vm3315_vm2, %v3314_v0, %v4634_v17 }
 0xc9c   : > { %v3339_v48 = vpack.c.bf16 %v3331_v7, %v3330_v13 }
 0xc9d   : > { %v3328_v63 = vsel %vm3315_vm2, %v3311_v56, %v4628_v25  ;;  %v3329_v30 = vsel %vm3315_vm2, %v3312_v24, %v4629_v21 }
 0xc9e   : > { %v3338_v33 = vpack.c.bf16 %v3329_v30, %v3328_v63 }
 0xca0   : > { %4368 = vmatprep.mubr.bf16.mxu1 %v3338_v33 }
 0xca1   : > { %4369 = vmatmul.mubr.bf16.gmra.mxu1 %v3339_v48 }
 0xd22   : > { %v4358_v38 = vpop.f32.mrf.mxu1 }
 0xd23   : > { %v3454_v42 = vadd.f32 %v4358_v38, %v3779_v18 }
 0xd24   : > { %v3445_v1 = vpop.f32.mrf.mxu1 }
 0xd25   : > { %3510 = vst [vmem:[%s6876_s29 + $0x10] sm:$0xff] %v3454_v42  ;;  %v3446_v6 = vadd.f32 %v3779_v18, %v3445_v1 }
 0xd26   : > { %v4359_v11 = vpop.f32.mrf.mxu1 }
 0xd27   : > { %3508 = vst [vmem:[%s6876_s29] sm:$0xff] %v3446_v6  ;;  %v3457_v5 = vadd.f32 %v4359_v11, %v3779_v18 }
 0xd28   : > { %v3448_v36 = vpop.f32.mrf.mxu1 }
 0xd29   : > { %3511 = vst [vmem:[%s6876_s29 + $0x18] sm:$0xff] %v3457_v5  ;;  %v3449_v37 = vadd.f32 %v3779_v18, %v3448_v36 }
 0xd2a   : > { %v4362_v27 = vpop.f32.mrf.mxu1 }
 0xd2b   : > { %3509 = vst [vmem:[%s6876_s29 + $0x8] sm:$0xff] %v3449_v37  ;;  %v3470_v26 = vadd.f32 %v4362_v27, %v3779_v18 }
 0xd2c   : > { %v3461_v19 = vpop.f32.mrf.mxu1 }
 0xd2d   : > { %3514 = vst [vmem:[%s6876_s29 + $0x30] sm:$0xff] %v3470_v26  ;;  %v3462_v28 = vadd.f32 %v3779_v18, %v3461_v19 }
 0xd2e   : > { %v4363_v58 = vpop.f32.mrf.mxu1 }
 0xd2f   : > { %3512 = vst [vmem:[%s6876_s29 + $0x20] sm:$0xff] %v3462_v28  ;;  %v3473_v62 = vadd.f32 %v4363_v58, %v3779_v18 }
 0xd30   : > { %v3464_v8 = vpop.f32.mrf.mxu1 }
 0xd31   : > { %3515 = vst [vmem:[%s6876_s29 + $0x38] sm:$0xff] %v3473_v62  ;;  %v3465_v29 = vadd.f32 %v3779_v18, %v3464_v8 }
 0xd32   : > { %v4366_v2 = vpop.f32.mrf.mxu1 }
 0xd33   : > { %3513 = vst [vmem:[%s6876_s29 + $0x28] sm:$0xff] %v3465_v29  ;;  %v3486_v51 = vadd.f32 %v4366_v2, %v3779_v18 }
 0xd34   : > { %v3477_v50 = vpop.f32.mrf.mxu1 }
 0xd35   : > { %3518 = vst [vmem:[%s6876_s29 + $0x50] sm:$0xff] %v3486_v51  ;;  %v3478_v15 = vadd.f32 %v3779_v18, %v3477_v50 }
 0xd36   : > { %v4367_v40 = vpop.f32.mrf.mxu1 }
 0xd37   : > { %3516 = vst [vmem:[%s6876_s29 + $0x40] sm:$0xff] %v3478_v15  ;;  %v3489_v22 = vadd.f32 %v4367_v40, %v3779_v18 }
 0xd38   : > { %v3480_v43 = vpop.f32.mrf.mxu1 }
 0xd39   : > { %3519 = vst [vmem:[%s6876_s29 + $0x58] sm:$0xff] %v3489_v22  ;;  %v3481_v41 = vadd.f32 %v3779_v18, %v3480_v43 }
 0xd3b   : > { %3517 = vst [vmem:[%s6876_s29 + $0x48] sm:$0xff] %v3481_v41 }
 0xd61   : > { %v4370_v12 = vpop.f32.mrf.mxu1 }
 0xd62   : > { %v3502_v44 = vadd.f32 %v4370_v12, %v3779_v18 }
 0xd63   : > { %v3493_v23 = vpop.f32.mrf.mxu1 }
 0xd64   : > { %3522 = vst [vmem:[%s6876_s29 + $0x70] sm:$0xff] %v3502_v44  ;;  %v3494_v53 = vadd.f32 %v3779_v18, %v3493_v23 }
 0xd65   : > { %v4371_v14 = vpop.f32.mrf.mxu1 }
 0xd66   : > { %3520 = vst [vmem:[%s6876_s29 + $0x60] sm:$0xff] %v3494_v53  ;;  %v3505_v47 = vadd.f32 %v4371_v14, %v3779_v18 }
 0xd67   : > { %v3496_v20 = vpop.f32.mrf.mxu1 }
 0xd68   : > { %3523 = vst [vmem:[%s6876_s29 + $0x78] sm:$0xff] %v3505_v47  ;;  %v3497_v57 = vadd.f32 %v3779_v18, %v3496_v20 }
 0xd6a   : > { %3521 = vst [vmem:[%s6876_s29 + $0x68] sm:$0xff] %v3497_v57 }
 0xd6b   : > { %5154 = shalt.err (!%p5151_p8)
}
 0xd6c   : > { %s5155_s16 = scalar_lea.hbm %s6897_s8, 2048  ;;  %s5159_s6 = scalar_lea.hbm %s6955_s11, 4096 }
 0xd6d   : > { %p5156_p3 = scmp.ne.s32.totalorder %s6897_s8, %s5155_s16  ;;  %p5160_p2 = scmp.lt.s32.totalorder %s6897_s8, %s6955_s11 }
 0xd6e   : > { %p5161_p10 = scmp.lt.s32.totalorder %s5159_s6, %s5155_s16 }
 0xd6f   : > { %p5157_p7 = pnand %p5156_p3, %p7133_p5 }
 0xd70   : > { %p5162_p0 = por %p5161_p10, %p5160_p2 }
 0xd71   : > { %p5158_p12 = pneg %p5157_p7 }
 0xd73   : > { %p5163_p13 = pnand %p5162_p0, %p5158_p12 }
 0xd75   : > { %5166 = shalt.err (!%p5163_p13)
}
 0xd76   : > { %s5238_s13 = smov 128   ;;  %s5239_s26 = smov 8  }
 0xd77   : > { %4428 = dma.vmem_to_hbm [thread:$0]  (%p7133_p5), %s6899_s12, 2048, %s6897_s8, %s3525_s24, %s5238_s13, %s5238_s13, %s5239_s26  }
 0xd78 PF: > { %s7134_s21 = sld [smem:[#allocation24_spill]]  ;;  %s3553_s29 = sand.u32 1, %s5209_s17  }
 0xd79   : > { %p7136_p11 = scmp.ge.s32.totalorder %s5221_s20, 2  ;;  %s3554_s30 = scalar_lea.sflag [#allocation4], %s3553_s29 }
 0xd7e   : > { %p7135_p9 = scmp.ne.s32.totalorder %s7134_s21, 0 }
 0xd80   : > { %p4454_p1 = pnand %p7136_p11, %p7135_p9 }
 0xd82   : > { %p4455_p4 = pneg %p4454_p1 }
 0xd84   : > { %5204 = dma.done.wait (%p4455_p4), %s3554_s30, 2048  }
 0xd85   : > { %5206 = vsyncadd (%p4455_p4), %s3554_s30, 4294965248  ;;  %s7137_s20 = sld [smem:[#allocation22_spill]]  ;;  %s7140_s17 = smov %s5213_s18 }
 0xd86   : > { %s7138_s22 = sld [smem:[#allocation21_spill]] }
 0xd87   : > { %s7139_s19 = sld [smem:[#allocation23_spill]] }
 0xd8b   : > { %p29_p6 = scmp.ge.s32.totalorder %s7137_s20, 4  }
 0xd8c   : > { %s7141_s18 = smov %s7138_s22 }
 0xd8d   :  { %31 = sbr.rel (!%p29_p6) target bundleno = 16 (0x10), region = 142 }
 0xd92   :  { %3559 = vsyncpa [#allocation3], 1 }
 0xd93   :  { %3561 = vsyncpa [#allocation3 + $0x1], 1 }
 0xd94   :  { %3562 = vsyncpa [#allocation6], 1 }
 0xd95   :  { %3564 = vsyncpa [#allocation6 + $0x1], 1 }
 0xd96   :  { %3565 = vsyncpa [#allocation9], 1 }
 0xd97   :  { %3566 = vsyncpa [#allocation12], 1 }
 0xd98   :  { %3567 = vsyncpa [#allocation4], 1 }
 0xd99   :  { %3569 = vsyncpa [#allocation4 + $0x1], 1 }

// kernel: tpu_custom_call.1
= control target key start
LH: loop header
LB: loop body
LE: loop exit
PB: predicated region body
PF: predicated region fallthrough
CT: control target
= control target key end

     0   :  { %s6944_s0 = inlined_call_operand.hbm [shape: bf16[256,128], index: 0, kind: input, shape index: {}]   ;;  %s6945_s1 = inlined_call_operand.hbm [shape: bf16[256,128], index: 1, kind: input, shape index: {}]   ;;  %s6946_s2 = inlined_call_operand.hbm [shape: bf16[128,128], index: 2, kind: input, shape index: {}]   ;;  %s6947_s3 = inlined_call_operand.vmem [shape: f32[1,128], index: 3, kind: input, shape index: {}]   ;;  %s6948_s4 = inlined_call_operand.hbm [shape: bf16[128,128], index: 4, kind: input, shape index: {}]   ;;  %s6949_s5 = inlined_call_operand.vmem [shape: f32[1,128], index: 5, kind: input, shape index: {}]   ;;  %s6950_s6 = inlined_call_operand.hbm [shape: bf16[128,128], index: 6, kind: input, shape index: {}]   ;;  %s6951_s7 = inlined_call_operand.vmem [shape: f32[1,128], index: 7, kind: input, shape index: {}]   ;;  %s6952_s8 = inlined_call_operand.hbm [shape: bf16[128,128], index: 8, kind: input, shape index: {}]   ;;  %s6953_s9 = inlined_call_operand.vmem [shape: f32[1,128], index: 9, kind: input, shape index: {}]   ;;  %s6954_s10 = inlined_call_operand.hbm [shape: f32[128,128], index: 10, kind: input, shape index: {}]   ;;  %s6955_s11 = inlined_call_operand.hbm [shape: f32[256,128], index: 11, kind: output, shape index: {}]  }
   0x1   :  { %7001 = sst [smem:[#allocation59_spill]] %s6944_s0 }
   0x2   :  { %7002 = sst [smem:[#allocation60_spill]] %s6946_s2 }
   0x3   :  { %7003 = sst [smem:[#allocation61_spill]] %s6948_s4 }
   0x4   :  { %7004 = sst [smem:[#allocation62_spill]] %s6950_s6 }
   0x5   :  { %7005 = sst [smem:[#allocation63_spill]] %s6952_s8 }
   0x6   :  { %7006 = sst [smem:[#allocation64_spill]] %s6954_s10 }
   0x7   :  { %16 = vsyncpa [#allocation3], 0 }
   0x8   :  { %18 = vsyncpa [#allocation3 + $0x1], 0 }
   0x9   :  { %19 = vsyncpa [#allocation6], 0 }
   0xa   :  { %21 = vsyncpa [#allocation6 + $0x1], 0 }
   0xb   :  { %22 = vsyncpa [#allocation9], 0 }
   0xc   :  { %23 = vsyncpa [#allocation12], 0 }
   0xd   :  { %24 = vsyncpa [#allocation4], 0 }
   0xe   :  { %26 = vsyncpa [#allocation4 + $0x1], 0  ;;  %s5300_s17 = smov 0   ;;  %s5302_s18 = smov 0  }
   0xf   :  { %s5304_s19 = smov 0   ;;  %s5306_s20 = smov 0  }
  0x10 LB: > { %7007 = sst [smem:[#allocation21_spill]] %s5217_s19  ;;  %s5223_s21 = smov [#allocation7]   ;;  %s5221_s20 = sphi %s5306_s20, %s7137_s20   ;;  %s5217_s19 = sphi %s5304_s19, %s7139_s19   ;;  %s5213_s18 = sphi %s5302_s18, %s7141_s18   ;;  %s5209_s17 = sphi %s5300_s17, %s7140_s17  }
  0x11   : > { %s316_s22 = sshll.u32 %s5223_s21, 4  ;;  %s5321_s23 = sadd.s32 4294967295, %s5221_s20   ;;  %s317_s22 = int_to_ptr.vmem [resolvable:$true] %s316_s22 }
  0x12   : > { %p3682_p0 = scmp.ge.s32.totalorder %s5221_s20, 1  ;;  %p6963_p1 = scmp.eq.s32.totalorder %s5321_s23, 0 }
  0x13   : > { %p304_p2 = scmp.lt.s32.totalorder %s5221_s20, 3  ;;  %s5224_s25 = smov [#allocation8]  }
  0x14   : > { %s332_s26 = sshll.u32 %s5224_s25, 4  ;;  %s5225_s28 = smov [#allocation11]   ;;  %s5339_s26 = int_to_ptr.vmem [resolvable:$true] %s332_s26 }
  0x15   : > { %p5326_p3 = pnand %p3682_p0, %p304_p2  ;;  %s364_s29 = sshll.u32 %s5225_s28, 4  ;;  %s5341_s29 = int_to_ptr.vmem [resolvable:$true] %s364_s29 }
  0x16   : > { %s4966_s12 = scalar_lea.vmem %s317_s22, 1024  ;;  %p4974_p11 = scmp.lt.s32.totalorder %s317_s22, %s317_s22 }
  0x17   : > { %p4430_p5 = pneg %p5326_p3  ;;  %p4967_p8 = scmp.ne.s32.totalorder %s317_s22, %s4966_s12 }
  0x18   : > { %p4975_p12 = scmp.lt.s32.totalorder %s4966_s12, %s4966_s12 }
  0x19   : > { %p5335_p6 = pnand %p4430_p5, %p6963_p1 }
  0x1a   : > { %p4976_p13 = por %p4975_p12, %p4974_p11 }
  0x1b   : > { %p5345_p7 = pneg %p5335_p6 }
  0x1d   : > { %p4969_p9 = pnand %p4967_p8, %p5345_p7 }
  0x1f   : > { %p4970_p10 = pneg %p4969_p9 }
  0x21   : > { %p4977_p0 = pnand %p4976_p13, %p4970_p10 }
  0x23   : > { %4980 = shalt.err (!%p4977_p0)
}
  0x24   : > { %s6956_s13 = smov 64   ;;  %s6958_s14 = smov 4  }
  0x25   : > { %s7011_s2 = sld [smem:[#allocation60_spill]]  ;;  %s4992_s21 = scalar_lea.vmem %s5339_s26, 1024 }
  0x26   : > { %p4993_p2 = scmp.ne.s32.totalorder %s5339_s26, %s4992_s21  ;;  %p5000_p9 = scmp.lt.s32.totalorder %s5339_s26, %s5339_s26 }
  0x27   : > { %p5001_p10 = scmp.lt.s32.totalorder %s4992_s21, %s4992_s21 }
  0x28   : > { %p4995_p5 = pnand %p4993_p2, %p5345_p7 }
  0x29   : > { %p5002_p11 = por %p5001_p10, %p5000_p9 }
  0x2a   : > { %p4996_p8 = pneg %p4995_p5 }
  0x2b   : > { %4433 = dma.hbm_to_vmem [thread:$0]  (!%p5335_p6), %s7011_s2, 1024, %s317_s22, [#allocation6], %s6956_s13, %s6956_s13, %s6958_s14  }
  0x2c   : > { %p5003_p12 = pnand %p5002_p11, %p4996_p8 }
  0x2e   : > { %5006 = shalt.err (!%p5003_p12)
}
  0x2f   : > { %s7012_s4 = sld [smem:[#allocation61_spill]]  ;;  %s5018_s22 = scalar_lea.vmem %s5341_s29, 1024 }
  0x30   : > { %p5019_p13 = scmp.ne.s32.totalorder %s5341_s29, %s5018_s22  ;;  %p5026_p5 = scmp.lt.s32.totalorder %s5341_s29, %s5341_s29 }
  0x31   : > { %p5027_p8 = scmp.lt.s32.totalorder %s5018_s22, %s5018_s22 }
  0x32   : > { %p5021_p0 = pnand %p5019_p13, %p5345_p7 }
  0x33   : > { %p5028_p9 = por %p5027_p8, %p5026_p5 }
  0x34   : > { %p5022_p2 = pneg %p5021_p0 }
  0x35   : > { %4436 = dma.hbm_to_vmem [thread:$0]  (!%p5335_p6), %s7012_s4, 1024, %s5339_s26, [#allocation9], %s6956_s13, %s6956_s13, %s6958_s14  }
  0x36   : > { %p5029_p10 = pnand %p5028_p9, %p5022_p2 }
  0x38   : > { %5032 = shalt.err (!%p5029_p10)
}
  0x39   : > { %s7013_s8 = sld [smem:[#allocation63_spill]]  ;;  %s5228_s26 = smov [#allocation10]  }
  0x3a   : > { %s348_s16 = sshll.u32 %s5228_s26, 4  ;;  %s5229_s21 = smov [#allocation13]   ;;  %s349_s16 = int_to_ptr.vmem [resolvable:$true] %s348_s16 }
  0x3b   : > { %s380_s25 = sshll.u32 %s5229_s21, 4  ;;  %s5044_s28 = scalar_lea.vmem %s349_s16, 1024  ;;  %s381_s25 = int_to_ptr.vmem [resolvable:$true] %s380_s25 }
  0x3c   : > { %p5045_p11 = scmp.ne.s32.totalorder %s349_s16, %s5044_s28  ;;  %p5052_p0 = scmp.lt.s32.totalorder %s349_s16, %s349_s16 }
  0x3d   : > { %p5053_p2 = scmp.lt.s32.totalorder %s5044_s28, %s5044_s28 }
  0x3e   : > { %p5047_p12 = pnand %p5045_p11, %p5345_p7 }
  0x3f   : > { %4442 = dma.hbm_to_vmem [thread:$0]  (!%p5335_p6), %s7013_s8, 1024, %s5341_s29, [#allocation12], %s6956_s13, %s6956_s13, %s6958_s14  }
  0x40   : > { %p5048_p13 = pneg %p5047_p12  ;;  %p5054_p5 = por %p5053_p2, %p5052_p0 }
  0x42   : > { %p5055_p8 = pnand %p5054_p5, %p5048_p13 }
  0x44   : > { %5058 = shalt.err (!%p5055_p8)
}
  0x45   : > { %s7014_s6 = sld [smem:[#allocation62_spill]]  ;;  %s5070_s12 = scalar_lea.vmem %s381_s25, 2048 }
  0x46   : > { %p5071_p9 = scmp.ne.s32.totalorder %s381_s25, %s5070_s12  ;;  %p5078_p12 = scmp.lt.s32.totalorder %s381_s25, %s381_s25 }
  0x47   : > { %p5079_p0 = scmp.lt.s32.totalorder %s5070_s12, %s5070_s12 }
  0x48   : > { %p5073_p10 = pnand %p5071_p9, %p5345_p7 }
  0x49   : > { %p5080_p13 = por %p5079_p0, %p5078_p12 }
  0x4a   : > { %p5074_p11 = pneg %p5073_p10 }
  0x4b   : > { %4439 = dma.hbm_to_vmem [thread:$0]  (!%p5335_p6), %s7014_s6, 1024, %s349_s16, [#allocation9], %s6956_s13, %s6956_s13, %s6958_s14  }
  0x4c   : > { %p5081_p2 = pnand %p5080_p13, %p5074_p11 }
  0x4e   : > { %5084 = shalt.err (!%p5081_p2)
}
  0x4f   : > { %s5230_s15 = smov 128   ;;  %s5231_s30 = smov 8  }
  0x50   : > { %s7015_s10 = sld [smem:[#allocation64_spill]]  ;;  %s3681_s21 = sadd.s32 4294967294, %s5221_s20  }
  0x51   : > { %s5408_s28 = sadd.s32 1, %s5221_s20   ;;  %s39_s29 = sadd.s32 1, %s5217_s19 }
  0x52   : > { %7016 = sst [smem:[#allocation22_spill]] %s5408_s28  ;;  %s36_s22 = ssub.s32 %s5221_s20, %s5408_s28 }
  0x53   : > { %p46_p7 = scmp.ne.s32.totalorder %s5217_s19, %s5213_s18  ;;  %p37_p5 = scmp.eq.s32.totalorder %s36_s22, 0 }
  0x54   : > { %p47_p8 = scmp.eq.s32.totalorder %s5221_s20, 0  ;;  %p52_p9 = scmp.ne.s32.totalorder %s5213_s18, %s5209_s17 }
  0x55   : > { %p291_p10 = scmp.eq.s32.totalorder %s5321_s23, 1  ;;  %p297_p0 = scmp.eq.s32.totalorder %s3681_s21, 1 }
  0x56   : > { %4445 = dma.hbm_to_vmem [thread:$0]  (!%p5335_p6), %s7015_s10, 2048, %s381_s25, [#allocation12], %s5230_s15, %s5230_s15, %s5231_s30  }
  0x57   : > { %s5420_s12 = scalar_select %p37_p5, %s5217_s19, %s39_s29  }
  0x58   : > { %p48_p11 = por %p47_p8, %p46_p7  ;;  %p5424_p12 = por %p6963_p1, %p52_p9 }
  0x59   : > { %7017 = sst [smem:[#allocation23_spill]] %s5420_s12  ;;  %p5428_p6 = por %p291_p10, %p46_p7 }
  0x5a   : > { %s7018_s27 = scalar_select %p5424_p12, 1, 0 }
  0x5b   : > { %s7019_s25 = scalar_select %p5428_p6, 1, 0 }
  0x5c   : > { %p4462_p13 = scmp.lt.s32.totalorder %s5221_s20, 2  ;;  %s394_s15 = sand.u32 1, %s5217_s19  }
  0x5d   : > { %p5434_p2 = por %p297_p0, %p52_p9  ;;  %s5438_s26 = sshll.u32 %s394_s15, 6 }
  0x5e   : > { %s3793_s16 = sshll.u32 %s5221_s20, 10  ;;  %s7022_s0 = sld [smem:[#allocation59_spill]] }
  0x5f   : > { %s7020_s30 = scalar_select %p5434_p2, 1, 0 }
  0x60   : > { %s398_s14 = scalar_lea.vmem [#allocation2], %s5438_s26  ;;  %p5447_p7 = pnand %p4462_p13, %p48_p11 }
  0x61   : > { %7021 = sst [smem:[#allocation24_spill]] %s7020_s30  ;;  %s405_s21 = sshll.u32 %s398_s14, 4  ;;  %s5451_s21 = int_to_ptr.vmem [resolvable:$true] %s405_s21 }
  0x62   : > { %s5456_s8 = scalar_lea.hbm %s6945_s1, %s3793_s16  ;;  %s5458_s29 = scalar_lea.sflag [#allocation3], %s394_s15 }
  0x63   : > { %p5087_p8 = pneg %p5447_p7 }
  0x64   : > { %s5444_s13 = scalar_lea.hbm %s7022_s0, %s3793_s16  ;;  %s5090_s12 = scalar_lea.hbm %s7022_s0, 2048 }
  0x65   : > { %s5085_s22 = scalar_lea.hbm %s5444_s13, 1024  ;;  %p5091_p11 = scmp.lt.s32.totalorder %s5444_s13, %s7022_s0 }
  0x66   : > { %p5086_p5 = scmp.ne.s32.totalorder %s5444_s13, %s5085_s22  ;;  %p5092_p0 = scmp.lt.s32.totalorder %s5090_s12, %s5085_s22 }
  0x68   : > { %p5088_p9 = pnand %p5087_p8, %p5086_p5  ;;  %p5093_p13 = por %p5092_p0, %p5091_p11 }
  0x6a   : > { %p5089_p10 = pneg %p5088_p9 }
  0x6c   : > { %p5094_p4 = pnand %p5093_p13, %p5089_p10 }
  0x6e   : > { %5097 = shalt.err (!%p5094_p4)
}
  0x6f   : > { %s5098_s4 = scalar_lea.vmem %s5451_s21, 1024  ;;  %s5232_s6 = smov [#allocation2]  }
  0x70   : > { %p5099_p1 = scmp.ne.s32.totalorder %s5451_s21, %s5098_s4  ;;  %s5103_s10 = sshll.u32 %s5232_s6, 4  ;;  %s5104_s10 = int_to_ptr.vmem [resolvable:$false] %s5103_s10 }
  0x71   : > { %s5105_s15 = scalar_lea.vmem %s5104_s10, 2048  ;;  %p5106_p2 = scmp.lt.s32.totalorder %s5451_s21, %s5104_s10 }
  0x72   : > { %p5101_p5 = pnand %p5099_p1, %p5087_p8  ;;  %p5107_p6 = scmp.lt.s32.totalorder %s5105_s15, %s5098_s4 }
  0x74   : > { %p5102_p9 = pneg %p5101_p5  ;;  %p5108_p12 = por %p5107_p6, %p5106_p2 }
  0x76   : > { %p5109_p11 = pnand %p5108_p12, %p5102_p9 }
  0x78   : > { %5112 = shalt.err (!%p5109_p11)
}
  0x79   : > { %s7024_s19 = smov 4   ;;  %s7025_s28 = smov 64  }
  0x7a   : > { %4449 = dma.hbm_to_vmem [thread:$0]  (!%p5447_p7), %s5444_s13, 1024, %s5451_s21, %s5458_s29, %s7025_s28, %s7025_s28, %s7024_s19  }
  0x7b   : > { %s419_s12 = scalar_lea.vmem [#allocation5], %s5438_s26  ;;  %s415_s22 = sand.u32 1, %s5221_s20  }
  0x7c   : > { %s426_s16 = sshll.u32 %s419_s12, 4  ;;  %s416_s14 = scalar_lea.sflag [#allocation6], %s415_s22  ;;  %s5490_s16 = int_to_ptr.vmem [resolvable:$true] %s426_s16 }
  0x7d   : > { %s5113_s4 = scalar_lea.hbm %s5456_s8, 1024  ;;  %s5118_s15 = scalar_lea.hbm %s6945_s1, 2048 }
  0x7e   : > { %p5114_p1 = scmp.ne.s32.totalorder %s5456_s8, %s5113_s4  ;;  %p5119_p6 = scmp.lt.s32.totalorder %s5456_s8, %s6945_s1 }
  0x7f   : > { %p5120_p2 = scmp.lt.s32.totalorder %s5118_s15, %s5113_s4 }
  0x80   : > { %p5116_p4 = pnand %p5114_p1, %p5087_p8 }
  0x81   : > { %p5121_p10 = por %p5120_p2, %p5119_p6 }
  0x82   : > { %p5117_p12 = pneg %p5116_p4 }
  0x84   : > { %p5122_p0 = pnand %p5121_p10, %p5117_p12 }
  0x86   : > { %5125 = shalt.err (!%p5122_p0)
}
  0x87   : > { %s5126_s13 = scalar_lea.vmem %s5490_s16, 1024  ;;  %s5233_s26 = smov [#allocation5]  }
  0x88   : > { %p5127_p13 = scmp.ne.s32.totalorder %s5490_s16, %s5126_s13  ;;  %s5131_s21 = sshll.u32 %s5233_s26, 4  ;;  %s5132_s21 = int_to_ptr.vmem [resolvable:$false] %s5131_s21 }
  0x89   : > { %s5133_s29 = scalar_lea.vmem %s5132_s21, 2048  ;;  %p5134_p11 = scmp.lt.s32.totalorder %s5490_s16, %s5132_s21 }
  0x8a   : > { %p5129_p5 = pnand %p5127_p13, %p5087_p8  ;;  %p5135_p1 = scmp.lt.s32.totalorder %s5133_s29, %s5126_s13 }
  0x8c   : > { %p5130_p9 = pneg %p5129_p5  ;;  %p5136_p4 = por %p5135_p1, %p5134_p11 }
  0x8e   : > { %p5137_p6 = pnand %p5136_p4, %p5130_p9 }
  0x90   : > { %5140 = shalt.err (!%p5137_p6)
}
  0x91   : > { %4452 = dma.hbm_to_vmem [thread:$0]  (!%p5447_p7), %s5456_s8, 1024, %s5490_s16, %s416_s14, %s7025_s28, %s7025_s28, %s7024_s19  }
  0x92   : > { %438 = sbr.rel (%p5326_p3) target bundleno = 3448 (0xd78), region = 64 }
  0x97   : > { %s5520_s0 = sand.u32 1, %s5213_s18   ;;  %p7026_p8 = scmp.ne.s32.totalorder %s7018_s27, 0 }
  0x98   : > { %s3696_s30 = sshll.u32 %s5520_s0, 6  ;;  %s441_s12 = scalar_lea.sflag [#allocation3], %s5520_s0 }
  0x99   : > { %s5524_s22 = scalar_lea.vmem [#allocation2], %s3696_s30 }
  0x9a   : > { %5184 = dma.done.wait (%p7026_p8), %s441_s12, 1024  }
  0x9b   : > { %5186 = vsyncadd (%p7026_p8), %s441_s12, 4294966272  ;;  %s449_s2 = sand.u32 1, %s5321_s23   ;;  %s5531_s24 = scalar_lea.vmem [#allocation5], %s3696_s30 }
  0x9c   : > { %s450_s8 = scalar_lea.sflag [#allocation6], %s449_s2 }
  0x9d   : > { %5188 = dma.done.wait (%p7026_p8), %s450_s8, 1024  }
  0x9e   : > { %5190 = vsyncadd (%p7026_p8), %s450_s8, 4294966272  ;;  %p7027_p3 = scmp.eq.s32.totalorder %s5321_s23, 0 }
  0xa0   : > { %5192 = dma.done.wait (%p7027_p3), [#allocation6], 1024   ;;  %p7028_p7 = pmov %p7027_p3 }
  0xa1   : > { %p7029_p12 = pmov %p7027_p3 }
  0xa2   : > { %5194 = vsyncadd (%p7028_p7), [#allocation6], 4294966272 }
  0xa3   : > { %5196 = dma.done.wait (%p7029_p12), [#allocation9], 2048   ;;  %p7030_p2 = pmov %p7027_p3 }
  0xa5   : > { %5198 = vsyncadd (%p7030_p2), [#allocation9], 4294965248  ;;  %p7031_p10 = pmov %p7030_p2 }
  0xa6   : > { %p7032_p0 = pmov %p7030_p2 }
  0xa7   : > { %5200 = dma.done.wait (%p7031_p10), [#allocation12], 3072  }
  0xa8   : > { %5202 = vsyncadd (%p7032_p0), [#allocation12], 4294964224  ;;  %v4635_v0 = vld [vmem:[#allocation8 + $0x38] sm:$0xff]   ;;  %v4636_v1 = vld [vmem:[#allocation8 + $0x30] sm:$0xff]   ;;  %vm1193_vm0 = vcmask 261120   ;;  %s5234_s14 = smov 96  }
  0xa9   : > { %4020 = vmatprep.subr.bf16.mxu1 %v4635_v0  ;;  %v4637_v2 = vld [vmem:[#allocation8 + $0x28] sm:$0xff]   ;;  %v4638_v3 = vld [vmem:[#allocation8 + $0x20] sm:$0xff]   ;;  %v4639_v5 = vld [vmem:[#allocation8 + $0x18] sm:$0xff]   ;;  %s5235_s10 = smov 64   ;;  %s5236_s15 = smov 32   ;;  %vm3298_vm1 = vcmask 523264  }
  0xaa   : > { %4021 = vmatpush3.bf16.msra.mxu1 %v4635_v0  ;;  %v4643_v4 = vld [vmem:[%s5531_s24] sm:$0xff]   ;;  %v4640_v6 = vld [vmem:[#allocation8 + $0x10] sm:$0xff]   ;;  %v4651_v7 = vld [vmem:[#allocation7 + $0x38] sm:$0xff]   ;;  %vm3315_vm2 = vcmask 785408   ;;  %s3703_s13 = sshll.u32 %s5520_s0, 7  ;;  %s3795_s30 = sshll.u32 %s5321_s23, 11 }
  0xab   : > { %4022 = vmatprep.subr.bf16.mxu1 %v4636_v1  ;;  %4036 = vmatprep.mubr.bf16.mxu1 %v4643_v4  ;;  %v4652_v8 = vld [vmem:[#allocation7 + $0x30] sm:$0xff]   ;;  %v4641_v9 = vld [vmem:[#allocation8 + $0x8] sm:$0xff]   ;;  %v4642_v11 = vld [vmem:[#allocation8] sm:$0xff]   ;;  %s6876_s29 = scalar_lea.vmem [#allocation14], %s3703_s13  ;;  %s6897_s8 = scalar_lea.hbm %s6955_s11, %s3795_s30 }
  0xac   : > { %3988 = vmatprep.subr.bf16.mxu0 %v4651_v7  ;;  %v4653_v10 = vld [vmem:[#allocation7 + $0x28] sm:$0xff]   ;;  %v4654_v12 = vld [vmem:[#allocation7 + $0x20] sm:$0xff]   ;;  %v4655_v14 = vld [vmem:[#allocation7 + $0x18] sm:$0xff]   ;;  %s3538_s12 = sshll.u32 %s6876_s29, 4  ;;  %p7133_p5 = scmp.ne.s32.totalorder %s7019_s25, 0  ;;  %s6899_s12 = int_to_ptr.vmem [resolvable:$true] %s3538_s12 }
  0xad   : > { %3989 = vmatpush3.bf16.msra.mxu0 %v4651_v7  ;;  %v4659_v13 = vld [vmem:[%s5524_s22] sm:$0xff]   ;;  %v4644_v15 = vld [vmem:[%s5531_s24 + $0x8] sm:$0xff]   ;;  %v4645_v16 = vld [vmem:[%s5531_s24 + $0x10] sm:$0xff]   ;;  %s5141_s23 = scalar_lea.vmem %s6899_s12, 2048  ;;  %s5237_s27 = smov [#allocation14]  }
  0xae   : > { %4023 = vmatpush3.bf16.msra.mxu1 %v4636_v1  ;;  %3990 = vmatprep.subr.bf16.mxu0 %v4652_v8  ;;  %v4656_v17 = vld [vmem:[#allocation7 + $0x10] sm:$0xff]   ;;  %v4646_v18 = vld [vmem:[%s5531_s24 + $0x18] sm:$0xff]   ;;  %v4657_v19 = vld [vmem:[#allocation7 + $0x8] sm:$0xff]   ;;  %p5142_p13 = scmp.ne.s32.totalorder %s6899_s12, %s5141_s23  ;;  %s5145_s19 = sshll.u32 %s5237_s27, 4  ;;  %s5146_s19 = int_to_ptr.vmem [resolvable:$false] %s5145_s19 }
  0xaf   : > { %4024 = vmatprep.subr.bf16.mxu1 %v4637_v2  ;;  %4004 = vmatprep.mubr.bf16.mxu0 %v4659_v13  ;;  %v4647_v20 = vld [vmem:[%s5531_s24 + $0x20] sm:$0xff]   ;;  %v4667_v22 = vld [vmem:[#allocation10 + $0x38] sm:$0xff]   ;;  %v4648_v23 = vld [vmem:[%s5531_s24 + $0x28] sm:$0xff]   ;;  %s5147_s28 = scalar_lea.vmem %s5146_s19, 4096  ;;  %p5148_p1 = scmp.lt.s32.totalorder %s6899_s12, %s5146_s19 }
  0xb0   : > { %v4658_v21 = vld [vmem:[#allocation7] sm:$0xff]   ;;  %v4660_v24 = vld [vmem:[%s5524_s22 + $0x8] sm:$0xff]   ;;  %v4649_v25 = vld [vmem:[%s5531_s24 + $0x30] sm:$0xff]   ;;  %p5143_p9 = pnand %p5142_p13, %p7133_p5  ;;  %p5149_p4 = scmp.lt.s32.totalorder %s5147_s28, %s5141_s23 }
  0xb1   : > { %3991 = vmatpush3.bf16.msra.mxu0 %v4652_v8  ;;  %v4661_v26 = vld [vmem:[%s5524_s22 + $0x10] sm:$0xff]   ;;  %v4669_v28 = vld [vmem:[#allocation10 + $0x28] sm:$0xff]   ;;  %v4650_v29 = vld [vmem:[%s5531_s24 + $0x38] sm:$0xff]   ;;  %s3525_s24 = scalar_lea.sflag [#allocation4], %s5520_s0 }
  0xb2   : > { %4025 = vmatpush3.bf16.msra.mxu1 %v4637_v2  ;;  %3992 = vmatprep.subr.bf16.mxu0 %v4653_v10  ;;  %v4668_v27 = vld [vmem:[#allocation10 + $0x30] sm:$0xff]   ;;  %v4662_v30 = vld [vmem:[%s5524_s22 + $0x18] sm:$0xff]   ;;  %v4663_v31 = vld [vmem:[%s5524_s22 + $0x20] sm:$0xff]   ;;  %p5144_p11 = pneg %p5143_p9  ;;  %p5150_p6 = por %p5149_p4, %p5148_p1 }
  0xb3   : > { %4026 = vmatprep.subr.bf16.mxu1 %v4638_v3  ;;  %v4670_v32 = vld [vmem:[#allocation10 + $0x20] sm:$0xff]   ;;  %v4671_v33 = vld [vmem:[#allocation10 + $0x18] sm:$0xff]   ;;  %v4664_v34 = vld [vmem:[%s5524_s22 + $0x28] sm:$0xff]  }
  0xb4   : > { %v4665_v35 = vld [vmem:[%s5524_s22 + $0x30] sm:$0xff]   ;;  %v4666_v36 = vld [vmem:[%s5524_s22 + $0x38] sm:$0xff]   ;;  %v4673_v38 = vld [vmem:[#allocation10 + $0x8] sm:$0xff]   ;;  %p5151_p8 = pnand %p5150_p6, %p5144_p11 }
  0xb5   : > { %3993 = vmatpush3.bf16.msra.mxu0 %v4653_v10  ;;  %v4672_v37 = vld [vmem:[#allocation10 + $0x10] sm:$0xff]   ;;  %v4674_v39 = vld [vmem:[#allocation10] sm:$0xff]  }
  0xb6   : > { %4027 = vmatpush3.bf16.msra.mxu1 %v4638_v3  ;;  %3994 = vmatprep.subr.bf16.mxu0 %v4654_v12  ;;  %v3721_v43 = vld [vmem:[%s6949_s5] ss:$0 sm:$0xff] }
  0xb7   : > { %4028 = vmatprep.subr.bf16.mxu1 %v4639_v5  ;;  %v5577_v56 = vld [vmem:[%s6947_s3] ss:$0 sm:$0xff] }
  0xb9   : > { %3995 = vmatpush3.bf16.msra.mxu0 %v4654_v12 }
  0xba   : > { %4029 = vmatpush3.bf16.msra.mxu1 %v4639_v5  ;;  %3996 = vmatprep.subr.bf16.mxu0 %v4655_v14 }
  0xbb   : > { %4030 = vmatprep.subr.bf16.mxu1 %v4640_v6 }
  0xbd   : > { %3997 = vmatpush3.bf16.msra.mxu0 %v4655_v14 }
  0xbe   : > { %4031 = vmatpush3.bf16.msra.mxu1 %v4640_v6  ;;  %3998 = vmatprep.subr.bf16.mxu0 %v4656_v17 }
  0xbf   : > { %4032 = vmatprep.subr.bf16.mxu1 %v4641_v9 }
  0xc1   : > { %3999 = vmatpush3.bf16.msra.mxu0 %v4656_v17 }
  0xc2   : > { %4033 = vmatpush3.bf16.msra.mxu1 %v4641_v9  ;;  %4000 = vmatprep.subr.bf16.mxu0 %v4657_v19 }
  0xc3   : > { %4034 = vmatprep.subr.bf16.mxu1 %v4642_v11 }
  0xc5   : > { %4001 = vmatpush3.bf16.msra.mxu0 %v4657_v19 }
  0xc6   : > { %4035 = vmatpush3.bf16.msra.mxu1 %v4642_v11  ;;  %4002 = vmatprep.subr.bf16.mxu0 %v4658_v21 }
  0xc9   : > { %4037 = vmatmul.mubr.bf16.vlgmr.msra.gmra.mxu1 %v4644_v15  ;;  %4003 = vmatpush3.bf16.msra.mxu0 %v4658_v21 }
  0xca   : > { %4040 = vmatprep.mubr.bf16.mxu1 %v4645_v16  ;;  %4052 = vmatprep.subr.bf16.mxu0 %v4667_v22 }
  0xcc   : > { %4005 = vmatmul.mubr.bf16.vlgmr.msra.gmra.mxu0 %v4660_v24 }
  0xcd   : > { %4008 = vmatprep.mubr.bf16.mxu0 %v4661_v26  ;;  %4053 = vmatpush3.bf16.msra.mxu0 %v4667_v22 }
  0xce   : > { %4054 = vmatprep.subr.bf16.mxu0 %v4668_v27 }
  0xd1   : > { %4041 = vmatmul.mubr.bf16.gmra.mxu1 %v4646_v18  ;;  %4055 = vmatpush3.bf16.msra.mxu0 %v4668_v27 }
  0xd2   : > { %4044 = vmatprep.mubr.bf16.mxu1 %v4647_v20  ;;  %4056 = vmatprep.subr.bf16.mxu0 %v4669_v28 }
  0xd4   : > { %4009 = vmatmul.mubr.bf16.gmra.mxu0 %v4662_v30 }
  0xd5   : > { %4012 = vmatprep.mubr.bf16.mxu0 %v4663_v31  ;;  %4057 = vmatpush3.bf16.msra.mxu0 %v4669_v28 }
  0xd6   : > { %4058 = vmatprep.subr.bf16.mxu0 %v4670_v32 }
  0xd9   : > { %4045 = vmatmul.mubr.bf16.gmra.mxu1 %v4648_v23  ;;  %4059 = vmatpush3.bf16.msra.mxu0 %v4670_v32 }
  0xda   : > { %4048 = vmatprep.mubr.bf16.mxu1 %v4649_v25  ;;  %4060 = vmatprep.subr.bf16.mxu0 %v4671_v33 }
  0xdc   : > { %4013 = vmatmul.mubr.bf16.gmra.mxu0 %v4664_v34 }
  0xdd   : > { %4016 = vmatprep.mubr.bf16.mxu0 %v4665_v35  ;;  %4061 = vmatpush3.bf16.msra.mxu0 %v4671_v33 }
  0xde   : > { %4062 = vmatprep.subr.bf16.mxu0 %v4672_v37 }
  0xe1   : > { %4049 = vmatmul.mubr.bf16.gmra.mxu1 %v4650_v29  ;;  %4063 = vmatpush3.bf16.msra.mxu0 %v4672_v37 }
  0xe2   : > { %4064 = vmatprep.subr.bf16.mxu0 %v4673_v38 }
  0xe4   : > { %4017 = vmatmul.mubr.bf16.gmra.mxu0 %v4666_v36 }
  0xe5   : > { %4065 = vmatpush3.bf16.msra.mxu0 %v4673_v38 }
  0xe6   : > { %4066 = vmatprep.subr.bf16.mxu0 %v4674_v39 }
  0xe9   : > { %4067 = vmatpush3.bf16.msra.mxu0 %v4674_v39 }
 0x189   : > { %v4038_v40 = vpop.f32.mrf.mxu1 }
 0x18a   : > { %v931_v48 = vadd.f32 %v4038_v40, %v3721_v43 }
 0x18b   : > { %v922_v41 = vpop.f32.mrf.mxu1 }
 0x18c   : > { %v923_v46 = vadd.f32 %v3721_v43, %v922_v41  ;;  %v4006_v61 = vpop.f32.mrf.mxu0 }
 0x18d   : > { %v4039_v42 = vpop.f32.mrf.mxu1  ;;  %v715_v63 = vadd.f32 %v4006_v61, %v5577_v56 }
 0x18e   : > { %v934_v44 = vadd.f32 %v4039_v42, %v3721_v43  ;;  %v706_v2 = vpop.f32.mrf.mxu0 }
 0x18f   : > { %v925_v45 = vpop.f32.mrf.mxu1  ;;  %v707_v5 = vadd.f32 %v5577_v56, %v706_v2 }
 0x190   : > { %v926_v47 = vadd.f32 %v3721_v43, %v925_v45  ;;  %v5570_v51 = vpack.c.bf16 %v934_v44, %v931_v48  ;;  %v4007_v4 = vpop.f32.mrf.mxu0 }
 0x191   : > { %v4042_v49 = vpop.f32.mrf.mxu1  ;;  %v718_v6 = vadd.f32 %v4007_v4, %v5577_v56 }
 0x192   : > { %v5568_v50 = vpack.c.bf16 %v926_v47, %v923_v46  ;;  %v947_v59 = vadd.f32 %v4042_v49, %v3721_v43  ;;  %v709_v9 = vpop.f32.mrf.mxu0  ;;  %v1222_v39 = vsel %vm1193_vm0, %v5570_v51, 0 }
 0x193   : > { %v938_v52 = vpop.f32.mrf.mxu1  ;;  %v5588_v12 = vpack.c.bf16 %v718_v6, %v715_v63  ;;  %v710_v13 = vadd.f32 %v5577_v56, %v709_v9 }
 0x194   : > { %4068 = vmatprep.mubr.bf16.mxu0 %v5568_v50  ;;  %v939_v57 = vadd.f32 %v3721_v43, %v938_v52  ;;  %v4010_v32 = vpop.f32.mrf.mxu0  ;;  %v1219_v42 = vsel %vm1193_vm0, %v5568_v50, 0 }
 0x195   : > { %v4043_v53 = vpop.f32.mrf.mxu1  ;;  %4069 = vmatmul.mubr.bf16.vlgmr.msra.gmra.mxu0 %v5570_v51  ;;  %v5593_v17 = vpack.c.bf16 %v710_v13, %v707_v5  ;;  %v731_v49 = vadd.f32 %v4010_v32, %v5577_v56 }
 0x196   : > { %v950_v54 = vadd.f32 %v4043_v53, %v3721_v43  ;;  %v722_v34 = vpop.f32.mrf.mxu0 }
 0x197   : > { %v941_v55 = vpop.f32.mrf.mxu1  ;;  %4100 = vmatprep.mubr.msk.bf16.mxu1 %vm1193_vm0, %v5593_v17  ;;  %v723_v44 = vadd.f32 %v5577_v56, %v722_v34 }
 0x198   : > { %v942_v58 = vadd.f32 %v3721_v43, %v941_v55  ;;  %v5582_v0 = vpack.c.bf16 %v950_v54, %v947_v59  ;;  %v4011_v35 = vpop.f32.mrf.mxu0 }
 0x199   : > { %v4046_v60 = vpop.f32.mrf.mxu1  ;;  %v734_v52 = vadd.f32 %v4011_v35, %v5577_v56 }
 0x19a   : > { %v5579_v62 = vpack.c.bf16 %v942_v58, %v939_v57  ;;  %7034 = vst [vmem:[#allocation26_spill] sm:$0xff] %v5582_v0  ;;  %v963_v14 = vadd.f32 %v4046_v60, %v3721_v43  ;;  %v1228_v33 = vsel %vm1193_vm0, %v5582_v0, 0  ;;  %v725_v37 = vpop.f32.mrf.mxu0 }
 0x19b   : > { %v954_v1 = vpop.f32.mrf.mxu1  ;;  %v726_v45 = vadd.f32 %v5577_v56, %v725_v37  ;;  %v5655_v57 = vpack.c.bf16 %v734_v52, %v731_v49 }
 0x19c   : > { %7033 = vst [vmem:[#allocation25_spill] sm:$0xff] %v5579_v62  ;;  %4072 = vmatprep.mubr.bf16.mxu0 %v5579_v62  ;;  %v955_v10 = vadd.f32 %v3721_v43, %v954_v1  ;;  %v1225_v36 = vsel %vm1193_vm0, %v5579_v62, 0  ;;  %v4014_v38 = vpop.f32.mrf.mxu0 }
 0x19d   : > { %v4047_v3 = vpop.f32.mrf.mxu1  ;;  %4073 = vmatmul.mubr.bf16.gmra.mxu0 %v5582_v0  ;;  %v5645_v47 = vpack.c.bf16 %v726_v45, %v723_v44  ;;  %v747_v60 = vadd.f32 %v4014_v38, %v5577_v56 }
 0x19e   : > { %v966_v7 = vadd.f32 %v4047_v3, %v3721_v43  ;;  %v738_v40 = vpop.f32.mrf.mxu0 }
 0x19f   : > { %v957_v8 = vpop.f32.mrf.mxu1  ;;  %v739_v53 = vadd.f32 %v5577_v56, %v738_v40 }
 0x1a0   : > { %v958_v11 = vadd.f32 %v3721_v43, %v957_v8  ;;  %v5595_v18 = vpack.c.bf16 %v966_v7, %v963_v14  ;;  %v4015_v41 = vpop.f32.mrf.mxu0 }
 0x1a1   : > { %v4050_v15 = vpop.f32.mrf.mxu1  ;;  %v750_v61 = vadd.f32 %v4015_v41, %v5577_v56 }
 0x1a2   : > { %v5591_v16 = vpack.c.bf16 %v958_v11, %v955_v10  ;;  %7035 = vst [vmem:[#allocation27_spill] sm:$0xff] %v5595_v18  ;;  %v979_v21 = vadd.f32 %v4050_v15, %v3721_v43  ;;  %v1234_v30 = vsel %vm1193_vm0, %v5595_v18, 0 }
 0x1a3   : > { %v970_v19 = vpop.f32.mrf.mxu1  ;;  %v5667_v2 = vpack.c.bf16 %v750_v61, %v747_v60  ;;  %v5720_v61 = vld [vmem:[#allocation13 + $0x10] sm:$0xff] }
 0x1a4   : > { %4076 = vmatprep.mubr.bf16.mxu0 %v5591_v16  ;;  %v971_v24 = vadd.f32 %v3721_v43, %v970_v19  ;;  %v1231_v31 = vsel %vm1193_vm0, %v5591_v16, 0 }
 0x1a5   : > { %v4051_v20 = vpop.f32.mrf.mxu1  ;;  %4077 = vmatmul.mubr.bf16.gmra.mxu0 %v5595_v18 }
 0x1a6   : > { %v982_v22 = vadd.f32 %v4051_v20, %v3721_v43 }
 0x1a7   : > { %v973_v23 = vpop.f32.mrf.mxu1 }
 0x1a8   : > { %v5601_v25 = vpack.c.bf16 %v982_v22, %v979_v21  ;;  %v974_v26 = vadd.f32 %v3721_v43, %v973_v23  ;;  %v741_v43 = vpop.f32.mrf.mxu0 }
 0x1a9   : > { %v742_v54 = vadd.f32 %v5577_v56, %v741_v43 }
 0x1aa   : > { %7036 = vst [vmem:[#allocation28_spill] sm:$0xff] %v5601_v25  ;;  %v5603_v27 = vpack.c.bf16 %v974_v26, %v971_v24  ;;  %1666 = vrot.lane.b32.xlu0 %v5601_v25, %s5234_s14  ;;  %4372 = vmatprep.subr.msk.bf16.mxu1 %vm1193_vm0, %v5601_v25  ;;  %v1240_v28 = vsel %vm1193_vm0, %v5601_v25, 0  ;;  %v4018_v46 = vpop.f32.mrf.mxu0  ;;  %v3738_v24 = vld [vmem:[%s6951_s7] ss:$0 sm:$0xff] }
 0x1ab   : > { %4085 = vmatpush3.bf16.xpose.msra.mxu1 %v1240_v28  ;;  %v5657_v58 = vpack.c.bf16 %v742_v54, %v739_v53  ;;  %v763_v4 = vadd.f32 %v4018_v46, %v5577_v56 }
 0x1ac   : > { %1664 = vrot.lane.b32.xlu1 %v5603_v27, %s5234_s14  ;;  %4080 = vmatprep.mubr.bf16.mxu0 %v5603_v27  ;;  %v1237_v29 = vsel %vm1193_vm0, %v5603_v27, 0  ;;  %v754_v48 = vpop.f32.mrf.mxu0 }
 0x1ad   : > { %4373 = vmatprep.subr.msk.bf16.mxu1 %vm1193_vm0, %v5603_v27  ;;  %4081 = vmatmul.mubr.bf16.gmra.mxu0 %v5601_v25  ;;  %v755_v63 = vadd.f32 %v5577_v56, %v754_v48 }
 0x1ae   : > { %v4019_v55 = vpop.f32.mrf.mxu0 }
 0x1af   : > { %v766_v5 = vadd.f32 %v4019_v55, %v5577_v56 }
 0x1b0   : > { %v757_v59 = vpop.f32.mrf.mxu0 }
 0x1b1   : > { %v758_v1 = vadd.f32 %v5577_v56, %v757_v59  ;;  %v5677_v6 = vpack.c.bf16 %v766_v5, %v763_v4  ;;  %v5722_v4 = vld [vmem:[#allocation13] sm:$0xff] }
 0x1b3   : > { %4087 = vmatpush3.bf16.xpose.msra.mxu1 %v1237_v29  ;;  %v5669_v3 = vpack.c.bf16 %v758_v1, %v755_v63 }
 0x1b4   : > { %4374 = vmatprep.subr.msk.bf16.mxu1 %vm1193_vm0, %v5595_v18 }
 0x1bb   : > { %4089 = vmatpush3.bf16.xpose.msra.mxu1 %v1234_v30 }
 0x1bc   : > { %4375 = vmatprep.subr.msk.bf16.mxu1 %vm1193_vm0, %v5591_v16 }
 0x1c3   : > { %4091 = vmatpush3.bf16.xpose.msra.mxu1 %v1231_v31 }
 0x1c4   : > { %4376 = vmatprep.subr.msk.bf16.mxu1 %vm1193_vm0, %v5582_v0 }
 0x1cb   : > { %4093 = vmatpush3.bf16.xpose.msra.mxu1 %v1228_v33 }
 0x1cc   : > { %4377 = vmatprep.subr.msk.bf16.mxu1 %vm1193_vm0, %v5579_v62 }
 0x1d3   : > { %4095 = vmatpush3.bf16.xpose.msra.mxu1 %v1225_v36 }
 0x1d4   : > { %4378 = vmatprep.subr.msk.bf16.mxu1 %vm1193_vm0, %v5570_v51 }
 0x1db   : > { %4097 = vmatpush3.bf16.xpose.msra.mxu1 %v1222_v39 }
 0x1dc   : > { %4379 = vmatprep.subr.msk.bf16.mxu1 %vm1193_vm0, %v5568_v50 }
 0x1e3   : > { %4099 = vmatpush3.bf16.xpose.msra.mxu1 %v1219_v42 }
 0x1ea   : > { %4101 = vmatmul.mubr.msk.bf16.vlgmr.msra.gmra.mxu1 %vm1193_vm0, %v5588_v12 }
 0x1eb   : > { %4104 = vmatprep.mubr.msk.bf16.mxu1 %vm1193_vm0, %v5645_v47 }
 0x1f2   : > { %4105 = vmatmul.mubr.msk.bf16.gmra.mxu1 %vm1193_vm0, %v5655_v57 }
 0x1f3   : > { %4108 = vmatprep.mubr.msk.bf16.mxu1 %vm1193_vm0, %v5657_v58 }
 0x1fa   : > { %4109 = vmatmul.mubr.msk.bf16.gmra.mxu1 %vm1193_vm0, %v5667_v2 }
 0x1fb   : > { %4112 = vmatprep.mubr.msk.bf16.mxu1 %vm1193_vm0, %v5669_v3 }
 0x202   : > { %4113 = vmatmul.mubr.msk.bf16.gmra.mxu1 %vm1193_vm0, %v5677_v6 }
 0x21c   : > { %v5715_v59 = vpop.permute.xlu0 %1666 }
 0x255   : > { %v4070_v7 = vpop.f32.mrf.mxu0 }
 0x256   : > { %v1107_v49 = vadd.f32 %v4070_v7, %v3738_v24 }
 0x257   : > { %v1098_v8 = vpop.f32.mrf.mxu0 }
 0x258   : > { %v1099_v54 = vadd.f32 %v3738_v24, %v1098_v8 }
 0x259   : > { %v4071_v9 = vpop.f32.mrf.mxu0 }
 0x25a   : > { %v1110_v46 = vadd.f32 %v4071_v9, %v3738_v24  ;;  %v5727_v9 = vld [vmem:[#allocation13 + $0x18] sm:$0xff] }
 0x25b   : > { %v1101_v10 = vpop.f32.mrf.mxu0 }
 0x25c   : > { %v5707_v52 = vpack.c.bf16 %v1110_v46, %v1107_v49  ;;  %v1102_v53 = vadd.f32 %v3738_v24, %v1101_v10 }
 0x25d   : > { %v4074_v11 = vpop.f32.mrf.mxu0 }
 0x25e   : > { %v1123_v42 = vadd.f32 %v4074_v11, %v3738_v24  ;;  %7037 = vst [vmem:[#allocation29_spill] sm:$0xff] %v5707_v52  ;;  %v5711_v55 = vpack.c.bf16 %v1102_v53, %v1099_v54  ;;  %v5772_v54 = vld [vmem:[#allocation13 + $0x58] sm:$0xff] }
 0x25f   : > { %v1114_v13 = vpop.f32.mrf.mxu0 }
 0x260   : > { %v1115_v45 = vadd.f32 %v3738_v24, %v1114_v13  ;;  %7038 = vst [vmem:[#allocation30_spill] sm:$0xff] %v5711_v55 }
 0x261   : > { %v4075_v14 = vpop.f32.mrf.mxu0 }
 0x262   : > { %v1126_v40 = vadd.f32 %v4075_v14, %v3738_v24  ;;  %v5733_v14 = vld [vmem:[#allocation13 + $0x8] sm:$0xff] }
 0x263   : > { %v1117_v15 = vpop.f32.mrf.mxu0 }
 0x264   : > { %v5699_v43 = vpack.c.bf16 %v1126_v40, %v1123_v42  ;;  %v1118_v44 = vadd.f32 %v3738_v24, %v1117_v15  ;;  %v5759_v40 = vld [vmem:[#allocation13 + $0x50] sm:$0xff] }
 0x265   : > { %v4078_v19 = vpop.f32.mrf.mxu0  ;;  %7041 = vst [vmem:[#allocation33_spill] sm:$0xff] %v5759_v40 }
 0x266   : > { %v1139_v36 = vadd.f32 %v4078_v19, %v3738_v24  ;;  %v5703_v48 = vpack.c.bf16 %v1118_v44, %v1115_v45 }
 0x267   : > { %v1130_v20 = vpop.f32.mrf.mxu0 }
 0x268   : > { %v1131_v39 = vadd.f32 %v3738_v24, %v1130_v20 }
 0x269   : > { %v4079_v21 = vpop.f32.mrf.mxu0 }
 0x26a   : > { %v1142_v34 = vadd.f32 %v4079_v21, %v3738_v24  ;;  %v5739_v21 = vld [vmem:[#allocation13 + $0x30] sm:$0xff] }
 0x26b   : > { %v1133_v56 = vpop.f32.mrf.mxu0  ;;  %7039 = vst [vmem:[#allocation31_spill] sm:$0xff] %v5739_v21 }
 0x26c   : > { %v5691_v37 = vpack.c.bf16 %v1142_v34, %v1139_v36  ;;  %v1134_v38 = vadd.f32 %v3738_v24, %v1133_v56 }
 0x26d   : > { %v4082_v22 = vpop.f32.mrf.mxu0 }
 0x26e   : > { %v1155_v28 = vadd.f32 %v4082_v22, %v3738_v24  ;;  %v5695_v41 = vpack.c.bf16 %v1134_v38, %v1131_v39  ;;  %v5757_v39 = vld [vmem:[#allocation13 + $0x28] sm:$0xff] }
 0x26f   : > { %v1146_v23 = vpop.f32.mrf.mxu0 }
 0x270   : > { %v1147_v31 = vadd.f32 %v3738_v24, %v1146_v23 }
 0x271   : > { %v4083_v26 = vpop.f32.mrf.mxu0 }
 0x272   : > { %v1158_v29 = vadd.f32 %v4083_v26, %v3738_v24 }
 0x273   : > { %v1149_v30 = vpop.f32.mrf.mxu0 }
 0x274   : > { %v5684_v32 = vpack.c.bf16 %v1158_v29, %v1155_v28  ;;  %v1150_v33 = vadd.f32 %v3738_v24, %v1149_v30  ;;  %v5749_v28 = vld [vmem:[#allocation13 + $0x38] sm:$0xff] }
 0x276   : > { %v5686_v35 = vpack.c.bf16 %v1150_v33, %v1147_v31  ;;  %4116 = vmatprep.subr.bf16.mxu0 %v5684_v32  ;;  %v5751_v33 = vld [vmem:[#allocation13 + $0x20] sm:$0xff] }
 0x277   : > { %4117 = vmatpush3.bf16.msra.mxu0 %v5684_v32  ;;  %7040 = vst [vmem:[#allocation32_spill] sm:$0xff] %v5751_v33 }
 0x278   : > { %4118 = vmatprep.subr.bf16.mxu0 %v5686_v35 }
 0x27b   : > { %4119 = vmatpush3.bf16.msra.mxu0 %v5686_v35 }
 0x27c   : > { %4120 = vmatprep.subr.bf16.mxu0 %v5691_v37 }
 0x27f   : > { %4121 = vmatpush3.bf16.msra.mxu0 %v5691_v37 }
 0x280   : > { %4122 = vmatprep.subr.bf16.mxu0 %v5695_v41 }
 0x283   : > { %4123 = vmatpush3.bf16.msra.mxu0 %v5695_v41 }
 0x284   : > { %4124 = vmatprep.subr.bf16.mxu0 %v5699_v43 }
 0x287   : > { %4125 = vmatpush3.bf16.msra.mxu0 %v5699_v43 }
 0x288   : > { %4126 = vmatprep.subr.bf16.mxu0 %v5703_v48 }
 0x28b   : > { %4127 = vmatpush3.bf16.msra.mxu0 %v5703_v48 }
 0x28c   : > { %4128 = vmatprep.subr.bf16.mxu0 %v5707_v52 }
 0x28f   : > { %4129 = vmatpush3.bf16.msra.mxu0 %v5707_v52 }
 0x290   : > { %4130 = vmatprep.subr.bf16.mxu0 %v5711_v55 }
 0x293   : > { %4131 = vmatpush3.bf16.msra.mxu0 %v5711_v55 }
 0x294   : > { %4380 = vmatprep.subr.msk.bf16.mxu0 %vm1193_vm0, %v5715_v59 }
 0x2aa   : > { %v4102_v60 = vpop.f32.mrf.mxu1 }
 0x2ab   : > { %v1341_v63 = vmul.f32 0.17677669, %v4102_v60 }
 0x2ac   : > { %v1276_v1 = vpop.f32.mrf.mxu1 }
 0x2ad   : > { %v1339_v5 = vmul.f32 0.17677669, %v1276_v1  ;;  %v5725_v7 = vadd.f32 %v1341_v63, %v5720_v61 }
 0x2ae   : > { %v4103_v8 = vpop.f32.mrf.mxu1 }
 0x2af   : > { %v1342_v10 = vmul.f32 0.17677669, %v4103_v8  ;;  %1375 = vmax.xlane.f32.xlu1 %v5725_v7  ;;  %v5731_v11 = vadd.f32 %v1339_v5, %v5722_v4  ;;  %v5775_v5 = vld [vmem:[#allocation13 + $0x40] sm:$0xff] }
 0x2b0   : > { %v1279_v13 = vpop.f32.mrf.mxu1  ;;  %7042 = vst [vmem:[#allocation34_spill] sm:$0xff] %v5775_v5 }
 0x2b1   : > { %v1340_v15 = vmul.f32 0.17677669, %v1279_v13  ;;  %1371 = vmax.xlane.f32.xlu0 %v5731_v11  ;;  %v5737_v19 = vadd.f32 %v1342_v10, %v5727_v9 }
 0x2b2   : > { %v4106_v20 = vpop.f32.mrf.mxu1 }
 0x2b3   : > { %v1345_v56 = vmul.f32 0.17677669, %v4106_v20  ;;  %1377 = vmax.xlane.f32.xlu1 %v5737_v19  ;;  %v5743_v22 = vadd.f32 %v1340_v15, %v5733_v14  ;;  %v5781_v15 = vld [vmem:[#allocation13 + $0x48] sm:$0xff]  ;;  %v5783_v20 = vld [vmem:[#allocation13 + $0x70] sm:$0xff] }
 0x2b4   : > { %v1292_v23 = vpop.f32.mrf.mxu1  ;;  %7043 = vst [vmem:[#allocation35_spill] sm:$0xff] %v5783_v20 }
 0x2b5   : > { %1373 = vmax.xlane.f32.xlu0 %v5743_v22  ;;  %v5747_v24 = vadd.f32 %v1345_v56, %v5739_v21  ;;  %v1343_v29 = vmul.f32 0.17677669, %v1292_v23 }
 0x2b6   : > { %v4107_v26 = vpop.f32.mrf.mxu1 }
 0x2b7   : > { %v1346_v30 = vmul.f32 0.17677669, %v4107_v26  ;;  %v5763_v44 = vadd.f32 %v1343_v29, %v5751_v33 }
 0x2b8   : > { %v1295_v31 = vpop.f32.mrf.mxu1 }
 0x2b9   : > { %v1344_v34 = vmul.f32 0.17677669, %v1295_v31  ;;  %1383 = vmax.xlane.f32.xlu0 %v5747_v24  ;;  %v5755_v36 = vadd.f32 %v1346_v30, %v5749_v28 }
 0x2ba   : > { %v4110_v38 = vpop.f32.mrf.mxu1 }
 0x2bb   : > { %v1349_v42 = vmul.f32 0.17677669, %v4110_v38  ;;  %1385 = vmax.xlane.f32.xlu1 %v5755_v36  ;;  %v5767_v46 = vadd.f32 %v1344_v34, %v5757_v39  ;;  %v5796_v34 = vld [vmem:[#allocation13 + $0x60] sm:$0xff] }
 0x2bc   : > { %v1308_v45 = vpop.f32.mrf.mxu1  ;;  %7044 = vst [vmem:[#allocation36_spill] sm:$0xff] %v5796_v34 }
 0x2bd   : > { %1379 = vmax.xlane.f32.xlu0 %v5763_v44  ;;  %v5770_v49 = vadd.f32 %v1349_v42, %v5759_v40  ;;  %v1347_v60 = vmul.f32 0.17677669, %v1308_v45 }
 0x2be   : > { %v4111_v53 = vpop.f32.mrf.mxu1 }
 0x2bf   : > { %v1350_v63 = vmul.f32 0.17677669, %v4111_v53  ;;  %1381 = vmax.xlane.f32.xlu1 %v5767_v46  ;;  %v5787_v23 = vadd.f32 %v1347_v60, %v5775_v5  ;;  %v5808_v60 = vld [vmem:[#allocation13 + $0x78] sm:$0xff] }
 0x2c0   : > { %v1311_v1 = vpop.f32.mrf.mxu1  ;;  %7045 = vst [vmem:[#allocation37_spill] sm:$0xff] %v5808_v60 }
 0x2c1   : > { %v1348_v8 = vmul.f32 0.17677669, %v1311_v1  ;;  %1391 = vmax.xlane.f32.xlu0 %v5770_v49  ;;  %v5779_v10 = vadd.f32 %v1350_v63, %v5772_v54 }
 0x2c2   : > { %v4114_v13 = vpop.f32.mrf.mxu1 }
 0x2c3   : > { %1393 = vmax.xlane.f32.xlu1 %v5779_v10  ;;  %v1353_v56 = vmul.f32 0.17677669, %v4114_v13  ;;  %v5791_v29 = vadd.f32 %v1348_v8, %v5781_v15  ;;  %v5813_v8 = vld [vmem:[#allocation13 + $0x68] sm:$0xff] }
 0x2c4   : > { %v1324_v26 = vpop.f32.mrf.mxu1  ;;  %7046 = vst [vmem:[#allocation38_spill] sm:$0xff] %v5813_v8 }
 0x2c5   : > { %1387 = vmax.xlane.f32.xlu0 %v5787_v23  ;;  %v1351_v30 = vmul.f32 0.17677669, %v1324_v26  ;;  %v5794_v31 = vadd.f32 %v1353_v56, %v5783_v20  ;;  %v5820_v56 = vpop.permute.xlu1 %1664 }
 0x2c6   : > { %v4115_v42 = vpop.f32.mrf.mxu1 }
 0x2c7   : > { %1389 = vmax.xlane.f32.xlu1 %v5791_v29  ;;  %v5801_v38 = vadd.f32 %v1351_v30, %v5796_v34  ;;  %v1354_v45 = vmul.f32 0.17677669, %v4115_v42 }
 0x2c8   : > { %v1327_v53 = vpop.f32.mrf.mxu1 }
 0x2c9   : > { %1399 = vmax.xlane.f32.xlu0 %v5794_v31  ;;  %v1352_v63 = vmul.f32 0.17677669, %v1327_v53  ;;  %v5811_v1 = vadd.f32 %v1354_v45, %v5808_v60 }
 0x2cb   : > { %v5817_v13 = vadd.f32 %v1352_v63, %v5813_v8 }
 0x2cd   : > { %1395 = vmax.xlane.f32.xlu0 %v5801_v38 }
 0x2d8   : > { %1660 = vrot.lane.b32.xlu1 %v5591_v16, %s5234_s14 }
 0x2e3   : > { %1662 = vrot.lane.b32.xlu0 %v5595_v18, %s5234_s14 }
 0x2fc   : > { %1401 = vmax.xlane.f32.xlu1 %v5811_v1 }
 0x300   : > { %1397 = vmax.xlane.f32.xlu1 %v5817_v13 }
 0x338   : > { %v1376_v26 = vpop.xlane.xlu1 %1375 }
 0x339   : > { %v1405_v30 = vsub.f32 %v5725_v7, %v1376_v26 }
 0x33a   : > { %v1372_v42 = vpop.xlane.xlu0 %1371 }
 0x33b   : > { %v1423_v18 = vmul.f32 1.442695, %v1405_v30  ;;  %v1403_v53 = vsub.f32 %v5731_v11, %v1372_v42 }
 0x33c   : > { %v1378_v45 = vpop.xlane.xlu1 %1377 }
 0x33d   : > { %4683 = vpow2.f32 %v1423_v18  ;;  %v1419_v25 = vmul.f32 1.442695, %v1403_v53  ;;  %v1406_v60 = vsub.f32 %v5737_v19, %v1378_v45 }
 0x33e   : > { %v1374_v34 = vpop.xlane.xlu0 %1373 }
 0x33f   : > { %v1425_v20 = vmul.f32 1.442695, %v1406_v60  ;;  %v1404_v63 = vsub.f32 %v5743_v22, %v1374_v34  ;;  %4685 = vpow2.f32 %v1419_v25 }
 0x341   : > { %4687 = vpow2.f32 %v1425_v20  ;;  %v1421_v8 = vmul.f32 1.442695, %v1404_v63 }
 0x342   : > { %v1384_v25 = vpop.xlane.xlu0 %1383 }
 0x343   : > { %4689 = vpow2.f32 %v1421_v8  ;;  %v1409_v60 = vsub.f32 %v5747_v24, %v1384_v25 }
 0x344   : > { %v1386_v20 = vpop.xlane.xlu1 %1385 }
 0x345   : > { %v1431_v42 = vmul.f32 1.442695, %v1409_v60  ;;  %v1410_v45 = vsub.f32 %v5755_v36, %v1386_v20 }
 0x346   : > { %v1380_v19 = vpop.xlane.xlu0 %1379 }
 0x347   : > { %v1407_v26 = vsub.f32 %v5763_v44, %v1380_v19  ;;  %4691 = vpow2.f32 %v1431_v42  ;;  %v1433_v21 = vmul.f32 1.442695, %v1410_v45 }
 0x348   : > { %v1382_v8 = vpop.xlane.xlu1 %1381 }
 0x349   : > { %v1408_v53 = vsub.f32 %v5767_v46, %v1382_v8  ;;  %v1427_v63 = vmul.f32 1.442695, %v1407_v26 }
 0x34a   : > { %v5826_v5 = vpop.eup %4683  ;;  %v1392_v22 = vpop.xlane.xlu0 %1391 }
 0x34b   : > { %1455 = vadd.xlane.f32.xlu0 %v5826_v5  ;;  %4693 = vpow2.f32 %v1427_v63  ;;  %v1413_v24 = vsub.f32 %v5770_v49, %v1392_v22 }
 0x34c   : > { %v5829_v7 = vpop.eup %4685  ;;  %v1394_v40 = vpop.xlane.xlu1 %1393 }
 0x34d   : > { %v1439_v46 = vmul.f32 1.442695, %v1413_v24  ;;  %v1414_v60 = vsub.f32 %v5779_v10, %v1394_v40 }
 0x34e   : > { %v5831_v11 = vpop.eup %4687  ;;  %v1388_v34 = vpop.xlane.xlu0 %1387 }
 0x34f   : > { %1451 = vadd.xlane.f32.xlu0 %v5829_v7  ;;  %1457 = vadd.xlane.f32.xlu1 %v5831_v11  ;;  %v1411_v36 = vsub.f32 %v5787_v23, %v1388_v34 }
 0x350   : > { %v5835_v18 = vpop.eup %4689  ;;  %v1390_v19 = vpop.xlane.xlu1 %1389 }
 0x351   : > { %v1435_v8 = vmul.f32 1.442695, %v1411_v36 }
 0x352   : > { %v1400_v30 = vpop.xlane.xlu0 %1399 }
 0x353   : > { %1453 = vadd.xlane.f32.xlu1 %v5835_v18  ;;  %v1417_v33 = vsub.f32 %v5794_v31, %v1400_v30 }
 0x354   : > { %v5851_v31 = vpop.permute.xlu1 %1660  ;;  %v5853_v26 = vpop.eup %4691 }
 0x355   : > { %v1447_v25 = vmul.f32 1.442695, %v1417_v33 }
 0x358   : > { %v5856_v33 = vpop.eup %4693 }
 0x364   : > { %1656 = vrot.lane.b32.xlu1 %v5579_v62, %s5234_s14  ;;  %v1429_v62 = vmul.f32 1.442695, %v1408_v53 }
 0x365   : > { %1658 = vrot.lane.b32.xlu0 %v5582_v0, %s5234_s14  ;;  %v1396_v0 = vpop.xlane.xlu0 %1395 }
 0x366   : > { %4695 = vpow2.f32 %v1429_v62  ;;  %v1415_v44 = vsub.f32 %v5801_v38, %v1396_v0  ;;  %v1441_v62 = vmul.f32 1.442695, %v1414_v60 }
 0x367   : > { %4697 = vpow2.f32 %v1433_v21  ;;  %v1412_v21 = vsub.f32 %v5791_v29, %v1390_v19 }
 0x368   : > { %4699 = vpow2.f32 %v1447_v25  ;;  %v1443_v20 = vmul.f32 1.442695, %v1415_v44 }
 0x369   : > { %4701 = vpow2.f32 %v1439_v46  ;;  %v1437_v22 = vmul.f32 1.442695, %v1412_v21  ;;  %v1663_v25 = vpop.permute.xlu0 %1662 }
 0x36a   : > { %4703 = vpow2.f32 %v1443_v20 }
 0x36b   : > { %4705 = vpow2.f32 %v1435_v8 }
 0x36c   : > { %4707 = vpow2.f32 %v1441_v62 }
 0x373   : > { %v5860_v23 = vpop.eup %4695 }
 0x374   : > { %v5864_v38 = vpop.eup %4697 }
 0x375   : > { %v5867_v30 = vpop.eup %4699 }
 0x376   : > { %v5871_v29 = vpop.eup %4701 }
 0x377   : > { %v5873_v42 = vpop.eup %4703 }
 0x378   : > { %v5877_v53 = vpop.eup %4705 }
 0x384   : > { %1463 = vadd.xlane.f32.xlu0 %v5853_v26 }
 0x385   : > { %v1402_v0 = vpop.xlane.xlu1 %1401 }
 0x386   : > { %v1418_v49 = vsub.f32 %v5811_v1, %v1402_v0 }
 0x388   : > { %v1449_v40 = vmul.f32 1.442695, %v1418_v49  ;;  %1461 = vadd.xlane.f32.xlu0 %v5860_v23  ;;  %1459 = vadd.xlane.f32.xlu1 %v5856_v33 }
 0x389   : > { %v1398_v10 = vpop.xlane.xlu1 %1397 }
 0x38a   : > { %4709 = vpow2.f32 %v1449_v40  ;;  %v1416_v34 = vsub.f32 %v5817_v13, %v1398_v10  ;;  %v5880_v13 = vpop.eup %4707 }
 0x38b   : > { %4711 = vpow2.f32 %v1437_v22 }
 0x38c   : > { %1479 = vadd.xlane.f32.xlu0 %v5867_v30  ;;  %1465 = vadd.xlane.f32.xlu1 %v5864_v38  ;;  %v1445_v1 = vmul.f32 1.442695, %v1416_v34  ;;  %v1714_v34 = vsel %vm1193_vm0, %v5715_v59, 0 }
 0x38e   : > { %4713 = vpow2.f32 %v1445_v1 }
 0x390   : > { %1475 = vadd.xlane.f32.xlu0 %v5873_v42  ;;  %1471 = vadd.xlane.f32.xlu1 %v5871_v29 }
 0x394   : > { %1467 = vadd.xlane.f32.xlu1 %v5877_v53 }
 0x397   : > { %v5882_v45 = vpop.eup %4709 }
 0x398   : > { %1481 = vadd.xlane.f32.xlu0 %v5882_v45  ;;  %1473 = vadd.xlane.f32.xlu1 %v5880_v13  ;;  %v5886_v63 = vpop.eup %4711 }
 0x39b   : > { %v5889_v24 = vpop.eup %4713 }
 0x39c   : > { %1469 = vadd.xlane.f32.xlu1 %v5886_v63 }
 0x3a0   : > { %1477 = vadd.xlane.f32.xlu1 %v5889_v24 }
 0x3ae   : > { %1654 = vrot.lane.b32.xlu0 %v5570_v51, %s5234_s14 }
 0x3b1   : > { %1652 = vrot.lane.b32.xlu1 %v5568_v50, %s5234_s14 }
 0x3b2   : > { %1628 = vrot.lane.b32.xlu0 %v5593_v17, %s5234_s14 }
 0x3b5   : > { %1630 = vrot.lane.b32.xlu1 %v5588_v12, %s5234_s14 }
 0x3b6   : > { %1632 = vrot.lane.b32.xlu0 %v5645_v47, %s5234_s14 }
 0x3b9   : > { %1634 = vrot.lane.b32.xlu1 %v5655_v57, %s5234_s14 }
 0x3ba   : > { %1636 = vrot.lane.b32.xlu0 %v5657_v58, %s5234_s14 }
 0x3bd   : > { %1638 = vrot.lane.b32.xlu1 %v5667_v2, %s5234_s14 }
 0x3be   : > { %1640 = vrot.lane.b32.xlu0 %v5669_v3, %s5234_s14 }
 0x3c1   : > { %1642 = vrot.lane.b32.xlu1 %v5677_v6, %s5234_s14 }
 0x3c2   : > { %2019 = vrot.lane.b32.xlu0 %v5684_v32, %s5234_s14 }
 0x3c5   : > { %2017 = vrot.lane.b32.xlu1 %v5686_v35, %s5234_s14 }
 0x3c6   : > { %2015 = vrot.lane.b32.xlu0 %v5691_v37, %s5234_s14 }
 0x3c9   : > { %2009 = vrot.lane.b32.xlu1 %v5703_v48, %s5234_s14 }
 0x3ca   : > { %2013 = vrot.lane.b32.xlu0 %v5695_v41, %s5234_s14 }
 0x3cd   : > { %2005 = vrot.lane.b32.xlu1 %v5711_v55, %s5234_s14 }
 0x3ce   : > { %2011 = vrot.lane.b32.xlu0 %v5699_v43, %s5234_s14 }
 0x3d4   : > { %v1456_v44 = vpop.xlane.xlu0 %1455 }
 0x3d8   : > { %v1452_v19 = vpop.xlane.xlu0 %1451  ;;  %v1458_v46 = vpop.xlane.xlu1 %1457 }
 0x3d9   : > { %4715 = vrcp.f32 %v1458_v46 }
 0x3da   : > { %4717 = vrcp.f32 %v1452_v19 }
 0x3db   : > { %4719 = vrcp.f32 %v1456_v44 }
 0x3dc   : > { %v1454_v36 = vpop.xlane.xlu1 %1453  ;;  %v1659_v59 = vpop.permute.xlu0 %1658 }
 0x3dd   : > { %4721 = vrcp.f32 %v1454_v36 }
 0x3e6   : > { %v4716_v20 = vpop.eup %4715 }
 0x3e7   : > { %v4718_v60 = vpop.eup %4717  ;;  %v1502_v0 = vmul.f32 %v4716_v20, %v5831_v11  ;;  %v1711_v11 = vsel %vm1193_vm0, %v5820_v56, 0 }
 0x3e8   : > { %v4720_v8 = vpop.eup %4719  ;;  %v1499_v21 = vmul.f32 %v4718_v60, %v5829_v7  ;;  %v1708_v7 = vsel %vm1193_vm0, %v1663_v25, 0 }
 0x3e9   : > { %v1501_v40 = vmul.f32 %v4720_v8, %v5826_v5  ;;  %v1705_v5 = vsel %vm1193_vm0, %v5851_v31, 0 }
 0x3ea   : > { %v4722_v62 = vpop.eup %4721 }
 0x3eb   : > { %v1500_v49 = vmul.f32 %v4722_v62, %v5835_v18  ;;  %v1516_v22 = vpack.c.bf16 %v1502_v0, %v1501_v40  ;;  %v1657_v18 = vpop.permute.xlu1 %1656 }
 0x3ed   : > { %v1515_v10 = vpack.c.bf16 %v1500_v49, %v1499_v21 }
 0x3ef   : > { %4132 = vmatprep.mubr.bf16.mxu0 %v1515_v10 }
 0x3f0   : > { %4133 = vmatmul.mubr.bf16.vlgmr.msra.gmra.mxu0 %v1516_v22 }
 0x3f1   : > { %4149 = vmatpush3.bf16.xpose.msra.mxu0 %v1714_v34 }
 0x3f2   : > { %4381 = vmatprep.subr.msk.bf16.mxu0 %vm1193_vm0, %v5820_v56  ;;  %v1702_v56 = vsel %vm1193_vm0, %v1659_v59, 0 }
 0x3f9   : > { %4151 = vmatpush3.bf16.xpose.msra.mxu0 %v1711_v11 }
 0x3fa   : > { %4382 = vmatprep.subr.msk.bf16.mxu0 %vm1193_vm0, %v1663_v25 }
 0x401   : > { %4153 = vmatpush3.bf16.xpose.msra.mxu0 %v1708_v7 }
 0x402   : > { %4383 = vmatprep.subr.msk.bf16.mxu0 %vm1193_vm0, %v5851_v31  ;;  %v1699_v31 = vsel %vm1193_vm0, %v1657_v18, 0 }
 0x409   : > { %4155 = vmatpush3.bf16.xpose.msra.mxu0 %v1705_v5 }
 0x40a   : > { %4384 = vmatprep.subr.msk.bf16.mxu0 %vm1193_vm0, %v1659_v59 }
 0x40d   : > { %v1464_v1 = vpop.xlane.xlu0 %1463 }
 0x411   : > { %4157 = vmatpush3.bf16.xpose.msra.mxu0 %v1702_v56  ;;  %v1462_v44 = vpop.xlane.xlu0 %1461  ;;  %v1460_v19 = vpop.xlane.xlu1 %1459 }
 0x412   : > { %4723 = vrcp.f32 %v1462_v44  ;;  %4385 = vmatprep.subr.msk.bf16.mxu0 %vm1193_vm0, %v1657_v18 }
 0x413   : > { %4725 = vrcp.f32 %v1460_v19 }
 0x414   : > { %4727 = vrcp.f32 %v1464_v1 }
 0x415   : > { %v1466_v25 = vpop.xlane.xlu1 %1465  ;;  %v1480_v46 = vpop.xlane.xlu0 %1479 }
 0x416   : > { %4729 = vrcp.f32 %v1466_v25 }
 0x419   : > { %4159 = vmatpush3.bf16.xpose.msra.mxu0 %v1699_v31  ;;  %v1472_v36 = vpop.xlane.xlu1 %1471  ;;  %v1476_v20 = vpop.xlane.xlu0 %1475 }
 0x41d   : > { %v1468_v60 = vpop.xlane.xlu1 %1467 }
 0x41f   : > { %v4724_v8 = vpop.eup %4723 }
 0x420   : > { %v4726_v62 = vpop.eup %4725  ;;  %v1504_v0 = vmul.f32 %v4724_v8, %v5860_v23 }
 0x421   : > { %v1482_v21 = vpop.xlane.xlu0 %1481  ;;  %v1474_v49 = vpop.xlane.xlu1 %1473  ;;  %v1503_v40 = vmul.f32 %v4726_v62, %v5856_v33 }
 0x422   : > { %v4728_v10 = vpop.eup %4727  ;;  %4731 = vrcp.f32 %v1474_v49 }
 0x423   : > { %v1517_v22 = vpack.c.bf16 %v1504_v0, %v1503_v40  ;;  %v4730_v34 = vpop.eup %4729  ;;  %4733 = vrcp.f32 %v1468_v60  ;;  %v1505_v5 = vmul.f32 %v4728_v10, %v5853_v26 }
 0x424   : > { %4735 = vrcp.f32 %v1472_v36  ;;  %v1506_v59 = vmul.f32 %v4730_v34, %v5864_v38 }
 0x425   : > { %4136 = vmatprep.mubr.bf16.mxu0 %v1517_v22  ;;  %v1655_v11 = vpop.permute.xlu0 %1654  ;;  %v1470_v7 = vpop.xlane.xlu1 %1469 }
 0x426   : > { %4737 = vrcp.f32 %v1470_v7  ;;  %4386 = vmatprep.subr.msk.bf16.mxu0 %vm1193_vm0, %v1655_v11  ;;  %v1696_v23 = vsel %vm1193_vm0, %v1655_v11, 0  ;;  %v1518_v33 = vpack.c.bf16 %v1506_v59, %v1505_v5 }
 0x427   : > { %4161 = vmatpush3.bf16.xpose.msra.mxu0 %v1696_v23  ;;  %4739 = vrcp.f32 %v1476_v20 }
 0x428   : > { %4137 = vmatmul.mubr.bf16.gmra.mxu0 %v1518_v33 }
 0x429   : > { %v1629_v18 = vpop.permute.xlu0 %1628  ;;  %v1478_v1 = vpop.xlane.xlu1 %1477 }
 0x42a   : > { %4741 = vrcp.f32 %v1478_v1 }
 0x42b   : > { %4743 = vrcp.f32 %v1482_v21 }
 0x42c   : > { %4745 = vrcp.f32 %v1480_v46 }
 0x42d   : > { %v1633_v56 = vpop.permute.xlu0 %1632  ;;  %v1653_v44 = vpop.permute.xlu1 %1652 }
 0x42e   : > { %4387 = vmatprep.subr.msk.bf16.mxu0 %vm1193_vm0, %v1653_v44  ;;  %v1693_v26 = vsel %vm1193_vm0, %v1653_v44, 0 }
 0x42f   : > { %4163 = vmatpush3.bf16.xpose.msra.mxu0 %v1693_v26  ;;  %v4732_v38 = vpop.eup %4731 }
 0x430   : > { %v4734_v19 = vpop.eup %4733  ;;  %v1510_v20 = vmul.f32 %v4732_v38, %v5880_v13 }
 0x431   : > { %v1637_v25 = vpop.permute.xlu0 %1636  ;;  %v1631_v31 = vpop.permute.xlu1 %1630  ;;  %v1507_v8 = vmul.f32 %v4734_v19, %v5877_v53 }
 0x432   : > { %v4736_v36 = vpop.eup %4735 }
 0x433   : > { %v4738_v60 = vpop.eup %4737  ;;  %v1509_v49 = vmul.f32 %v4736_v36, %v5871_v29 }
 0x434   : > { %v1508_v62 = vmul.f32 %v4738_v60, %v5886_v63  ;;  %v4740_v46 = vpop.eup %4739 }
 0x435   : > { %v1641_v0 = vpop.permute.xlu0 %1640  ;;  %v1635_v21 = vpop.permute.xlu1 %1634  ;;  %v1520_v22 = vpack.c.bf16 %v1510_v20, %v1509_v49  ;;  %v1511_v11 = vmul.f32 %v4740_v46, %v5873_v42 }
 0x436   : > { %v1519_v40 = vpack.c.bf16 %v1508_v62, %v1507_v8 }
 0x437   : > { %v4742_v10 = vpop.eup %4741 }
 0x438   : > { %v4744_v34 = vpop.eup %4743  ;;  %4140 = vmatprep.mubr.bf16.mxu0 %v1519_v40  ;;  %v1512_v7 = vmul.f32 %v4742_v10, %v5889_v24 }
 0x439   : > { %v2020_v5 = vpop.permute.xlu0 %2019  ;;  %4141 = vmatmul.mubr.bf16.gmra.mxu0 %v1520_v22  ;;  %v1639_v13 = vpop.permute.xlu1 %1638  ;;  %v1514_v59 = vmul.f32 %v4744_v34, %v5882_v45 }
 0x43a   : > { %v4746_v53 = vpop.eup %4745  ;;  %4180 = vmatprep.subr.bf16.mxu1 %v2020_v5  ;;  %v1521_v63 = vpack.c.bf16 %v1512_v7, %v1511_v11 }
 0x43b   : > { %4181 = vmatpush3.bf16.msra.mxu1 %v2020_v5  ;;  %v1513_v23 = vmul.f32 %v4746_v53, %v5867_v30 }
 0x43c   : > { %4144 = vmatprep.mubr.bf16.mxu0 %v1521_v63 }
 0x43d   : > { %v1643_v29 = vpop.permute.xlu1 %1642  ;;  %v2016_v33 = vpop.permute.xlu0 %2015  ;;  %v1522_v1 = vpack.c.bf16 %v1514_v59, %v1513_v23 }
 0x441   : > { %4145 = vmatmul.mubr.bf16.gmra.mxu0 %v1522_v1  ;;  %v2018_v44 = vpop.permute.xlu1 %2017  ;;  %v2014_v42 = vpop.permute.xlu0 %2013 }
 0x442   : > { %4164 = vmatprep.mubr.msk.bf16.mxu0 %vm1193_vm0, %v1629_v18  ;;  %4182 = vmatprep.subr.bf16.mxu1 %v2018_v44 }
 0x443   : > { %4183 = vmatpush3.bf16.msra.mxu1 %v2018_v44 }
 0x444   : > { %4184 = vmatprep.subr.bf16.mxu1 %v2016_v33 }
 0x445   : > { %v2012_v45 = vpop.permute.xlu0 %2011  ;;  %v2010_v30 = vpop.permute.xlu1 %2009 }
 0x447   : > { %4185 = vmatpush3.bf16.msra.mxu1 %v2016_v33 }
 0x448   : > { %4186 = vmatprep.subr.bf16.mxu1 %v2014_v42 }
 0x449   : > { %4165 = vmatmul.mubr.msk.bf16.vlgmr.msra.gmra.mxu0 %vm1193_vm0, %v1631_v31 }
 0x44a   : > { %4168 = vmatprep.mubr.msk.bf16.mxu0 %vm1193_vm0, %v1633_v56 }
 0x44b   : > { %4187 = vmatpush3.bf16.msra.mxu1 %v2014_v42 }
 0x44c   : > { %4188 = vmatprep.subr.bf16.mxu1 %v2012_v45 }
 0x44f   : > { %4189 = vmatpush3.bf16.msra.mxu1 %v2012_v45 }
 0x450   : > { %4190 = vmatprep.subr.bf16.mxu1 %v2010_v30 }
 0x451   : > { %4169 = vmatmul.mubr.msk.bf16.gmra.mxu0 %vm1193_vm0, %v1635_v21 }
 0x452   : > { %4172 = vmatprep.mubr.msk.bf16.mxu0 %vm1193_vm0, %v1637_v25 }
 0x453   : > { %4191 = vmatpush3.bf16.msra.mxu1 %v2010_v30 }
 0x459   : > { %4173 = vmatmul.mubr.msk.bf16.gmra.mxu0 %vm1193_vm0, %v1639_v13 }
 0x45a   : > { %4176 = vmatprep.mubr.msk.bf16.mxu0 %vm1193_vm0, %v1641_v0 }
 0x461   : > { %4177 = vmatmul.mubr.msk.bf16.gmra.mxu0 %vm1193_vm0, %v1643_v29 }
 0x4b0   : > { %v5970_v24 = vpop.f32.mrf.mxu0 }
 0x4b1   : > { %7047 = vst [vmem:[#allocation39_spill] sm:$0xff] %v5970_v24 }
 0x4b2   : > { %v5972_v18 = vpop.f32.mrf.mxu0 }
 0x4b3   : > { %7048 = vst [vmem:[#allocation40_spill] sm:$0xff] %v5972_v18  ;;  %v6314_v18 = vld [vmem:[#allocation13 + $0x58] sm:$0xff] }
 0x4b4   : > { %v5974_v56 = vpop.f32.mrf.mxu0 }
 0x4b5   : > { %7049 = vst [vmem:[#allocation41_spill] sm:$0xff] %v5974_v56 }
 0x4b6   : > { %v5976_v26 = vpop.f32.mrf.mxu0 }
 0x4b7   : > { %7050 = vst [vmem:[#allocation42_spill] sm:$0xff] %v5976_v26  ;;  %v6320_v26 = vld [vmem:[#allocation13 + $0x48] sm:$0xff] }
 0x4e8   : > { %v5978_v38 = vpop.f32.mrf.mxu0 }
 0x4e9   : > { %7051 = vst [vmem:[#allocation43_spill] sm:$0xff] %v5978_v38 }
 0x4ea   : > { %v5980_v19 = vpop.f32.mrf.mxu0 }
 0x4eb   : > { %7052 = vst [vmem:[#allocation44_spill] sm:$0xff] %v5980_v19 }
 0x4ec   : > { %v5982_v25 = vpop.f32.mrf.mxu0 }
 0x4ed   : > { %7053 = vst [vmem:[#allocation45_spill] sm:$0xff] %v5982_v25  ;;  %v6308_v25 = vld [vmem:[#allocation13 + $0x28] sm:$0xff] }
 0x4ee   : > { %v5984_v31 = vpop.f32.mrf.mxu0 }
 0x4ef   : > { %7054 = vst [vmem:[#allocation46_spill] sm:$0xff] %v5984_v31 }
 0x4f9   : > { %v5986_v36 = vpop.f32.mrf.mxu0 }
 0x4fa   : > { %7055 = vst [vmem:[#allocation47_spill] sm:$0xff] %v5986_v36 }
 0x4fb   : > { %v5988_v60 = vpop.f32.mrf.mxu0 }
 0x4fc   : > { %7056 = vst [vmem:[#allocation48_spill] sm:$0xff] %v5988_v60 }
 0x4fd   : > { %v5990_v20 = vpop.f32.mrf.mxu0 }
 0x4fe   : > { %7057 = vst [vmem:[#allocation49_spill] sm:$0xff] %v5990_v20 }
 0x4ff   : > { %v5992_v8 = vpop.f32.mrf.mxu0 }
 0x500   : > { %7058 = vst [vmem:[#allocation50_spill] sm:$0xff] %v5992_v8 }
 0x501   : > { %v5994_v62 = vpop.f32.mrf.mxu0 }
 0x502   : > { %7059 = vst [vmem:[#allocation51_spill] sm:$0xff] %v5994_v62 }
 0x503   : > { %v5996_v46 = vpop.f32.mrf.mxu0 }
 0x504   : > { %7060 = vst [vmem:[#allocation52_spill] sm:$0xff] %v5996_v46 }
 0x505   : > { %v5998_v0 = vpop.f32.mrf.mxu0 }
 0x506   : > { %7061 = vst [vmem:[#allocation53_spill] sm:$0xff] %v5998_v0 }
 0x507   : > { %v6000_v21 = vpop.f32.mrf.mxu0 }
 0x508   : > { %7062 = vst [vmem:[#allocation54_spill] sm:$0xff] %v6000_v21 }
 0x509   : > { %v4166_v49 = vpop.f32.mrf.mxu0 }
 0x50a   : > { %v1815_v40 = vmul.f32 0.17677669, %v4166_v49 }
 0x50b   : > { %v1750_v10 = vpop.f32.mrf.mxu0 }
 0x50c   : > { %v1813_v22 = vmul.f32 0.17677669, %v1750_v10  ;;  %v6003_v34 = vadd.f32 %v1815_v40, %v5720_v61 }
 0x50d   : > { %v4167_v11 = vpop.f32.mrf.mxu0 }
 0x50e   : > { %1849 = vmax.xlane.f32.xlu0 %v6003_v34  ;;  %v1816_v5 = vmul.f32 0.17677669, %v4167_v11  ;;  %v6007_v53 = vadd.f32 %v1813_v22, %v5722_v4  ;;  %v7063_v22 = vld [vmem:[#allocation31_spill] sm:$0xff] }
 0x50f   : > { %v1753_v7 = vpop.f32.mrf.mxu0 }
 0x510   : > { %v1814_v13 = vmul.f32 0.17677669, %v1753_v7  ;;  %v6015_v61 = vadd.f32 %v1816_v5, %v5727_v9  ;;  %v7064_v7 = vld [vmem:[#allocation32_spill] sm:$0xff] }
 0x511   : > { %v4170_v63 = vpop.f32.mrf.mxu0 }
 0x512   : > { %1845 = vmax.xlane.f32.xlu0 %v6007_v53  ;;  %v6011_v59 = vadd.f32 %v1814_v13, %v5733_v14 }
 0x513   : > { %v1766_v29 = vpop.f32.mrf.mxu0 }
 0x514   : > { %1847 = vmax.xlane.f32.xlu1 %v6011_v59 }
 0x515   : > { %v4171_v23 = vpop.f32.mrf.mxu0 }
 0x516   : > { %v1820_v33 = vmul.f32 0.17677669, %v4171_v23  ;;  %1851 = vmax.xlane.f32.xlu0 %v6015_v61 }
 0x517   : > { %v1769_v1 = vpop.f32.mrf.mxu0 }
 0x518   : > { %v1818_v44 = vmul.f32 0.17677669, %v1769_v1  ;;  %v6019_v4 = vadd.f32 %v1820_v33, %v5749_v28  ;;  %v7065_v33 = vld [vmem:[#allocation33_spill] sm:$0xff] }
 0x519   : > { %v4174_v42 = vpop.f32.mrf.mxu0 }
 0x51a   : > { %1859 = vmax.xlane.f32.xlu1 %v6019_v4  ;;  %v6023_v45 = vadd.f32 %v1818_v44, %v5757_v39  ;;  %v1819_v39 = vmul.f32 0.17677669, %v4170_v63 }
 0x51b   : > { %v1782_v14 = vpop.f32.mrf.mxu0 }
 0x51c   : > { %v6041_v11 = vadd.f32 %v1819_v39, %v7063_v22  ;;  %v1821_v23 = vmul.f32 0.17677669, %v1782_v14  ;;  %v7068_v22 = vld [vmem:[#allocation36_spill] sm:$0xff] }
 0x51d   : > { %v4175_v30 = vpop.f32.mrf.mxu0 }
 0x51e   : > { %v1824_v49 = vmul.f32 0.17677669, %v4175_v30  ;;  %1855 = vmax.xlane.f32.xlu1 %v6023_v45 }
 0x51f   : > { %v1785_v9 = vpop.f32.mrf.mxu0 }
 0x520   : > { %v1822_v40 = vmul.f32 0.17677669, %v1785_v9  ;;  %v6027_v10 = vadd.f32 %v1824_v49, %v5772_v54  ;;  %v1817_v54 = vmul.f32 0.17677669, %v1766_v29  ;;  %v7066_v29 = vld [vmem:[#allocation34_spill] sm:$0xff] }
 0x521   : > { %v4178_v13 = vpop.f32.mrf.mxu0  ;;  %v6053_v30 = vadd.f32 %v1821_v23, %v7066_v29  ;;  %v7070_v23 = vld [vmem:[#allocation38_spill] sm:$0xff] }
 0x522   : > { %1867 = vmax.xlane.f32.xlu1 %v6027_v10  ;;  %v6031_v28 = vadd.f32 %v1822_v40, %v5781_v15  ;;  %v1823_v15 = vmul.f32 0.17677669, %v4174_v42  ;;  %v6045_v5 = vadd.f32 %v1817_v54, %v7064_v7  ;;  %v1827_v63 = vmul.f32 0.17677669, %v4178_v13  ;;  %v7067_v40 = vld [vmem:[#allocation35_spill] sm:$0xff]  ;;  %v7069_v7 = vld [vmem:[#allocation37_spill] sm:$0xff] }
 0x523   : > { %v1798_v44 = vpop.f32.mrf.mxu0  ;;  %v7073_v29 = vld [vmem:[#allocation26_spill] sm:$0xff] }
 0x524   : > { %v6049_v1 = vadd.f32 %v1823_v15, %v7065_v33  ;;  %v1825_v42 = vmul.f32 0.17677669, %v1798_v44  ;;  %v6057_v39 = vadd.f32 %v1827_v63, %v7067_v40  ;;  %v7071_v44 = vld [vmem:[#allocation28_spill] sm:$0xff]  ;;  %v7072_v63 = vld [vmem:[#allocation27_spill] sm:$0xff] }
 0x525   : > { %v4179_v49 = vpop.f32.mrf.mxu0 }
 0x526   : > { %1863 = vmax.xlane.f32.xlu1 %v6031_v28  ;;  %v1828_v9 = vmul.f32 0.17677669, %v4179_v49  ;;  %v6061_v15 = vadd.f32 %v1825_v42, %v7068_v22 }
 0x527   : > { %v1801_v54 = vpop.f32.mrf.mxu0 }
 0x528   : > { %v1826_v14 = vmul.f32 0.17677669, %v1801_v54  ;;  %v6064_v13 = vadd.f32 %v1828_v9, %v7069_v7  ;;  %v2006_v9 = vpop.permute.xlu1 %2005 }
 0x52a   : > { %v6069_v33 = vadd.f32 %v1826_v14, %v7070_v23 }
 0x52c   : > { %2007 = vrot.lane.b32.xlu0 %v5707_v52, %s5234_s14 }
 0x537   : > { %2154 = vrot.lane.b32.xlu1 %v5603_v27, %s5235_s10 }
 0x53b   : > { %2150 = vrot.lane.b32.xlu1 %v5591_v16, %s5235_s10 }
 0x54b   : > { %1857 = vmax.xlane.f32.xlu0 %v6041_v11 }
 0x54f   : > { %1853 = vmax.xlane.f32.xlu0 %v6045_v5 }
 0x553   : > { %1865 = vmax.xlane.f32.xlu0 %v6049_v1 }
 0x557   : > { %1861 = vmax.xlane.f32.xlu0 %v6053_v30 }
 0x55b   : > { %1873 = vmax.xlane.f32.xlu0 %v6057_v39 }
 0x55f   : > { %1869 = vmax.xlane.f32.xlu0 %v6061_v15  ;;  %1875 = vmax.xlane.f32.xlu1 %v6064_v13 }
 0x563   : > { %1871 = vmax.xlane.f32.xlu1 %v6069_v33 }
 0x575   : > { %2156 = vrot.lane.b32.xlu0 %v7071_v44, %s5235_s10 }
 0x579   : > { %2152 = vrot.lane.b32.xlu0 %v7072_v63, %s5235_s10 }
 0x57d   : > { %2148 = vrot.lane.b32.xlu0 %v7073_v29, %s5235_s10 }
 0x597   : > { %v1850_v49 = vpop.xlane.xlu0 %1849 }
 0x598   : > { %v1879_v42 = vsub.f32 %v6003_v34, %v1850_v49 }
 0x59a   : > { %v1897_v40 = vmul.f32 1.442695, %v1879_v42 }
 0x59b   : > { %v1846_v54 = vpop.xlane.xlu0 %1845 }
 0x59c   : > { %4747 = vpow2.f32 %v1897_v40  ;;  %v1877_v14 = vsub.f32 %v6007_v53, %v1846_v54 }
 0x59d   : > { %v1848_v22 = vpop.xlane.xlu1 %1847 }
 0x59e   : > { %v1893_v7 = vmul.f32 1.442695, %v1877_v14  ;;  %v1878_v46 = vsub.f32 %v6011_v59, %v1848_v22 }
 0x59f   : > { %v1852_v23 = vpop.xlane.xlu0 %1851 }
 0x5a0   : > { %4749 = vpow2.f32 %v1893_v7  ;;  %v1880_v21 = vsub.f32 %v6015_v61, %v1852_v23  ;;  %v1895_v60 = vmul.f32 1.442695, %v1878_v46 }
 0x5a2   : > { %v1899_v62 = vmul.f32 1.442695, %v1880_v21 }
 0x5a3   : > { %v2008_v0 = vpop.permute.xlu0 %2007 }
 0x5a4   : > { %4751 = vpow2.f32 %v1899_v62  ;;  %4192 = vmatprep.subr.bf16.mxu1 %v2008_v0  ;;  %v1860_v62 = vpop.xlane.xlu1 %1859 }
 0x5a5   : > { %4193 = vmatpush3.bf16.msra.mxu1 %v2008_v0  ;;  %4753 = vpow2.f32 %v1895_v60  ;;  %v7074_v60 = vld [vmem:[#allocation25_spill] sm:$0xff]  ;;  %v1884_v40 = vsub.f32 %v6019_v4, %v1860_v62 }
 0x5a6   : > { %4194 = vmatprep.subr.bf16.mxu1 %v2006_v9 }
 0x5a7   : > { %v1907_v8 = vmul.f32 1.442695, %v1884_v40 }
 0x5a8   : > { %v1856_v46 = vpop.xlane.xlu1 %1855 }
 0x5a9   : > { %v6082_v34 = vpop.eup %4747  ;;  %4195 = vmatpush3.bf16.msra.mxu1 %v2006_v9  ;;  %v1882_v61 = vsub.f32 %v6023_v45, %v1856_v46 }
 0x5aa   : > { %1929 = vadd.xlane.f32.xlu1 %v6082_v34 }
 0x5ab   : > { %v1903_v54 = vmul.f32 1.442695, %v1882_v61 }
 0x5ac   : > { %v1868_v0 = vpop.xlane.xlu1 %1867 }
 0x5ad   : > { %v6085_v53 = vpop.eup %4749 }
 0x5ae   : > { %1925 = vadd.xlane.f32.xlu1 %v6085_v53 }
 0x5b0   : > { %v1864_v14 = vpop.xlane.xlu1 %1863 }
 0x5b1   : > { %v6088_v59 = vpop.eup %4751 }
 0x5b2   : > { %1931 = vadd.xlane.f32.xlu1 %v6088_v59  ;;  %v6091_v21 = vpop.eup %4753 }
 0x5b4   : > { %v6101_v45 = vpop.permute.xlu1 %2154 }
 0x5b6   : > { %1927 = vadd.xlane.f32.xlu1 %v6091_v21 }
 0x5c7   : > { %2146 = vrot.lane.b32.xlu1 %v7074_v60, %s5235_s10 }
 0x5d4   : > { %v1858_v49 = vpop.xlane.xlu0 %1857 }
 0x5d5   : > { %v1883_v42 = vsub.f32 %v6041_v11, %v1858_v49  ;;  %v1888_v11 = vsub.f32 %v6027_v10, %v1868_v0 }
 0x5d7   : > { %v1905_v9 = vmul.f32 1.442695, %v1883_v42  ;;  %v1915_v49 = vmul.f32 1.442695, %v1888_v11  ;;  %v6106_v42 = vpop.permute.xlu1 %2150 }
 0x5d8   : > { %v1854_v22 = vpop.xlane.xlu0 %1853 }
 0x5d9   : > { %4755 = vpow2.f32 %v1905_v9  ;;  %v1881_v7 = vsub.f32 %v6045_v5, %v1854_v22  ;;  %v1886_v5 = vsub.f32 %v6031_v28, %v1864_v14 }
 0x5da   : > { %4757 = vpow2.f32 %v1903_v54 }
 0x5db   : > { %v1901_v23 = vmul.f32 1.442695, %v1881_v7 }
 0x5dc   : > { %v1866_v36 = vpop.xlane.xlu0 %1865 }
 0x5dd   : > { %4759 = vpow2.f32 %v1901_v23  ;;  %v1887_v20 = vsub.f32 %v6049_v1, %v1866_v36 }
 0x5de   : > { %4761 = vpow2.f32 %v1907_v8  ;;  %v1911_v8 = vmul.f32 1.442695, %v1886_v5 }
 0x5df   : > { %v1913_v46 = vmul.f32 1.442695, %v1887_v20 }
 0x5e0   : > { %v1862_v4 = vpop.xlane.xlu0 %1861 }
 0x5e1   : > { %4763 = vpow2.f32 %v1913_v46  ;;  %v1885_v62 = vsub.f32 %v6053_v30, %v1862_v4 }
 0x5e3   : > { %v1909_v61 = vmul.f32 1.442695, %v1885_v62 }
 0x5e4   : > { %v1874_v9 = vpop.xlane.xlu0 %1873 }
 0x5e5   : > { %4765 = vpow2.f32 %v1909_v61  ;;  %v1891_v36 = vsub.f32 %v6057_v39, %v1874_v9 }
 0x5e6   : > { %v6109_v1 = vpop.eup %4755  ;;  %4767 = vpow2.f32 %v1915_v49 }
 0x5e7   : > { %v1921_v20 = vmul.f32 1.442695, %v1891_v36  ;;  %1937 = vadd.xlane.f32.xlu0 %v6109_v1  ;;  %v6112_v30 = vpop.eup %4757 }
 0x5e8   : > { %v1870_v10 = vpop.xlane.xlu0 %1869  ;;  %v1876_v0 = vpop.xlane.xlu1 %1875 }
 0x5e9   : > { %4769 = vpow2.f32 %v1921_v20  ;;  %v1889_v28 = vsub.f32 %v6061_v15, %v1870_v10  ;;  %v1892_v40 = vsub.f32 %v6064_v13, %v1876_v0 }
 0x5ea   : > { %v6116_v54 = vpop.eup %4759  ;;  %4771 = vpow2.f32 %v1911_v8 }
 0x5eb   : > { %v1917_v14 = vmul.f32 1.442695, %v1889_v28  ;;  %1933 = vadd.xlane.f32.xlu0 %v6116_v54  ;;  %1935 = vadd.xlane.f32.xlu1 %v6112_v30  ;;  %v1923_v39 = vmul.f32 1.442695, %v1892_v40  ;;  %v6122_v23 = vpop.eup %4761 }
 0x5ec   : > { %v6120_v22 = vpop.permute.xlu0 %2156  ;;  %v1872_v7 = vpop.xlane.xlu1 %1871 }
 0x5ed   : > { %4773 = vpow2.f32 %v1917_v14  ;;  %v1890_v46 = vsub.f32 %v6069_v33, %v1872_v7  ;;  %4388 = vmatprep.subr.msk.bf16.mxu1 %vm1193_vm0, %v6120_v22 }
 0x5ee   : > { %v6127_v15 = vpop.eup %4763  ;;  %4775 = vpow2.f32 %v1923_v39 }
 0x5ef   : > { %v1919_v13 = vmul.f32 1.442695, %v1890_v46  ;;  %1939 = vadd.xlane.f32.xlu0 %v6122_v23  ;;  %1945 = vadd.xlane.f32.xlu1 %v6127_v15 }
 0x5f1   : > { %4777 = vpow2.f32 %v1919_v13 }
 0x5f2   : > { %v6131_v11 = vpop.eup %4765 }
 0x5f3   : > { %1941 = vadd.xlane.f32.xlu1 %v6131_v11  ;;  %v6134_v4 = vpop.eup %4767 }
 0x5f6   : > { %v6136_v62 = vpop.eup %4769 }
 0x5f7   : > { %1953 = vadd.xlane.f32.xlu0 %v6136_v62  ;;  %1947 = vadd.xlane.f32.xlu1 %v6134_v4  ;;  %v6140_v33 = vpop.eup %4771 }
 0x5fa   : > { %v6142_v61 = vpop.eup %4773 }
 0x5fb   : > { %1949 = vadd.xlane.f32.xlu0 %v6142_v61  ;;  %1943 = vadd.xlane.f32.xlu1 %v6140_v33  ;;  %v6146_v49 = vpop.eup %4775 }
 0x5fe   : > { %v6148_v5 = vpop.eup %4777 }
 0x5ff   : > { %1955 = vadd.xlane.f32.xlu0 %v6146_v49  ;;  %1951 = vadd.xlane.f32.xlu1 %v6148_v5 }
 0x610   : > { %2142 = vrot.lane.b32.xlu1 %v5568_v50, %s5235_s10 }
 0x614   : > { %2128 = vrot.lane.b32.xlu1 %v5588_v12, %s5235_s10 }
 0x615   : > { %2144 = vrot.lane.b32.xlu0 %v5570_v51, %s5235_s10 }
 0x618   : > { %2132 = vrot.lane.b32.xlu1 %v5655_v57, %s5235_s10 }
 0x619   : > { %2126 = vrot.lane.b32.xlu0 %v5593_v17, %s5235_s10 }
 0x61c   : > { %2136 = vrot.lane.b32.xlu1 %v5667_v2, %s5235_s10 }
 0x61d   : > { %2130 = vrot.lane.b32.xlu0 %v5645_v47, %s5235_s10 }
 0x620   : > { %2140 = vrot.lane.b32.xlu1 %v5677_v6, %s5235_s10 }
 0x621   : > { %2134 = vrot.lane.b32.xlu0 %v5657_v58, %s5235_s10 }
 0x624   : > { %2499 = vrot.lane.b32.xlu1 %v5686_v35, %s5235_s10 }
 0x625   : > { %2138 = vrot.lane.b32.xlu0 %v5669_v3, %s5235_s10 }
 0x628   : > { %2491 = vrot.lane.b32.xlu1 %v5703_v48, %s5235_s10 }
 0x629   : > { %2501 = vrot.lane.b32.xlu0 %v5684_v32, %s5235_s10 }
 0x62c   : > { %2487 = vrot.lane.b32.xlu1 %v5711_v55, %s5235_s10 }
 0x62d   : > { %2497 = vrot.lane.b32.xlu0 %v5691_v37, %s5235_s10 }
 0x631   : > { %2495 = vrot.lane.b32.xlu0 %v5695_v41, %s5235_s10 }
 0x633   : > { %v1930_v9 = vpop.xlane.xlu1 %1929 }
 0x635   : > { %2493 = vrot.lane.b32.xlu0 %v5699_v43, %s5235_s10 }
 0x637   : > { %v1926_v36 = vpop.xlane.xlu1 %1925 }
 0x63b   : > { %v1932_v20 = vpop.xlane.xlu1 %1931 }
 0x63c   : > { %4779 = vrcp.f32 %v1932_v20 }
 0x63d   : > { %4781 = vrcp.f32 %v1926_v36  ;;  %v2153_v36 = vpop.permute.xlu0 %2152 }
 0x63e   : > { %4783 = vrcp.f32 %v1930_v9  ;;  %v2204_v9 = vsel %vm1193_vm0, %v6120_v22, 0 }
 0x63f   : > { %v1928_v8 = vpop.xlane.xlu1 %1927 }
 0x640   : > { %4785 = vrcp.f32 %v1928_v8 }
 0x649   : > { %v4780_v10 = vpop.eup %4779 }
 0x64a   : > { %v4782_v0 = vpop.eup %4781  ;;  %v1976_v14 = vmul.f32 %v4780_v10, %v6088_v59  ;;  %v2201_v59 = vsel %vm1193_vm0, %v6101_v45, 0 }
 0x64b   : > { %v4784_v28 = vpop.eup %4783  ;;  %v1973_v39 = vmul.f32 %v4782_v0, %v6085_v53  ;;  %v2149_v53 = vpop.permute.xlu0 %2148 }
 0x64c   : > { %v1975_v46 = vmul.f32 %v4784_v28, %v6082_v34  ;;  %v2198_v34 = vsel %vm1193_vm0, %v2153_v36, 0 }
 0x64d   : > { %v4786_v40 = vpop.eup %4785 }
 0x64e   : > { %v1974_v7 = vmul.f32 %v4786_v40, %v6091_v21  ;;  %v1990_v19 = vpack.c.bf16 %v1976_v14, %v1975_v46  ;;  %v2147_v21 = vpop.permute.xlu1 %2146 }
 0x650   : > { %v1989_v13 = vpack.c.bf16 %v1974_v7, %v1973_v39 }
 0x652   : > { %4196 = vmatprep.mubr.bf16.mxu1 %v1989_v13 }
 0x653   : > { %4197 = vmatmul.mubr.bf16.vlgmr.msra.gmra.mxu1 %v1990_v19  ;;  %v2195_v19 = vsel %vm1193_vm0, %v6106_v42, 0 }
 0x654   : > { %4213 = vmatpush3.bf16.xpose.msra.mxu1 %v2204_v9 }
 0x655   : > { %4389 = vmatprep.subr.msk.bf16.mxu1 %vm1193_vm0, %v6101_v45  ;;  %v2192_v45 = vsel %vm1193_vm0, %v2149_v53, 0 }
 0x65c   : > { %4215 = vmatpush3.bf16.xpose.msra.mxu1 %v2201_v59 }
 0x65d   : > { %4390 = vmatprep.subr.msk.bf16.mxu1 %vm1193_vm0, %v2153_v36 }
 0x664   : > { %4217 = vmatpush3.bf16.xpose.msra.mxu1 %v2198_v34 }
 0x665   : > { %4391 = vmatprep.subr.msk.bf16.mxu1 %vm1193_vm0, %v6106_v42  ;;  %v2189_v42 = vsel %vm1193_vm0, %v2147_v21, 0 }
 0x66c   : > { %4219 = vmatpush3.bf16.xpose.msra.mxu1 %v2195_v19 }
 0x66d   : > { %4392 = vmatprep.subr.msk.bf16.mxu1 %vm1193_vm0, %v2149_v53 }
 0x670   : > { %v1938_v22 = vpop.xlane.xlu0 %1937 }
 0x674   : > { %4221 = vmatpush3.bf16.xpose.msra.mxu1 %v2192_v45  ;;  %v1934_v20 = vpop.xlane.xlu0 %1933  ;;  %v1936_v8 = vpop.xlane.xlu1 %1935 }
 0x675   : > { %4787 = vrcp.f32 %v1934_v20  ;;  %4393 = vmatprep.subr.msk.bf16.mxu1 %vm1193_vm0, %v2147_v21 }
 0x676   : > { %4789 = vrcp.f32 %v1936_v8 }
 0x677   : > { %4791 = vrcp.f32 %v1938_v22 }
 0x678   : > { %v1940_v10 = vpop.xlane.xlu0 %1939  ;;  %v1946_v0 = vpop.xlane.xlu1 %1945 }
 0x679   : > { %4793 = vrcp.f32 %v1940_v10 }
 0x67c   : > { %4223 = vmatpush3.bf16.xpose.msra.mxu1 %v2189_v42  ;;  %v1942_v28 = vpop.xlane.xlu1 %1941 }
 0x680   : > { %v1954_v40 = vpop.xlane.xlu0 %1953  ;;  %v1948_v14 = vpop.xlane.xlu1 %1947 }
 0x681   : > { %4795 = vrcp.f32 %v1948_v14 }
 0x682   : > { %v4788_v39 = vpop.eup %4787  ;;  %4797 = vrcp.f32 %v1942_v28 }
 0x683   : > { %v4790_v7 = vpop.eup %4789  ;;  %v1977_v46 = vmul.f32 %v4788_v39, %v6116_v54  ;;  %4799 = vrcp.f32 %v1946_v0 }
 0x684   : > { %v4792_v13 = vpop.eup %4791  ;;  %v1950_v9 = vpop.xlane.xlu0 %1949  ;;  %v1978_v36 = vmul.f32 %v4790_v7, %v6112_v30 }
 0x685   : > { %v1944_v59 = vpop.xlane.xlu1 %1943  ;;  %v1979_v53 = vmul.f32 %v4792_v13, %v6109_v1 }
 0x686   : > { %v4794_v34 = vpop.eup %4793  ;;  %4801 = vrcp.f32 %v1944_v59  ;;  %v1991_v19 = vpack.c.bf16 %v1978_v36, %v1977_v46 }
 0x687   : > { %v1980_v21 = vmul.f32 %v4794_v34, %v6122_v23  ;;  %4803 = vrcp.f32 %v1950_v9 }
 0x688   : > { %4200 = vmatprep.mubr.bf16.mxu1 %v1991_v19  ;;  %v1956_v22 = vpop.xlane.xlu0 %1955 }
 0x689   : > { %v1952_v45 = vpop.xlane.xlu1 %1951  ;;  %v1992_v20 = vpack.c.bf16 %v1980_v21, %v1979_v53 }
 0x68a   : > { %4805 = vrcp.f32 %v1952_v45 }
 0x68b   : > { %4807 = vrcp.f32 %v1956_v22  ;;  %4201 = vmatmul.mubr.bf16.gmra.mxu1 %v1992_v20 }
 0x68c   : > { %v2145_v54 = vpop.permute.xlu0 %2144  ;;  %4809 = vrcp.f32 %v1954_v40 }
 0x68d   : > { %v2143_v8 = vpop.permute.xlu1 %2142  ;;  %4394 = vmatprep.subr.msk.bf16.mxu1 %vm1193_vm0, %v2145_v54  ;;  %v2186_v30 = vsel %vm1193_vm0, %v2145_v54, 0 }
 0x68e   : > { %4225 = vmatpush3.bf16.xpose.msra.mxu1 %v2186_v30  ;;  %v4796_v1 = vpop.eup %4795  ;;  %v2183_v9 = vsel %vm1193_vm0, %v2143_v8, 0 }
 0x68f   : > { %4395 = vmatprep.subr.msk.bf16.mxu1 %vm1193_vm0, %v2143_v8  ;;  %v4798_v0 = vpop.eup %4797  ;;  %v1984_v14 = vmul.f32 %v4796_v1, %v6134_v4 }
 0x690   : > { %v2127_v23 = vpop.permute.xlu0 %2126  ;;  %v4800_v42 = vpop.eup %4799  ;;  %v1981_v46 = vmul.f32 %v4798_v0, %v6131_v11 }
 0x691   : > { %v2129_v10 = vpop.permute.xlu1 %2128  ;;  %v1983_v59 = vmul.f32 %v4800_v42, %v6127_v15 }
 0x693   : > { %v4802_v28 = vpop.eup %4801  ;;  %v1994_v19 = vpack.c.bf16 %v1984_v14, %v1983_v59 }
 0x694   : > { %v2131_v39 = vpop.permute.xlu0 %2130  ;;  %v1982_v40 = vmul.f32 %v4802_v28, %v6140_v33  ;;  %v4804_v13 = vpop.eup %4803 }
 0x695   : > { %v2133_v7 = vpop.permute.xlu1 %2132  ;;  %v1985_v4 = vmul.f32 %v4804_v13, %v6142_v61 }
 0x696   : > { %4227 = vmatpush3.bf16.xpose.msra.mxu1 %v2183_v9  ;;  %v1993_v36 = vpack.c.bf16 %v1982_v40, %v1981_v46 }
 0x697   : > { %v4806_v34 = vpop.eup %4805 }
 0x698   : > { %v4808_v53 = vpop.eup %4807  ;;  %4204 = vmatprep.mubr.bf16.mxu1 %v1993_v36  ;;  %v2135_v21 = vpop.permute.xlu0 %2134  ;;  %v1986_v45 = vmul.f32 %v4806_v34, %v6148_v5 }
 0x699   : > { %v2137_v22 = vpop.permute.xlu1 %2136  ;;  %4205 = vmatmul.mubr.bf16.gmra.mxu1 %v1994_v19  ;;  %v4810_v11 = vpop.eup %4809  ;;  %v1988_v20 = vmul.f32 %v4808_v53, %v6146_v49 }
 0x69a   : > { %v1995_v33 = vpack.c.bf16 %v1986_v45, %v1985_v4  ;;  %v1987_v8 = vmul.f32 %v4810_v11, %v6136_v62 }
 0x69c   : > { %4208 = vmatprep.mubr.bf16.mxu1 %v1995_v33  ;;  %v2139_v54 = vpop.permute.xlu0 %2138  ;;  %v1996_v30 = vpack.c.bf16 %v1988_v20, %v1987_v8 }
 0x69d   : > { %v2141_v15 = vpop.permute.xlu1 %2140 }
 0x6a0   : > { %v2502_v1 = vpop.permute.xlu0 %2501 }
 0x6a1   : > { %4209 = vmatmul.mubr.bf16.gmra.mxu1 %v1996_v30  ;;  %4244 = vmatprep.subr.bf16.mxu0 %v2502_v1  ;;  %v2500_v0 = vpop.permute.xlu1 %2499 }
 0x6a2   : > { %4228 = vmatprep.mubr.msk.bf16.mxu1 %vm1193_vm0, %v2127_v23  ;;  %4245 = vmatpush3.bf16.msra.mxu0 %v2502_v1  ;;  %v6278_v1 = vld [vmem:[#allocation13 + $0x10] sm:$0xff] }
 0x6a3   : > { %4246 = vmatprep.subr.bf16.mxu0 %v2500_v0 }
 0x6a4   : > { %v2498_v61 = vpop.permute.xlu0 %2497 }
 0x6a5   : > { %v2492_v49 = vpop.permute.xlu1 %2491 }
 0x6a6   : > { %4247 = vmatpush3.bf16.msra.mxu0 %v2500_v0 }
 0x6a7   : > { %4248 = vmatprep.subr.bf16.mxu0 %v2498_v61 }
 0x6a8   : > { %v2496_v5 = vpop.permute.xlu0 %2495 }
 0x6a9   : > { %4229 = vmatmul.mubr.msk.bf16.vlgmr.msra.gmra.mxu1 %vm1193_vm0, %v2129_v10 }
 0x6aa   : > { %4232 = vmatprep.mubr.msk.bf16.mxu1 %vm1193_vm0, %v2131_v39  ;;  %4249 = vmatpush3.bf16.msra.mxu0 %v2498_v61 }
 0x6ab   : > { %4250 = vmatprep.subr.bf16.mxu0 %v2496_v5 }
 0x6ac   : > { %v2494_v62 = vpop.permute.xlu0 %2493 }
 0x6ae   : > { %4251 = vmatpush3.bf16.msra.mxu0 %v2496_v5 }
 0x6af   : > { %4252 = vmatprep.subr.bf16.mxu0 %v2494_v62 }
 0x6b1   : > { %4233 = vmatmul.mubr.msk.bf16.gmra.mxu1 %vm1193_vm0, %v2133_v7 }
 0x6b2   : > { %4236 = vmatprep.mubr.msk.bf16.mxu1 %vm1193_vm0, %v2135_v21  ;;  %4253 = vmatpush3.bf16.msra.mxu0 %v2494_v62 }
 0x6b3   : > { %4254 = vmatprep.subr.bf16.mxu0 %v2492_v49 }
 0x6b6   : > { %4255 = vmatpush3.bf16.msra.mxu0 %v2492_v49  ;;  %v6284_v49 = vld [vmem:[#allocation13] sm:$0xff] }
 0x6b9   : > { %4237 = vmatmul.mubr.msk.bf16.gmra.mxu1 %vm1193_vm0, %v2137_v22 }
 0x6ba   : > { %4240 = vmatprep.mubr.msk.bf16.mxu1 %vm1193_vm0, %v2139_v54 }
 0x6c1   : > { %4241 = vmatmul.mubr.msk.bf16.gmra.mxu1 %vm1193_vm0, %v2141_v15 }
 0x713   : > { %v6230_v23 = vpop.f32.mrf.mxu1 }
 0x714   : > { %7075 = vst [vmem:[#allocation31_spill] sm:$0xff] %v6230_v23 }
 0x715   : > { %v6232_v10 = vpop.f32.mrf.mxu1 }
 0x716   : > { %7076 = vst [vmem:[#allocation32_spill] sm:$0xff] %v6232_v10  ;;  %v6362_v10 = vld [vmem:[#allocation13 + $0x60] sm:$0xff] }
 0x717   : > { %v6234_v42 = vpop.f32.mrf.mxu1 }
 0x718   : > { %7077 = vst [vmem:[#allocation33_spill] sm:$0xff] %v6234_v42 }
 0x719   : > { %v6238_v14 = vpop.f32.mrf.mxu1 }
 0x71a   : > { %7078 = vst [vmem:[#allocation34_spill] sm:$0xff] %v6238_v14 }
 0x74b   : > { %v6242_v7 = vpop.f32.mrf.mxu1 }
 0x74c   : > { %7079 = vst [vmem:[#allocation35_spill] sm:$0xff] %v6242_v7 }
 0x74d   : > { %v6244_v46 = vpop.f32.mrf.mxu1 }
 0x74e   : > { %7080 = vst [vmem:[#allocation36_spill] sm:$0xff] %v6244_v46 }
 0x74f   : > { %v6246_v40 = vpop.f32.mrf.mxu1 }
 0x750   : > { %7081 = vst [vmem:[#allocation37_spill] sm:$0xff] %v6246_v40 }
 0x751   : > { %v6250_v9 = vpop.f32.mrf.mxu1 }
 0x752   : > { %7082 = vst [vmem:[#allocation38_spill] sm:$0xff] %v6250_v9 }
 0x759   : > { %v6254_v36 = vpop.f32.mrf.mxu1 }
 0x75a   : > { %7083 = vst [vmem:[#allocation28_spill] sm:$0xff] %v6254_v36 }
 0x75b   : > { %v6256_v34 = vpop.f32.mrf.mxu1 }
 0x75c   : > { %7084 = vst [vmem:[#allocation27_spill] sm:$0xff] %v6256_v34 }
 0x75d   : > { %v6258_v19 = vpop.f32.mrf.mxu1 }
 0x75e   : > { %7085 = vst [vmem:[#allocation26_spill] sm:$0xff] %v6258_v19 }
 0x75f   : > { %v6262_v21 = vpop.f32.mrf.mxu1 }
 0x760   : > { %7086 = vst [vmem:[#allocation25_spill] sm:$0xff] %v6262_v21 }
 0x761   : > { %v6266_v4 = vpop.f32.mrf.mxu1 }
 0x762   : > { %7087 = vst [vmem:[#allocation55_spill] sm:$0xff] %v6266_v4 }
 0x763   : > { %v6268_v45 = vpop.f32.mrf.mxu1 }
 0x764   : > { %7088 = vst [vmem:[#allocation56_spill] sm:$0xff] %v6268_v45 }
 0x765   : > { %v6270_v11 = vpop.f32.mrf.mxu1 }
 0x766   : > { %7089 = vst [vmem:[#allocation57_spill] sm:$0xff] %v6270_v11 }
 0x767   : > { %v6274_v20 = vpop.f32.mrf.mxu1 }
 0x768   : > { %7090 = vst [vmem:[#allocation58_spill] sm:$0xff] %v6274_v20 }
 0x769   : > { %v4230_v15 = vpop.f32.mrf.mxu1 }
 0x76a   : > { %v2305_v8 = vmul.f32 0.17677669, %v4230_v15  ;;  %v6289_v15 = vld [vmem:[#allocation13 + $0x8] sm:$0xff] }
 0x76b   : > { %v2240_v30 = vpop.f32.mrf.mxu1 }
 0x76c   : > { %v6281_v0 = vadd.f32 %v6278_v1, %v2305_v8  ;;  %v2303_v61 = vmul.f32 0.17677669, %v2240_v30  ;;  %v6295_v30 = vld [vmem:[#allocation13 + $0x18] sm:$0xff] }
 0x76d   : > { %v4231_v5 = vpop.f32.mrf.mxu1 }
 0x76e   : > { %2339 = vmax.xlane.f32.xlu0 %v6281_v0  ;;  %v6287_v33 = vadd.f32 %v6284_v49, %v2303_v61  ;;  %v2306_v22 = vmul.f32 0.17677669, %v4231_v5 }
 0x76f   : > { %v2243_v62 = vpop.f32.mrf.mxu1 }
 0x770   : > { %v2304_v54 = vmul.f32 0.17677669, %v2243_v62  ;;  %v6298_v53 = vadd.f32 %v6295_v30, %v2306_v22  ;;  %v6302_v62 = vld [vmem:[#allocation13 + $0x38] sm:$0xff] }
 0x771   : > { %v4234_v59 = vpop.f32.mrf.mxu1 }
 0x772   : > { %v6292_v39 = vadd.f32 %v6289_v15, %v2304_v54  ;;  %2335 = vmax.xlane.f32.xlu0 %v6287_v33 }
 0x773   : > { %v2256_v8 = vpop.f32.mrf.mxu1 }
 0x774   : > { %2337 = vmax.xlane.f32.xlu1 %v6292_v39 }
 0x775   : > { %v4235_v61 = vpop.f32.mrf.mxu1 }
 0x776   : > { %v2310_v13 = vmul.f32 0.17677669, %v4235_v61  ;;  %2341 = vmax.xlane.f32.xlu0 %v6298_v53 }
 0x777   : > { %v2259_v5 = vpop.f32.mrf.mxu1 }
 0x778   : > { %v6305_v54 = vadd.f32 %v6302_v62, %v2310_v13  ;;  %v2308_v28 = vmul.f32 0.17677669, %v2259_v5 }
 0x779   : > { %v4238_v31 = vpop.f32.mrf.mxu1 }
 0x77a   : > { %2349 = vmax.xlane.f32.xlu1 %v6305_v54  ;;  %v6311_v22 = vadd.f32 %v6308_v25, %v2308_v28  ;;  %v2313_v4 = vmul.f32 0.17677669, %v4238_v31  ;;  %v6356_v31 = vld [vmem:[#allocation13 + $0x70] sm:$0xff] }
 0x77b   : > { %v2272_v38 = vpop.f32.mrf.mxu1 }
 0x77d   : > { %v4239_v24 = vpop.f32.mrf.mxu1 }
 0x77e   : > { %v2314_v61 = vmul.f32 0.17677669, %v4239_v24  ;;  %2345 = vmax.xlane.f32.xlu1 %v6311_v22  ;;  %v2309_v24 = vmul.f32 0.17677669, %v4234_v59  ;;  %v2311_v59 = vmul.f32 0.17677669, %v2272_v38 }
 0x77f   : > { %v2275_v56 = vpop.f32.mrf.mxu1 }
 0x780   : > { %v6317_v13 = vadd.f32 %v6314_v18, %v2314_v61  ;;  %v2312_v5 = vmul.f32 0.17677669, %v2275_v56  ;;  %v6332_v56 = vld [vmem:[#allocation13 + $0x30] sm:$0xff]  ;;  %v2307_v61 = vmul.f32 0.17677669, %v2256_v8  ;;  %v6350_v8 = vld [vmem:[#allocation13 + $0x40] sm:$0xff] }
 0x781   : > { %v6335_v28 = vadd.f32 %v6332_v56, %v2309_v24  ;;  %v4242_v11 = vpop.f32.mrf.mxu1  ;;  %v6353_v34 = vadd.f32 %v6350_v8, %v2311_v59  ;;  %v6367_v59 = vld [vmem:[#allocation13 + $0x78] sm:$0xff] }
 0x782   : > { %2357 = vmax.xlane.f32.xlu1 %v6317_v13  ;;  %v6323_v45 = vadd.f32 %v6320_v26, %v2312_v5  ;;  %v6338_v5 = vld [vmem:[#allocation13 + $0x20] sm:$0xff] }
 0x783   : > { %v6341_v20 = vadd.f32 %v6338_v5, %v2307_v61  ;;  %v2288_v24 = vpop.f32.mrf.mxu1  ;;  %v2317_v61 = vmul.f32 0.17677669, %v4242_v11 }
 0x785   : > { %v4243_v21 = vpop.f32.mrf.mxu1  ;;  %v6359_v46 = vadd.f32 %v6356_v31, %v2317_v61 }
 0x786   : > { %2353 = vmax.xlane.f32.xlu1 %v6323_v45  ;;  %v2318_v9 = vmul.f32 0.17677669, %v4243_v21 }
 0x787   : > { %v2291_v38 = vpop.f32.mrf.mxu1 }
 0x788   : > { %v6370_v11 = vadd.f32 %v6367_v59, %v2318_v9  ;;  %v2316_v36 = vmul.f32 0.17677669, %v2291_v38 }
 0x78c   : > { %2489 = vrot.lane.b32.xlu0 %v5707_v52, %s5235_s10 }
 0x797   : > { %2636 = vrot.lane.b32.xlu1 %v5603_v27, %s5236_s15  ;;  %v6344_v27 = vld [vmem:[#allocation13 + $0x50] sm:$0xff] }
 0x79b   : > { %2632 = vrot.lane.b32.xlu1 %v5591_v16, %s5236_s15  ;;  %v6347_v16 = vadd.f32 %v6344_v27, %v2313_v4  ;;  %v2315_v4 = vmul.f32 0.17677669, %v2288_v24  ;;  %v6374_v24 = vld [vmem:[#allocation13 + $0x68] sm:$0xff] }
 0x79c   : > { %v6377_v21 = vadd.f32 %v6374_v24, %v2316_v36 }
 0x79d   : > { %v6365_v14 = vadd.f32 %v6362_v10, %v2315_v4  ;;  %v2488_v4 = vpop.permute.xlu1 %2487 }
 0x7ab   : > { %2347 = vmax.xlane.f32.xlu0 %v6335_v28 }
 0x7af   : > { %2343 = vmax.xlane.f32.xlu0 %v6341_v20 }
 0x7b3   : > { %2355 = vmax.xlane.f32.xlu0 %v6347_v16 }
 0x7b7   : > { %2351 = vmax.xlane.f32.xlu0 %v6353_v34 }
 0x7bb   : > { %2363 = vmax.xlane.f32.xlu0 %v6359_v46 }
 0x7bf   : > { %2359 = vmax.xlane.f32.xlu0 %v6365_v14  ;;  %2365 = vmax.xlane.f32.xlu1 %v6370_v11 }
 0x7c3   : > { %2361 = vmax.xlane.f32.xlu1 %v6377_v21 }
 0x7d5   : > { %2638 = vrot.lane.b32.xlu0 %v7071_v44, %s5236_s15 }
 0x7d9   : > { %2634 = vrot.lane.b32.xlu0 %v7072_v63, %s5236_s15 }
 0x7dd   : > { %2630 = vrot.lane.b32.xlu0 %v7073_v29, %s5236_s15 }
 0x7f7   : > { %v2340_v9 = vpop.xlane.xlu0 %2339 }
 0x7f8   : > { %v2369_v61 = vsub.f32 %v6281_v0, %v2340_v9 }
 0x7fa   : > { %v2387_v38 = vmul.f32 1.442695, %v2369_v61 }
 0x7fb   : > { %v2336_v19 = vpop.xlane.xlu0 %2335 }
 0x7fc   : > { %4811 = vpow2.f32 %v2387_v38  ;;  %v2367_v36 = vsub.f32 %v6287_v33, %v2336_v19 }
 0x7fd   : > { %v2338_v7 = vpop.xlane.xlu1 %2337 }
 0x7fe   : > { %v2383_v40 = vmul.f32 1.442695, %v2367_v36  ;;  %v2368_v44 = vsub.f32 %v6292_v39, %v2338_v7 }
 0x7ff   : > { %v2342_v52 = vpop.xlane.xlu0 %2341 }
 0x800   : > { %4813 = vpow2.f32 %v2383_v40  ;;  %v2370_v63 = vsub.f32 %v6298_v53, %v2342_v52  ;;  %v2385_v29 = vmul.f32 1.442695, %v2368_v44 }
 0x802   : > { %v2389_v23 = vmul.f32 1.442695, %v2370_v63 }
 0x803   : > { %v2490_v42 = vpop.permute.xlu0 %2489 }
 0x804   : > { %4815 = vpow2.f32 %v2389_v23  ;;  %4256 = vmatprep.subr.bf16.mxu0 %v2490_v42  ;;  %v2350_v23 = vpop.xlane.xlu1 %2349 }
 0x805   : > { %4257 = vmatpush3.bf16.msra.mxu0 %v2490_v42  ;;  %4817 = vpow2.f32 %v2385_v29  ;;  %v2374_v61 = vsub.f32 %v6305_v54, %v2350_v23 }
 0x806   : > { %4258 = vmatprep.subr.bf16.mxu0 %v2488_v4 }
 0x807   : > { %v2397_v29 = vmul.f32 1.442695, %v2374_v61 }
 0x808   : > { %v2346_v42 = vpop.xlane.xlu1 %2345 }
 0x809   : > { %v6390_v0 = vpop.eup %4811  ;;  %4259 = vmatpush3.bf16.msra.mxu0 %v2488_v4  ;;  %v2372_v40 = vsub.f32 %v6311_v22, %v2346_v42 }
 0x80a   : > { %2419 = vadd.xlane.f32.xlu1 %v6390_v0 }
 0x80b   : > { %v2393_v4 = vmul.f32 1.442695, %v2372_v40 }
 0x80c   : > { %v2358_v7 = vpop.xlane.xlu1 %2357 }
 0x80d   : > { %v6393_v19 = vpop.eup %4813 }
 0x80e   : > { %2415 = vadd.xlane.f32.xlu1 %v6393_v19 }
 0x810   : > { %v2354_v38 = vpop.xlane.xlu1 %2353 }
 0x811   : > { %v6396_v39 = vpop.eup %4815 }
 0x812   : > { %2421 = vadd.xlane.f32.xlu1 %v6396_v39  ;;  %v6399_v52 = vpop.eup %4817 }
 0x814   : > { %v6409_v22 = vpop.permute.xlu1 %2636 }
 0x816   : > { %2417 = vadd.xlane.f32.xlu1 %v6399_v52 }
 0x827   : > { %2628 = vrot.lane.b32.xlu1 %v7074_v60, %s5236_s15 }
 0x834   : > { %v2348_v53 = vpop.xlane.xlu0 %2347 }
 0x835   : > { %v2373_v33 = vsub.f32 %v6335_v28, %v2348_v53  ;;  %v2378_v28 = vsub.f32 %v6317_v13, %v2358_v7 }
 0x837   : > { %v2395_v9 = vmul.f32 1.442695, %v2373_v33  ;;  %v2405_v53 = vmul.f32 1.442695, %v2378_v28  ;;  %v6414_v33 = vpop.permute.xlu1 %2632 }
 0x838   : > { %v2344_v36 = vpop.xlane.xlu0 %2343 }
 0x839   : > { %4819 = vpow2.f32 %v2395_v9  ;;  %v2371_v44 = vsub.f32 %v6341_v20, %v2344_v36  ;;  %v2376_v20 = vsub.f32 %v6323_v45, %v2354_v38 }
 0x83a   : > { %4821 = vpow2.f32 %v2393_v4 }
 0x83b   : > { %v2391_v63 = vmul.f32 1.442695, %v2371_v44  ;;  %v2401_v13 = vmul.f32 1.442695, %v2376_v20 }
 0x83c   : > { %v2356_v60 = vpop.xlane.xlu0 %2355 }
 0x83d   : > { %4823 = vpow2.f32 %v2391_v63  ;;  %v2377_v55 = vsub.f32 %v6347_v16, %v2356_v60 }
 0x83e   : > { %4825 = vpow2.f32 %v2397_v29 }
 0x83f   : > { %v2403_v42 = vmul.f32 1.442695, %v2377_v55 }
 0x840   : > { %v2352_v54 = vpop.xlane.xlu0 %2351 }
 0x841   : > { %4827 = vpow2.f32 %v2403_v42  ;;  %v2375_v23 = vsub.f32 %v6353_v34, %v2352_v54 }
 0x843   : > { %v2399_v40 = vmul.f32 1.442695, %v2375_v23 }
 0x844   : > { %v2364_v9 = vpop.xlane.xlu0 %2363 }
 0x845   : > { %4829 = vpow2.f32 %v2399_v40  ;;  %v2381_v16 = vsub.f32 %v6359_v46, %v2364_v9 }
 0x846   : > { %v6417_v61 = vpop.eup %4819  ;;  %4831 = vpow2.f32 %v2405_v53 }
 0x847   : > { %v2411_v55 = vmul.f32 1.442695, %v2381_v16  ;;  %2427 = vadd.xlane.f32.xlu0 %v6417_v61  ;;  %v6420_v34 = vpop.eup %4821 }
 0x848   : > { %v2360_v7 = vpop.xlane.xlu0 %2359  ;;  %v2366_v4 = vpop.xlane.xlu1 %2365 }
 0x849   : > { %4833 = vpow2.f32 %v2411_v55  ;;  %v2379_v45 = vsub.f32 %v6365_v14, %v2360_v7  ;;  %v2382_v38 = vsub.f32 %v6370_v11, %v2366_v4  ;;  %v2683_v55 = vsel %vm1193_vm0, %v6409_v22, 0 }
 0x84a   : > { %v6424_v36 = vpop.eup %4823  ;;  %4835 = vpow2.f32 %v2401_v13 }
 0x84b   : > { %v2407_v44 = vmul.f32 1.442695, %v2379_v45  ;;  %2423 = vadd.xlane.f32.xlu0 %v6424_v36  ;;  %2425 = vadd.xlane.f32.xlu1 %v6420_v34  ;;  %v2413_v46 = vmul.f32 1.442695, %v2382_v38  ;;  %v6428_v60 = vpop.eup %4825 }
 0x84c   : > { %v2639_v63 = vpop.permute.xlu0 %2638  ;;  %v2362_v29 = vpop.xlane.xlu1 %2361 }
 0x84d   : > { %4837 = vpow2.f32 %v2407_v44  ;;  %v2380_v42 = vsub.f32 %v6377_v21, %v2362_v29  ;;  %4396 = vmatprep.subr.msk.bf16.mxu0 %vm1193_vm0, %v2639_v63  ;;  %v2686_v16 = vsel %vm1193_vm0, %v2639_v63, 0 }
 0x84e   : > { %v6432_v14 = vpop.eup %4827  ;;  %4839 = vpow2.f32 %v2413_v46 }
 0x84f   : > { %v2409_v11 = vmul.f32 1.442695, %v2380_v42  ;;  %2429 = vadd.xlane.f32.xlu0 %v6428_v60  ;;  %2435 = vadd.xlane.f32.xlu1 %v6432_v14 }
 0x851   : > { %4841 = vpow2.f32 %v2409_v11 }
 0x852   : > { %v6436_v28 = vpop.eup %4829 }
 0x853   : > { %2431 = vadd.xlane.f32.xlu1 %v6436_v28  ;;  %v6439_v54 = vpop.eup %4831 }
 0x856   : > { %v6441_v23 = vpop.eup %4833 }
 0x857   : > { %2443 = vadd.xlane.f32.xlu0 %v6441_v23  ;;  %2437 = vadd.xlane.f32.xlu1 %v6439_v54  ;;  %v6445_v21 = vpop.eup %4835 }
 0x85a   : > { %v6447_v40 = vpop.eup %4837 }
 0x85b   : > { %2439 = vadd.xlane.f32.xlu0 %v6447_v40  ;;  %2433 = vadd.xlane.f32.xlu1 %v6445_v21  ;;  %v6451_v53 = vpop.eup %4839 }
 0x85e   : > { %v6453_v20 = vpop.eup %4841 }
 0x85f   : > { %2445 = vadd.xlane.f32.xlu0 %v6451_v53  ;;  %2441 = vadd.xlane.f32.xlu1 %v6453_v20 }
 0x870   : > { %2624 = vrot.lane.b32.xlu1 %v5568_v50, %s5236_s15 }
 0x874   : > { %2610 = vrot.lane.b32.xlu1 %v5588_v12, %s5236_s15 }
 0x875   : > { %2626 = vrot.lane.b32.xlu0 %v5570_v51, %s5236_s15 }
 0x878   : > { %2614 = vrot.lane.b32.xlu1 %v5655_v57, %s5236_s15 }
 0x879   : > { %2608 = vrot.lane.b32.xlu0 %v5593_v17, %s5236_s15 }
 0x87c   : > { %2618 = vrot.lane.b32.xlu1 %v5667_v2, %s5236_s15 }
 0x87d   : > { %2612 = vrot.lane.b32.xlu0 %v5645_v47, %s5236_s15 }
 0x880   : > { %2622 = vrot.lane.b32.xlu1 %v5677_v6, %s5236_s15 }
 0x881   : > { %2616 = vrot.lane.b32.xlu0 %v5657_v58, %s5236_s15 }
 0x884   : > { %2981 = vrot.lane.b32.xlu1 %v5686_v35, %s5236_s15 }
 0x885   : > { %2620 = vrot.lane.b32.xlu0 %v5669_v3, %s5236_s15 }
 0x889   : > { %2983 = vrot.lane.b32.xlu0 %v5684_v32, %s5236_s15 }
 0x88d   : > { %2979 = vrot.lane.b32.xlu0 %v5691_v37, %s5236_s15 }
 0x893   : > { %v2420_v50 = vpop.xlane.xlu1 %2419 }
 0x897   : > { %v2416_v51 = vpop.xlane.xlu1 %2415 }
 0x89b   : > { %v2422_v12 = vpop.xlane.xlu1 %2421 }
 0x89c   : > { %4843 = vrcp.f32 %v2422_v12 }
 0x89d   : > { %4845 = vrcp.f32 %v2416_v51 }
 0x89e   : > { %4847 = vrcp.f32 %v2420_v50 }
 0x89f   : > { %v2418_v17 = vpop.xlane.xlu1 %2417 }
 0x8a0   : > { %4849 = vrcp.f32 %v2418_v17 }
 0x8a3   : > { %v2629_v13 = vpop.permute.xlu1 %2628 }
 0x8a9   : > { %v4844_v47 = vpop.eup %4843 }
 0x8aa   : > { %v4846_v57 = vpop.eup %4845  ;;  %v2466_v3 = vmul.f32 %v4844_v47, %v6396_v39  ;;  %v2635_v39 = vpop.permute.xlu0 %2634 }
 0x8ab   : > { %v4848_v58 = vpop.eup %4847  ;;  %v2463_v6 = vmul.f32 %v4846_v57, %v6393_v19  ;;  %v2680_v19 = vsel %vm1193_vm0, %v2635_v39, 0 }
 0x8ac   : > { %v2465_v35 = vmul.f32 %v4848_v58, %v6390_v0  ;;  %v2677_v0 = vsel %vm1193_vm0, %v6414_v33, 0 }
 0x8ad   : > { %v4850_v2 = vpop.eup %4849 }
 0x8ae   : > { %v2464_v32 = vmul.f32 %v4850_v2, %v6399_v52  ;;  %v2480_v9 = vpack.c.bf16 %v2466_v3, %v2465_v35  ;;  %v2631_v52 = vpop.permute.xlu0 %2630 }
 0x8b0   : > { %v2479_v37 = vpack.c.bf16 %v2464_v32, %v2463_v6 }
 0x8b2   : > { %4260 = vmatprep.mubr.bf16.mxu0 %v2479_v37 }
 0x8b3   : > { %4261 = vmatmul.mubr.bf16.vlgmr.msra.gmra.mxu0 %v2480_v9 }
 0x8b4   : > { %4277 = vmatpush3.bf16.xpose.msra.mxu0 %v2686_v16 }
 0x8b5   : > { %4397 = vmatprep.subr.msk.bf16.mxu0 %vm1193_vm0, %v6409_v22  ;;  %v2674_v22 = vsel %vm1193_vm0, %v2631_v52, 0 }
 0x8bc   : > { %4279 = vmatpush3.bf16.xpose.msra.mxu0 %v2683_v55 }
 0x8bd   : > { %4398 = vmatprep.subr.msk.bf16.mxu0 %vm1193_vm0, %v2635_v39 }
 0x8c4   : > { %4281 = vmatpush3.bf16.xpose.msra.mxu0 %v2680_v19 }
 0x8c5   : > { %4399 = vmatprep.subr.msk.bf16.mxu0 %vm1193_vm0, %v6414_v33  ;;  %v2671_v33 = vsel %vm1193_vm0, %v2629_v13, 0 }
 0x8cc   : > { %4283 = vmatpush3.bf16.xpose.msra.mxu0 %v2677_v0 }
 0x8cd   : > { %4400 = vmatprep.subr.msk.bf16.mxu0 %vm1193_vm0, %v2631_v52 }
 0x8d0   : > { %v2428_v7 = vpop.xlane.xlu0 %2427 }
 0x8d4   : > { %4285 = vmatpush3.bf16.xpose.msra.mxu0 %v2674_v22  ;;  %v2424_v4 = vpop.xlane.xlu0 %2423  ;;  %v2426_v45 = vpop.xlane.xlu1 %2425 }
 0x8d5   : > { %4851 = vrcp.f32 %v2424_v4  ;;  %4401 = vmatprep.subr.msk.bf16.mxu0 %vm1193_vm0, %v2629_v13 }
 0x8d6   : > { %4853 = vrcp.f32 %v2426_v45 }
 0x8d7   : > { %4855 = vrcp.f32 %v2428_v7 }
 0x8d8   : > { %v2430_v38 = vpop.xlane.xlu0 %2429  ;;  %v2436_v44 = vpop.xlane.xlu1 %2435 }
 0x8d9   : > { %4857 = vrcp.f32 %v2430_v38 }
 0x8dc   : > { %4287 = vmatpush3.bf16.xpose.msra.mxu0 %v2671_v33  ;;  %v2432_v46 = vpop.xlane.xlu1 %2431 }
 0x8e0   : > { %v2444_v63 = vpop.xlane.xlu0 %2443  ;;  %v2438_v29 = vpop.xlane.xlu1 %2437 }
 0x8e1   : > { %4859 = vrcp.f32 %v2438_v29 }
 0x8e2   : > { %v4852_v42 = vpop.eup %4851  ;;  %4861 = vrcp.f32 %v2432_v46 }
 0x8e3   : > { %v4854_v11 = vpop.eup %4853  ;;  %v2467_v50 = vmul.f32 %v4852_v42, %v6424_v36  ;;  %4863 = vrcp.f32 %v2436_v44 }
 0x8e4   : > { %v4856_v51 = vpop.eup %4855  ;;  %v2440_v12 = vpop.xlane.xlu0 %2439  ;;  %v2468_v47 = vmul.f32 %v4854_v11, %v6420_v34 }
 0x8e5   : > { %v2434_v17 = vpop.xlane.xlu1 %2433  ;;  %v2469_v2 = vmul.f32 %v4856_v51, %v6417_v61 }
 0x8e6   : > { %v4858_v57 = vpop.eup %4857  ;;  %4865 = vrcp.f32 %v2434_v17  ;;  %v2481_v58 = vpack.c.bf16 %v2468_v47, %v2467_v50 }
 0x8e7   : > { %v2470_v3 = vmul.f32 %v4858_v57, %v6428_v60  ;;  %4867 = vrcp.f32 %v2440_v12 }
 0x8e8   : > { %4264 = vmatprep.mubr.bf16.mxu0 %v2481_v58  ;;  %v2446_v6 = vpop.xlane.xlu0 %2445 }
 0x8e9   : > { %v2442_v32 = vpop.xlane.xlu1 %2441  ;;  %v2482_v35 = vpack.c.bf16 %v2470_v3, %v2469_v2 }
 0x8ea   : > { %4869 = vrcp.f32 %v2442_v32 }
 0x8eb   : > { %4871 = vrcp.f32 %v2446_v6  ;;  %4265 = vmatmul.mubr.bf16.gmra.mxu0 %v2482_v35 }
 0x8ec   : > { %v2627_v36 = vpop.permute.xlu0 %2626  ;;  %4873 = vrcp.f32 %v2444_v63 }
 0x8ed   : > { %v2625_v37 = vpop.permute.xlu1 %2624  ;;  %v2668_v34 = vsel %vm1193_vm0, %v2627_v36, 0  ;;  %4402 = vmatprep.subr.msk.bf16.mxu0 %vm1193_vm0, %v2627_v36 }
 0x8ee   : > { %4289 = vmatpush3.bf16.xpose.msra.mxu0 %v2668_v34  ;;  %v4860_v61 = vpop.eup %4859  ;;  %v2665_v4 = vsel %vm1193_vm0, %v2625_v37, 0 }
 0x8ef   : > { %4403 = vmatprep.subr.msk.bf16.mxu0 %vm1193_vm0, %v2625_v37  ;;  %v4862_v16 = vpop.eup %4861  ;;  %v2474_v19 = vmul.f32 %v4860_v61, %v6439_v54 }
 0x8f0   : > { %v2609_v60 = vpop.permute.xlu0 %2608  ;;  %v4864_v55 = vpop.eup %4863  ;;  %v2471_v13 = vmul.f32 %v4862_v16, %v6436_v28 }
 0x8f1   : > { %v2611_v9 = vpop.permute.xlu1 %2610  ;;  %v2473_v45 = vmul.f32 %v4864_v55, %v6432_v14 }
 0x8f3   : > { %v4866_v39 = vpop.eup %4865  ;;  %v2484_v33 = vpack.c.bf16 %v2474_v19, %v2473_v45 }
 0x8f4   : > { %v2613_v0 = vpop.permute.xlu0 %2612  ;;  %v2472_v7 = vmul.f32 %v4866_v39, %v6445_v21  ;;  %v4868_v22 = vpop.eup %4867 }
 0x8f5   : > { %v2615_v52 = vpop.permute.xlu1 %2614  ;;  %v2475_v54 = vmul.f32 %v4868_v22, %v6447_v40 }
 0x8f6   : > { %4291 = vmatpush3.bf16.xpose.msra.mxu0 %v2665_v4  ;;  %v2483_v38 = vpack.c.bf16 %v2472_v7, %v2471_v13 }
 0x8f7   : > { %v4870_v44 = vpop.eup %4869 }
 0x8f8   : > { %v4872_v46 = vpop.eup %4871  ;;  %4268 = vmatprep.mubr.bf16.mxu0 %v2483_v38  ;;  %v2617_v63 = vpop.permute.xlu0 %2616  ;;  %v2476_v42 = vmul.f32 %v4870_v44, %v6453_v20 }
 0x8f9   : > { %v2619_v29 = vpop.permute.xlu1 %2618  ;;  %4269 = vmatmul.mubr.bf16.gmra.mxu0 %v2484_v33  ;;  %v4874_v28 = vpop.eup %4873  ;;  %v2478_v11 = vmul.f32 %v4872_v46, %v6451_v53 }
 0x8fa   : > { %v2485_v21 = vpack.c.bf16 %v2476_v42, %v2475_v54  ;;  %v2477_v51 = vmul.f32 %v4874_v28, %v6441_v23 }
 0x8fc   : > { %4272 = vmatprep.mubr.bf16.mxu0 %v2485_v21  ;;  %v2621_v50 = vpop.permute.xlu0 %2620  ;;  %v2486_v12 = vpack.c.bf16 %v2478_v11, %v2477_v51 }
 0x8fd   : > { %v2623_v14 = vpop.permute.xlu1 %2622 }
 0x900   : > { %v2984_v17 = vpop.permute.xlu0 %2983 }
 0x901   : > { %4273 = vmatmul.mubr.bf16.gmra.mxu0 %v2486_v12  ;;  %4308 = vmatprep.subr.bf16.mxu1 %v2984_v17  ;;  %v2982_v47 = vpop.permute.xlu1 %2981 }
 0x902   : > { %4292 = vmatprep.mubr.msk.bf16.mxu0 %vm1193_vm0, %v2609_v60  ;;  %4309 = vmatpush3.bf16.msra.mxu1 %v2984_v17 }
 0x903   : > { %4310 = vmatprep.subr.bf16.mxu1 %v2982_v47 }
 0x904   : > { %v2980_v40 = vpop.permute.xlu0 %2979 }
 0x906   : > { %4311 = vmatpush3.bf16.msra.mxu1 %v2982_v47 }
 0x907   : > { %4312 = vmatprep.subr.bf16.mxu1 %v2980_v40 }
 0x909   : > { %4293 = vmatmul.mubr.msk.bf16.vlgmr.msra.gmra.mxu0 %vm1193_vm0, %v2611_v9 }
 0x90a   : > { %4296 = vmatprep.mubr.msk.bf16.mxu0 %vm1193_vm0, %v2613_v0  ;;  %4313 = vmatpush3.bf16.msra.mxu1 %v2980_v40 }
 0x911   : > { %4297 = vmatmul.mubr.msk.bf16.gmra.mxu0 %vm1193_vm0, %v2615_v52 }
 0x912   : > { %4300 = vmatprep.mubr.msk.bf16.mxu0 %vm1193_vm0, %v2617_v63 }
 0x919   : > { %4301 = vmatmul.mubr.msk.bf16.gmra.mxu0 %vm1193_vm0, %v2619_v29 }
 0x91a   : > { %4304 = vmatprep.mubr.msk.bf16.mxu0 %vm1193_vm0, %v2621_v50 }
 0x921   : > { %4305 = vmatmul.mubr.msk.bf16.gmra.mxu0 %vm1193_vm0, %v2623_v14 }
 0x973   : > { %v6526_v23 = vpop.f32.mrf.mxu0 }
 0x975   : > { %v6528_v53 = vpop.f32.mrf.mxu0 }
 0x977   : > { %v6530_v20 = vpop.f32.mrf.mxu0 }
 0x978   : > { %v4530_v57 = vpack.i.bf16 %v6530_v20, %v6526_v23  ;;  %v7100_v20 = vld [vmem:[#allocation28_spill] sm:$0xff] }
 0x979   : > { %v6534_v58 = vpop.f32.mrf.mxu0 }
 0x97a   : > { %v4525_v2 = vpack.i.bf16 %v6534_v58, %v6528_v53  ;;  %v7099_v53 = vld [vmem:[#allocation26_spill] sm:$0xff] }
 0x9ab   : > { %v6538_v3 = vpop.f32.mrf.mxu0 }
 0x9ad   : > { %v6540_v6 = vpop.f32.mrf.mxu0 }
 0x9af   : > { %v6542_v32 = vpop.f32.mrf.mxu0 }
 0x9b0   : > { %v4550_v35 = vpack.i.bf16 %v6542_v32, %v6538_v3  ;;  %v7103_v3 = vld [vmem:[#allocation32_spill] sm:$0xff] }
 0x9b1   : > { %v6546_v36 = vpop.f32.mrf.mxu0 }
 0x9b2   : > { %v4545_v37 = vpack.i.bf16 %v6546_v36, %v6540_v6 }
 0x9b9   : > { %v6550_v34 = vpop.f32.mrf.mxu0 }
 0x9bb   : > { %v6552_v61 = vpop.f32.mrf.mxu0 }
 0x9bd   : > { %v6554_v60 = vpop.f32.mrf.mxu0 }
 0x9be   : > { %v4580_v9 = vpack.i.bf16 %v6554_v60, %v6550_v34 }
 0x9bf   : > { %v6558_v16 = vpop.f32.mrf.mxu0 }
 0x9c0   : > { %v4575_v55 = vpack.i.bf16 %v6558_v16, %v6552_v61 }
 0x9c1   : > { %v6562_v39 = vpop.f32.mrf.mxu0 }
 0x9c3   : > { %v6564_v19 = vpop.f32.mrf.mxu0 }
 0x9c5   : > { %v6566_v0 = vpop.f32.mrf.mxu0 }
 0x9c6   : > { %v4620_v52 = vpack.i.bf16 %v6566_v0, %v6562_v39 }
 0x9c7   : > { %v6570_v13 = vpop.f32.mrf.mxu0 }
 0x9c8   : > { %v4615_v7 = vpack.i.bf16 %v6570_v13, %v6564_v19 }
 0x9c9   : > { %v4294_v22 = vpop.f32.mrf.mxu0 }
 0x9ca   : > { %v2787_v4 = vmul.f32 0.17677669, %v4294_v22 }
 0x9cb   : > { %v2722_v45 = vpop.f32.mrf.mxu0 }
 0x9cc   : > { %v6575_v38 = vadd.f32 %v6278_v1, %v2787_v4  ;;  %v2785_v44 = vmul.f32 0.17677669, %v2722_v45 }
 0x9cd   : > { %v4295_v33 = vpop.f32.mrf.mxu0 }
 0x9ce   : > { %2821 = vmax.xlane.f32.xlu0 %v6575_v38  ;;  %v6579_v63 = vadd.f32 %v6284_v49, %v2785_v44  ;;  %v2788_v29 = vmul.f32 0.17677669, %v4295_v33 }
 0x9cf   : > { %v2725_v46 = vpop.f32.mrf.mxu0 }
 0x9d0   : > { %v2786_v54 = vmul.f32 0.17677669, %v2725_v46  ;;  %v6586_v1 = vadd.f32 %v6295_v30, %v2788_v29 }
 0x9d1   : > { %v4298_v42 = vpop.f32.mrf.mxu0 }
 0x9d2   : > { %v6582_v28 = vadd.f32 %v6289_v15, %v2786_v54  ;;  %2817 = vmax.xlane.f32.xlu0 %v6579_v63  ;;  %v2791_v11 = vmul.f32 0.17677669, %v4298_v42 }
 0x9d3   : > { %v2738_v21 = vpop.f32.mrf.mxu0 }
 0x9d4   : > { %2819 = vmax.xlane.f32.xlu1 %v6582_v28  ;;  %v6591_v51 = vadd.f32 %v6332_v56, %v2791_v11  ;;  %v2789_v12 = vmul.f32 0.17677669, %v2738_v21 }
 0x9d5   : > { %v4299_v50 = vpop.f32.mrf.mxu0 }
 0x9d6   : > { %v2792_v14 = vmul.f32 0.17677669, %v4299_v50  ;;  %2823 = vmax.xlane.f32.xlu0 %v6586_v1  ;;  %v6599_v40 = vadd.f32 %v6338_v5, %v2789_v12 }
 0x9d7   : > { %v2741_v49 = vpop.f32.mrf.mxu0 }
 0x9d8   : > { %v6594_v15 = vadd.f32 %v6302_v62, %v2792_v14  ;;  %v2790_v17 = vmul.f32 0.17677669, %v2741_v49 }
 0x9d9   : > { %v4302_v47 = vpop.f32.mrf.mxu0 }
 0x9da   : > { %2829 = vmax.xlane.f32.xlu0 %v6591_v51  ;;  %2831 = vmax.xlane.f32.xlu1 %v6594_v15  ;;  %v6602_v22 = vadd.f32 %v6308_v25, %v2790_v17  ;;  %v2795_v4 = vmul.f32 0.17677669, %v4302_v47 }
 0x9db   : > { %v2754_v30 = vpop.f32.mrf.mxu0 }
 0x9dc   : > { %v6607_v44 = vadd.f32 %v6344_v27, %v2795_v4  ;;  %v2793_v33 = vmul.f32 0.17677669, %v2754_v30 }
 0x9dd   : > { %v4303_v56 = vpop.f32.mrf.mxu0 }
 0x9de   : > { %v2796_v45 = vmul.f32 0.17677669, %v4303_v56  ;;  %2825 = vmax.xlane.f32.xlu0 %v6599_v40  ;;  %2827 = vmax.xlane.f32.xlu1 %v6602_v22  ;;  %v6615_v25 = vadd.f32 %v6350_v8, %v2793_v33 }
 0x9df   : > { %v2757_v62 = vpop.f32.mrf.mxu0 }
 0x9e0   : > { %v6610_v46 = vadd.f32 %v6314_v18, %v2796_v45  ;;  %v2794_v5 = vmul.f32 0.17677669, %v2757_v62 }
 0x9e1   : > { %v4306_v29 = vpop.f32.mrf.mxu0 }
 0x9e2   : > { %2837 = vmax.xlane.f32.xlu0 %v6607_v44  ;;  %2839 = vmax.xlane.f32.xlu1 %v6610_v46  ;;  %v6618_v54 = vadd.f32 %v6320_v26, %v2794_v5  ;;  %v2799_v42 = vmul.f32 0.17677669, %v4306_v29 }
 0x9e3   : > { %v2770_v21 = vpop.f32.mrf.mxu0 }
 0x9e4   : > { %v6623_v18 = vadd.f32 %v6356_v31, %v2799_v42  ;;  %v2797_v27 = vmul.f32 0.17677669, %v2770_v21 }
 0x9e5   : > { %v4307_v26 = vpop.f32.mrf.mxu0 }
 0x9e6   : > { %2833 = vmax.xlane.f32.xlu0 %v6615_v25  ;;  %2835 = vmax.xlane.f32.xlu1 %v6618_v54  ;;  %v6627_v11 = vadd.f32 %v6362_v10, %v2797_v27  ;;  %v2800_v8 = vmul.f32 0.17677669, %v4307_v26 }
 0x9e7   : > { %v2773_v50 = vpop.f32.mrf.mxu0 }
 0x9e8   : > { %v6635_v31 = vadd.f32 %v6367_v59, %v2800_v8  ;;  %v2798_v14 = vmul.f32 0.17677669, %v2773_v50 }
 0x9ea   : > { %2845 = vmax.xlane.f32.xlu0 %v6623_v18  ;;  %v6639_v10 = vadd.f32 %v6374_v24, %v2798_v14 }
 0x9ee   : > { %2841 = vmax.xlane.f32.xlu0 %v6627_v11 }
 0x9f7   : > { %2975 = vrot.lane.b32.xlu1 %v5699_v43, %s5236_s15 }
 0xa04   : > { %2977 = vrot.lane.b32.xlu0 %v5695_v41, %s5236_s15 }
 0xa1b   : > { %2847 = vmax.xlane.f32.xlu1 %v6635_v31 }
 0xa1f   : > { %2843 = vmax.xlane.f32.xlu1 %v6639_v10 }
 0xa30   : > { %2973 = vrot.lane.b32.xlu1 %v5703_v48, %s5236_s15 }
 0xa57   : > { %v2822_v43 = vpop.xlane.xlu0 %2821 }
 0xa58   : > { %v2851_v41 = vsub.f32 %v6575_v38, %v2822_v43 }
 0xa5a   : > { %v2869_v49 = vmul.f32 1.442695, %v2851_v41 }
 0xa5b   : > { %v2818_v12 = vpop.xlane.xlu0 %2817 }
 0xa5c   : > { %4875 = vpow2.f32 %v2869_v49  ;;  %v2849_v59 = vsub.f32 %v6579_v63, %v2818_v12 }
 0xa5d   : > { %v2820_v17 = vpop.xlane.xlu1 %2819 }
 0xa5e   : > { %v2865_v47 = vmul.f32 1.442695, %v2849_v59  ;;  %v2850_v30 = vsub.f32 %v6582_v28, %v2820_v17 }
 0xa5f   : > { %v2824_v4 = vpop.xlane.xlu0 %2823 }
 0xa60   : > { %4877 = vpow2.f32 %v2865_v47  ;;  %v2852_v24 = vsub.f32 %v6586_v1, %v2824_v4  ;;  %v2867_v45 = vmul.f32 1.442695, %v2850_v30 }
 0xa62   : > { %v2871_v56 = vmul.f32 1.442695, %v2852_v24 }
 0xa63   : > { %v2830_v62 = vpop.xlane.xlu0 %2829  ;;  %v2832_v48 = vpop.xlane.xlu1 %2831 }
 0xa64   : > { %4879 = vpow2.f32 %v2871_v56  ;;  %v2855_v38 = vsub.f32 %v6591_v51, %v2830_v62  ;;  %v2856_v63 = vsub.f32 %v6594_v15, %v2832_v48 }
 0xa65   : > { %4881 = vpow2.f32 %v2867_v45 }
 0xa66   : > { %v2877_v33 = vmul.f32 1.442695, %v2855_v38  ;;  %v2879_v51 = vmul.f32 1.442695, %v2856_v63 }
 0xa67   : > { %v2826_v5 = vpop.xlane.xlu0 %2825  ;;  %v2828_v29 = vpop.xlane.xlu1 %2827 }
 0xa68   : > { %4883 = vpow2.f32 %v2877_v33  ;;  %v2853_v28 = vsub.f32 %v6599_v40, %v2826_v5  ;;  %v2854_v42 = vsub.f32 %v6602_v22, %v2828_v29 }
 0xa69   : > { %v6652_v21 = vpop.eup %4875 }
 0xa6a   : > { %v2873_v1 = vmul.f32 1.442695, %v2853_v28  ;;  %v2875_v27 = vmul.f32 1.442695, %v2854_v42  ;;  %2901 = vadd.xlane.f32.xlu1 %v6652_v21  ;;  %v7091_v42 = vld [vmem:[#allocation30_spill] sm:$0xff] }
 0xa6b   : > { %v2838_v26 = vpop.xlane.xlu0 %2837  ;;  %v2840_v8 = vpop.xlane.xlu1 %2839 }
 0xa6c   : > { %4885 = vpow2.f32 %v2873_v1  ;;  %v2859_v50 = vsub.f32 %v6607_v44, %v2838_v26  ;;  %v2860_v40 = vsub.f32 %v6610_v46, %v2840_v8  ;;  %v7092_v1 = vld [vmem:[#allocation33_spill] sm:$0xff] }
 0xa6d   : > { %v6656_v14 = vpop.eup %4877  ;;  %4887 = vpow2.f32 %v2875_v27  ;;  %v7093_v27 = vld [vmem:[#allocation31_spill] sm:$0xff]  ;;  %v7095_v8 = vld [vmem:[#allocation29_spill] sm:$0xff] }
 0xa6e   : > { %2897 = vadd.xlane.f32.xlu1 %v6656_v14  ;;  %v2885_v15 = vmul.f32 1.442695, %v2859_v50  ;;  %4889 = vpow2.f32 %v2879_v51  ;;  %v2887_v44 = vmul.f32 1.442695, %v2860_v40  ;;  %v7094_v26 = vpack.i.bf16 %v7092_v1, %v7093_v27  ;;  %v7096_v40 = vld [vmem:[#allocation37_spill] sm:$0xff] }
 0xa6f   : > { %v2834_v22 = vpop.xlane.xlu0 %2833  ;;  %v2836_v41 = vpop.xlane.xlu1 %2835 }
 0xa70   : > { %v2857_v43 = vsub.f32 %v6615_v25, %v2834_v22  ;;  %4891 = vpow2.f32 %v2885_v15  ;;  %v2858_v59 = vsub.f32 %v6618_v54, %v2836_v41  ;;  %v7097_v22 = vld [vmem:[#allocation35_spill] sm:$0xff] }
 0xa71   : > { %v6661_v49 = vpop.eup %4879 }
 0xa72   : > { %v2881_v12 = vmul.f32 1.442695, %v2857_v43  ;;  %2903 = vadd.xlane.f32.xlu1 %v6661_v49  ;;  %v6665_v47 = vpop.eup %4881  ;;  %v2883_v25 = vmul.f32 1.442695, %v2858_v59  ;;  %v7098_v43 = vpack.i.bf16 %v7096_v40, %v7097_v22 }
 0xa73   : > { %v2846_v17 = vpop.xlane.xlu0 %2845  ;;  %v2976_v38 = vpop.permute.xlu1 %2975 }
 0xa74   : > { %4893 = vpow2.f32 %v2881_v12  ;;  %v2863_v46 = vsub.f32 %v6623_v18, %v2846_v17  ;;  %v7108_v17 = vld [vmem:[#allocation25_spill] sm:$0xff] }
 0xa75   : > { %v6668_v30 = vpop.eup %4883  ;;  %4895 = vpow2.f32 %v2887_v44 }
 0xa76   : > { %v2893_v4 = vmul.f32 1.442695, %v2863_v46  ;;  %2909 = vadd.xlane.f32.xlu0 %v6668_v30  ;;  %2899 = vadd.xlane.f32.xlu1 %v6665_v47  ;;  %v7109_v46 = vld [vmem:[#allocation27_spill] sm:$0xff] }
 0xa77   : > { %v2842_v24 = vpop.xlane.xlu0 %2841 }
 0xa78   : > { %4897 = vpow2.f32 %v2893_v4  ;;  %v2861_v56 = vsub.f32 %v6627_v11, %v2842_v24  ;;  %v7110_v4 = vpack.i.bf16 %v7108_v17, %v7109_v46 }
 0xa79   : > { %v6673_v54 = vpop.eup %4885  ;;  %4899 = vpow2.f32 %v2883_v25 }
 0xa7a   : > { %v6675_v45 = vpop.eup %4887  ;;  %v2889_v62 = vmul.f32 1.442695, %v2861_v56  ;;  %2905 = vadd.xlane.f32.xlu0 %v6673_v54 }
 0xa7b   : > { %2907 = vadd.xlane.f32.xlu1 %v6675_v45  ;;  %v2978_v18 = vpop.permute.xlu0 %2977  ;;  %v6679_v48 = vpop.eup %4889 }
 0xa7c   : > { %4901 = vpow2.f32 %v2889_v62  ;;  %4314 = vmatprep.subr.bf16.mxu1 %v2978_v18 }
 0xa7d   : > { %4315 = vmatpush3.bf16.msra.mxu1 %v2978_v18  ;;  %v6682_v11 = vpop.eup %4891 }
 0xa7e   : > { %2911 = vadd.xlane.f32.xlu0 %v6679_v48  ;;  %4316 = vmatprep.subr.bf16.mxu1 %v2976_v38 }
 0xa81   : > { %v6684_v33 = vpop.eup %4893  ;;  %4317 = vmatpush3.bf16.msra.mxu1 %v2976_v38 }
 0xa82   : > { %2917 = vadd.xlane.f32.xlu0 %v6682_v11  ;;  %2913 = vadd.xlane.f32.xlu1 %v6684_v33  ;;  %v6688_v5 = vpop.eup %4895 }
 0xa85   : > { %v6690_v29 = vpop.eup %4897 }
 0xa86   : > { %2925 = vadd.xlane.f32.xlu1 %v6690_v29  ;;  %2919 = vadd.xlane.f32.xlu0 %v6688_v5  ;;  %v6694_v63 = vpop.eup %4899 }
 0xa89   : > { %v6696_v28 = vpop.eup %4901 }
 0xa8a   : > { %2921 = vadd.xlane.f32.xlu1 %v6696_v28  ;;  %2915 = vadd.xlane.f32.xlu0 %v6694_v63 }
 0xa9b   : > { %2969 = vrot.lane.b32.xlu1 %v7091_v42, %s5236_s15 }
 0xa9f   : > { %4521 = vrot.lane.b32.xlu1 %v7094_v26, %s5236_s15 }
 0xaa0   : > { %2971 = vrot.lane.b32.xlu0 %v7095_v8, %s5236_s15 }
 0xaa3   : > { %4526 = vrot.lane.b32.xlu1 %v4525_v2, %s5235_s10 }
 0xaa4   : > { %v2848_v51 = vpop.xlane.xlu1 %2847 }
 0xaa5   : > { %v2864_v12 = vsub.f32 %v6635_v31, %v2848_v51  ;;  %v7102_v31 = vld [vmem:[#allocation34_spill] sm:$0xff] }
 0xaa6   : > { %v7104_v32 = vpack.i.bf16 %v7102_v31, %v7103_v3 }
 0xaa7   : > { %4531 = vrot.lane.b32.xlu1 %v4530_v57, %s5235_s10  ;;  %v2895_v23 = vmul.f32 1.442695, %v2864_v12  ;;  %v7101_v57 = vpack.i.bf16 %v7099_v53, %v7100_v20 }
 0xaa8   : > { %v2844_v50 = vpop.xlane.xlu1 %2843 }
 0xaa9   : > { %v2862_v15 = vsub.f32 %v6639_v10, %v2844_v50  ;;  %v7106_v10 = vld [vmem:[#allocation36_spill] sm:$0xff] }
 0xaab   : > { %4541 = vrot.lane.b32.xlu1 %v7098_v43, %s5236_s15  ;;  %v2891_v44 = vmul.f32 1.442695, %v2862_v15 }
 0xaac   : > { %v2974_v41 = vpop.permute.xlu1 %2973 }
 0xaad   : > { %4318 = vmatprep.subr.bf16.mxu1 %v2974_v41  ;;  %4903 = vpow2.f32 %v2891_v44 }
 0xaae   : > { %4319 = vmatpush3.bf16.msra.mxu1 %v2974_v41  ;;  %4905 = vpow2.f32 %v2895_v23 }
 0xaaf   : > { %4551 = vrot.lane.b32.xlu1 %v4550_v35, %s5235_s10  ;;  %v7105_v35 = vld [vmem:[#allocation38_spill] sm:$0xff] }
 0xab0   : > { %v7107_v59 = vpack.i.bf16 %v7105_v35, %v7106_v10 }
 0xab3   : > { %4561 = vrot.lane.b32.xlu1 %v7101_v57, %s5236_s15 }
 0xaba   : > { %v6730_v58 = vpop.eup %4903 }
 0xabb   : > { %v6733_v2 = vpop.eup %4905 }
 0xabf   : > { %2923 = vadd.xlane.f32.xlu0 %v6730_v58 }
 0xac3   : > { %2927 = vadd.xlane.f32.xlu0 %v6733_v2 }
 0xad9   : > { %4516 = vrot.lane.b32.xlu0 %v7104_v32, %s5236_s15 }
 0xadd   : > { %4536 = vrot.lane.b32.xlu0 %v7107_v59, %s5236_s15 }
 0xae1   : > { %4546 = vrot.lane.b32.xlu0 %v4545_v37, %s5235_s10 }
 0xae5   : > { %4556 = vrot.lane.b32.xlu0 %v7110_v4, %s5236_s15 }
 0xaf3   : > { %v2902_v25 = vpop.xlane.xlu1 %2901 }
 0xaf7   : > { %v2898_v24 = vpop.xlane.xlu1 %2897 }
 0xaf8   : > { %4907 = vrcp.f32 %v2898_v24 }
 0xafb   : > { %v2904_v56 = vpop.xlane.xlu1 %2903 }
 0xaff   : > { %v2910_v62 = vpop.xlane.xlu0 %2909  ;;  %v2900_v18 = vpop.xlane.xlu1 %2899 }
 0xb00   : > { %4909 = vrcp.f32 %v2900_v18 }
 0xb01   : > { %4911 = vrcp.f32 %v2904_v56 }
 0xb03   : > { %v2906_v38 = vpop.xlane.xlu0 %2905 }
 0xb04   : > { %v2908_v42 = vpop.xlane.xlu1 %2907  ;;  %4913 = vrcp.f32 %v2906_v38 }
 0xb05   : > { %4915 = vrcp.f32 %v2908_v42  ;;  %v4908_v37 = vpop.eup %4907 }
 0xb06   : > { %4917 = vrcp.f32 %v2902_v25  ;;  %v2945_v51 = vmul.f32 %v4908_v37, %v6656_v14  ;;  %v4675_v37 = vld [vmem:[#allocation11 + $0x38] sm:$0xff]  }
 0xb07   : > { %v2912_v1 = vpop.xlane.xlu0 %2911 }
 0xb08   : > { %4919 = vrcp.f32 %v2912_v1 }
 0xb09   : > { %4921 = vrcp.f32 %v2910_v62 }
 0xb0b   : > { %v2918_v6 = vpop.xlane.xlu0 %2917  ;;  %v2914_v36 = vpop.xlane.xlu1 %2913 }
 0xb0d   : > { %v4910_v27 = vpop.eup %4909 }
 0xb0e   : > { %v2946_v50 = vmul.f32 %v4910_v27, %v6665_v47  ;;  %v4912_v43 = vpop.eup %4911  ;;  %v4676_v27 = vld [vmem:[#allocation11 + $0x30] sm:$0xff]  }
 0xb0f   : > { %v2920_v26 = vpop.xlane.xlu0 %2919  ;;  %v2926_v8 = vpop.xlane.xlu1 %2925  ;;  %v2948_v14 = vmul.f32 %v4912_v43, %v6661_v49 }
 0xb10   : > { %v2961_v15 = vpack.c.bf16 %v2946_v50, %v2945_v51 }
 0xb11   : > { %v4914_v41 = vpop.eup %4913 }
 0xb12   : > { %4324 = vmatprep.mubr.bf16.mxu1 %v2961_v15  ;;  %v4916_v44 = vpop.eup %4915  ;;  %v2949_v47 = vmul.f32 %v4914_v41, %v6673_v54 }
 0xb13   : > { %v2916_v40 = vpop.xlane.xlu0 %2915  ;;  %v2922_v22 = vpop.xlane.xlu1 %2921  ;;  %v2950_v20 = vmul.f32 %v4916_v44, %v6675_v45 }
 0xb14   : > { %4923 = vrcp.f32 %v2916_v40  ;;  %v4918_v23 = vpop.eup %4917 }
 0xb15   : > { %4925 = vrcp.f32 %v2914_v36  ;;  %v2947_v57 = vmul.f32 %v4918_v23, %v6652_v21  ;;  %v4920_v3 = vpop.eup %4919  ;;  %v2963_v32 = vpack.c.bf16 %v2950_v20, %v2949_v47 }
 0xb16   : > { %4927 = vrcp.f32 %v2920_v26  ;;  %v4922_v35 = vpop.eup %4921  ;;  %v2952_v17 = vmul.f32 %v4920_v3, %v6679_v48  ;;  %v4677_v26 = vld [vmem:[#allocation11 + $0x28] sm:$0xff]  }
 0xb17   : > { %v2972_v12 = vpop.permute.xlu0 %2971  ;;  %v2970_v53 = vpop.permute.xlu1 %2969  ;;  %4929 = vrcp.f32 %v2918_v6  ;;  %v2962_v31 = vpack.c.bf16 %v2948_v14, %v2947_v57  ;;  %v2951_v54 = vmul.f32 %v4922_v35, %v6668_v30  ;;  %v7111_v57 = vld [vmem:[#allocation57_spill] sm:$0xff]  ;;  %v7114_v3 = vld [vmem:[#allocation58_spill] sm:$0xff] }
 0xb18   : > { %4320 = vmatprep.subr.bf16.mxu1 %v2972_v12  ;;  %4931 = vrcp.f32 %v2922_v22 }
 0xb19   : > { %4321 = vmatpush3.bf16.msra.mxu1 %v2972_v12  ;;  %v2964_v46 = vpack.c.bf16 %v2952_v17, %v2951_v54 }
 0xb1a   : > { %4322 = vmatprep.subr.bf16.mxu1 %v2970_v53 }
 0xb1d   : > { %4323 = vmatpush3.bf16.msra.mxu1 %v2970_v53 }
 0xb1e   : > { %4340 = vmatprep.subr.bf16.mxu1 %v4675_v37 }
 0xb20   : > { %4325 = vmatmul.mubr.bf16.vlgmr.msra.gmra.mxu1 %v2962_v31  ;;  %v7112_v31 = vld [vmem:[#allocation55_spill] sm:$0xff] }
 0xb21   : > { %v4924_v10 = vpop.eup %4923  ;;  %4328 = vmatprep.mubr.bf16.mxu1 %v2963_v32  ;;  %4341 = vmatpush3.bf16.msra.mxu1 %v4675_v37  ;;  %v7113_v34 = vpack.i.bf16 %v7111_v57, %v7112_v31  ;;  %v7115_v32 = vld [vmem:[#allocation56_spill] sm:$0xff] }
 0xb22   : > { %v4926_v59 = vpop.eup %4925  ;;  %v2954_v49 = vmul.f32 %v4924_v10, %v6694_v63  ;;  %4342 = vmatprep.subr.bf16.mxu1 %v4676_v27  ;;  %v7116_v61 = vpack.i.bf16 %v7114_v3, %v7115_v32  ;;  %v7121_v3 = vld [vmem:[#allocation45_spill] sm:$0xff] }
 0xb23   : > { %v2953_v45 = vmul.f32 %v4926_v59, %v6684_v33  ;;  %v4928_v4 = vpop.eup %4927 }
 0xb24   : > { %v4930_v25 = vpop.eup %4929  ;;  %v2956_v24 = vmul.f32 %v4928_v4, %v6688_v5 }
 0xb25   : > { %v2965_v21 = vpack.c.bf16 %v2954_v49, %v2953_v45  ;;  %v2955_v56 = vmul.f32 %v4930_v25, %v6682_v11  ;;  %v4932_v30 = vpop.eup %4931  ;;  %4343 = vmatpush3.bf16.msra.mxu1 %v4676_v27  ;;  %v4522_v45 = vpop.permute.xlu1 %4521 }
 0xb26   : > { %v2957_v18 = vmul.f32 %v4932_v30, %v6696_v28  ;;  %4344 = vmatprep.subr.bf16.mxu1 %v4677_v26  ;;  %v4678_v28 = vld [vmem:[#allocation11 + $0x20] sm:$0xff]   ;;  %v7117_v30 = vld [vmem:[#allocation42_spill] sm:$0xff] }
 0xb27   : > { %v2966_v62 = vpack.c.bf16 %v2956_v24, %v2955_v56  ;;  %v4524_v24 = vunpack.i.h.bf16 %v4522_v45  ;;  %v4523_v56 = vunpack.i.l.bf16 %v4522_v45  ;;  %v7124_v45 = vld [vmem:[#allocation44_spill] sm:$0xff] }
 0xb28   : > { %4329 = vmatmul.mubr.bf16.gmra.mxu1 %v2964_v46 }
 0xb29   : > { %4332 = vmatprep.mubr.bf16.mxu1 %v2965_v21  ;;  %4345 = vmatpush3.bf16.msra.mxu1 %v4677_v26  ;;  %v4527_v46 = vpop.permute.xlu1 %4526 }
 0xb2a   : > { %4346 = vmatprep.subr.bf16.mxu1 %v4678_v28  ;;  %v4529_v27 = vunpack.i.h.bf16 %v4527_v46  ;;  %v4528_v26 = vunpack.i.l.bf16 %v4527_v46 }
 0xb2d   : > { %4347 = vmatpush3.bf16.msra.mxu1 %v4678_v28  ;;  %v4532_v4 = vpop.permute.xlu1 %4531 }
 0xb30   : > { %4333 = vmatmul.mubr.bf16.gmra.mxu1 %v2966_v62 }
 0xb31   : > { %v4542_v0 = vpop.permute.xlu1 %4541 }
 0xb35   : > { %v4552_v21 = vpop.permute.xlu1 %4551 }
 0xb39   : > { %v6800_v19 = vpop.permute.xlu1 %4561 }
 0xb48   : > { %v2924_v48 = vpop.xlane.xlu0 %2923 }
 0xb49   : > { %4933 = vrcp.f32 %v2924_v48  ;;  %v4534_v48 = vunpack.i.h.bf16 %v4532_v4 }
 0xb4a   : > { %4935 = vrcp.f32 %v2926_v8  ;;  %v4680_v8 = vld [vmem:[#allocation11 + $0x10] sm:$0xff]  }
 0xb4c   : > { %v2928_v63 = vpop.xlane.xlu0 %2927 }
 0xb4d   : > { %4937 = vrcp.f32 %v2928_v63  ;;  %v4533_v63 = vunpack.i.l.bf16 %v4532_v4 }
 0xb50   : > { %v4517_v39 = vpop.permute.xlu0 %4516 }
 0xb51   : > { %v4519_v13 = vunpack.i.h.bf16 %v4517_v39 }
 0xb56   : > { %v4934_v33 = vpop.eup %4933 }
 0xb57   : > { %v2958_v38 = vmul.f32 %v4934_v33, %v6730_v58  ;;  %v4936_v42 = vpop.eup %4935  ;;  %v4679_v58 = vld [vmem:[#allocation11 + $0x18] sm:$0xff]   ;;  %v3283_v33 = vsel %vm1193_vm0, %v7117_v30, %v4519_v13 }
 0xb58   : > { %v2959_v11 = vmul.f32 %v4936_v42, %v6690_v29  ;;  %4348 = vmatprep.subr.bf16.mxu1 %v4679_v58  ;;  %v4681_v29 = vld [vmem:[#allocation11 + $0x8] sm:$0xff]  }
 0xb59   : > { %v2967_v1 = vpack.c.bf16 %v2958_v38, %v2957_v18  ;;  %4349 = vmatpush3.bf16.msra.mxu1 %v4679_v58  ;;  %v7118_v38 = vld [vmem:[#allocation40_spill] sm:$0xff] }
 0xb5a   : > { %v4938_v6 = vpop.eup %4937  ;;  %4350 = vmatprep.subr.bf16.mxu1 %v4680_v8 }
 0xb5b   : > { %4336 = vmatprep.mubr.bf16.mxu1 %v2967_v1  ;;  %v2960_v5 = vmul.f32 %v4938_v6, %v6733_v2  ;;  %v4682_v2 = vld [vmem:[#allocation11] sm:$0xff]  }
 0xb5d   : > { %v2968_v36 = vpack.c.bf16 %v2960_v5, %v2959_v11  ;;  %4351 = vmatpush3.bf16.msra.mxu1 %v4680_v8  ;;  %v7119_v11 = vld [vmem:[#allocation41_spill] sm:$0xff] }
 0xb5e   : > { %4352 = vmatprep.subr.bf16.mxu1 %v4681_v29  ;;  %v3285_v5 = vsel %vm1193_vm0, %v7119_v11, %v4524_v24 }
 0xb5f   : > { %4337 = vmatmul.mubr.bf16.gmra.mxu1 %v2968_v36  ;;  %v7120_v36 = vld [vmem:[#allocation39_spill] sm:$0xff]  ;;  %v3302_v8 = vsel %vm3298_vm1, %v3285_v5, %v4534_v48  ;;  %v4563_v48 = vunpack.i.l.bf16 %v6800_v19 }
 0xb60   : > { %v3284_v37 = vsel %vm1193_vm0, %v7120_v36, %v4523_v56 }
 0xb61   : > { %4353 = vmatpush3.bf16.msra.mxu1 %v4681_v29  ;;  %v3301_v58 = vsel %vm3298_vm1, %v3284_v37, %v4533_v63 }
 0xb62   : > { %4354 = vmatprep.subr.bf16.mxu1 %v4682_v2 }
 0xb65   : > { %4355 = vmatpush3.bf16.msra.mxu1 %v4682_v2 }
 0xbe0   : > { %v4326_v51 = vpop.f32.mrf.mxu1 }
 0xbe2   : > { %v3027_v50 = vpop.f32.mrf.mxu1 }
 0xbe4   : > { %v4327_v15 = vpop.f32.mrf.mxu1 }
 0xbe5   : > { %v4565_v40 = vpack.i.bf16 %v4327_v15, %v4326_v51 }
 0xbe6   : > { %v3030_v22 = vpop.f32.mrf.mxu1 }
 0xbe7   : > { %v4570_v43 = vpack.i.bf16 %v3030_v22, %v3027_v50  ;;  %4566 = vrot.lane.b32.xlu1 %v4565_v40, %s5234_s14  ;;  %v3300_v22 = vsel %vm3298_vm1, %v3283_v33, %v4529_v27  ;;  %v7125_v27 = vld [vmem:[#allocation49_spill] sm:$0xff] }
 0xbe8   : > { %v4330_v41 = vpop.f32.mrf.mxu1 }
 0xbe9   : > { %4571 = vrot.lane.b32.xlu0 %v4570_v43, %s5234_s14  ;;  %v4544_v43 = vunpack.i.h.bf16 %v4542_v0 }
 0xbea   : > { %v3043_v12 = vpop.f32.mrf.mxu1 }
 0xbeb   : > { %4581 = vrot.lane.b32.xlu1 %v4580_v9, %s5235_s10  ;;  %v3289_v32 = vsel %vm1193_vm0, %v7121_v3, %v4544_v43 }
 0xbec   : > { %v4331_v44 = vpop.f32.mrf.mxu1 }
 0xbed   : > { %v4585_v23 = vpack.i.bf16 %v4331_v44, %v4330_v41  ;;  %4576 = vrot.lane.b32.xlu0 %v4575_v55, %s5235_s10  ;;  %v4543_v41 = vunpack.i.l.bf16 %v4542_v0 }
 0xbee   : > { %v3046_v53 = vpop.f32.mrf.mxu1 }
 0xbef   : > { %v4590_v14 = vpack.i.bf16 %v3046_v53, %v3043_v12  ;;  %4586 = vrot.lane.b32.xlu1 %v4585_v23, %s5234_s14  ;;  %v4554_v23 = vunpack.i.h.bf16 %v4552_v21  ;;  %v4553_v53 = vunpack.i.l.bf16 %v4552_v21 }
 0xbf0   : > { %v4334_v47 = vpop.f32.mrf.mxu1 }
 0xbf1   : > { %4591 = vrot.lane.b32.xlu0 %v4590_v14, %s5234_s14 }
 0xbf2   : > { %v3059_v20 = vpop.f32.mrf.mxu1 }
 0xbf3   : > { %4601 = vrot.lane.b32.xlu1 %v7113_v34, %s5236_s15 }
 0xbf4   : > { %v4335_v60 = vpop.f32.mrf.mxu1 }
 0xbf5   : > { %v4605_v9 = vpack.i.bf16 %v4335_v60, %v4334_v47  ;;  %4596 = vrot.lane.b32.xlu0 %v7116_v61, %s5236_s15  ;;  %v7122_v61 = vld [vmem:[#allocation43_spill] sm:$0xff] }
 0xbf6   : > { %v3062_v16 = vpop.f32.mrf.mxu1 }
 0xbf7   : > { %v4610_v55 = vpack.i.bf16 %v3062_v16, %v3059_v20  ;;  %4606 = vrot.lane.b32.xlu1 %v4605_v9, %s5234_s14  ;;  %v3288_v16 = vsel %vm1193_vm0, %v7122_v61, %v4543_v41 }
 0xbf9   : > { %4611 = vrot.lane.b32.xlu0 %v4610_v55, %s5234_s14 }
 0xbfb   : > { %4621 = vrot.lane.b32.xlu1 %v4620_v52, %s5235_s10  ;;  %v4537_v52 = vpop.permute.xlu0 %4536 }
 0xbfc   : > { %v4539_v20 = vunpack.i.h.bf16 %v4537_v52  ;;  %v4538_v57 = vunpack.i.l.bf16 %v4537_v52 }
 0xbfd   : > { %4616 = vrot.lane.b32.xlu0 %v4615_v7, %s5235_s10  ;;  %v4518_v7 = vunpack.i.l.bf16 %v4517_v39 }
 0xbfe   : > { %v3286_v46 = vsel %vm1193_vm0, %v7124_v45, %v4538_v57 }
 0xbff   : > { %v4547_v25 = vpop.permute.xlu0 %4546  ;;  %v3282_v42 = vsel %vm1193_vm0, %v7118_v38, %v4518_v7  ;;  %v4564_v7 = vunpack.i.h.bf16 %v6800_v19  ;;  %v7126_v19 = vld [vmem:[#allocation47_spill] sm:$0xff] }
 0xc00   : > { %v3299_v40 = vsel %vm3298_vm1, %v3282_v42, %v4528_v26  ;;  %v4549_v34 = vunpack.i.h.bf16 %v4547_v25  ;;  %v4548_v60 = vunpack.i.l.bf16 %v4547_v25 }
 0xc01   : > { %v3293_v26 = vsel %vm1193_vm0, %v7125_v27, %v4564_v7 }
 0xc02   : > { %v3303_v0 = vsel %vm3298_vm1, %v3286_v46, %v4548_v60  ;;  %v7132_v46 = vld [vmem:[#allocation52_spill] sm:$0xff] }
 0xc03   : > { %v6802_v62 = vpop.permute.xlu0 %4556 }
 0xc04   : > { %v4559_v63 = vunpack.i.h.bf16 %v6802_v62  ;;  %v4558_v30 = vunpack.i.l.bf16 %v6802_v62 }
 0xc1f   : > { %v4338_v35 = vpop.f32.mrf.mxu1 }
 0xc21   : > { %v3075_v10 = vpop.f32.mrf.mxu1 }
 0xc23   : > { %v4339_v59 = vpop.f32.mrf.mxu1 }
 0xc24   : > { %v4630_v17 = vpack.i.bf16 %v4339_v59, %v4338_v35  ;;  %v3306_v59 = vsel %vm3298_vm1, %v3289_v32, %v4554_v23 }
 0xc25   : > { %v3078_v49 = vpop.f32.mrf.mxu1 }
 0xc26   : > { %v4625_v54 = vpack.i.bf16 %v3078_v49, %v3075_v10  ;;  %4631 = vrot.lane.b32.xlu1 %v4630_v17, %s5234_s14  ;;  %v3305_v10 = vsel %vm3298_vm1, %v3288_v16, %v4553_v53  ;;  %v7123_v49 = vld [vmem:[#allocation46_spill] sm:$0xff] }
 0xc28   : > { %4626 = vrot.lane.b32.xlu0 %v4625_v54, %s5234_s14  ;;  %v3287_v54 = vsel %vm1193_vm0, %v7123_v49, %v4539_v20 }
 0xc29   : > { %v3304_v52 = vsel %vm3298_vm1, %v3287_v54, %v4549_v34  ;;  %v7131_v54 = vld [vmem:[#allocation54_spill] sm:$0xff] }
 0xc59   : > { %v4567_v18 = vpop.permute.xlu1 %4566 }
 0xc5a   : > { %v4569_v1 = vunpack.i.h.bf16 %v4567_v18  ;;  %v4568_v6 = vunpack.i.l.bf16 %v4567_v18 }
 0xc5b   : > { %v4572_v28 = vpop.permute.xlu0 %4571 }
 0xc5c   : > { %v4574_v29 = vunpack.i.h.bf16 %v4572_v28  ;;  %v4573_v2 = vunpack.i.l.bf16 %v4572_v28  ;;  %v3318_v51 = vsel %vm3315_vm2, %v3301_v58, %v4568_v6  ;;  %v3319_v50 = vsel %vm3315_vm2, %v3302_v8, %v4569_v1  ;;  %v7127_v58 = vld [vmem:[#allocation50_spill] sm:$0xff]  ;;  %v7128_v8 = vld [vmem:[#allocation48_spill] sm:$0xff] }
 0xc5d   : > { %v4582_v15 = vpop.permute.xlu1 %4581  ;;  %v3333_v31 = vpack.c.bf16 %v3319_v50, %v3318_v51  ;;  %v3292_v28 = vsel %vm1193_vm0, %v7126_v19, %v4563_v48  ;;  %v3291_v62 = vsel %vm1193_vm0, %v7127_v58, %v4559_v63 }
 0xc5e   : > { %v3316_v12 = vsel %vm3315_vm2, %v3299_v40, %v4573_v2  ;;  %v3317_v44 = vsel %vm3315_vm2, %v3300_v22, %v4574_v29  ;;  %v4584_v38 = vunpack.i.h.bf16 %v4582_v15  ;;  %v4583_v42 = vunpack.i.l.bf16 %v4582_v15 }
 0xc5f   : > { %v4577_v14 = vpop.permute.xlu0 %4576  ;;  %v3332_v47 = vpack.c.bf16 %v3317_v44, %v3316_v12  ;;  %v3290_v29 = vsel %vm1193_vm0, %v7128_v8, %v4558_v30 }
 0xc60   : > { %v4579_v6 = vunpack.i.h.bf16 %v4577_v14  ;;  %v4578_v11 = vunpack.i.l.bf16 %v4577_v14  ;;  %v3309_v51 = vsel %vm3298_vm1, %v3292_v28, %v4583_v42  ;;  %v3310_v50 = vsel %vm3298_vm1, %v3293_v26, %v4584_v38 }
 0xc61   : > { %v4587_v9 = vpop.permute.xlu1 %4586  ;;  %4356 = vmatprep.mubr.bf16.mxu1 %v3332_v47 }
 0xc62   : > { %v4589_v55 = vunpack.i.h.bf16 %v4587_v9  ;;  %v4588_v35 = vunpack.i.l.bf16 %v4587_v9  ;;  %4357 = vmatmul.mubr.bf16.vlgmr.msra.gmra.mxu1 %v3333_v31  ;;  %v3308_v22 = vsel %vm3298_vm1, %v3291_v62, %v4579_v6  ;;  %v3307_v43 = vsel %vm3298_vm1, %v3290_v29, %v4578_v11 }
 0xc63   : > { %v4592_v17 = vpop.permute.xlu0 %4591 }
 0xc64   : > { %v4594_v4 = vunpack.i.h.bf16 %v4592_v17  ;;  %v4593_v39 = vunpack.i.l.bf16 %v4592_v17  ;;  %v3322_v25 = vsel %vm3315_vm2, %v3305_v10, %v4588_v35  ;;  %v3323_v13 = vsel %vm3315_vm2, %v3306_v59, %v4589_v55  ;;  %v7129_v55 = vld [vmem:[#allocation53_spill] sm:$0xff]  ;;  %v7130_v10 = vld [vmem:[#allocation51_spill] sm:$0xff] }
 0xc65   : > { %v4602_v21 = vpop.permute.xlu1 %4601  ;;  %v3335_v1 = vpack.c.bf16 %v3323_v13, %v3322_v25 }
 0xc66   : > { %v3320_v24 = vsel %vm3315_vm2, %v3303_v0, %v4593_v39  ;;  %v3321_v56 = vsel %vm3315_vm2, %v3304_v52, %v4594_v4  ;;  %v4604_v20 = vunpack.i.h.bf16 %v4602_v21  ;;  %v4603_v57 = vunpack.i.l.bf16 %v4602_v21 }
 0xc67   : > { %v4597_v33 = vpop.permute.xlu0 %4596  ;;  %v3334_v18 = vpack.c.bf16 %v3321_v56, %v3320_v24 }
 0xc68   : > { %v4599_v34 = vunpack.i.h.bf16 %v4597_v33  ;;  %v4598_v60 = vunpack.i.l.bf16 %v4597_v33  ;;  %v3297_v35 = vsel %vm1193_vm0, %v7129_v55, %v4604_v20  ;;  %v3296_v59 = vsel %vm1193_vm0, %v7130_v10, %v4603_v57 }
 0xc69   : > { %v4607_v5 = vpop.permute.xlu1 %4606  ;;  %4360 = vmatprep.mubr.bf16.mxu1 %v3334_v18  ;;  %v3779_v18 = vld [vmem:[%s6953_s9] ss:$0 sm:$0xff] }
 0xc6a   : > { %v4609_v36 = vunpack.i.h.bf16 %v4607_v5  ;;  %v4608_v37 = vunpack.i.l.bf16 %v4607_v5  ;;  %4361 = vmatmul.mubr.bf16.gmra.mxu1 %v3335_v1  ;;  %v3295_v45 = vsel %vm1193_vm0, %v7131_v54, %v4599_v34  ;;  %v3294_v4 = vsel %vm1193_vm0, %v7132_v46, %v4598_v60 }
 0xc6b   : > { %v4612_v2 = vpop.permute.xlu0 %4611 }
 0xc6c   : > { %v4614_v15 = vunpack.i.h.bf16 %v4612_v2  ;;  %v4613_v40 = vunpack.i.l.bf16 %v4612_v2  ;;  %v3326_v41 = vsel %vm3315_vm2, %v3309_v51, %v4608_v37  ;;  %v3327_v12 = vsel %vm3315_vm2, %v3310_v50, %v4609_v36 }
 0xc6d   : > { %v3337_v14 = vpack.c.bf16 %v3327_v12, %v3326_v41  ;;  %v4622_v47 = vpop.permute.xlu1 %4621 }
 0xc6e   : > { %v3324_v44 = vsel %vm3315_vm2, %v3307_v43, %v4613_v40  ;;  %v3325_v23 = vsel %vm3315_vm2, %v3308_v22, %v4614_v15  ;;  %v4624_v9 = vunpack.i.h.bf16 %v4622_v47  ;;  %v4623_v3 = vunpack.i.l.bf16 %v4622_v47 }
 0xc6f   : > { %v3336_v53 = vpack.c.bf16 %v3325_v23, %v3324_v44  ;;  %v4617_v31 = vpop.permute.xlu0 %4616 }
 0xc70   : > { %v4619_v32 = vunpack.i.h.bf16 %v4617_v31  ;;  %v4618_v61 = vunpack.i.l.bf16 %v4617_v31  ;;  %v3313_v39 = vsel %vm3298_vm1, %v3296_v59, %v4623_v3  ;;  %v3314_v0 = vsel %vm3298_vm1, %v3297_v35, %v4624_v9 }
 0xc71   : > { %4364 = vmatprep.mubr.bf16.mxu1 %v3336_v53 }
 0xc72   : > { %4365 = vmatmul.mubr.bf16.gmra.mxu1 %v3337_v14  ;;  %v3312_v24 = vsel %vm3298_vm1, %v3295_v45, %v4619_v32  ;;  %v3311_v56 = vsel %vm3298_vm1, %v3294_v4, %v4618_v61 }
 0xc98   : > { %v4632_v16 = vpop.permute.xlu1 %4631 }
 0xc99   : > { %v4634_v17 = vunpack.i.h.bf16 %v4632_v16  ;;  %v4633_v49 = vunpack.i.l.bf16 %v4632_v16 }
 0xc9a   : > { %v4627_v52 = vpop.permute.xlu0 %4626 }
 0xc9b   : > { %v4629_v21 = vunpack.i.h.bf16 %v4627_v52  ;;  %v4628_v25 = vunpack.i.l.bf16 %v4627_v52  ;;  %v3330_v13 = vsel %vm3315_vm2, %v3313_v39, %v4633_v49  ;;  %v3331_v7 = vsel %vm3315_vm2, %v3314_v0, %v4634_v17 }
 0xc9c   : > { %v3339_v48 = vpack.c.bf16 %v3331_v7, %v3330_v13 }
 0xc9d   : > { %v3328_v63 = vsel %vm3315_vm2, %v3311_v56, %v4628_v25  ;;  %v3329_v30 = vsel %vm3315_vm2, %v3312_v24, %v4629_v21 }
 0xc9e   : > { %v3338_v33 = vpack.c.bf16 %v3329_v30, %v3328_v63 }
 0xca0   : > { %4368 = vmatprep.mubr.bf16.mxu1 %v3338_v33 }
 0xca1   : > { %4369 = vmatmul.mubr.bf16.gmra.mxu1 %v3339_v48 }
 0xd22   : > { %v4358_v38 = vpop.f32.mrf.mxu1 }
 0xd23   : > { %v3454_v42 = vadd.f32 %v4358_v38, %v3779_v18 }
 0xd24   : > { %v3445_v1 = vpop.f32.mrf.mxu1 }
 0xd25   : > { %3510 = vst [vmem:[%s6876_s29 + $0x10] sm:$0xff] %v3454_v42  ;;  %v3446_v6 = vadd.f32 %v3779_v18, %v3445_v1 }
 0xd26   : > { %v4359_v11 = vpop.f32.mrf.mxu1 }
 0xd27   : > { %3508 = vst [vmem:[%s6876_s29] sm:$0xff] %v3446_v6  ;;  %v3457_v5 = vadd.f32 %v4359_v11, %v3779_v18 }
 0xd28   : > { %v3448_v36 = vpop.f32.mrf.mxu1 }
 0xd29   : > { %3511 = vst [vmem:[%s6876_s29 + $0x18] sm:$0xff] %v3457_v5  ;;  %v3449_v37 = vadd.f32 %v3779_v18, %v3448_v36 }
 0xd2a   : > { %v4362_v27 = vpop.f32.mrf.mxu1 }
 0xd2b   : > { %3509 = vst [vmem:[%s6876_s29 + $0x8] sm:$0xff] %v3449_v37  ;;  %v3470_v26 = vadd.f32 %v4362_v27, %v3779_v18 }
 0xd2c   : > { %v3461_v19 = vpop.f32.mrf.mxu1 }
 0xd2d   : > { %3514 = vst [vmem:[%s6876_s29 + $0x30] sm:$0xff] %v3470_v26  ;;  %v3462_v28 = vadd.f32 %v3779_v18, %v3461_v19 }
 0xd2e   : > { %v4363_v58 = vpop.f32.mrf.mxu1 }
 0xd2f   : > { %3512 = vst [vmem:[%s6876_s29 + $0x20] sm:$0xff] %v3462_v28  ;;  %v3473_v62 = vadd.f32 %v4363_v58, %v3779_v18 }
 0xd30   : > { %v3464_v8 = vpop.f32.mrf.mxu1 }
 0xd31   : > { %3515 = vst [vmem:[%s6876_s29 + $0x38] sm:$0xff] %v3473_v62  ;;  %v3465_v29 = vadd.f32 %v3779_v18, %v3464_v8 }
 0xd32   : > { %v4366_v2 = vpop.f32.mrf.mxu1 }
 0xd33   : > { %3513 = vst [vmem:[%s6876_s29 + $0x28] sm:$0xff] %v3465_v29  ;;  %v3486_v51 = vadd.f32 %v4366_v2, %v3779_v18 }
 0xd34   : > { %v3477_v50 = vpop.f32.mrf.mxu1 }
 0xd35   : > { %3518 = vst [vmem:[%s6876_s29 + $0x50] sm:$0xff] %v3486_v51  ;;  %v3478_v15 = vadd.f32 %v3779_v18, %v3477_v50 }
 0xd36   : > { %v4367_v40 = vpop.f32.mrf.mxu1 }
 0xd37   : > { %3516 = vst [vmem:[%s6876_s29 + $0x40] sm:$0xff] %v3478_v15  ;;  %v3489_v22 = vadd.f32 %v4367_v40, %v3779_v18 }
 0xd38   : > { %v3480_v43 = vpop.f32.mrf.mxu1 }
 0xd39   : > { %3519 = vst [vmem:[%s6876_s29 + $0x58] sm:$0xff] %v3489_v22  ;;  %v3481_v41 = vadd.f32 %v3779_v18, %v3480_v43 }
 0xd3b   : > { %3517 = vst [vmem:[%s6876_s29 + $0x48] sm:$0xff] %v3481_v41 }
 0xd61   : > { %v4370_v12 = vpop.f32.mrf.mxu1 }
 0xd62   : > { %v3502_v44 = vadd.f32 %v4370_v12, %v3779_v18 }
 0xd63   : > { %v3493_v23 = vpop.f32.mrf.mxu1 }
 0xd64   : > { %3522 = vst [vmem:[%s6876_s29 + $0x70] sm:$0xff] %v3502_v44  ;;  %v3494_v53 = vadd.f32 %v3779_v18, %v3493_v23 }
 0xd65   : > { %v4371_v14 = vpop.f32.mrf.mxu1 }
 0xd66   : > { %3520 = vst [vmem:[%s6876_s29 + $0x60] sm:$0xff] %v3494_v53  ;;  %v3505_v47 = vadd.f32 %v4371_v14, %v3779_v18 }
 0xd67   : > { %v3496_v20 = vpop.f32.mrf.mxu1 }
 0xd68   : > { %3523 = vst [vmem:[%s6876_s29 + $0x78] sm:$0xff] %v3505_v47  ;;  %v3497_v57 = vadd.f32 %v3779_v18, %v3496_v20 }
 0xd6a   : > { %3521 = vst [vmem:[%s6876_s29 + $0x68] sm:$0xff] %v3497_v57 }
 0xd6b   : > { %5154 = shalt.err (!%p5151_p8)
}
 0xd6c   : > { %s5155_s16 = scalar_lea.hbm %s6897_s8, 2048  ;;  %s5159_s6 = scalar_lea.hbm %s6955_s11, 4096 }
 0xd6d   : > { %p5156_p3 = scmp.ne.s32.totalorder %s6897_s8, %s5155_s16  ;;  %p5160_p2 = scmp.lt.s32.totalorder %s6897_s8, %s6955_s11 }
 0xd6e   : > { %p5161_p10 = scmp.lt.s32.totalorder %s5159_s6, %s5155_s16 }
 0xd6f   : > { %p5157_p7 = pnand %p5156_p3, %p7133_p5 }
 0xd70   : > { %p5162_p0 = por %p5161_p10, %p5160_p2 }
 0xd71   : > { %p5158_p12 = pneg %p5157_p7 }
 0xd73   : > { %p5163_p13 = pnand %p5162_p0, %p5158_p12 }
 0xd75   : > { %5166 = shalt.err (!%p5163_p13)
}
 0xd76   : > { %s5238_s13 = smov 128   ;;  %s5239_s26 = smov 8  }
 0xd77   : > { %4428 = dma.vmem_to_hbm [thread:$0]  (%p7133_p5), %s6899_s12, 2048, %s6897_s8, %s3525_s24, %s5238_s13, %s5238_s13, %s5239_s26  }
 0xd78 PF: > { %s7134_s21 = sld [smem:[#allocation24_spill]]  ;;  %s3553_s29 = sand.u32 1, %s5209_s17  }
 0xd79   : > { %p7136_p11 = scmp.ge.s32.totalorder %s5221_s20, 2  ;;  %s3554_s30 = scalar_lea.sflag [#allocation4], %s3553_s29 }
 0xd7e   : > { %p7135_p9 = scmp.ne.s32.totalorder %s7134_s21, 0 }
 0xd80   : > { %p4454_p1 = pnand %p7136_p11, %p7135_p9 }
 0xd82   : > { %p4455_p4 = pneg %p4454_p1 }
 0xd84   : > { %5204 = dma.done.wait (%p4455_p4), %s3554_s30, 2048  }
 0xd85   : > { %5206 = vsyncadd (%p4455_p4), %s3554_s30, 4294965248  ;;  %s7137_s20 = sld [smem:[#allocation22_spill]]  ;;  %s7140_s17 = smov %s5213_s18 }
 0xd86   : > { %s7138_s22 = sld [smem:[#allocation21_spill]] }
 0xd87   : > { %s7139_s19 = sld [smem:[#allocation23_spill]] }
 0xd8b   : > { %p29_p6 = scmp.ge.s32.totalorder %s7137_s20, 4  }
 0xd8c   : > { %s7141_s18 = smov %s7138_s22 }
 0xd8d   :  { %31 = sbr.rel (!%p29_p6) target bundleno = 16 (0x10), region = 142 }
 0xd92   :  { %3559 = vsyncpa [#allocation3], 1 }
 0xd93   :  { %3561 = vsyncpa [#allocation3 + $0x1], 1 }
 0xd94   :  { %3562 = vsyncpa [#allocation6], 1 }
 0xd95   :  { %3564 = vsyncpa [#allocation6 + $0x1], 1 }
 0xd96   :  { %3565 = vsyncpa [#allocation9], 1 }
 0xd97   :  { %3566 = vsyncpa [#allocation12], 1 }
 0xd98   :  { %3567 = vsyncpa [#allocation4], 1 }
 0xd99   :  { %3569 = vsyncpa [#allocation4 + $0x1], 1 }

</bundles_post_ra>
